<compile_context>
chip_gen: v7x
topology: tpu7x:2x2x1
jax: 0.10.0
libtpu: 0.0.40
codegen_flags: <defaults>
</compile_context>

<pallas_src>
import functools
import math

import jax
import jax.numpy as jnp
from jax import lax
from jax.experimental import pallas as pl
from jax.experimental.pallas import tpu as pltpu


_TRANS_B_DIMS = (((1,), (1,)), ((), ()))   # A @ B^T contraction for 2-D tiles


def _layer_norm(x, g, b, eps=1e-5):
    mu = jnp.mean(x, axis=-1, keepdims=True)
    var = jnp.mean((x - mu) ** 2, axis=-1, keepdims=True)
    return (x - mu) * lax.rsqrt(var + eps) * g + b


# --------------------------------- kernel -----------------------------------
def temporal_block_kernel(xq_ref, xkv_ref,
                          g1_ref, b1_ref,
                          wq_ref, wk_ref, wv_ref, bq_ref, bk_ref, bv_ref,
                          wo_ref, bo_ref, g2_ref, b2_ref,
                          wfc_ref, bfc_ref, wpr_ref, bpr_ref,
                          o_ref,
                          q_sc, m_sc, l_sc, acc_sc,
                          *, n_head):
    """One TemporalAttentionBlock, flash-style over KV tiles.

    Grid: (batch, q_row_tile, kv_tile).  KV is innermost / "arbitrary"; the
    online-softmax state for the current (batch, q_row_tile) lives in VMEM
    scratch; the output row tile is written only on the last KV step.
    """
    f32 = jnp.float32
    bf16 = jnp.bfloat16
    ki = pl.program_id(2)
    n_kv = pl.num_programs(2)

    # ---- per-(batch, q-tile) init: cache per-head Q, reset softmax state ----
    @pl.when(ki == 0)
    def _init():
        hq = _layer_norm(xq_ref[0].astype(f32), g1_ref[0], b1_ref[0]).astype(bf16)
        for n in range(n_head):
            # Head split lives in the weight slice (leading-axis ref index ->
            # no activation relayout).  Attention scale pre-folded into wq/bq.
            q_n = jnp.dot(hq, wq_ref[n], preferred_element_type=f32) + bq_ref[n]
            q_sc[n] = q_n.astype(bf16)
        m_sc[...] = jnp.full(m_sc.shape, -jnp.inf, m_sc.dtype)
        l_sc[...] = jnp.zeros(l_sc.shape, l_sc.dtype)
        acc_sc[...] = jnp.zeros(acc_sc.shape, acc_sc.dtype)

    # ---- flash-style online-softmax update with the current KV tile ---------
    hk = _layer_norm(xkv_ref[0].astype(f32), g1_ref[0], b1_ref[0]).astype(bf16)
    for n in range(n_head):
        k_n = (jnp.dot(hk, wk_ref[n], preferred_element_type=f32)
               + bk_ref[n]).astype(bf16)
        v_n = (jnp.dot(hk, wv_ref[n], preferred_element_type=f32)
               + bv_ref[n]).astype(bf16)
        s = lax.dot_general(q_sc[n], k_n, _TRANS_B_DIMS,
                            preferred_element_type=f32)           # (Tq, Tkv) f32
        m_prev = m_sc[n]
        m_new = jnp.maximum(m_prev, jnp.max(s, axis=-1, keepdims=True))
        alpha = jnp.exp(m_prev - m_new)                           # f32 (EUP)
        p = jnp.exp(s - m_new)
        l_sc[n] = alpha * l_sc[n] + jnp.sum(p, axis=-1, keepdims=True)
        acc_sc[n] = alpha * acc_sc[n] + jnp.dot(p.astype(bf16), v_n,
                                                preferred_element_type=f32)
        m_sc[n] = m_new

    # ---- finalize: merge heads, output proj, residual, row-tiled MLP --------
    @pl.when(ki == n_kv - 1)
    def _finalize():
        x = xq_ref[0].astype(f32)                                 # residual stream
        attn = None
        for n in range(n_head):
            o_n = (acc_sc[n] * pl.reciprocal(l_sc[n], approx=True)).astype(bf16)
            part = jnp.dot(o_n, wo_ref[n], preferred_element_type=f32)
            attn = part if attn is None else attn + part          # only (Tq, D) live
        x = x + attn + bo_ref[0]

        h2 = _layer_norm(x, g2_ref[0], b2_ref[0]).astype(bf16)
        u = jnp.dot(h2, wfc_ref[...], preferred_element_type=f32) + bfc_ref[0]
        u = u * jax.nn.sigmoid(1.702 * u)                         # QuickGELU, f32
        m = jnp.dot(u.astype(bf16), wpr_ref[...],
                    preferred_element_type=f32) + bpr_ref[0]
        o_ref[0] = (x + m).astype(o_ref.dtype)


# --------------------------------- wrapper -----------------------------------
def _tpu_vmem_capacity_bytes():
    try:
        return int(pltpu.get_tpu_info().vmem_capacity_bytes)
    except Exception:
        return 128 * 1024 * 1024          # v5e / v6e default


def _pick_tile(total, target):
    """Largest multiple-of-8 divisor of `total` that is <= target (else `total`)."""
    if total <= target:
        return total
    best = total
    for cand in range(8, target + 1, 8):
        if total % cand == 0:
            best = cand
    return best


def _const_spec(shape):
    """Grid-invariant (weight / bias) input: single-buffered if supported."""
    index_map = lambda b, qi, ki: (0,) * len(shape)
    try:
        return pl.BlockSpec(shape, index_map, pipeline_mode=pl.Buffered(1))
    except Exception:                      # older jax without BlockSpec pipeline_mode
        return pl.BlockSpec(shape, index_map)


def _prep_block_params(params, n_head):
    """Split fused qkv into per-head (n_head, D, hd) weights, fold the attention
    scale into wq/bq, reshape wo per head, cast matmul weights to bf16."""
    bf16 = jnp.bfloat16
    D = params["wo"].shape[0]
    hd = D // n_head
    scale = 1.0 / math.sqrt(hd)
    wqkv, bqkv = params["wqkv"], params["bqkv"]
    wq = wqkv[:, 0 * D:1 * D] * scale
    wk = wqkv[:, 1 * D:2 * D]
    wv = wqkv[:, 2 * D:3 * D]
    bq = bqkv[:, 0 * D:1 * D] * scale
    bk = bqkv[:, 1 * D:2 * D]
    bv = bqkv[:, 2 * D:3 * D]

    def per_head_w(w):                     # (D, D) -> (n_head, D, hd)
        return jnp.transpose(w.reshape(D, n_head, hd), (1, 0, 2)).astype(bf16)

    def per_head_b(b):                     # (1, D) -> (n_head, 1, hd), keep f32
        return b.reshape(n_head, 1, hd)

    wo3 = params["wo"].reshape(n_head, hd, D).astype(bf16)
    return (params["g1"], params["b1"],
            per_head_w(wq), per_head_w(wk), per_head_w(wv),
            per_head_b(bq), per_head_b(bk), per_head_b(bv),
            wo3, params["bo"], params["g2"], params["b2"],
            params["wfc"].astype(bf16), params["bfc"],
            params["wproj"].astype(bf16), params["bproj"])


def temporal_block(x_bsd, params, n_head, tq=None, tkv=None):
    """Run one TemporalAttentionBlock on x of shape (B, S, D)."""
    B, S, D = x_bsd.shape
    assert D % n_head == 0
    hd = D // n_head
    param_vals = _prep_block_params(params, n_head)

    vmem_cap = _tpu_vmem_capacity_bytes()
    small_vmem = vmem_cap <= 64 * 1024 * 1024          # v7x-class TensorCore
    if tq is None:
        tq = _pick_tile(S, 256)
    if tkv is None:
        tkv = _pick_tile(S, 512 if small_vmem else 1024)
    assert S % tq == 0 and S % tkv == 0, (S, tq, tkv)
    nq, nkv = S // tq, S // tkv

    in_specs = [
        pl.BlockSpec((1, tq, D), lambda b, qi, ki: (b, qi, 0)),    # residual / Q rows
        pl.BlockSpec((1, tkv, D), lambda b, qi, ki: (b, ki, 0)),   # K/V source rows
    ] + [_const_spec(p.shape) for p in param_vals]
    out_spec = pl.BlockSpec((1, tq, D), lambda b, qi, ki: (b, qi, 0))

    kernel = functools.partial(temporal_block_kernel, n_head=n_head)
    # No input_output_aliases: x rows are re-read as K/V after earlier q-row
    # outputs have been written back, so in-place aliasing would be unsafe.
    return pl.pallas_call(
        kernel,
        out_shape=jax.ShapeDtypeStruct((B, S, D), x_bsd.dtype),
        grid=(B, nq, nkv),
        in_specs=in_specs,
        out_specs=out_spec,
        scratch_shapes=[
            pltpu.VMEM((n_head, tq, hd), jnp.bfloat16),   # cached per-head Q
            pltpu.VMEM((n_head, tq, 1), jnp.float32),     # running max
            pltpu.VMEM((n_head, tq, 1), jnp.float32),     # running sum
            pltpu.VMEM((n_head, tq, hd), jnp.float32),    # output numerator
        ],
        compiler_params=pltpu.CompilerParams(
            dimension_semantics=("parallel", "parallel", "arbitrary"),
            vmem_limit_bytes=int(min(vmem_cap * 3 // 4, 100 * 1024 * 1024))),
    )(x_bsd, x_bsd, *param_vals)


def temporal_transformer_forward(x_lbd, blocks_params, n_head, T, tq=None, tkv=None):
    """Matches TemporalTransformer.forward: x is (l, b*T, d)."""
    l, bt, d = x_lbd.shape
    b = bt // T
    x = jnp.transpose(x_lbd, (1, 0, 2))          # (b*T, l, d)
    x = x.reshape(b, T * l, d)                   # (b, S, d)
    for params in blocks_params:                 # layers // 3 blocks
        x = temporal_block(x, params, n_head, tq=tq, tkv=tkv)
    x = x.reshape(b * T, l, d)
    x = jnp.transpose(x, (1, 0, 2))              # (l, b*T, d)
    return x


# ---------------------------- pure-JAX reference ----------------------------
def _block_ref(x, p, n_head):
    B, S, D = x.shape
    hd = D // n_head
    h = _layer_norm(x, p["g1"][0], p["b1"][0])
    qkv = h @ p["wqkv"] + p["bqkv"][0]
    q, k, v = jnp.split(qkv, 3, axis=-1)
    q = q.reshape(B, S, n_head, hd).transpose(0, 2, 1, 3) * (hd ** -0.5)
    k = k.reshape(B, S, n_head, hd).transpose(0, 2, 1, 3)
    v = v.reshape(B, S, n_head, hd).transpose(0, 2, 1, 3)
    s = q @ jnp.swapaxes(k, -1, -2)
    a = jax.nn.softmax(s, axis=-1)
    o = (a @ v).transpose(0, 2, 1, 3).reshape(B, S, D)
    x = x + o @ p["wo"] + p["bo"][0]
    h2 = _layer_norm(x, p["g2"][0], p["b2"][0])
    u = h2 @ p["wfc"] + p["bfc"][0]
    u = u * jax.nn.sigmoid(1.702 * u)
    return x + u @ p["wproj"] + p["bproj"][0]


def _transformer_ref(x_lbd, blocks_params, n_head, T):
    l, bt, d = x_lbd.shape
    b = bt // T
    x = jnp.transpose(x_lbd, (1, 0, 2)).reshape(b, T * l, d)
    for p in blocks_params:
        x = _block_ref(x, p, n_head)
    return jnp.transpose(x.reshape(b * T, l, d), (1, 0, 2))


# ------------------------------- param init --------------------------------
def init_block_params(key, d_model):
    ks = jax.random.split(key, 8)
    std = 0.02
    f32 = jnp.float32
    return {
        "g1": jnp.ones((1, d_model), f32),
        "b1": jnp.zeros((1, d_model), f32),
        "wqkv": std * jax.random.normal(ks[0], (d_model, 3 * d_model), f32),
        "bqkv": std * jax.random.normal(ks[1], (1, 3 * d_model), f32),
        "wo": std * jax.random.normal(ks[2], (d_model, d_model), f32),
        "bo": std * jax.random.normal(ks[3], (1, d_model), f32),
        "g2": jnp.ones((1, d_model), f32),
        "b2": jnp.zeros((1, d_model), f32),
        "wfc": std * jax.random.normal(ks[4], (d_model, 4 * d_model), f32),
        "bfc": std * jax.random.normal(ks[5], (1, 4 * d_model), f32),
        "wproj": std * jax.random.normal(ks[6], (4 * d_model, d_model), f32),
        "bproj": std * jax.random.normal(ks[7], (1, d_model), f32),
    }


if __name__ == "__main__":
    # TemporalTransformer(width=128, layers=3, heads=4, T=8) -> layers//3 = 1 block.
    # width=128 keeps the lane dimension dense (review item for the toy config);
    # l=16 gives S = T*l = 128, so tq=tkv=64 actually exercises the multi-tile
    # flash path (2 q-row tiles x 2 kv tiles) against the f32 reference.
    width, layers, heads, T = 128, 3, 4, 8
    l, b = 16, 2
    bt = b * T

    key = jax.random.PRNGKey(0)
    kx, kp = jax.random.split(key)
    x = jax.random.normal(kx, (l, bt, width), jnp.float32)      # (l, b*T, d)

    n_blocks = layers // 3
    blocks_params = [init_block_params(jax.random.fold_in(kp, i), width)
                     for i in range(n_blocks)]

    fwd = jax.jit(functools.partial(temporal_transformer_forward,
                                    n_head=heads, T=T, tq=64, tkv=64))
    out = jax.block_until_ready(fwd(x, blocks_params))
    assert out.shape == (l, bt, width)

    ref = jax.block_until_ready(_transformer_ref(x, blocks_params, heads, T))
    # bf16 matmul inputs (f32 accumulation) + approx reciprocal -> loose tol vs f32 ref.
    err = float(jnp.max(jnp.abs(out - ref)))
    assert jnp.allclose(out, ref, atol=5e-2, rtol=5e-2), f"max abs err = {err}"

    print("KERNEL_OK")
</pallas_src>

<mosaic_0001>
module attributes {stable_mosaic.version = 11 : i64} {
  func.func @temporal_block_kernel(%arg0: i32, %arg1: i32, %arg2: i32, %arg3: memref<1x64x128xf32, #tpu.memory_space<vmem>>, %arg4: memref<1x64x128xf32, #tpu.memory_space<vmem>>, %arg5: memref<1x128xf32, #tpu.memory_space<vmem>>, %arg6: memref<1x128xf32, #tpu.memory_space<vmem>>, %arg7: memref<4x128x32xbf16, #tpu.memory_space<vmem>>, %arg8: memref<4x128x32xbf16, #tpu.memory_space<vmem>>, %arg9: memref<4x128x32xbf16, #tpu.memory_space<vmem>>, %arg10: memref<4x1x32xf32, #tpu.memory_space<vmem>>, %arg11: memref<4x1x32xf32, #tpu.memory_space<vmem>>, %arg12: memref<4x1x32xf32, #tpu.memory_space<vmem>>, %arg13: memref<4x32x128xbf16, #tpu.memory_space<vmem>>, %arg14: memref<1x128xf32, #tpu.memory_space<vmem>>, %arg15: memref<1x128xf32, #tpu.memory_space<vmem>>, %arg16: memref<1x128xf32, #tpu.memory_space<vmem>>, %arg17: memref<128x512xbf16, #tpu.memory_space<vmem>>, %arg18: memref<1x512xf32, #tpu.memory_space<vmem>>, %arg19: memref<512x128xbf16, #tpu.memory_space<vmem>>, %arg20: memref<1x128xf32, #tpu.memory_space<vmem>>, %arg21: memref<1x64x128xf32, #tpu.memory_space<vmem>>, %arg22: memref<4x64x32xbf16, #tpu.memory_space<vmem>>, %arg23: memref<4x64x1xf32, #tpu.memory_space<vmem>>, %arg24: memref<4x64x1xf32, #tpu.memory_space<vmem>>, %arg25: memref<4x64x32xf32, #tpu.memory_space<vmem>>) attributes {dimension_semantics = [#tpu.dimension_semantics<parallel>, #tpu.dimension_semantics<parallel>, #tpu.dimension_semantics<arbitrary>], iteration_bounds = array<i64: 2, 2, 2>, scalar_prefetch = 0 : i64, scratch_operands = 4 : i64, tpu.core_type = #tpu.core_type<tc>, window_params = [{transform_indices = @transform_0, window_bounds = array<i64: 1, 64, 128>}, {transform_indices = @transform_1, window_bounds = array<i64: 1, 64, 128>}, {pipeline_mode = #tpu.pipeline_mode<synchronous>, transform_indices = @transform_2, window_bounds = array<i64: 1, 128>}, {pipeline_mode = #tpu.pipeline_mode<synchronous>, transform_indices = @transform_3, window_bounds = array<i64: 1, 128>}, {pipeline_mode = #tpu.pipeline_mode<synchronous>, transform_indices = @transform_4, window_bounds = array<i64: 4, 128, 32>}, {pipeline_mode = #tpu.pipeline_mode<synchronous>, transform_indices = @transform_5, window_bounds = array<i64: 4, 128, 32>}, {pipeline_mode = #tpu.pipeline_mode<synchronous>, transform_indices = @transform_6, window_bounds = array<i64: 4, 128, 32>}, {pipeline_mode = #tpu.pipeline_mode<synchronous>, transform_indices = @transform_7, window_bounds = array<i64: 4, 1, 32>}, {pipeline_mode = #tpu.pipeline_mode<synchronous>, transform_indices = @transform_8, window_bounds = array<i64: 4, 1, 32>}, {pipeline_mode = #tpu.pipeline_mode<synchronous>, transform_indices = @transform_9, window_bounds = array<i64: 4, 1, 32>}, {pipeline_mode = #tpu.pipeline_mode<synchronous>, transform_indices = @transform_10, window_bounds = array<i64: 4, 32, 128>}, {pipeline_mode = #tpu.pipeline_mode<synchronous>, transform_indices = @transform_11, window_bounds = array<i64: 1, 128>}, {pipeline_mode = #tpu.pipeline_mode<synchronous>, transform_indices = @transform_12, window_bounds = array<i64: 1, 128>}, {pipeline_mode = #tpu.pipeline_mode<synchronous>, transform_indices = @transform_13, window_bounds = array<i64: 1, 128>}, {pipeline_mode = #tpu.pipeline_mode<synchronous>, transform_indices = @transform_14, window_bounds = array<i64: 128, 512>}, {pipeline_mode = #tpu.pipeline_mode<synchronous>, transform_indices = @transform_15, window_bounds = array<i64: 1, 512>}, {pipeline_mode = #tpu.pipeline_mode<synchronous>, transform_indices = @transform_16, window_bounds = array<i64: 512, 128>}, {pipeline_mode = #tpu.pipeline_mode<synchronous>, transform_indices = @transform_17, window_bounds = array<i64: 1, 128>}, {transform_indices = @transform_18, window_bounds = array<i64: 1, 64, 128>}]} {
    %c0_i32 = arith.constant 0 : i32
    %0 = arith.cmpi eq, %arg2, %c0_i32 : i32
    %1 = arith.extui %0 : i1 to i32
    %c0_i32_0 = arith.constant 0 : i32
    %2 = arith.cmpi ne, %1, %c0_i32_0 : i32
    scf.if %2 {
      %c0_165 = arith.constant 0 : index
      %c0_166 = arith.constant 0 : index
      %c0_167 = arith.constant 0 : index
      %241 = vector.load %arg3[%c0_165, %c0_166, %c0_167] : memref<1x64x128xf32, #tpu.memory_space<vmem>>, vector<1x64x128xf32>
      %242 = vector.shape_cast %241 : vector<1x64x128xf32> to vector<64x128xf32>
      %c0_168 = arith.constant 0 : index
      %c0_169 = arith.constant 0 : index
      %243 = vector.load %arg5[%c0_168, %c0_169] : memref<1x128xf32, #tpu.memory_space<vmem>>, vector<1x128xf32>
      %244 = vector.shape_cast %243 : vector<1x128xf32> to vector<128xf32>
      %c0_170 = arith.constant 0 : index
      %c0_171 = arith.constant 0 : index
      %245 = vector.load %arg6[%c0_170, %c0_171] : memref<1x128xf32, #tpu.memory_space<vmem>>, vector<1x128xf32>
      %246 = vector.shape_cast %245 : vector<1x128xf32> to vector<128xf32>
      %cst_172 = arith.constant dense<0.000000e+00> : vector<64xf32>
      %247 = vector.multi_reduction <add>, %242, %cst_172 [1] : vector<64x128xf32> to vector<64xf32>
      %248 = vector.shape_cast %247 : vector<64xf32> to vector<64x1xf32>
      %cst_173 = arith.constant 1.280000e+02 : f32
      %249 = vector.broadcast %cst_173 : f32 to vector<64x1xf32>
      %250 = arith.divf %248, %249 : vector<64x1xf32>
      %251 = vector.broadcast %250 : vector<64x1xf32> to vector<64x128xf32>
      %252 = arith.subf %242, %251 : vector<64x128xf32>
      %253 = arith.mulf %252, %252 : vector<64x128xf32>
      %cst_174 = arith.constant dense<0.000000e+00> : vector<64xf32>
      %254 = vector.multi_reduction <add>, %253, %cst_174 [1] : vector<64x128xf32> to vector<64xf32>
      %255 = vector.shape_cast %254 : vector<64xf32> to vector<64x1xf32>
      %cst_175 = arith.constant 1.280000e+02 : f32
      %256 = vector.broadcast %cst_175 : f32 to vector<64x1xf32>
      %257 = arith.divf %255, %256 : vector<64x1xf32>
      %258 = vector.broadcast %250 : vector<64x1xf32> to vector<64x128xf32>
      %259 = arith.subf %242, %258 : vector<64x128xf32>
      %cst_176 = arith.constant 9.99999974E-6 : f32
      %260 = vector.broadcast %cst_176 : f32 to vector<64x1xf32>
      %261 = arith.addf %257, %260 : vector<64x1xf32>
      %262 = math.rsqrt %261 : vector<64x1xf32>
      %263 = vector.broadcast %262 : vector<64x1xf32> to vector<64x128xf32>
      %264 = arith.mulf %259, %263 : vector<64x128xf32>
      %265 = vector.shape_cast %244 : vector<128xf32> to vector<1x128xf32>
      %266 = vector.broadcast %265 : vector<1x128xf32> to vector<64x128xf32>
      %267 = arith.mulf %264, %266 : vector<64x128xf32>
      %268 = vector.shape_cast %246 : vector<128xf32> to vector<1x128xf32>
      %269 = vector.broadcast %268 : vector<1x128xf32> to vector<64x128xf32>
      %270 = arith.addf %267, %269 : vector<64x128xf32>
      %271 = arith.truncf %270 : vector<64x128xf32> to vector<64x128xbf16>
      %c0_177 = arith.constant 0 : index
      %c0_178 = arith.constant 0 : index
      %c0_179 = arith.constant 0 : index
      %272 = vector.load %arg7[%c0_177, %c0_178, %c0_179] : memref<4x128x32xbf16, #tpu.memory_space<vmem>>, vector<1x128x32xbf16>
      %273 = vector.shape_cast %272 : vector<1x128x32xbf16> to vector<128x32xbf16>
      %cst_180 = arith.constant dense<0.000000e+00> : vector<64x32xf32>
      %274 = tpu.matmul %271, %273, %cst_180 {dimension_numbers = #tpu.dot_dimension_numbers<[1], [0], [0], [1], [0, 0, 1, 1], [], []>} : vector<64x128xbf16>, vector<128x32xbf16>, vector<64x32xf32> -> vector<64x32xf32>
      %c0_181 = arith.constant 0 : index
      %c0_182 = arith.constant 0 : index
      %c0_183 = arith.constant 0 : index
      %275 = vector.load %arg10[%c0_181, %c0_182, %c0_183] : memref<4x1x32xf32, #tpu.memory_space<vmem>>, vector<1x1x32xf32>
      %276 = vector.shape_cast %275 : vector<1x1x32xf32> to vector<1x32xf32>
      %277 = vector.broadcast %276 : vector<1x32xf32> to vector<64x32xf32>
      %278 = arith.addf %274, %277 : vector<64x32xf32>
      %279 = arith.truncf %278 : vector<64x32xf32> to vector<64x32xbf16>
      %c0_184 = arith.constant 0 : index
      %c0_185 = arith.constant 0 : index
      %c0_186 = arith.constant 0 : index
      %280 = vector.load %arg22[%c0_184, %c0_185, %c0_186] : memref<4x64x32xbf16, #tpu.memory_space<vmem>>, vector<1x64x32xbf16>
      %281 = vector.shape_cast %280 : vector<1x64x32xbf16> to vector<64x32xbf16>
      %282 = vector.shape_cast %279 : vector<64x32xbf16> to vector<1x64x32xbf16>
      tpu.vector_store %arg22[%c0_184, %c0_185, %c0_186], %282 {strides = array<i32>} : memref<4x64x32xbf16, #tpu.memory_space<vmem>>, vector<1x64x32xbf16>,
      %c1_187 = arith.constant 1 : index
      %c0_188 = arith.constant 0 : index
      %c0_189 = arith.constant 0 : index
      %283 = vector.load %arg7[%c1_187, %c0_188, %c0_189] : memref<4x128x32xbf16, #tpu.memory_space<vmem>>, vector<1x128x32xbf16>
      %284 = vector.shape_cast %283 : vector<1x128x32xbf16> to vector<128x32xbf16>
      %cst_190 = arith.constant dense<0.000000e+00> : vector<64x32xf32>
      %285 = tpu.matmul %271, %284, %cst_190 {dimension_numbers = #tpu.dot_dimension_numbers<[1], [0], [0], [1], [0, 0, 1, 1], [], []>} : vector<64x128xbf16>, vector<128x32xbf16>, vector<64x32xf32> -> vector<64x32xf32>
      %c1_191 = arith.constant 1 : index
      %c0_192 = arith.constant 0 : index
      %c0_193 = arith.constant 0 : index
      %286 = vector.load %arg10[%c1_191, %c0_192, %c0_193] : memref<4x1x32xf32, #tpu.memory_space<vmem>>, vector<1x1x32xf32>
      %287 = vector.shape_cast %286 : vector<1x1x32xf32> to vector<1x32xf32>
      %288 = vector.broadcast %287 : vector<1x32xf32> to vector<64x32xf32>
      %289 = arith.addf %285, %288 : vector<64x32xf32>
      %290 = arith.truncf %289 : vector<64x32xf32> to vector<64x32xbf16>
      %c1_194 = arith.constant 1 : index
      %c0_195 = arith.constant 0 : index
      %c0_196 = arith.constant 0 : index
      %291 = vector.load %arg22[%c1_194, %c0_195, %c0_196] : memref<4x64x32xbf16, #tpu.memory_space<vmem>>, vector<1x64x32xbf16>
      %292 = vector.shape_cast %291 : vector<1x64x32xbf16> to vector<64x32xbf16>
      %293 = vector.shape_cast %290 : vector<64x32xbf16> to vector<1x64x32xbf16>
      tpu.vector_store %arg22[%c1_194, %c0_195, %c0_196], %293 {strides = array<i32>} : memref<4x64x32xbf16, #tpu.memory_space<vmem>>, vector<1x64x32xbf16>,
      %c2_197 = arith.constant 2 : index
      %c0_198 = arith.constant 0 : index
      %c0_199 = arith.constant 0 : index
      %294 = vector.load %arg7[%c2_197, %c0_198, %c0_199] : memref<4x128x32xbf16, #tpu.memory_space<vmem>>, vector<1x128x32xbf16>
      %295 = vector.shape_cast %294 : vector<1x128x32xbf16> to vector<128x32xbf16>
      %cst_200 = arith.constant dense<0.000000e+00> : vector<64x32xf32>
      %296 = tpu.matmul %271, %295, %cst_200 {dimension_numbers = #tpu.dot_dimension_numbers<[1], [0], [0], [1], [0, 0, 1, 1], [], []>} : vector<64x128xbf16>, vector<128x32xbf16>, vector<64x32xf32> -> vector<64x32xf32>
      %c2_201 = arith.constant 2 : index
      %c0_202 = arith.constant 0 : index
      %c0_203 = arith.constant 0 : index
      %297 = vector.load %arg10[%c2_201, %c0_202, %c0_203] : memref<4x1x32xf32, #tpu.memory_space<vmem>>, vector<1x1x32xf32>
      %298 = vector.shape_cast %297 : vector<1x1x32xf32> to vector<1x32xf32>
      %299 = vector.broadcast %298 : vector<1x32xf32> to vector<64x32xf32>
      %300 = arith.addf %296, %299 : vector<64x32xf32>
      %301 = arith.truncf %300 : vector<64x32xf32> to vector<64x32xbf16>
      %c2_204 = arith.constant 2 : index
      %c0_205 = arith.constant 0 : index
      %c0_206 = arith.constant 0 : index
      %302 = vector.load %arg22[%c2_204, %c0_205, %c0_206] : memref<4x64x32xbf16, #tpu.memory_space<vmem>>, vector<1x64x32xbf16>
      %303 = vector.shape_cast %302 : vector<1x64x32xbf16> to vector<64x32xbf16>
      %304 = vector.shape_cast %301 : vector<64x32xbf16> to vector<1x64x32xbf16>
      tpu.vector_store %arg22[%c2_204, %c0_205, %c0_206], %304 {strides = array<i32>} : memref<4x64x32xbf16, #tpu.memory_space<vmem>>, vector<1x64x32xbf16>,
      %c3_207 = arith.constant 3 : index
      %c0_208 = arith.constant 0 : index
      %c0_209 = arith.constant 0 : index
      %305 = vector.load %arg7[%c3_207, %c0_208, %c0_209] : memref<4x128x32xbf16, #tpu.memory_space<vmem>>, vector<1x128x32xbf16>
      %306 = vector.shape_cast %305 : vector<1x128x32xbf16> to vector<128x32xbf16>
      %cst_210 = arith.constant dense<0.000000e+00> : vector<64x32xf32>
      %307 = tpu.matmul %271, %306, %cst_210 {dimension_numbers = #tpu.dot_dimension_numbers<[1], [0], [0], [1], [0, 0, 1, 1], [], []>} : vector<64x128xbf16>, vector<128x32xbf16>, vector<64x32xf32> -> vector<64x32xf32>
      %c3_211 = arith.constant 3 : index
      %c0_212 = arith.constant 0 : index
      %c0_213 = arith.constant 0 : index
      %308 = vector.load %arg10[%c3_211, %c0_212, %c0_213] : memref<4x1x32xf32, #tpu.memory_space<vmem>>, vector<1x1x32xf32>
      %309 = vector.shape_cast %308 : vector<1x1x32xf32> to vector<1x32xf32>
      %310 = vector.broadcast %309 : vector<1x32xf32> to vector<64x32xf32>
      %311 = arith.addf %307, %310 : vector<64x32xf32>
      %312 = arith.truncf %311 : vector<64x32xf32> to vector<64x32xbf16>
      %c3_214 = arith.constant 3 : index
      %c0_215 = arith.constant 0 : index
      %c0_216 = arith.constant 0 : index
      %313 = vector.load %arg22[%c3_214, %c0_215, %c0_216] : memref<4x64x32xbf16, #tpu.memory_space<vmem>>, vector<1x64x32xbf16>
      %314 = vector.shape_cast %313 : vector<1x64x32xbf16> to vector<64x32xbf16>
      %315 = vector.shape_cast %312 : vector<64x32xbf16> to vector<1x64x32xbf16>
      tpu.vector_store %arg22[%c3_214, %c0_215, %c0_216], %315 {strides = array<i32>} : memref<4x64x32xbf16, #tpu.memory_space<vmem>>, vector<1x64x32xbf16>,
      %cst_217 = arith.constant 0xFF800000 : f32
      %316 = vector.broadcast %cst_217 : f32 to vector<4x64x1xf32>
      %c0_218 = arith.constant 0 : index
      %c0_219 = arith.constant 0 : index
      %c0_220 = arith.constant 0 : index
      %317 = vector.load %arg23[%c0_218, %c0_219, %c0_220] : memref<4x64x1xf32, #tpu.memory_space<vmem>>, vector<4x64x1xf32>
      tpu.vector_store %arg23[%c0_218, %c0_219, %c0_220], %316 {strides = array<i32>} : memref<4x64x1xf32, #tpu.memory_space<vmem>>, vector<4x64x1xf32>,
      %cst_221 = arith.constant 0.000000e+00 : f32
      %318 = vector.broadcast %cst_221 : f32 to vector<4x64x1xf32>
      %c0_222 = arith.constant 0 : index
      %c0_223 = arith.constant 0 : index
      %c0_224 = arith.constant 0 : index
      %319 = vector.load %arg24[%c0_222, %c0_223, %c0_224] : memref<4x64x1xf32, #tpu.memory_space<vmem>>, vector<4x64x1xf32>
      tpu.vector_store %arg24[%c0_222, %c0_223, %c0_224], %318 {strides = array<i32>} : memref<4x64x1xf32, #tpu.memory_space<vmem>>, vector<4x64x1xf32>,
      %cst_225 = arith.constant 0.000000e+00 : f32
      %320 = vector.broadcast %cst_225 : f32 to vector<4x64x32xf32>
      %c0_226 = arith.constant 0 : index
      %c0_227 = arith.constant 0 : index
      %c0_228 = arith.constant 0 : index
      %321 = vector.load %arg25[%c0_226, %c0_227, %c0_228] : memref<4x64x32xf32, #tpu.memory_space<vmem>>, vector<4x64x32xf32>
      tpu.vector_store %arg25[%c0_226, %c0_227, %c0_228], %320 {strides = array<i32>} : memref<4x64x32xf32, #tpu.memory_space<vmem>>, vector<4x64x32xf32>,
    } else {
    }
    %c0 = arith.constant 0 : index
    %c0_1 = arith.constant 0 : index
    %c0_2 = arith.constant 0 : index
    %3 = vector.load %arg4[%c0, %c0_1, %c0_2] : memref<1x64x128xf32, #tpu.memory_space<vmem>>, vector<1x64x128xf32>
    %4 = vector.shape_cast %3 : vector<1x64x128xf32> to vector<64x128xf32>
    %c0_3 = arith.constant 0 : index
    %c0_4 = arith.constant 0 : index
    %5 = vector.load %arg5[%c0_3, %c0_4] : memref<1x128xf32, #tpu.memory_space<vmem>>, vector<1x128xf32>
    %6 = vector.shape_cast %5 : vector<1x128xf32> to vector<128xf32>
    %c0_5 = arith.constant 0 : index
    %c0_6 = arith.constant 0 : index
    %7 = vector.load %arg6[%c0_5, %c0_6] : memref<1x128xf32, #tpu.memory_space<vmem>>, vector<1x128xf32>
    %8 = vector.shape_cast %7 : vector<1x128xf32> to vector<128xf32>
    %cst = arith.constant dense<0.000000e+00> : vector<64xf32>
    %9 = vector.multi_reduction <add>, %4, %cst [1] : vector<64x128xf32> to vector<64xf32>
    %10 = vector.shape_cast %9 : vector<64xf32> to vector<64x1xf32>
    %cst_7 = arith.constant 1.280000e+02 : f32
    %11 = vector.broadcast %cst_7 : f32 to vector<64x1xf32>
    %12 = arith.divf %10, %11 : vector<64x1xf32>
    %13 = vector.broadcast %12 : vector<64x1xf32> to vector<64x128xf32>
    %14 = arith.subf %4, %13 : vector<64x128xf32>
    %15 = arith.mulf %14, %14 : vector<64x128xf32>
    %cst_8 = arith.constant dense<0.000000e+00> : vector<64xf32>
    %16 = vector.multi_reduction <add>, %15, %cst_8 [1] : vector<64x128xf32> to vector<64xf32>
    %17 = vector.shape_cast %16 : vector<64xf32> to vector<64x1xf32>
    %cst_9 = arith.constant 1.280000e+02 : f32
    %18 = vector.broadcast %cst_9 : f32 to vector<64x1xf32>
    %19 = arith.divf %17, %18 : vector<64x1xf32>
    %20 = vector.broadcast %12 : vector<64x1xf32> to vector<64x128xf32>
    %21 = arith.subf %4, %20 : vector<64x128xf32>
    %cst_10 = arith.constant 9.99999974E-6 : f32
    %22 = vector.broadcast %cst_10 : f32 to vector<64x1xf32>
    %23 = arith.addf %19, %22 : vector<64x1xf32>
    %24 = math.rsqrt %23 : vector<64x1xf32>
    %25 = vector.broadcast %24 : vector<64x1xf32> to vector<64x128xf32>
    %26 = arith.mulf %21, %25 : vector<64x128xf32>
    %27 = vector.shape_cast %6 : vector<128xf32> to vector<1x128xf32>
    %28 = vector.broadcast %27 : vector<1x128xf32> to vector<64x128xf32>
    %29 = arith.mulf %26, %28 : vector<64x128xf32>
    %30 = vector.shape_cast %8 : vector<128xf32> to vector<1x128xf32>
    %31 = vector.broadcast %30 : vector<1x128xf32> to vector<64x128xf32>
    %32 = arith.addf %29, %31 : vector<64x128xf32>
    %33 = arith.truncf %32 : vector<64x128xf32> to vector<64x128xbf16>
    %c0_11 = arith.constant 0 : index
    %c0_12 = arith.constant 0 : index
    %c0_13 = arith.constant 0 : index
    %34 = vector.load %arg8[%c0_11, %c0_12, %c0_13] : memref<4x128x32xbf16, #tpu.memory_space<vmem>>, vector<1x128x32xbf16>
    %35 = vector.shape_cast %34 : vector<1x128x32xbf16> to vector<128x32xbf16>
    %cst_14 = arith.constant dense<0.000000e+00> : vector<64x32xf32>
    %36 = tpu.matmul %33, %35, %cst_14 {dimension_numbers = #tpu.dot_dimension_numbers<[1], [0], [0], [1], [0, 0, 1, 1], [], []>} : vector<64x128xbf16>, vector<128x32xbf16>, vector<64x32xf32> -> vector<64x32xf32>
    %c0_15 = arith.constant 0 : index
    %c0_16 = arith.constant 0 : index
    %c0_17 = arith.constant 0 : index
    %37 = vector.load %arg11[%c0_15, %c0_16, %c0_17] : memref<4x1x32xf32, #tpu.memory_space<vmem>>, vector<1x1x32xf32>
    %38 = vector.shape_cast %37 : vector<1x1x32xf32> to vector<1x32xf32>
    %39 = vector.broadcast %38 : vector<1x32xf32> to vector<64x32xf32>
    %40 = arith.addf %36, %39 : vector<64x32xf32>
    %41 = arith.truncf %40 : vector<64x32xf32> to vector<64x32xbf16>
    %c0_18 = arith.constant 0 : index
    %c0_19 = arith.constant 0 : index
    %c0_20 = arith.constant 0 : index
    %42 = vector.load %arg9[%c0_18, %c0_19, %c0_20] : memref<4x128x32xbf16, #tpu.memory_space<vmem>>, vector<1x128x32xbf16>
    %43 = vector.shape_cast %42 : vector<1x128x32xbf16> to vector<128x32xbf16>
    %cst_21 = arith.constant dense<0.000000e+00> : vector<64x32xf32>
    %44 = tpu.matmul %33, %43, %cst_21 {dimension_numbers = #tpu.dot_dimension_numbers<[1], [0], [0], [1], [0, 0, 1, 1], [], []>} : vector<64x128xbf16>, vector<128x32xbf16>, vector<64x32xf32> -> vector<64x32xf32>
    %c0_22 = arith.constant 0 : index
    %c0_23 = arith.constant 0 : index
    %c0_24 = arith.constant 0 : index
    %45 = vector.load %arg12[%c0_22, %c0_23, %c0_24] : memref<4x1x32xf32, #tpu.memory_space<vmem>>, vector<1x1x32xf32>
    %46 = vector.shape_cast %45 : vector<1x1x32xf32> to vector<1x32xf32>
    %47 = vector.broadcast %46 : vector<1x32xf32> to vector<64x32xf32>
    %48 = arith.addf %44, %47 : vector<64x32xf32>
    %49 = arith.truncf %48 : vector<64x32xf32> to vector<64x32xbf16>
    %c0_25 = arith.constant 0 : index
    %c0_26 = arith.constant 0 : index
    %c0_27 = arith.constant 0 : index
    %50 = vector.load %arg22[%c0_25, %c0_26, %c0_27] : memref<4x64x32xbf16, #tpu.memory_space<vmem>>, vector<1x64x32xbf16>
    %51 = vector.shape_cast %50 : vector<1x64x32xbf16> to vector<64x32xbf16>
    %cst_28 = arith.constant dense<0.000000e+00> : vector<64x64xf32>
    %52 = tpu.matmul %51, %41, %cst_28 {dimension_numbers = #tpu.dot_dimension_numbers<[1], [1], [0], [0], [0, 0, 1, 0], [], []>} : vector<64x32xbf16>, vector<64x32xbf16>, vector<64x64xf32> -> vector<64x64xf32>
    %c0_29 = arith.constant 0 : index
    %c0_30 = arith.constant 0 : index
    %c0_31 = arith.constant 0 : index
    %53 = vector.load %arg23[%c0_29, %c0_30, %c0_31] : memref<4x64x1xf32, #tpu.memory_space<vmem>>, vector<1x64x1xf32>
    %54 = vector.shape_cast %53 : vector<1x64x1xf32> to vector<64x1xf32>
    %cst_32 = arith.constant dense<0xFF800000> : vector<64xf32>
    %55 = vector.multi_reduction <maximumf>, %52, %cst_32 [1] : vector<64x64xf32> to vector<64xf32>
    %56 = vector.shape_cast %55 : vector<64xf32> to vector<64x1xf32>
    %57 = arith.maximumf %54, %56 : vector<64x1xf32>
    %58 = arith.subf %54, %57 : vector<64x1xf32>
    %59 = math.exp %58 : vector<64x1xf32>
    %60 = vector.broadcast %57 : vector<64x1xf32> to vector<64x64xf32>
    %61 = arith.subf %52, %60 : vector<64x64xf32>
    %62 = math.exp %61 : vector<64x64xf32>
    %c0_33 = arith.constant 0 : index
    %c0_34 = arith.constant 0 : index
    %c0_35 = arith.constant 0 : index
    %63 = vector.load %arg24[%c0_33, %c0_34, %c0_35] : memref<4x64x1xf32, #tpu.memory_space<vmem>>, vector<1x64x1xf32>
    %64 = vector.shape_cast %63 : vector<1x64x1xf32> to vector<64x1xf32>
    %65 = arith.mulf %59, %64 : vector<64x1xf32>
    %cst_36 = arith.constant dense<0.000000e+00> : vector<64xf32>
    %66 = vector.multi_reduction <add>, %62, %cst_36 [1] : vector<64x64xf32> to vector<64xf32>
    %67 = vector.shape_cast %66 : vector<64xf32> to vector<64x1xf32>
    %68 = arith.addf %65, %67 : vector<64x1xf32>
    %c0_37 = arith.constant 0 : index
    %c0_38 = arith.constant 0 : index
    %c0_39 = arith.constant 0 : index
    %69 = vector.load %arg24[%c0_37, %c0_38, %c0_39] : memref<4x64x1xf32, #tpu.memory_space<vmem>>, vector<1x64x1xf32>
    %70 = vector.shape_cast %69 : vector<1x64x1xf32> to vector<64x1xf32>
    %71 = vector.shape_cast %68 : vector<64x1xf32> to vector<1x64x1xf32>
    tpu.vector_store %arg24[%c0_37, %c0_38, %c0_39], %71 {strides = array<i32>} : memref<4x64x1xf32, #tpu.memory_space<vmem>>, vector<1x64x1xf32>,
    %c0_40 = arith.constant 0 : index
    %c0_41 = arith.constant 0 : index
    %c0_42 = arith.constant 0 : index
    %72 = vector.load %arg25[%c0_40, %c0_41, %c0_42] : memref<4x64x32xf32, #tpu.memory_space<vmem>>, vector<1x64x32xf32>
    %73 = vector.shape_cast %72 : vector<1x64x32xf32> to vector<64x32xf32>
    %74 = vector.broadcast %59 : vector<64x1xf32> to vector<64x32xf32>
    %75 = arith.mulf %74, %73 : vector<64x32xf32>
    %76 = arith.truncf %62 : vector<64x64xf32> to vector<64x64xbf16>
    %cst_43 = arith.constant dense<0.000000e+00> : vector<64x32xf32>
    %77 = tpu.matmul %76, %49, %cst_43 {dimension_numbers = #tpu.dot_dimension_numbers<[1], [0], [0], [1], [0, 0, 1, 1], [], []>} : vector<64x64xbf16>, vector<64x32xbf16>, vector<64x32xf32> -> vector<64x32xf32>
    %78 = arith.addf %75, %77 : vector<64x32xf32>
    %c0_44 = arith.constant 0 : index
    %c0_45 = arith.constant 0 : index
    %c0_46 = arith.constant 0 : index
    %79 = vector.load %arg25[%c0_44, %c0_45, %c0_46] : memref<4x64x32xf32, #tpu.memory_space<vmem>>, vector<1x64x32xf32>
    %80 = vector.shape_cast %79 : vector<1x64x32xf32> to vector<64x32xf32>
    %81 = vector.shape_cast %78 : vector<64x32xf32> to vector<1x64x32xf32>
    tpu.vector_store %arg25[%c0_44, %c0_45, %c0_46], %81 {strides = array<i32>} : memref<4x64x32xf32, #tpu.memory_space<vmem>>, vector<1x64x32xf32>,
    %c0_47 = arith.constant 0 : index
    %c0_48 = arith.constant 0 : index
    %c0_49 = arith.constant 0 : index
    %82 = vector.load %arg23[%c0_47, %c0_48, %c0_49] : memref<4x64x1xf32, #tpu.memory_space<vmem>>, vector<1x64x1xf32>
    %83 = vector.shape_cast %82 : vector<1x64x1xf32> to vector<64x1xf32>
    %84 = vector.shape_cast %57 : vector<64x1xf32> to vector<1x64x1xf32>
    tpu.vector_store %arg23[%c0_47, %c0_48, %c0_49], %84 {strides = array<i32>} : memref<4x64x1xf32, #tpu.memory_space<vmem>>, vector<1x64x1xf32>,
    %c1 = arith.constant 1 : index
    %c0_50 = arith.constant 0 : index
    %c0_51 = arith.constant 0 : index
    %85 = vector.load %arg8[%c1, %c0_50, %c0_51] : memref<4x128x32xbf16, #tpu.memory_space<vmem>>, vector<1x128x32xbf16>
    %86 = vector.shape_cast %85 : vector<1x128x32xbf16> to vector<128x32xbf16>
    %cst_52 = arith.constant dense<0.000000e+00> : vector<64x32xf32>
    %87 = tpu.matmul %33, %86, %cst_52 {dimension_numbers = #tpu.dot_dimension_numbers<[1], [0], [0], [1], [0, 0, 1, 1], [], []>} : vector<64x128xbf16>, vector<128x32xbf16>, vector<64x32xf32> -> vector<64x32xf32>
    %c1_53 = arith.constant 1 : index
    %c0_54 = arith.constant 0 : index
    %c0_55 = arith.constant 0 : index
    %88 = vector.load %arg11[%c1_53, %c0_54, %c0_55] : memref<4x1x32xf32, #tpu.memory_space<vmem>>, vector<1x1x32xf32>
    %89 = vector.shape_cast %88 : vector<1x1x32xf32> to vector<1x32xf32>
    %90 = vector.broadcast %89 : vector<1x32xf32> to vector<64x32xf32>
    %91 = arith.addf %87, %90 : vector<64x32xf32>
    %92 = arith.truncf %91 : vector<64x32xf32> to vector<64x32xbf16>
    %c1_56 = arith.constant 1 : index
    %c0_57 = arith.constant 0 : index
    %c0_58 = arith.constant 0 : index
    %93 = vector.load %arg9[%c1_56, %c0_57, %c0_58] : memref<4x128x32xbf16, #tpu.memory_space<vmem>>, vector<1x128x32xbf16>
    %94 = vector.shape_cast %93 : vector<1x128x32xbf16> to vector<128x32xbf16>
    %cst_59 = arith.constant dense<0.000000e+00> : vector<64x32xf32>
    %95 = tpu.matmul %33, %94, %cst_59 {dimension_numbers = #tpu.dot_dimension_numbers<[1], [0], [0], [1], [0, 0, 1, 1], [], []>} : vector<64x128xbf16>, vector<128x32xbf16>, vector<64x32xf32> -> vector<64x32xf32>
    %c1_60 = arith.constant 1 : index
    %c0_61 = arith.constant 0 : index
    %c0_62 = arith.constant 0 : index
    %96 = vector.load %arg12[%c1_60, %c0_61, %c0_62] : memref<4x1x32xf32, #tpu.memory_space<vmem>>, vector<1x1x32xf32>
    %97 = vector.shape_cast %96 : vector<1x1x32xf32> to vector<1x32xf32>
    %98 = vector.broadcast %97 : vector<1x32xf32> to vector<64x32xf32>
    %99 = arith.addf %95, %98 : vector<64x32xf32>
    %100 = arith.truncf %99 : vector<64x32xf32> to vector<64x32xbf16>
    %c1_63 = arith.constant 1 : index
    %c0_64 = arith.constant 0 : index
    %c0_65 = arith.constant 0 : index
    %101 = vector.load %arg22[%c1_63, %c0_64, %c0_65] : memref<4x64x32xbf16, #tpu.memory_space<vmem>>, vector<1x64x32xbf16>
    %102 = vector.shape_cast %101 : vector<1x64x32xbf16> to vector<64x32xbf16>
    %cst_66 = arith.constant dense<0.000000e+00> : vector<64x64xf32>
    %103 = tpu.matmul %102, %92, %cst_66 {dimension_numbers = #tpu.dot_dimension_numbers<[1], [1], [0], [0], [0, 0, 1, 0], [], []>} : vector<64x32xbf16>, vector<64x32xbf16>, vector<64x64xf32> -> vector<64x64xf32>
    %c1_67 = arith.constant 1 : index
    %c0_68 = arith.constant 0 : index
    %c0_69 = arith.constant 0 : index
    %104 = vector.load %arg23[%c1_67, %c0_68, %c0_69] : memref<4x64x1xf32, #tpu.memory_space<vmem>>, vector<1x64x1xf32>
    %105 = vector.shape_cast %104 : vector<1x64x1xf32> to vector<64x1xf32>
    %cst_70 = arith.constant dense<0xFF800000> : vector<64xf32>
    %106 = vector.multi_reduction <maximumf>, %103, %cst_70 [1] : vector<64x64xf32> to vector<64xf32>
    %107 = vector.shape_cast %106 : vector<64xf32> to vector<64x1xf32>
    %108 = arith.maximumf %105, %107 : vector<64x1xf32>
    %109 = arith.subf %105, %108 : vector<64x1xf32>
    %110 = math.exp %109 : vector<64x1xf32>
    %111 = vector.broadcast %108 : vector<64x1xf32> to vector<64x64xf32>
    %112 = arith.subf %103, %111 : vector<64x64xf32>
    %113 = math.exp %112 : vector<64x64xf32>
    %c1_71 = arith.constant 1 : index
    %c0_72 = arith.constant 0 : index
    %c0_73 = arith.constant 0 : index
    %114 = vector.load %arg24[%c1_71, %c0_72, %c0_73] : memref<4x64x1xf32, #tpu.memory_space<vmem>>, vector<1x64x1xf32>
    %115 = vector.shape_cast %114 : vector<1x64x1xf32> to vector<64x1xf32>
    %116 = arith.mulf %110, %115 : vector<64x1xf32>
    %cst_74 = arith.constant dense<0.000000e+00> : vector<64xf32>
    %117 = vector.multi_reduction <add>, %113, %cst_74 [1] : vector<64x64xf32> to vector<64xf32>
    %118 = vector.shape_cast %117 : vector<64xf32> to vector<64x1xf32>
    %119 = arith.addf %116, %118 : vector<64x1xf32>
    %c1_75 = arith.constant 1 : index
    %c0_76 = arith.constant 0 : index
    %c0_77 = arith.constant 0 : index
    %120 = vector.load %arg24[%c1_75, %c0_76, %c0_77] : memref<4x64x1xf32, #tpu.memory_space<vmem>>, vector<1x64x1xf32>
    %121 = vector.shape_cast %120 : vector<1x64x1xf32> to vector<64x1xf32>
    %122 = vector.shape_cast %119 : vector<64x1xf32> to vector<1x64x1xf32>
    tpu.vector_store %arg24[%c1_75, %c0_76, %c0_77], %122 {strides = array<i32>} : memref<4x64x1xf32, #tpu.memory_space<vmem>>, vector<1x64x1xf32>,
    %c1_78 = arith.constant 1 : index
    %c0_79 = arith.constant 0 : index
    %c0_80 = arith.constant 0 : index
    %123 = vector.load %arg25[%c1_78, %c0_79, %c0_80] : memref<4x64x32xf32, #tpu.memory_space<vmem>>, vector<1x64x32xf32>
    %124 = vector.shape_cast %123 : vector<1x64x32xf32> to vector<64x32xf32>
    %125 = vector.broadcast %110 : vector<64x1xf32> to vector<64x32xf32>
    %126 = arith.mulf %125, %124 : vector<64x32xf32>
    %127 = arith.truncf %113 : vector<64x64xf32> to vector<64x64xbf16>
    %cst_81 = arith.constant dense<0.000000e+00> : vector<64x32xf32>
    %128 = tpu.matmul %127, %100, %cst_81 {dimension_numbers = #tpu.dot_dimension_numbers<[1], [0], [0], [1], [0, 0, 1, 1], [], []>} : vector<64x64xbf16>, vector<64x32xbf16>, vector<64x32xf32> -> vector<64x32xf32>
    %129 = arith.addf %126, %128 : vector<64x32xf32>
    %c1_82 = arith.constant 1 : index
    %c0_83 = arith.constant 0 : index
    %c0_84 = arith.constant 0 : index
    %130 = vector.load %arg25[%c1_82, %c0_83, %c0_84] : memref<4x64x32xf32, #tpu.memory_space<vmem>>, vector<1x64x32xf32>
    %131 = vector.shape_cast %130 : vector<1x64x32xf32> to vector<64x32xf32>
    %132 = vector.shape_cast %129 : vector<64x32xf32> to vector<1x64x32xf32>
    tpu.vector_store %arg25[%c1_82, %c0_83, %c0_84], %132 {strides = array<i32>} : memref<4x64x32xf32, #tpu.memory_space<vmem>>, vector<1x64x32xf32>,
    %c1_85 = arith.constant 1 : index
    %c0_86 = arith.constant 0 : index
    %c0_87 = arith.constant 0 : index
    %133 = vector.load %arg23[%c1_85, %c0_86, %c0_87] : memref<4x64x1xf32, #tpu.memory_space<vmem>>, vector<1x64x1xf32>
    %134 = vector.shape_cast %133 : vector<1x64x1xf32> to vector<64x1xf32>
    %135 = vector.shape_cast %108 : vector<64x1xf32> to vector<1x64x1xf32>
    tpu.vector_store %arg23[%c1_85, %c0_86, %c0_87], %135 {strides = array<i32>} : memref<4x64x1xf32, #tpu.memory_space<vmem>>, vector<1x64x1xf32>,
    %c2 = arith.constant 2 : index
    %c0_88 = arith.constant 0 : index
    %c0_89 = arith.constant 0 : index
    %136 = vector.load %arg8[%c2, %c0_88, %c0_89] : memref<4x128x32xbf16, #tpu.memory_space<vmem>>, vector<1x128x32xbf16>
    %137 = vector.shape_cast %136 : vector<1x128x32xbf16> to vector<128x32xbf16>
    %cst_90 = arith.constant dense<0.000000e+00> : vector<64x32xf32>
    %138 = tpu.matmul %33, %137, %cst_90 {dimension_numbers = #tpu.dot_dimension_numbers<[1], [0], [0], [1], [0, 0, 1, 1], [], []>} : vector<64x128xbf16>, vector<128x32xbf16>, vector<64x32xf32> -> vector<64x32xf32>
    %c2_91 = arith.constant 2 : index
    %c0_92 = arith.constant 0 : index
    %c0_93 = arith.constant 0 : index
    %139 = vector.load %arg11[%c2_91, %c0_92, %c0_93] : memref<4x1x32xf32, #tpu.memory_space<vmem>>, vector<1x1x32xf32>
    %140 = vector.shape_cast %139 : vector<1x1x32xf32> to vector<1x32xf32>
    %141 = vector.broadcast %140 : vector<1x32xf32> to vector<64x32xf32>
    %142 = arith.addf %138, %141 : vector<64x32xf32>
    %143 = arith.truncf %142 : vector<64x32xf32> to vector<64x32xbf16>
    %c2_94 = arith.constant 2 : index
    %c0_95 = arith.constant 0 : index
    %c0_96 = arith.constant 0 : index
    %144 = vector.load %arg9[%c2_94, %c0_95, %c0_96] : memref<4x128x32xbf16, #tpu.memory_space<vmem>>, vector<1x128x32xbf16>
    %145 = vector.shape_cast %144 : vector<1x128x32xbf16> to vector<128x32xbf16>
    %cst_97 = arith.constant dense<0.000000e+00> : vector<64x32xf32>
    %146 = tpu.matmul %33, %145, %cst_97 {dimension_numbers = #tpu.dot_dimension_numbers<[1], [0], [0], [1], [0, 0, 1, 1], [], []>} : vector<64x128xbf16>, vector<128x32xbf16>, vector<64x32xf32> -> vector<64x32xf32>
    %c2_98 = arith.constant 2 : index
    %c0_99 = arith.constant 0 : index
    %c0_100 = arith.constant 0 : index
    %147 = vector.load %arg12[%c2_98, %c0_99, %c0_100] : memref<4x1x32xf32, #tpu.memory_space<vmem>>, vector<1x1x32xf32>
    %148 = vector.shape_cast %147 : vector<1x1x32xf32> to vector<1x32xf32>
    %149 = vector.broadcast %148 : vector<1x32xf32> to vector<64x32xf32>
    %150 = arith.addf %146, %149 : vector<64x32xf32>
    %151 = arith.truncf %150 : vector<64x32xf32> to vector<64x32xbf16>
    %c2_101 = arith.constant 2 : index
    %c0_102 = arith.constant 0 : index
    %c0_103 = arith.constant 0 : index
    %152 = vector.load %arg22[%c2_101, %c0_102, %c0_103] : memref<4x64x32xbf16, #tpu.memory_space<vmem>>, vector<1x64x32xbf16>
    %153 = vector.shape_cast %152 : vector<1x64x32xbf16> to vector<64x32xbf16>
    %cst_104 = arith.constant dense<0.000000e+00> : vector<64x64xf32>
    %154 = tpu.matmul %153, %143, %cst_104 {dimension_numbers = #tpu.dot_dimension_numbers<[1], [1], [0], [0], [0, 0, 1, 0], [], []>} : vector<64x32xbf16>, vector<64x32xbf16>, vector<64x64xf32> -> vector<64x64xf32>
    %c2_105 = arith.constant 2 : index
    %c0_106 = arith.constant 0 : index
    %c0_107 = arith.constant 0 : index
    %155 = vector.load %arg23[%c2_105, %c0_106, %c0_107] : memref<4x64x1xf32, #tpu.memory_space<vmem>>, vector<1x64x1xf32>
    %156 = vector.shape_cast %155 : vector<1x64x1xf32> to vector<64x1xf32>
    %cst_108 = arith.constant dense<0xFF800000> : vector<64xf32>
    %157 = vector.multi_reduction <maximumf>, %154, %cst_108 [1] : vector<64x64xf32> to vector<64xf32>
    %158 = vector.shape_cast %157 : vector<64xf32> to vector<64x1xf32>
    %159 = arith.maximumf %156, %158 : vector<64x1xf32>
    %160 = arith.subf %156, %159 : vector<64x1xf32>
    %161 = math.exp %160 : vector<64x1xf32>
    %162 = vector.broadcast %159 : vector<64x1xf32> to vector<64x64xf32>
    %163 = arith.subf %154, %162 : vector<64x64xf32>
    %164 = math.exp %163 : vector<64x64xf32>
    %c2_109 = arith.constant 2 : index
    %c0_110 = arith.constant 0 : index
    %c0_111 = arith.constant 0 : index
    %165 = vector.load %arg24[%c2_109, %c0_110, %c0_111] : memref<4x64x1xf32, #tpu.memory_space<vmem>>, vector<1x64x1xf32>
    %166 = vector.shape_cast %165 : vector<1x64x1xf32> to vector<64x1xf32>
    %167 = arith.mulf %161, %166 : vector<64x1xf32>
    %cst_112 = arith.constant dense<0.000000e+00> : vector<64xf32>
    %168 = vector.multi_reduction <add>, %164, %cst_112 [1] : vector<64x64xf32> to vector<64xf32>
    %169 = vector.shape_cast %168 : vector<64xf32> to vector<64x1xf32>
    %170 = arith.addf %167, %169 : vector<64x1xf32>
    %c2_113 = arith.constant 2 : index
    %c0_114 = arith.constant 0 : index
    %c0_115 = arith.constant 0 : index
    %171 = vector.load %arg24[%c2_113, %c0_114, %c0_115] : memref<4x64x1xf32, #tpu.memory_space<vmem>>, vector<1x64x1xf32>
    %172 = vector.shape_cast %171 : vector<1x64x1xf32> to vector<64x1xf32>
    %173 = vector.shape_cast %170 : vector<64x1xf32> to vector<1x64x1xf32>
    tpu.vector_store %arg24[%c2_113, %c0_114, %c0_115], %173 {strides = array<i32>} : memref<4x64x1xf32, #tpu.memory_space<vmem>>, vector<1x64x1xf32>,
    %c2_116 = arith.constant 2 : index
    %c0_117 = arith.constant 0 : index
    %c0_118 = arith.constant 0 : index
    %174 = vector.load %arg25[%c2_116, %c0_117, %c0_118] : memref<4x64x32xf32, #tpu.memory_space<vmem>>, vector<1x64x32xf32>
    %175 = vector.shape_cast %174 : vector<1x64x32xf32> to vector<64x32xf32>
    %176 = vector.broadcast %161 : vector<64x1xf32> to vector<64x32xf32>
    %177 = arith.mulf %176, %175 : vector<64x32xf32>
    %178 = arith.truncf %164 : vector<64x64xf32> to vector<64x64xbf16>
    %cst_119 = arith.constant dense<0.000000e+00> : vector<64x32xf32>
    %179 = tpu.matmul %178, %151, %cst_119 {dimension_numbers = #tpu.dot_dimension_numbers<[1], [0], [0], [1], [0, 0, 1, 1], [], []>} : vector<64x64xbf16>, vector<64x32xbf16>, vector<64x32xf32> -> vector<64x32xf32>
    %180 = arith.addf %177, %179 : vector<64x32xf32>
    %c2_120 = arith.constant 2 : index
    %c0_121 = arith.constant 0 : index
    %c0_122 = arith.constant 0 : index
    %181 = vector.load %arg25[%c2_120, %c0_121, %c0_122] : memref<4x64x32xf32, #tpu.memory_space<vmem>>, vector<1x64x32xf32>
    %182 = vector.shape_cast %181 : vector<1x64x32xf32> to vector<64x32xf32>
    %183 = vector.shape_cast %180 : vector<64x32xf32> to vector<1x64x32xf32>
    tpu.vector_store %arg25[%c2_120, %c0_121, %c0_122], %183 {strides = array<i32>} : memref<4x64x32xf32, #tpu.memory_space<vmem>>, vector<1x64x32xf32>,
    %c2_123 = arith.constant 2 : index
    %c0_124 = arith.constant 0 : index
    %c0_125 = arith.constant 0 : index
    %184 = vector.load %arg23[%c2_123, %c0_124, %c0_125] : memref<4x64x1xf32, #tpu.memory_space<vmem>>, vector<1x64x1xf32>
    %185 = vector.shape_cast %184 : vector<1x64x1xf32> to vector<64x1xf32>
    %186 = vector.shape_cast %159 : vector<64x1xf32> to vector<1x64x1xf32>
    tpu.vector_store %arg23[%c2_123, %c0_124, %c0_125], %186 {strides = array<i32>} : memref<4x64x1xf32, #tpu.memory_space<vmem>>, vector<1x64x1xf32>,
    %c3 = arith.constant 3 : index
    %c0_126 = arith.constant 0 : index
    %c0_127 = arith.constant 0 : index
    %187 = vector.load %arg8[%c3, %c0_126, %c0_127] : memref<4x128x32xbf16, #tpu.memory_space<vmem>>, vector<1x128x32xbf16>
    %188 = vector.shape_cast %187 : vector<1x128x32xbf16> to vector<128x32xbf16>
    %cst_128 = arith.constant dense<0.000000e+00> : vector<64x32xf32>
    %189 = tpu.matmul %33, %188, %cst_128 {dimension_numbers = #tpu.dot_dimension_numbers<[1], [0], [0], [1], [0, 0, 1, 1], [], []>} : vector<64x128xbf16>, vector<128x32xbf16>, vector<64x32xf32> -> vector<64x32xf32>
    %c3_129 = arith.constant 3 : index
    %c0_130 = arith.constant 0 : index
    %c0_131 = arith.constant 0 : index
    %190 = vector.load %arg11[%c3_129, %c0_130, %c0_131] : memref<4x1x32xf32, #tpu.memory_space<vmem>>, vector<1x1x32xf32>
    %191 = vector.shape_cast %190 : vector<1x1x32xf32> to vector<1x32xf32>
    %192 = vector.broadcast %191 : vector<1x32xf32> to vector<64x32xf32>
    %193 = arith.addf %189, %192 : vector<64x32xf32>
    %194 = arith.truncf %193 : vector<64x32xf32> to vector<64x32xbf16>
    %c3_132 = arith.constant 3 : index
    %c0_133 = arith.constant 0 : index
    %c0_134 = arith.constant 0 : index
    %195 = vector.load %arg9[%c3_132, %c0_133, %c0_134] : memref<4x128x32xbf16, #tpu.memory_space<vmem>>, vector<1x128x32xbf16>
    %196 = vector.shape_cast %195 : vector<1x128x32xbf16> to vector<128x32xbf16>
    %cst_135 = arith.constant dense<0.000000e+00> : vector<64x32xf32>
    %197 = tpu.matmul %33, %196, %cst_135 {dimension_numbers = #tpu.dot_dimension_numbers<[1], [0], [0], [1], [0, 0, 1, 1], [], []>} : vector<64x128xbf16>, vector<128x32xbf16>, vector<64x32xf32> -> vector<64x32xf32>
    %c3_136 = arith.constant 3 : index
    %c0_137 = arith.constant 0 : index
    %c0_138 = arith.constant 0 : index
    %198 = vector.load %arg12[%c3_136, %c0_137, %c0_138] : memref<4x1x32xf32, #tpu.memory_space<vmem>>, vector<1x1x32xf32>
    %199 = vector.shape_cast %198 : vector<1x1x32xf32> to vector<1x32xf32>
    %200 = vector.broadcast %199 : vector<1x32xf32> to vector<64x32xf32>
    %201 = arith.addf %197, %200 : vector<64x32xf32>
    %202 = arith.truncf %201 : vector<64x32xf32> to vector<64x32xbf16>
    %c3_139 = arith.constant 3 : index
    %c0_140 = arith.constant 0 : index
    %c0_141 = arith.constant 0 : index
    %203 = vector.load %arg22[%c3_139, %c0_140, %c0_141] : memref<4x64x32xbf16, #tpu.memory_space<vmem>>, vector<1x64x32xbf16>
    %204 = vector.shape_cast %203 : vector<1x64x32xbf16> to vector<64x32xbf16>
    %cst_142 = arith.constant dense<0.000000e+00> : vector<64x64xf32>
    %205 = tpu.matmul %204, %194, %cst_142 {dimension_numbers = #tpu.dot_dimension_numbers<[1], [1], [0], [0], [0, 0, 1, 0], [], []>} : vector<64x32xbf16>, vector<64x32xbf16>, vector<64x64xf32> -> vector<64x64xf32>
    %c3_143 = arith.constant 3 : index
    %c0_144 = arith.constant 0 : index
    %c0_145 = arith.constant 0 : index
    %206 = vector.load %arg23[%c3_143, %c0_144, %c0_145] : memref<4x64x1xf32, #tpu.memory_space<vmem>>, vector<1x64x1xf32>
    %207 = vector.shape_cast %206 : vector<1x64x1xf32> to vector<64x1xf32>
    %cst_146 = arith.constant dense<0xFF800000> : vector<64xf32>
    %208 = vector.multi_reduction <maximumf>, %205, %cst_146 [1] : vector<64x64xf32> to vector<64xf32>
    %209 = vector.shape_cast %208 : vector<64xf32> to vector<64x1xf32>
    %210 = arith.maximumf %207, %209 : vector<64x1xf32>
    %211 = arith.subf %207, %210 : vector<64x1xf32>
    %212 = math.exp %211 : vector<64x1xf32>
    %213 = vector.broadcast %210 : vector<64x1xf32> to vector<64x64xf32>
    %214 = arith.subf %205, %213 : vector<64x64xf32>
    %215 = math.exp %214 : vector<64x64xf32>
    %c3_147 = arith.constant 3 : index
    %c0_148 = arith.constant 0 : index
    %c0_149 = arith.constant 0 : index
    %216 = vector.load %arg24[%c3_147, %c0_148, %c0_149] : memref<4x64x1xf32, #tpu.memory_space<vmem>>, vector<1x64x1xf32>
    %217 = vector.shape_cast %216 : vector<1x64x1xf32> to vector<64x1xf32>
    %218 = arith.mulf %212, %217 : vector<64x1xf32>
    %cst_150 = arith.constant dense<0.000000e+00> : vector<64xf32>
    %219 = vector.multi_reduction <add>, %215, %cst_150 [1] : vector<64x64xf32> to vector<64xf32>
    %220 = vector.shape_cast %219 : vector<64xf32> to vector<64x1xf32>
    %221 = arith.addf %218, %220 : vector<64x1xf32>
    %c3_151 = arith.constant 3 : index
    %c0_152 = arith.constant 0 : index
    %c0_153 = arith.constant 0 : index
    %222 = vector.load %arg24[%c3_151, %c0_152, %c0_153] : memref<4x64x1xf32, #tpu.memory_space<vmem>>, vector<1x64x1xf32>
    %223 = vector.shape_cast %222 : vector<1x64x1xf32> to vector<64x1xf32>
    %224 = vector.shape_cast %221 : vector<64x1xf32> to vector<1x64x1xf32>
    tpu.vector_store %arg24[%c3_151, %c0_152, %c0_153], %224 {strides = array<i32>} : memref<4x64x1xf32, #tpu.memory_space<vmem>>, vector<1x64x1xf32>,
    %c3_154 = arith.constant 3 : index
    %c0_155 = arith.constant 0 : index
    %c0_156 = arith.constant 0 : index
    %225 = vector.load %arg25[%c3_154, %c0_155, %c0_156] : memref<4x64x32xf32, #tpu.memory_space<vmem>>, vector<1x64x32xf32>
    %226 = vector.shape_cast %225 : vector<1x64x32xf32> to vector<64x32xf32>
    %227 = vector.broadcast %212 : vector<64x1xf32> to vector<64x32xf32>
    %228 = arith.mulf %227, %226 : vector<64x32xf32>
    %229 = arith.truncf %215 : vector<64x64xf32> to vector<64x64xbf16>
    %cst_157 = arith.constant dense<0.000000e+00> : vector<64x32xf32>
    %230 = tpu.matmul %229, %202, %cst_157 {dimension_numbers = #tpu.dot_dimension_numbers<[1], [0], [0], [1], [0, 0, 1, 1], [], []>} : vector<64x64xbf16>, vector<64x32xbf16>, vector<64x32xf32> -> vector<64x32xf32>
    %231 = arith.addf %228, %230 : vector<64x32xf32>
    %c3_158 = arith.constant 3 : index
    %c0_159 = arith.constant 0 : index
    %c0_160 = arith.constant 0 : index
    %232 = vector.load %arg25[%c3_158, %c0_159, %c0_160] : memref<4x64x32xf32, #tpu.memory_space<vmem>>, vector<1x64x32xf32>
    %233 = vector.shape_cast %232 : vector<1x64x32xf32> to vector<64x32xf32>
    %234 = vector.shape_cast %231 : vector<64x32xf32> to vector<1x64x32xf32>
    tpu.vector_store %arg25[%c3_158, %c0_159, %c0_160], %234 {strides = array<i32>} : memref<4x64x32xf32, #tpu.memory_space<vmem>>, vector<1x64x32xf32>,
    %c3_161 = arith.constant 3 : index
    %c0_162 = arith.constant 0 : index
    %c0_163 = arith.constant 0 : index
    %235 = vector.load %arg23[%c3_161, %c0_162, %c0_163] : memref<4x64x1xf32, #tpu.memory_space<vmem>>, vector<1x64x1xf32>
    %236 = vector.shape_cast %235 : vector<1x64x1xf32> to vector<64x1xf32>
    %237 = vector.shape_cast %210 : vector<64x1xf32> to vector<1x64x1xf32>
    tpu.vector_store %arg23[%c3_161, %c0_162, %c0_163], %237 {strides = array<i32>} : memref<4x64x1xf32, #tpu.memory_space<vmem>>, vector<1x64x1xf32>,
    %c1_i32 = arith.constant 1 : i32
    %238 = arith.cmpi eq, %arg2, %c1_i32 : i32
    %239 = arith.extui %238 : i1 to i32
    %c0_i32_164 = arith.constant 0 : i32
    %240 = arith.cmpi ne, %239, %c0_i32_164 : i32
    scf.if %240 {
      %c0_165 = arith.constant 0 : index
      %c0_166 = arith.constant 0 : index
      %c0_167 = arith.constant 0 : index
      %241 = vector.load %arg3[%c0_165, %c0_166, %c0_167] : memref<1x64x128xf32, #tpu.memory_space<vmem>>, vector<1x64x128xf32>
      %242 = vector.shape_cast %241 : vector<1x64x128xf32> to vector<64x128xf32>
      %c0_168 = arith.constant 0 : index
      %c0_169 = arith.constant 0 : index
      %c0_170 = arith.constant 0 : index
      %243 = vector.load %arg25[%c0_168, %c0_169, %c0_170] : memref<4x64x32xf32, #tpu.memory_space<vmem>>, vector<1x64x32xf32>
      %244 = vector.shape_cast %243 : vector<1x64x32xf32> to vector<64x32xf32>
      %c0_171 = arith.constant 0 : index
      %c0_172 = arith.constant 0 : index
      %c0_173 = arith.constant 0 : index
      %245 = vector.load %arg24[%c0_171, %c0_172, %c0_173] : memref<4x64x1xf32, #tpu.memory_space<vmem>>, vector<1x64x1xf32>
      %246 = vector.shape_cast %245 : vector<1x64x1xf32> to vector<64x1xf32>
      %247 = tpu.reciprocal %246 {approx = true} : vector<64x1xf32> -> vector<64x1xf32>
      %248 = vector.broadcast %247 : vector<64x1xf32> to vector<64x32xf32>
      %249 = arith.mulf %244, %248 : vector<64x32xf32>
      %250 = arith.truncf %249 : vector<64x32xf32> to vector<64x32xbf16>
      %c0_174 = arith.constant 0 : index
      %c0_175 = arith.constant 0 : index
      %c0_176 = arith.constant 0 : index
      %251 = vector.load %arg13[%c0_174, %c0_175, %c0_176] : memref<4x32x128xbf16, #tpu.memory_space<vmem>>, vector<1x32x128xbf16>
      %252 = vector.shape_cast %251 : vector<1x32x128xbf16> to vector<32x128xbf16>
      %cst_177 = arith.constant dense<0.000000e+00> : vector<64x128xf32>
      %253 = tpu.matmul %250, %252, %cst_177 {dimension_numbers = #tpu.dot_dimension_numbers<[1], [0], [0], [1], [0, 0, 1, 1], [], []>} : vector<64x32xbf16>, vector<32x128xbf16>, vector<64x128xf32> -> vector<64x128xf32>
      %c1_178 = arith.constant 1 : index
      %c0_179 = arith.constant 0 : index
      %c0_180 = arith.constant 0 : index
      %254 = vector.load %arg25[%c1_178, %c0_179, %c0_180] : memref<4x64x32xf32, #tpu.memory_space<vmem>>, vector<1x64x32xf32>
      %255 = vector.shape_cast %254 : vector<1x64x32xf32> to vector<64x32xf32>
      %c1_181 = arith.constant 1 : index
      %c0_182 = arith.constant 0 : index
      %c0_183 = arith.constant 0 : index
      %256 = vector.load %arg24[%c1_181, %c0_182, %c0_183] : memref<4x64x1xf32, #tpu.memory_space<vmem>>, vector<1x64x1xf32>
      %257 = vector.shape_cast %256 : vector<1x64x1xf32> to vector<64x1xf32>
      %258 = tpu.reciprocal %257 {approx = true} : vector<64x1xf32> -> vector<64x1xf32>
      %259 = vector.broadcast %258 : vector<64x1xf32> to vector<64x32xf32>
      %260 = arith.mulf %255, %259 : vector<64x32xf32>
      %261 = arith.truncf %260 : vector<64x32xf32> to vector<64x32xbf16>
      %c1_184 = arith.constant 1 : index
      %c0_185 = arith.constant 0 : index
      %c0_186 = arith.constant 0 : index
      %262 = vector.load %arg13[%c1_184, %c0_185, %c0_186] : memref<4x32x128xbf16, #tpu.memory_space<vmem>>, vector<1x32x128xbf16>
      %263 = vector.shape_cast %262 : vector<1x32x128xbf16> to vector<32x128xbf16>
      %cst_187 = arith.constant dense<0.000000e+00> : vector<64x128xf32>
      %264 = tpu.matmul %261, %263, %cst_187 {dimension_numbers = #tpu.dot_dimension_numbers<[1], [0], [0], [1], [0, 0, 1, 1], [], []>} : vector<64x32xbf16>, vector<32x128xbf16>, vector<64x128xf32> -> vector<64x128xf32>
      %265 = arith.addf %253, %264 : vector<64x128xf32>
      %c2_188 = arith.constant 2 : index
      %c0_189 = arith.constant 0 : index
      %c0_190 = arith.constant 0 : index
      %266 = vector.load %arg25[%c2_188, %c0_189, %c0_190] : memref<4x64x32xf32, #tpu.memory_space<vmem>>, vector<1x64x32xf32>
      %267 = vector.shape_cast %266 : vector<1x64x32xf32> to vector<64x32xf32>
      %c2_191 = arith.constant 2 : index
      %c0_192 = arith.constant 0 : index
      %c0_193 = arith.constant 0 : index
      %268 = vector.load %arg24[%c2_191, %c0_192, %c0_193] : memref<4x64x1xf32, #tpu.memory_space<vmem>>, vector<1x64x1xf32>
      %269 = vector.shape_cast %268 : vector<1x64x1xf32> to vector<64x1xf32>
      %270 = tpu.reciprocal %269 {approx = true} : vector<64x1xf32> -> vector<64x1xf32>
      %271 = vector.broadcast %270 : vector<64x1xf32> to vector<64x32xf32>
      %272 = arith.mulf %267, %271 : vector<64x32xf32>
      %273 = arith.truncf %272 : vector<64x32xf32> to vector<64x32xbf16>
      %c2_194 = arith.constant 2 : index
      %c0_195 = arith.constant 0 : index
      %c0_196 = arith.constant 0 : index
      %274 = vector.load %arg13[%c2_194, %c0_195, %c0_196] : memref<4x32x128xbf16, #tpu.memory_space<vmem>>, vector<1x32x128xbf16>
      %275 = vector.shape_cast %274 : vector<1x32x128xbf16> to vector<32x128xbf16>
      %cst_197 = arith.constant dense<0.000000e+00> : vector<64x128xf32>
      %276 = tpu.matmul %273, %275, %cst_197 {dimension_numbers = #tpu.dot_dimension_numbers<[1], [0], [0], [1], [0, 0, 1, 1], [], []>} : vector<64x32xbf16>, vector<32x128xbf16>, vector<64x128xf32> -> vector<64x128xf32>
      %277 = arith.addf %265, %276 : vector<64x128xf32>
      %c3_198 = arith.constant 3 : index
      %c0_199 = arith.constant 0 : index
      %c0_200 = arith.constant 0 : index
      %278 = vector.load %arg25[%c3_198, %c0_199, %c0_200] : memref<4x64x32xf32, #tpu.memory_space<vmem>>, vector<1x64x32xf32>
      %279 = vector.shape_cast %278 : vector<1x64x32xf32> to vector<64x32xf32>
      %c3_201 = arith.constant 3 : index
      %c0_202 = arith.constant 0 : index
      %c0_203 = arith.constant 0 : index
      %280 = vector.load %arg24[%c3_201, %c0_202, %c0_203] : memref<4x64x1xf32, #tpu.memory_space<vmem>>, vector<1x64x1xf32>
      %281 = vector.shape_cast %280 : vector<1x64x1xf32> to vector<64x1xf32>
      %282 = tpu.reciprocal %281 {approx = true} : vector<64x1xf32> -> vector<64x1xf32>
      %283 = vector.broadcast %282 : vector<64x1xf32> to vector<64x32xf32>
      %284 = arith.mulf %279, %283 : vector<64x32xf32>
      %285 = arith.truncf %284 : vector<64x32xf32> to vector<64x32xbf16>
      %c3_204 = arith.constant 3 : index
      %c0_205 = arith.constant 0 : index
      %c0_206 = arith.constant 0 : index
      %286 = vector.load %arg13[%c3_204, %c0_205, %c0_206] : memref<4x32x128xbf16, #tpu.memory_space<vmem>>, vector<1x32x128xbf16>
      %287 = vector.shape_cast %286 : vector<1x32x128xbf16> to vector<32x128xbf16>
      %cst_207 = arith.constant dense<0.000000e+00> : vector<64x128xf32>
      %288 = tpu.matmul %285, %287, %cst_207 {dimension_numbers = #tpu.dot_dimension_numbers<[1], [0], [0], [1], [0, 0, 1, 1], [], []>} : vector<64x32xbf16>, vector<32x128xbf16>, vector<64x128xf32> -> vector<64x128xf32>
      %289 = arith.addf %277, %288 : vector<64x128xf32>
      %290 = arith.addf %242, %289 : vector<64x128xf32>
      %c0_208 = arith.constant 0 : index
      %c0_209 = arith.constant 0 : index
      %291 = vector.load %arg14[%c0_208, %c0_209] : memref<1x128xf32, #tpu.memory_space<vmem>>, vector<1x128xf32>
      %292 = vector.shape_cast %291 : vector<1x128xf32> to vector<128xf32>
      %293 = vector.shape_cast %292 : vector<128xf32> to vector<1x128xf32>
      %294 = vector.broadcast %293 : vector<1x128xf32> to vector<64x128xf32>
      %295 = arith.addf %290, %294 : vector<64x128xf32>
      %c0_210 = arith.constant 0 : index
      %c0_211 = arith.constant 0 : index
      %296 = vector.load %arg15[%c0_210, %c0_211] : memref<1x128xf32, #tpu.memory_space<vmem>>, vector<1x128xf32>
      %297 = vector.shape_cast %296 : vector<1x128xf32> to vector<128xf32>
      %c0_212 = arith.constant 0 : index
      %c0_213 = arith.constant 0 : index
      %298 = vector.load %arg16[%c0_212, %c0_213] : memref<1x128xf32, #tpu.memory_space<vmem>>, vector<1x128xf32>
      %299 = vector.shape_cast %298 : vector<1x128xf32> to vector<128xf32>
      %cst_214 = arith.constant dense<0.000000e+00> : vector<64xf32>
      %300 = vector.multi_reduction <add>, %295, %cst_214 [1] : vector<64x128xf32> to vector<64xf32>
      %301 = vector.shape_cast %300 : vector<64xf32> to vector<64x1xf32>
      %cst_215 = arith.constant 1.280000e+02 : f32
      %302 = vector.broadcast %cst_215 : f32 to vector<64x1xf32>
      %303 = arith.divf %301, %302 : vector<64x1xf32>
      %304 = vector.broadcast %303 : vector<64x1xf32> to vector<64x128xf32>
      %305 = arith.subf %295, %304 : vector<64x128xf32>
      %306 = arith.mulf %305, %305 : vector<64x128xf32>
      %cst_216 = arith.constant dense<0.000000e+00> : vector<64xf32>
      %307 = vector.multi_reduction <add>, %306, %cst_216 [1] : vector<64x128xf32> to vector<64xf32>
      %308 = vector.shape_cast %307 : vector<64xf32> to vector<64x1xf32>
      %cst_217 = arith.constant 1.280000e+02 : f32
      %309 = vector.broadcast %cst_217 : f32 to vector<64x1xf32>
      %310 = arith.divf %308, %309 : vector<64x1xf32>
      %311 = vector.broadcast %303 : vector<64x1xf32> to vector<64x128xf32>
      %312 = arith.subf %295, %311 : vector<64x128xf32>
      %cst_218 = arith.constant 9.99999974E-6 : f32
      %313 = vector.broadcast %cst_218 : f32 to vector<64x1xf32>
      %314 = arith.addf %310, %313 : vector<64x1xf32>
      %315 = math.rsqrt %314 : vector<64x1xf32>
      %316 = vector.broadcast %315 : vector<64x1xf32> to vector<64x128xf32>
      %317 = arith.mulf %312, %316 : vector<64x128xf32>
      %318 = vector.shape_cast %297 : vector<128xf32> to vector<1x128xf32>
      %319 = vector.broadcast %318 : vector<1x128xf32> to vector<64x128xf32>
      %320 = arith.mulf %317, %319 : vector<64x128xf32>
      %321 = vector.shape_cast %299 : vector<128xf32> to vector<1x128xf32>
      %322 = vector.broadcast %321 : vector<1x128xf32> to vector<64x128xf32>
      %323 = arith.addf %320, %322 : vector<64x128xf32>
      %324 = arith.truncf %323 : vector<64x128xf32> to vector<64x128xbf16>
      %c0_219 = arith.constant 0 : index
      %c0_220 = arith.constant 0 : index
      %325 = vector.load %arg17[%c0_219, %c0_220] : memref<128x512xbf16, #tpu.memory_space<vmem>>, vector<128x512xbf16>
      %cst_221 = arith.constant dense<0.000000e+00> : vector<64x512xf32>
      %326 = tpu.matmul %324, %325, %cst_221 {dimension_numbers = #tpu.dot_dimension_numbers<[1], [0], [0], [1], [0, 0, 1, 1], [], []>} : vector<64x128xbf16>, vector<128x512xbf16>, vector<64x512xf32> -> vector<64x512xf32>
      %c0_222 = arith.constant 0 : index
      %c0_223 = arith.constant 0 : index
      %327 = vector.load %arg18[%c0_222, %c0_223] : memref<1x512xf32, #tpu.memory_space<vmem>>, vector<1x512xf32>
      %328 = vector.shape_cast %327 : vector<1x512xf32> to vector<512xf32>
      %329 = vector.shape_cast %328 : vector<512xf32> to vector<1x512xf32>
      %330 = vector.broadcast %329 : vector<1x512xf32> to vector<64x512xf32>
      %331 = arith.addf %326, %330 : vector<64x512xf32>
      %cst_224 = arith.constant 1.702000e+00 : f32
      %332 = vector.broadcast %cst_224 : f32 to vector<64x512xf32>
      %333 = arith.mulf %332, %331 : vector<64x512xf32>
      %334 = arith.negf %333 : vector<64x512xf32>
      %335 = math.exp %334 : vector<64x512xf32>
      %cst_225 = arith.constant 1.000000e+00 : f32
      %336 = vector.broadcast %cst_225 : f32 to vector<64x512xf32>
      %337 = arith.addf %336, %335 : vector<64x512xf32>
      %338 = arith.divf %336, %337 : vector<64x512xf32>
      %339 = arith.mulf %331, %338 : vector<64x512xf32>
      %340 = arith.truncf %339 : vector<64x512xf32> to vector<64x512xbf16>
      %c0_226 = arith.constant 0 : index
      %c0_227 = arith.constant 0 : index
      %341 = vector.load %arg19[%c0_226, %c0_227] : memref<512x128xbf16, #tpu.memory_space<vmem>>, vector<512x128xbf16>
      %cst_228 = arith.constant dense<0.000000e+00> : vector<64x128xf32>
      %342 = tpu.matmul %340, %341, %cst_228 {dimension_numbers = #tpu.dot_dimension_numbers<[1], [0], [0], [1], [0, 0, 1, 1], [], []>} : vector<64x512xbf16>, vector<512x128xbf16>, vector<64x128xf32> -> vector<64x128xf32>
      %c0_229 = arith.constant 0 : index
      %c0_230 = arith.constant 0 : index
      %343 = vector.load %arg20[%c0_229, %c0_230] : memref<1x128xf32, #tpu.memory_space<vmem>>, vector<1x128xf32>
      %344 = vector.shape_cast %343 : vector<1x128xf32> to vector<128xf32>
      %345 = vector.shape_cast %344 : vector<128xf32> to vector<1x128xf32>
      %346 = vector.broadcast %345 : vector<1x128xf32> to vector<64x128xf32>
      %347 = arith.addf %342, %346 : vector<64x128xf32>
      %348 = arith.addf %295, %347 : vector<64x128xf32>
      %c0_231 = arith.constant 0 : index
      %c0_232 = arith.constant 0 : index
      %c0_233 = arith.constant 0 : index
      %349 = vector.load %arg21[%c0_231, %c0_232, %c0_233] : memref<1x64x128xf32, #tpu.memory_space<vmem>>, vector<1x64x128xf32>
      %350 = vector.shape_cast %349 : vector<1x64x128xf32> to vector<64x128xf32>
      %351 = vector.shape_cast %348 : vector<64x128xf32> to vector<1x64x128xf32>
      tpu.vector_store %arg21[%c0_231, %c0_232, %c0_233], %351 {strides = array<i32>} : memref<1x64x128xf32, #tpu.memory_space<vmem>>, vector<1x64x128xf32>,
    } else {
    }
    return
  }
  func.func @transform_0(%arg0: i32, %arg1: i32, %arg2: i32) -> (i32, i32, i32) {
    %c0_i32 = arith.constant 0 : i32
    %c0_i32_0 = arith.constant 0 : i32
    return %arg0, %arg1, %c0_i32 : i32, i32, i32
  }
  func.func @transform_1(%arg0: i32, %arg1: i32, %arg2: i32) -> (i32, i32, i32) {
    %c0_i32 = arith.constant 0 : i32
    %c0_i32_0 = arith.constant 0 : i32
    return %arg0, %arg2, %c0_i32 : i32, i32, i32
  }
  func.func @transform_2(%arg0: i32, %arg1: i32, %arg2: i32) -> (i32, i32) {
    %c0_i32 = arith.constant 0 : i32
    %c0_i32_0 = arith.constant 0 : i32
    %c0_i32_1 = arith.constant 0 : i32
    return %c0_i32, %c0_i32_0 : i32, i32
  }
  func.func @transform_3(%arg0: i32, %arg1: i32, %arg2: i32) -> (i32, i32) {
    %c0_i32 = arith.constant 0 : i32
    %c0_i32_0 = arith.constant 0 : i32
    %c0_i32_1 = arith.constant 0 : i32
    return %c0_i32, %c0_i32_0 : i32, i32
  }
  func.func @transform_4(%arg0: i32, %arg1: i32, %arg2: i32) -> (i32, i32, i32) {
    %c0_i32 = arith.constant 0 : i32
    %c0_i32_0 = arith.constant 0 : i32
    %c0_i32_1 = arith.constant 0 : i32
    %c0_i32_2 = arith.constant 0 : i32
    return %c0_i32, %c0_i32_0, %c0_i32_1 : i32, i32, i32
  }
  func.func @transform_5(%arg0: i32, %arg1: i32, %arg2: i32) -> (i32, i32, i32) {
    %c0_i32 = arith.constant 0 : i32
    %c0_i32_0 = arith.constant 0 : i32
    %c0_i32_1 = arith.constant 0 : i32
    %c0_i32_2 = arith.constant 0 : i32
    return %c0_i32, %c0_i32_0, %c0_i32_1 : i32, i32, i32
  }
  func.func @transform_6(%arg0: i32, %arg1: i32, %arg2: i32) -> (i32, i32, i32) {
    %c0_i32 = arith.constant 0 : i32
    %c0_i32_0 = arith.constant 0 : i32
    %c0_i32_1 = arith.constant 0 : i32
    %c0_i32_2 = arith.constant 0 : i32
    return %c0_i32, %c0_i32_0, %c0_i32_1 : i32, i32, i32
  }
  func.func @transform_7(%arg0: i32, %arg1: i32, %arg2: i32) -> (i32, i32, i32) {
    %c0_i32 = arith.constant 0 : i32
    %c0_i32_0 = arith.constant 0 : i32
    %c0_i32_1 = arith.constant 0 : i32
    %c0_i32_2 = arith.constant 0 : i32
    return %c0_i32, %c0_i32_0, %c0_i32_1 : i32, i32, i32
  }
  func.func @transform_8(%arg0: i32, %arg1: i32, %arg2: i32) -> (i32, i32, i32) {
    %c0_i32 = arith.constant 0 : i32
    %c0_i32_0 = arith.constant 0 : i32
    %c0_i32_1 = arith.constant 0 : i32
    %c0_i32_2 = arith.constant 0 : i32
    return %c0_i32, %c0_i32_0, %c0_i32_1 : i32, i32, i32
  }
  func.func @transform_9(%arg0: i32, %arg1: i32, %arg2: i32) -> (i32, i32, i32) {
    %c0_i32 = arith.constant 0 : i32
    %c0_i32_0 = arith.constant 0 : i32
    %c0_i32_1 = arith.constant 0 : i32
    %c0_i32_2 = arith.constant 0 : i32
    return %c0_i32, %c0_i32_0, %c0_i32_1 : i32, i32, i32
  }
  func.func @transform_10(%arg0: i32, %arg1: i32, %arg2: i32) -> (i32, i32, i32) {
    %c0_i32 = arith.constant 0 : i32
    %c0_i32_0 = arith.constant 0 : i32
    %c0_i32_1 = arith.constant 0 : i32
    %c0_i32_2 = arith.constant 0 : i32
    return %c0_i32, %c0_i32_0, %c0_i32_1 : i32, i32, i32
  }
  func.func @transform_11(%arg0: i32, %arg1: i32, %arg2: i32) -> (i32, i32) {
    %c0_i32 = arith.constant 0 : i32
    %c0_i32_0 = arith.constant 0 : i32
    %c0_i32_1 = arith.constant 0 : i32
    return %c0_i32, %c0_i32_0 : i32, i32
  }
  func.func @transform_12(%arg0: i32, %arg1: i32, %arg2: i32) -> (i32, i32) {
    %c0_i32 = arith.constant 0 : i32
    %c0_i32_0 = arith.constant 0 : i32
    %c0_i32_1 = arith.constant 0 : i32
    return %c0_i32, %c0_i32_0 : i32, i32
  }
  func.func @transform_13(%arg0: i32, %arg1: i32, %arg2: i32) -> (i32, i32) {
    %c0_i32 = arith.constant 0 : i32
    %c0_i32_0 = arith.constant 0 : i32
    %c0_i32_1 = arith.constant 0 : i32
    return %c0_i32, %c0_i32_0 : i32, i32
  }
  func.func @transform_14(%arg0: i32, %arg1: i32, %arg2: i32) -> (i32, i32) {
    %c0_i32 = arith.constant 0 : i32
    %c0_i32_0 = arith.constant 0 : i32
    %c0_i32_1 = arith.constant 0 : i32
    return %c0_i32, %c0_i32_0 : i32, i32
  }
  func.func @transform_15(%arg0: i32, %arg1: i32, %arg2: i32) -> (i32, i32) {
    %c0_i32 = arith.constant 0 : i32
    %c0_i32_0 = arith.constant 0 : i32
    %c0_i32_1 = arith.constant 0 : i32
    return %c0_i32, %c0_i32_0 : i32, i32
  }
  func.func @transform_16(%arg0: i32, %arg1: i32, %arg2: i32) -> (i32, i32) {
    %c0_i32 = arith.constant 0 : i32
    %c0_i32_0 = arith.constant 0 : i32
    %c0_i32_1 = arith.constant 0 : i32
    return %c0_i32, %c0_i32_0 : i32, i32
  }
  func.func @transform_17(%arg0: i32, %arg1: i32, %arg2: i32) -> (i32, i32) {
    %c0_i32 = arith.constant 0 : i32
    %c0_i32_0 = arith.constant 0 : i32
    %c0_i32_1 = arith.constant 0 : i32
    return %c0_i32, %c0_i32_0 : i32, i32
  }
  func.func @transform_18(%arg0: i32, %arg1: i32, %arg2: i32) -> (i32, i32, i32) {
    %c0_i32 = arith.constant 0 : i32
    %c0_i32_0 = arith.constant 0 : i32
    return %arg0, %arg1, %c0_i32 : i32, i32, i32
  }
}

</mosaic_0001>

<bundles_post_ra>
// kernel: temporal_transformer_forward.1
= control target key start
LH: loop header
LB: loop body
LE: loop exit
PB: predicated region body
PF: predicated region fallthrough
CT: control target
= control target key end

     0   :  { %s12173_s0 = inlined_call_operand.hbm [shape: f32[2,128,128], index: 0, kind: input, shape index: {}, may-alias: {0,1}]   ;;  %s12174_s1 = inlined_call_operand.hbm [shape: f32[2,128,128], index: 1, kind: input, shape index: {}, may-alias: {0,1}]   ;;  %s12175_s2 = inlined_call_operand.hbm [shape: f32[1,128], index: 2, kind: input, shape index: {}]   ;;  %s12176_s3 = inlined_call_operand.hbm [shape: f32[1,128], index: 3, kind: input, shape index: {}]   ;;  %s12177_s4 = inlined_call_operand.hbm [shape: bf16[4,128,32], index: 4, kind: input, shape index: {}]   ;;  %s12178_s5 = inlined_call_operand.hbm [shape: bf16[4,128,32], index: 5, kind: input, shape index: {}]   ;;  %s12179_s6 = inlined_call_operand.hbm [shape: bf16[4,128,32], index: 6, kind: input, shape index: {}]   ;;  %s12180_s7 = inlined_call_operand.hbm [shape: f32[4,1,32], index: 7, kind: input, shape index: {}]   ;;  %s12181_s8 = inlined_call_operand.hbm [shape: f32[4,1,32], index: 8, kind: input, shape index: {}]   ;;  %s12182_s9 = inlined_call_operand.hbm [shape: f32[4,1,32], index: 9, kind: input, shape index: {}]   ;;  %s12183_s10 = inlined_call_operand.hbm [shape: bf16[4,32,128], index: 10, kind: input, shape index: {}]   ;;  %s12184_s11 = inlined_call_operand.hbm [shape: f32[1,128], index: 11, kind: input, shape index: {}]   ;;  %s12185_s12 = inlined_call_operand.hbm [shape: f32[1,128], index: 12, kind: input, shape index: {}]   ;;  %s12186_s13 = inlined_call_operand.hbm [shape: f32[1,128], index: 13, kind: input, shape index: {}]   ;;  %s12187_s14 = inlined_call_operand.hbm [shape: bf16[128,512], index: 14, kind: input, shape index: {}]   ;;  %s12188_s15 = inlined_call_operand.hbm [shape: f32[1,512], index: 15, kind: input, shape index: {}]   ;;  %s12189_s16 = inlined_call_operand.hbm [shape: bf16[512,128], index: 16, kind: input, shape index: {}]   ;;  %s12190_s17 = inlined_call_operand.hbm [shape: f32[1,128], index: 17, kind: input, shape index: {}]   ;;  %s12191_s18 = inlined_call_operand.hbm [shape: f32[2,128,128], index: 18, kind: output, shape index: {}]  }
   0x1   :  { %12258 = sst [smem:[#allocation112_spill]] %s12173_s0 }
   0x2   :  { %12259 = sst [smem:[#allocation113_spill]] %s12174_s1 }
   0x3   :  { %12260 = sst [smem:[#allocation114_spill]] %s12175_s2 }
   0x4   :  { %12261 = sst [smem:[#allocation115_spill]] %s12176_s3 }
   0x5   :  { %12262 = sst [smem:[#allocation116_spill]] %s12177_s4 }
   0x6   :  { %12263 = sst [smem:[#allocation117_spill]] %s12178_s5 }
   0x7   :  { %12264 = sst [smem:[#allocation118_spill]] %s12179_s6 }
   0x8   :  { %12265 = sst [smem:[#allocation119_spill]] %s12180_s7 }
   0x9   :  { %12266 = sst [smem:[#allocation120_spill]] %s12181_s8 }
   0xa   :  { %12267 = sst [smem:[#allocation121_spill]] %s12182_s9 }
   0xb   :  { %12268 = sst [smem:[#allocation122_spill]] %s12183_s10 }
   0xc   :  { %12269 = sst [smem:[#allocation123_spill]] %s12184_s11 }
   0xd   :  { %12270 = sst [smem:[#allocation124_spill]] %s12185_s12 }
   0xe   :  { %12271 = sst [smem:[#allocation125_spill]] %s12186_s13 }
   0xf   :  { %12272 = sst [smem:[#allocation126_spill]] %s12187_s14 }
  0x10   :  { %12273 = sst [smem:[#allocation127_spill]] %s12188_s15 }
  0x11   :  { %12274 = sst [smem:[#allocation128_spill]] %s12189_s16 }
  0x12   :  { %12275 = sst [smem:[#allocation129_spill]] %s12190_s17 }
  0x13   :  { %12276 = sst [smem:[#allocation130_spill]] %s12191_s18 }
  0x14   :  { %23 = vsyncpa [#allocation7], 0 }
  0x15   :  { %25 = vsyncpa [#allocation7 + $0x1], 0 }
  0x16   :  { %26 = vsyncpa [#allocation10], 0 }
  0x17   :  { %28 = vsyncpa [#allocation10 + $0x1], 0 }
  0x18   :  { %29 = vsyncpa [#allocation13], 0 }
  0x19   :  { %30 = vsyncpa [#allocation16], 0 }
  0x1a   :  { %31 = vsyncpa [#allocation19], 0 }
  0x1b   :  { %32 = vsyncpa [#allocation22], 0 }
  0x1c   :  { %33 = vsyncpa [#allocation25], 0 }
  0x1d   :  { %34 = vsyncpa [#allocation28], 0 }
  0x1e   :  { %35 = vsyncpa [#allocation31], 0 }
  0x1f   :  { %36 = vsyncpa [#allocation34], 0 }
  0x20   :  { %37 = vsyncpa [#allocation8], 0 }
  0x21   :  { %39 = vsyncpa [#allocation8 + $0x1], 0  ;;  %s9724_s27 = smov 0   ;;  %s9726_s28 = smov 0  }
  0x22   :  { %s9728_s29 = smov 0   ;;  %s9730_s30 = smov 0  }
  0x23   :  { %s9732_s0 = smov 0   ;;  %s9734_s19 = smov 0  }
  0x24   :  { %s9736_s1 = smov 0   ;;  %s9738_s20 = smov 0  }
  0x25   :  { %s9740_s21 = smov 0   ;;  %s9742_s22 = smov 0  }
  0x26   :  { %s9744_s2 = smov 0   ;;  %s9746_s23 = smov 0  }
  0x27   :  { %s9748_s24 = smov 0  }
  0x28 LB: > { %12277 = sst [smem:[#allocation48_spill]] %s9547_s27  ;;  %s9790_s25 = sadd.s32 4294967295, %s9595_s24   ;;  %s9595_s24 = sphi %s9748_s24, %s45_s24   ;;  %s9591_s23 = sphi %s9746_s23, %s12518_s23   ;;  %s9587_s2 = sphi %s9744_s2, %s12517_s2   ;;  %s9583_s22 = sphi %s9742_s22, %s12516_s22   ;;  %s9579_s21 = sphi %s9740_s21, %s12510_s21   ;;  %s9575_s20 = sphi %s9738_s20, %s12509_s20   ;;  %s9571_s1 = sphi %s9736_s1, %s12515_s1   ;;  %s9567_s19 = sphi %s9734_s19, %s12514_s19   ;;  %s9563_s0 = sphi %s9732_s0, %s12508_s0   ;;  %s9559_s30 = sphi %s9730_s30, %s12507_s30   ;;  %s9555_s29 = sphi %s9728_s29, %s12513_s29   ;;  %s9551_s28 = sphi %s9726_s28, %s12506_s28   ;;  %s9547_s27 = sphi %s9724_s27, %s12505_s27  }
  0x29   : > { %12278 = sst [smem:[#allocation49_spill]] %s9551_s28  ;;  %p6918_p0 = scmp.ge.s32.totalorder %s9595_s24, 1 }
  0x2a   : > { %12279 = sst [smem:[#allocation50_spill]] %s9555_s29  ;;  %p12207_p1 = scmp.eq.s32.totalorder %s9790_s25, 0 }
  0x2b   : > { %12280 = sst [smem:[#allocation51_spill]] %s9559_s30  ;;  %p489_p2 = scmp.lt.s32.totalorder %s9595_s24, 9 }
  0x2c   : > { %12281 = sst [smem:[#allocation52_spill]] %s9563_s0  ;;  %s9597_s18 = smov [#allocation11]  }
  0x2d   : > { %12282 = sst [smem:[#allocation53_spill]] %s9567_s19  ;;  %p9795_p3 = pnand %p6918_p0, %p489_p2 }
  0x2e   : > { %12283 = sst [smem:[#allocation54_spill]] %s9571_s1  ;;  %s9599_s28 = smov [#allocation15]  }
  0x2f   : > { %12284 = sst [smem:[#allocation55_spill]] %s9575_s20  ;;  %p8126_p4 = pneg %p9795_p3 }
  0x30   : > { %12285 = sst [smem:[#allocation56_spill]] %s9579_s21  ;;  %s502_s21 = sshll.u32 %s9597_s18, 4  ;;  %s503_s21 = int_to_ptr.vmem [resolvable:$true] %s502_s21 }
  0x31   : > { %12286 = sst [smem:[#allocation57_spill]] %s9587_s2  ;;  %s9598_s20 = smov [#allocation12]  }
  0x32   : > { %12287 = sst [smem:[#allocation58_spill]] %s9591_s23  ;;  %s513_s1 = sshll.u32 %s9598_s20, 4  ;;  %s9807_s1 = int_to_ptr.vmem [resolvable:$true] %s513_s1 }
  0x33   : > { %12288 = sst [smem:[#allocation59_spill]] %s9790_s25  ;;  %p9803_p5 = pnand %p8126_p4, %p12207_p1 }
  0x34   : > { %s12289_s26 = scalar_select %p9795_p3, 1, 0 }
  0x35   : > { %s9809_s29 = sshll.u32 %s9599_s28, 4  ;;  %s12292_s19 = sld [smem:[#allocation114_spill]]  ;;  %s537_s29 = int_to_ptr.vmem [resolvable:$true] %s9809_s29 }
  0x36   : > { %12290 = sst [smem:[#allocation60_spill]] %s12289_s26  ;;  %p9819_p7 = pneg %p9803_p5 }
  0x3b   : > { %s12293_s17 = smov %s12292_s19  ;;  %s8909_s18 = scalar_lea.hbm %s12292_s19, 16 }
  0x3c   : > { %p8910_p6 = scmp.ne.s32.totalorder %s12293_s17, %s8909_s18  ;;  %p8916_p10 = scmp.lt.u32.totalorder %s8909_s18, %s12293_s17 }
  0x3e   : > { %p8912_p8 = pnand %p9819_p7, %p8910_p6 }
  0x40   : > { %p8913_p9 = pneg %p8912_p8 }
  0x42   : > { %p8918_p11 = pnand %p8916_p10, %p8913_p9 }
  0x44   : > { %8921 = shalt.err (!%p8918_p11)
}
  0x45   : > { %s8922_s30 = scalar_lea.vmem %s503_s21, 16  ;;  %s8929_s0 = scalar_lea.vmem %s503_s21, 32 }
  0x46   : > { %p8923_p12 = scmp.ne.s32.totalorder %s503_s21, %s8922_s30  ;;  %p8930_p2 = scmp.lt.s32.totalorder %s503_s21, %s503_s21 }
  0x47   : > { %p8931_p4 = scmp.lt.s32.totalorder %s8929_s0, %s8922_s30 }
  0x48   : > { %p8925_p13 = pnand %p8923_p12, %p9819_p7 }
  0x49   : > { %p8932_p1 = por %p8931_p4, %p8930_p2 }
  0x4a   : > { %p8926_p0 = pneg %p8925_p13 }
  0x4c   : > { %p8933_p3 = pnand %p8932_p1, %p8926_p0 }
  0x4e   : > { %8936 = shalt.err (!%p8933_p3)
}
  0x4f   : > { %8129 = dma.hbm_to_vmem [thread:$0]  (!%p9803_p5), %s12293_s17, 16, %s503_s21, [#allocation10]  }
  0x50   : > { %s12295_s3 = sld [smem:[#allocation115_spill]] }
  0x56   : > { %s8937_s18 = scalar_lea.hbm %s12295_s3, 16 }
  0x57   : > { %p8938_p6 = scmp.ne.s32.totalorder %s12295_s3, %s8937_s18  ;;  %p8944_p1 = scmp.lt.u32.totalorder %s8937_s18, %s12295_s3 }
  0x59   : > { %p8940_p8 = pnand %p8938_p6, %p9819_p7 }
  0x5b   : > { %p8941_p9 = pneg %p8940_p8 }
  0x5d   : > { %p8946_p3 = pnand %p8944_p1, %p8941_p9 }
  0x5f   : > { %8949 = shalt.err (!%p8946_p3)
}
  0x60   : > { %s8950_s21 = scalar_lea.vmem %s9807_s1, 16  ;;  %s8957_s2 = scalar_lea.vmem %s9807_s1, 32 }
  0x61   : > { %p8951_p10 = scmp.ne.s32.totalorder %s9807_s1, %s8950_s21  ;;  %p8958_p13 = scmp.lt.s32.totalorder %s9807_s1, %s9807_s1 }
  0x62   : > { %p8959_p0 = scmp.lt.s32.totalorder %s8957_s2, %s8950_s21 }
  0x63   : > { %p8953_p11 = pnand %p8951_p10, %p9819_p7 }
  0x64   : > { %p8960_p2 = por %p8959_p0, %p8958_p13 }
  0x65   : > { %p8954_p12 = pneg %p8953_p11 }
  0x67   : > { %p8961_p4 = pnand %p8960_p2, %p8954_p12 }
  0x69   : > { %8964 = shalt.err (!%p8961_p4)
}
  0x6a   : > { %8132 = dma.hbm_to_vmem [thread:$0]  (!%p9803_p5), %s12295_s3, 16, %s9807_s1, [#allocation13]  }
  0x6b   : > { %s12296_s5 = sld [smem:[#allocation117_spill]] }
  0x71   : > { %s8965_s18 = scalar_lea.hbm %s12296_s5, 4096 }
  0x72   : > { %p8966_p6 = scmp.ne.s32.totalorder %s12296_s5, %s8965_s18  ;;  %p8972_p1 = scmp.lt.u32.totalorder %s8965_s18, %s12296_s5 }
  0x74   : > { %p8968_p8 = pnand %p8966_p6, %p9819_p7 }
  0x76   : > { %p8969_p9 = pneg %p8968_p8 }
  0x78   : > { %p8974_p3 = pnand %p8972_p1, %p8969_p9 }
  0x7a   : > { %8977 = shalt.err (!%p8974_p3)
}
  0x7b   : > { %s8978_s2 = scalar_lea.vmem %s537_s29, 4096  ;;  %p8986_p13 = scmp.lt.s32.totalorder %s537_s29, %s537_s29 }
  0x7c   : > { %p8979_p10 = scmp.ne.s32.totalorder %s537_s29, %s8978_s2  ;;  %p8987_p0 = scmp.lt.s32.totalorder %s8978_s2, %s8978_s2 }
  0x7e   : > { %p8981_p11 = pnand %p8979_p10, %p9819_p7  ;;  %p8988_p2 = por %p8987_p0, %p8986_p13 }
  0x80   : > { %p8982_p12 = pneg %p8981_p11 }
  0x82   : > { %p8989_p4 = pnand %p8988_p2, %p8982_p12 }
  0x84   : > { %8992 = shalt.err (!%p8989_p4)
}
  0x85   : > { %s12211_s1 = smov 64   ;;  %s12213_s19 = smov 4  }
  0x86   : > { %8138 = dma.hbm_to_vmem [thread:$0]  (!%p9803_p5), %s12296_s5, 4096, %s537_s29, [#allocation16], %s12211_s1, %s12211_s1, %s12213_s19  }
  0x87   : > { %s9602_s26 = smov [#allocation18]   ;;  %s12297_s7 = sld [smem:[#allocation119_spill]] }
  0x88   : > { %s562_s18 = sshll.u32 %s9602_s26, 4  ;;  %s563_s18 = int_to_ptr.vmem [resolvable:$true] %s562_s18 }
  0x8d   : > { %s8993_s0 = scalar_lea.hbm %s12297_s7, 64 }
  0x8e   : > { %p8994_p6 = scmp.ne.s32.totalorder %s12297_s7, %s8993_s0  ;;  %p9000_p1 = scmp.lt.u32.totalorder %s8993_s0, %s12297_s7 }
  0x90   : > { %p8996_p8 = pnand %p8994_p6, %p9819_p7 }
  0x92   : > { %p8997_p9 = pneg %p8996_p8 }
  0x94   : > { %p9002_p3 = pnand %p9000_p1, %p8997_p9 }
  0x96   : > { %9005 = shalt.err (!%p9002_p3)
}
  0x97   : > { %s9006_s29 = scalar_lea.vmem %s563_s18, 64  ;;  %p9014_p13 = scmp.lt.s32.totalorder %s563_s18, %s563_s18 }
  0x98   : > { %p9007_p10 = scmp.ne.s32.totalorder %s563_s18, %s9006_s29  ;;  %p9015_p0 = scmp.lt.s32.totalorder %s9006_s29, %s9006_s29 }
  0x9a   : > { %p9009_p11 = pnand %p9007_p10, %p9819_p7  ;;  %p9016_p2 = por %p9015_p0, %p9014_p13 }
  0x9c   : > { %p9010_p12 = pneg %p9009_p11 }
  0x9e   : > { %p9017_p4 = pnand %p9016_p2, %p9010_p12 }
  0xa0   : > { %9020 = shalt.err (!%p9017_p4)
}
  0xa1   : > { %s12215_s23 = smov 16   ;;  %s12217_s25 = smov 1  }
  0xa2   : > { %8144 = dma.hbm_to_vmem [thread:$0]  (!%p9803_p5), %s12297_s7, 64, %s563_s18, [#allocation19], %s12215_s23, %s12215_s23, %s12217_s25  }
  0xa3   : > { %s9605_s26 = smov [#allocation21]   ;;  %s9606_s30 = smov [#allocation24]  }
  0xa4   : > { %s588_s28 = sshll.u32 %s9605_s26, 4  ;;  %s615_s0 = sshll.u32 %s9606_s30, 4  ;;  %s589_s28 = int_to_ptr.vmem [resolvable:$true] %s588_s28  ;;  %s9902_s0 = int_to_ptr.vmem [resolvable:$true] %s615_s0 }
  0xa5   : > { %s12298_s9 = sld [smem:[#allocation121_spill]] }
  0xab   : > { %s9021_s29 = scalar_lea.hbm %s12298_s9, 64 }
  0xac   : > { %p9022_p6 = scmp.ne.s32.totalorder %s12298_s9, %s9021_s29  ;;  %p9028_p1 = scmp.lt.u32.totalorder %s9021_s29, %s12298_s9 }
  0xae   : > { %p9024_p8 = pnand %p9022_p6, %p9819_p7 }
  0xb0   : > { %p9025_p9 = pneg %p9024_p8 }
  0xb2   : > { %p9030_p3 = pnand %p9028_p1, %p9025_p9 }
  0xb4   : > { %9033 = shalt.err (!%p9030_p3)
}
  0xb5   : > { %s9034_s17 = scalar_lea.vmem %s589_s28, 64  ;;  %p9042_p13 = scmp.lt.s32.totalorder %s589_s28, %s589_s28 }
  0xb6   : > { %p9035_p10 = scmp.ne.s32.totalorder %s589_s28, %s9034_s17  ;;  %p9043_p0 = scmp.lt.s32.totalorder %s9034_s17, %s9034_s17 }
  0xb8   : > { %p9037_p11 = pnand %p9035_p10, %p9819_p7  ;;  %p9044_p2 = por %p9043_p0, %p9042_p13 }
  0xba   : > { %p9038_p12 = pneg %p9037_p11 }
  0xbc   : > { %p9045_p4 = pnand %p9044_p2, %p9038_p12 }
  0xbe   : > { %9048 = shalt.err (!%p9045_p4)
}
  0xbf   : > { %8150 = dma.hbm_to_vmem [thread:$0]  (!%p9803_p5), %s12298_s9, 64, %s589_s28, [#allocation22], %s12215_s23, %s12215_s23, %s12217_s25  }
  0xc0   : > { %s12299_s11 = sld [smem:[#allocation123_spill]] }
  0xc6   : > { %s9049_s21 = scalar_lea.hbm %s12299_s11, 16 }
  0xc7   : > { %p9050_p6 = scmp.ne.s32.totalorder %s12299_s11, %s9049_s21  ;;  %p9056_p1 = scmp.lt.u32.totalorder %s9049_s21, %s12299_s11 }
  0xc9   : > { %p9052_p8 = pnand %p9050_p6, %p9819_p7 }
  0xcb   : > { %p9053_p9 = pneg %p9052_p8 }
  0xcd   : > { %p9058_p3 = pnand %p9056_p1, %p9053_p9 }
  0xcf   : > { %9061 = shalt.err (!%p9058_p3)
}
  0xd0   : > { %s9062_s28 = scalar_lea.vmem %s9902_s0, 16  ;;  %s9069_s17 = scalar_lea.vmem %s9902_s0, 32 }
  0xd1   : > { %p9063_p10 = scmp.ne.s32.totalorder %s9902_s0, %s9062_s28  ;;  %p9070_p13 = scmp.lt.s32.totalorder %s9902_s0, %s9902_s0 }
  0xd2   : > { %p9071_p0 = scmp.lt.s32.totalorder %s9069_s17, %s9062_s28 }
  0xd3   : > { %p9065_p11 = pnand %p9063_p10, %p9819_p7 }
  0xd4   : > { %p9072_p2 = por %p9071_p0, %p9070_p13 }
  0xd5   : > { %p9066_p12 = pneg %p9065_p11 }
  0xd7   : > { %p9073_p4 = pnand %p9072_p2, %p9066_p12 }
  0xd9   : > { %9076 = shalt.err (!%p9073_p4)
}
  0xda   : > { %8156 = dma.hbm_to_vmem [thread:$0]  (!%p9803_p5), %s12299_s11, 16, %s9902_s0, [#allocation25]  }
  0xdb   : > { %s9607_s26 = smov [#allocation27]   ;;  %s9608_s21 = smov [#allocation30]  }
  0xdc   : > { %s637_s30 = sshll.u32 %s9607_s26, 4  ;;  %s661_s2 = sshll.u32 %s9608_s21, 4  ;;  %s638_s30 = int_to_ptr.vmem [resolvable:$true] %s637_s30  ;;  %s9949_s2 = int_to_ptr.vmem [resolvable:$true] %s661_s2 }
  0xdd   : > { %s12300_s13 = sld [smem:[#allocation125_spill]] }
  0xe3   : > { %s9077_s18 = scalar_lea.hbm %s12300_s13, 16 }
  0xe4   : > { %p9078_p6 = scmp.ne.s32.totalorder %s12300_s13, %s9077_s18  ;;  %p9084_p1 = scmp.lt.u32.totalorder %s9077_s18, %s12300_s13 }
  0xe6   : > { %p9080_p8 = pnand %p9078_p6, %p9819_p7 }
  0xe8   : > { %p9081_p9 = pneg %p9080_p8 }
  0xea   : > { %p9086_p3 = pnand %p9084_p1, %p9081_p9 }
  0xec   : > { %9089 = shalt.err (!%p9086_p3)
}
  0xed   : > { %s9090_s19 = scalar_lea.vmem %s638_s30, 16  ;;  %s9097_s26 = scalar_lea.vmem %s638_s30, 32 }
  0xee   : > { %p9091_p10 = scmp.ne.s32.totalorder %s638_s30, %s9090_s19  ;;  %p9098_p13 = scmp.lt.s32.totalorder %s638_s30, %s638_s30 }
  0xef   : > { %p9099_p0 = scmp.lt.s32.totalorder %s9097_s26, %s9090_s19 }
  0xf0   : > { %p9093_p11 = pnand %p9091_p10, %p9819_p7 }
  0xf1   : > { %p9100_p2 = por %p9099_p0, %p9098_p13 }
  0xf2   : > { %p9094_p12 = pneg %p9093_p11 }
  0xf4   : > { %p9101_p4 = pnand %p9100_p2, %p9094_p12 }
  0xf6   : > { %9104 = shalt.err (!%p9101_p4)
}
  0xf7   : > { %8162 = dma.hbm_to_vmem [thread:$0]  (!%p9803_p5), %s12300_s13, 16, %s638_s30, [#allocation28]  }
  0xf8   : > { %s12301_s15 = sld [smem:[#allocation127_spill]] }
  0xfe   : > { %s9105_s28 = scalar_lea.hbm %s12301_s15, 64 }
  0xff   : > { %p9106_p6 = scmp.ne.s32.totalorder %s12301_s15, %s9105_s28  ;;  %p9112_p1 = scmp.lt.u32.totalorder %s9105_s28, %s12301_s15 }
 0x101   : > { %p9108_p8 = pnand %p9106_p6, %p9819_p7 }
 0x103   : > { %p9109_p9 = pneg %p9108_p8 }
 0x105   : > { %p9114_p3 = pnand %p9112_p1, %p9109_p9 }
 0x107   : > { %9117 = shalt.err (!%p9114_p3)
}
 0x108   : > { %s9118_s30 = scalar_lea.vmem %s9949_s2, 64  ;;  %p9126_p13 = scmp.lt.s32.totalorder %s9949_s2, %s9949_s2 }
 0x109   : > { %p9119_p10 = scmp.ne.s32.totalorder %s9949_s2, %s9118_s30  ;;  %p9127_p0 = scmp.lt.s32.totalorder %s9118_s30, %s9118_s30 }
 0x10b   : > { %p9121_p11 = pnand %p9119_p10, %p9819_p7  ;;  %p9128_p2 = por %p9127_p0, %p9126_p13 }
 0x10d   : > { %p9122_p12 = pneg %p9121_p11 }
 0x10f   : > { %p9129_p4 = pnand %p9128_p2, %p9122_p12 }
 0x111   : > { %9132 = shalt.err (!%p9129_p4)
}
 0x112   : > { %8168 = dma.hbm_to_vmem [thread:$0]  (!%p9803_p5), %s12301_s15, 64, %s9949_s2, [#allocation31]  }
 0x113   : > { %s9609_s29 = smov [#allocation14]   ;;  %s9610_s18 = smov [#allocation17]  }
 0x114   : > { %s523_s3 = sshll.u32 %s9609_s29, 4  ;;  %s549_s28 = sshll.u32 %s9610_s18, 4  ;;  %s524_s3 = int_to_ptr.vmem [resolvable:$true] %s523_s3  ;;  %s9992_s28 = int_to_ptr.vmem [resolvable:$true] %s549_s28 }
 0x115   : > { %s12302_s4 = sld [smem:[#allocation116_spill]] }
 0x11b   : > { %s9133_s0 = scalar_lea.hbm %s12302_s4, 4096 }
 0x11c   : > { %p9134_p6 = scmp.ne.s32.totalorder %s12302_s4, %s9133_s0  ;;  %p9140_p1 = scmp.lt.u32.totalorder %s9133_s0, %s12302_s4 }
 0x11e   : > { %p9136_p8 = pnand %p9134_p6, %p9819_p7 }
 0x120   : > { %p9137_p9 = pneg %p9136_p8 }
 0x122   : > { %p9142_p3 = pnand %p9140_p1, %p9137_p9 }
 0x124   : > { %9145 = shalt.err (!%p9142_p3)
}
 0x125   : > { %s9146_s21 = scalar_lea.vmem %s524_s3, 4096  ;;  %p9154_p13 = scmp.lt.s32.totalorder %s524_s3, %s524_s3 }
 0x126   : > { %p9147_p10 = scmp.ne.s32.totalorder %s524_s3, %s9146_s21  ;;  %p9155_p0 = scmp.lt.s32.totalorder %s9146_s21, %s9146_s21 }
 0x128   : > { %p9149_p11 = pnand %p9147_p10, %p9819_p7  ;;  %p9156_p2 = por %p9155_p0, %p9154_p13 }
 0x12a   : > { %p9150_p12 = pneg %p9149_p11 }
 0x12c   : > { %p9157_p4 = pnand %p9156_p2, %p9150_p12 }
 0x12e   : > { %9160 = shalt.err (!%p9157_p4)
}
 0x12f   : > { %s12303_s29 = smov 4   ;;  %s12304_s18 = smov 64  }
 0x130   : > { %8135 = dma.hbm_to_vmem [thread:$0]  (!%p9803_p5), %s12302_s4, 4096, %s524_s3, [#allocation13], %s12304_s18, %s12304_s18, %s12303_s29  }
 0x131   : > { %s12305_s6 = sld [smem:[#allocation118_spill]] }
 0x137   : > { %s9161_s30 = scalar_lea.hbm %s12305_s6, 4096 }
 0x138   : > { %p9162_p6 = scmp.ne.s32.totalorder %s12305_s6, %s9161_s30  ;;  %p9168_p1 = scmp.lt.u32.totalorder %s9161_s30, %s12305_s6 }
 0x13a   : > { %p9164_p8 = pnand %p9162_p6, %p9819_p7 }
 0x13c   : > { %p9165_p9 = pneg %p9164_p8 }
 0x13e   : > { %p9170_p3 = pnand %p9168_p1, %p9165_p9 }
 0x140   : > { %9173 = shalt.err (!%p9170_p3)
}
 0x141   : > { %s9174_s3 = scalar_lea.vmem %s9992_s28, 4096  ;;  %p9182_p13 = scmp.lt.s32.totalorder %s9992_s28, %s9992_s28 }
 0x142   : > { %p9175_p10 = scmp.ne.s32.totalorder %s9992_s28, %s9174_s3  ;;  %p9183_p0 = scmp.lt.s32.totalorder %s9174_s3, %s9174_s3 }
 0x144   : > { %p9177_p11 = pnand %p9175_p10, %p9819_p7  ;;  %p9184_p2 = por %p9183_p0, %p9182_p13 }
 0x146   : > { %p9178_p12 = pneg %p9177_p11 }
 0x148   : > { %p9185_p4 = pnand %p9184_p2, %p9178_p12 }
 0x14a   : > { %9188 = shalt.err (!%p9185_p4)
}
 0x14b   : > { %8141 = dma.hbm_to_vmem [thread:$0]  (!%p9803_p5), %s12305_s6, 4096, %s9992_s28, [#allocation16], %s12304_s18, %s12304_s18, %s12303_s29  }
 0x14c   : > { %s9611_s1 = smov [#allocation20]   ;;  %s9612_s19 = smov [#allocation23]  }
 0x14d   : > { %s575_s0 = sshll.u32 %s9611_s1, 4  ;;  %s601_s30 = sshll.u32 %s9612_s19, 4  ;;  %s576_s0 = int_to_ptr.vmem [resolvable:$true] %s575_s0  ;;  %s10041_s30 = int_to_ptr.vmem [resolvable:$true] %s601_s30 }
 0x14e   : > { %s12306_s8 = sld [smem:[#allocation120_spill]] }
 0x154   : > { %s9189_s21 = scalar_lea.hbm %s12306_s8, 64 }
 0x155   : > { %p9190_p6 = scmp.ne.s32.totalorder %s12306_s8, %s9189_s21  ;;  %p9196_p1 = scmp.lt.u32.totalorder %s9189_s21, %s12306_s8 }
 0x157   : > { %p9192_p8 = pnand %p9190_p6, %p9819_p7 }
 0x159   : > { %p9193_p9 = pneg %p9192_p8 }
 0x15b   : > { %p9198_p3 = pnand %p9196_p1, %p9193_p9 }
 0x15d   : > { %9201 = shalt.err (!%p9198_p3)
}
 0x15e   : > { %s9202_s17 = scalar_lea.vmem %s576_s0, 64  ;;  %p9210_p13 = scmp.lt.s32.totalorder %s576_s0, %s576_s0 }
 0x15f   : > { %p9203_p10 = scmp.ne.s32.totalorder %s576_s0, %s9202_s17  ;;  %p9211_p0 = scmp.lt.s32.totalorder %s9202_s17, %s9202_s17 }
 0x161   : > { %p9205_p11 = pnand %p9203_p10, %p9819_p7  ;;  %p9212_p2 = por %p9211_p0, %p9210_p13 }
 0x163   : > { %p9206_p12 = pneg %p9205_p11 }
 0x165   : > { %p9213_p4 = pnand %p9212_p2, %p9206_p12 }
 0x167   : > { %9216 = shalt.err (!%p9213_p4)
}
 0x168   : > { %s12307_s25 = smov 1   ;;  %s12308_s1 = smov 16  }
 0x169   : > { %8147 = dma.hbm_to_vmem [thread:$0]  (!%p9803_p5), %s12306_s8, 64, %s576_s0, [#allocation19], %s12308_s1, %s12308_s1, %s12307_s25  }
 0x16a   : > { %s12309_s10 = sld [smem:[#allocation122_spill]] }
 0x170   : > { %s9217_s3 = scalar_lea.hbm %s12309_s10, 1024 }
 0x171   : > { %p9218_p6 = scmp.ne.s32.totalorder %s12309_s10, %s9217_s3  ;;  %p9224_p1 = scmp.lt.u32.totalorder %s9217_s3, %s12309_s10 }
 0x173   : > { %p9220_p8 = pnand %p9218_p6, %p9819_p7 }
 0x175   : > { %p9221_p9 = pneg %p9220_p8 }
 0x177   : > { %p9226_p3 = pnand %p9224_p1, %p9221_p9 }
 0x179   : > { %9229 = shalt.err (!%p9226_p3)
}
 0x17a   : > { %s9230_s0 = scalar_lea.vmem %s10041_s30, 1024  ;;  %p9238_p13 = scmp.lt.s32.totalorder %s10041_s30, %s10041_s30 }
 0x17b   : > { %p9231_p10 = scmp.ne.s32.totalorder %s10041_s30, %s9230_s0  ;;  %p9239_p0 = scmp.lt.s32.totalorder %s9230_s0, %s9230_s0 }
 0x17d   : > { %p9233_p11 = pnand %p9231_p10, %p9819_p7  ;;  %p9240_p2 = por %p9239_p0, %p9238_p13 }
 0x17f   : > { %p9234_p12 = pneg %p9233_p11 }
 0x181   : > { %p9241_p4 = pnand %p9240_p2, %p9234_p12 }
 0x183   : > { %9244 = shalt.err (!%p9241_p4)
}
 0x184   : > { %8153 = dma.hbm_to_vmem [thread:$0]  (!%p9803_p5), %s12309_s10, 1024, %s10041_s30, [#allocation22], %s12304_s18, %s12304_s18, %s12303_s29  }
 0x185   : > { %s9613_s19 = smov [#allocation26]   ;;  %s9614_s2 = smov [#allocation29]  }
 0x186   : > { %s626_s26 = sshll.u32 %s9613_s19, 4  ;;  %s647_s21 = sshll.u32 %s9614_s2, 4  ;;  %s627_s26 = int_to_ptr.vmem [resolvable:$true] %s626_s26  ;;  %s10090_s21 = int_to_ptr.vmem [resolvable:$true] %s647_s21 }
 0x187   : > { %s12310_s12 = sld [smem:[#allocation124_spill]] }
 0x18d   : > { %s9245_s28 = scalar_lea.hbm %s12310_s12, 16 }
 0x18e   : > { %p9246_p6 = scmp.ne.s32.totalorder %s12310_s12, %s9245_s28  ;;  %p9252_p1 = scmp.lt.u32.totalorder %s9245_s28, %s12310_s12 }
 0x190   : > { %p9248_p8 = pnand %p9246_p6, %p9819_p7 }
 0x192   : > { %p9249_p9 = pneg %p9248_p8 }
 0x194   : > { %p9254_p3 = pnand %p9252_p1, %p9249_p9 }
 0x196   : > { %9257 = shalt.err (!%p9254_p3)
}
 0x197   : > { %s9258_s25 = scalar_lea.vmem %s627_s26, 16  ;;  %s9265_s19 = scalar_lea.vmem %s627_s26, 32 }
 0x198   : > { %p9259_p10 = scmp.ne.s32.totalorder %s627_s26, %s9258_s25  ;;  %p9266_p13 = scmp.lt.s32.totalorder %s627_s26, %s627_s26 }
 0x199   : > { %p9267_p0 = scmp.lt.s32.totalorder %s9265_s19, %s9258_s25 }
 0x19a   : > { %p9261_p11 = pnand %p9259_p10, %p9819_p7 }
 0x19b   : > { %p9268_p2 = por %p9267_p0, %p9266_p13 }
 0x19c   : > { %p9262_p12 = pneg %p9261_p11 }
 0x19e   : > { %p9269_p4 = pnand %p9268_p2, %p9262_p12 }
 0x1a0   : > { %9272 = shalt.err (!%p9269_p4)
}
 0x1a1   : > { %8159 = dma.hbm_to_vmem [thread:$0]  (!%p9803_p5), %s12310_s12, 16, %s627_s26, [#allocation25]  }
 0x1a2   : > { %s12311_s14 = sld [smem:[#allocation126_spill]] }
 0x1a8   : > { %s9273_s17 = scalar_lea.hbm %s12311_s14, 4096 }
 0x1a9   : > { %p9274_p6 = scmp.ne.s32.totalorder %s12311_s14, %s9273_s17  ;;  %p9280_p1 = scmp.lt.u32.totalorder %s9273_s17, %s12311_s14 }
 0x1ab   : > { %p9276_p8 = pnand %p9274_p6, %p9819_p7 }
 0x1ad   : > { %p9277_p9 = pneg %p9276_p8 }
 0x1af   : > { %p9282_p3 = pnand %p9280_p1, %p9277_p9 }
 0x1b1   : > { %9285 = shalt.err (!%p9282_p3)
}
 0x1b2   : > { %s9286_s26 = scalar_lea.vmem %s10090_s21, 4096  ;;  %p9294_p13 = scmp.lt.s32.totalorder %s10090_s21, %s10090_s21 }
 0x1b3   : > { %p9287_p10 = scmp.ne.s32.totalorder %s10090_s21, %s9286_s26  ;;  %p9295_p0 = scmp.lt.s32.totalorder %s9286_s26, %s9286_s26 }
 0x1b5   : > { %p9289_p11 = pnand %p9287_p10, %p9819_p7  ;;  %p9296_p2 = por %p9295_p0, %p9294_p13 }
 0x1b7   : > { %p9290_p12 = pneg %p9289_p11 }
 0x1b9   : > { %p9297_p4 = pnand %p9296_p2, %p9290_p12 }
 0x1bb   : > { %9300 = shalt.err (!%p9297_p4)
}
 0x1bc   : > { %s9615_s19 = smov 256   ;;  %s9616_s23 = smov [#allocation32]  }
 0x1bd   : > { %8165 = dma.hbm_to_vmem [thread:$0]  (!%p9803_p5), %s12311_s14, 4096, %s10090_s21, [#allocation28], %s9615_s19, %s9615_s19, %s12308_s1  }
 0x1be   : > { %s671_s28 = sshll.u32 %s9616_s23, 4  ;;  %s9617_s17 = smov [#allocation33]   ;;  %s672_s28 = int_to_ptr.vmem [resolvable:$true] %s671_s28 }
 0x1bf   : > { %s685_s0 = sshll.u32 %s9617_s17, 4  ;;  %s12312_s16 = sld [smem:[#allocation128_spill]]  ;;  %s686_s0 = int_to_ptr.vmem [resolvable:$true] %s685_s0 }
 0x1c5   : > { %s9301_s25 = scalar_lea.hbm %s12312_s16, 4096 }
 0x1c6   : > { %p9302_p6 = scmp.ne.s32.totalorder %s12312_s16, %s9301_s25  ;;  %p9308_p1 = scmp.lt.u32.totalorder %s9301_s25, %s12312_s16 }
 0x1c8   : > { %p9304_p8 = pnand %p9302_p6, %p9819_p7 }
 0x1ca   : > { %p9305_p9 = pneg %p9304_p8 }
 0x1cc   : > { %p9310_p3 = pnand %p9308_p1, %p9305_p9 }
 0x1ce   : > { %9313 = shalt.err (!%p9310_p3)
}
 0x1cf   : > { %s9314_s1 = scalar_lea.vmem %s672_s28, 4096  ;;  %p9322_p13 = scmp.lt.s32.totalorder %s672_s28, %s672_s28 }
 0x1d0   : > { %p9315_p10 = scmp.ne.s32.totalorder %s672_s28, %s9314_s1  ;;  %p9323_p0 = scmp.lt.s32.totalorder %s9314_s1, %s9314_s1 }
 0x1d2   : > { %p9317_p11 = pnand %p9315_p10, %p9819_p7  ;;  %p9324_p2 = por %p9323_p0, %p9322_p13 }
 0x1d4   : > { %p9318_p12 = pneg %p9317_p11 }
 0x1d6   : > { %p9325_p4 = pnand %p9324_p2, %p9318_p12 }
 0x1d8   : > { %9328 = shalt.err (!%p9325_p4)
}
 0x1d9   : > { %8171 = dma.hbm_to_vmem [thread:$0]  (!%p9803_p5), %s12312_s16, 4096, %s672_s28, [#allocation31], %s12304_s18, %s12304_s18, %s12303_s29  }
 0x1da   : > { %s12313_s3 = sld [smem:[#allocation129_spill]] }
 0x1e0   : > { %s9329_s23 = scalar_lea.hbm %s12313_s3, 16 }
 0x1e1   : > { %p9330_p6 = scmp.ne.s32.totalorder %s12313_s3, %s9329_s23  ;;  %p9336_p1 = scmp.lt.u32.totalorder %s9329_s23, %s12313_s3 }
 0x1e3   : > { %p9332_p8 = pnand %p9330_p6, %p9819_p7 }
 0x1e5   : > { %p9333_p9 = pneg %p9332_p8 }
 0x1e7   : > { %p9338_p3 = pnand %p9336_p1, %p9333_p9 }
 0x1e9   : > { %9341 = shalt.err (!%p9338_p3)
}
 0x1ea   : > { %s9342_s26 = scalar_lea.vmem %s686_s0, 16  ;;  %s9349_s29 = scalar_lea.vmem %s686_s0, 32 }
 0x1eb   : > { %p9343_p10 = scmp.ne.s32.totalorder %s686_s0, %s9342_s26  ;;  %p9350_p13 = scmp.lt.s32.totalorder %s686_s0, %s686_s0 }
 0x1ec   : > { %p9351_p0 = scmp.lt.s32.totalorder %s9349_s29, %s9342_s26 }
 0x1ed   : > { %p9345_p11 = pnand %p9343_p10, %p9819_p7 }
 0x1ee   : > { %p9352_p2 = por %p9351_p0, %p9350_p13 }
 0x1ef   : > { %p9346_p12 = pneg %p9345_p11 }
 0x1f1   : > { %p9353_p4 = pnand %p9352_p2, %p9346_p12 }
 0x1f3   : > { %9356 = shalt.err (!%p9353_p4)
}
 0x1f4   : > { %s12314_s2 = sld [smem:[#allocation57_spill]]  ;;  %s12315_s1 = sld [smem:[#allocation58_spill]] }
 0x1f5   : > { %s12316_s5 = sld [smem:[#allocation53_spill]]  ;;  %s12317_s6 = sld [smem:[#allocation52_spill]] }
 0x1f6   : > { %s12318_s20 = sld [smem:[#allocation51_spill]]  ;;  %s12319_s27 = sld [smem:[#allocation59_spill]] }
 0x1f7   : > { %8174 = dma.hbm_to_vmem [thread:$0]  (!%p9803_p5), %s12313_s3, 16, %s686_s0, [#allocation34]  }
 0x1f8   : > { %s6917_s21 = sadd.s32 4294967294, %s9595_s24   ;;  %s57_s19 = sadd.s32 1, %s9583_s22 }
 0x1f9   : > { %p58_p7 = scmp.ge.s32.totalorder %s57_s19, 2  ;;  %p12220_p5 = scmp.eq.s32.totalorder %s9595_s24, 0 }
 0x1fa   : > { %s60_s23 = sadd.s32 1, %s12314_s2  ;;  %s64_s17 = sadd.s32 1, %s12315_s1 }
 0x1fb   : > { %s73_s4 = sadd.s32 1, %s12316_s5  ;;  %p80_p6 = scmp.ne.s32.totalorder %s12316_s5, %s12317_s6 }
 0x1fc   : > { %s12520_s19 = smov (%p58_p7, %s57_s19), 0  ;;  %s12522_s23 = smov (!%p58_p7, %s60_s23), %s12314_s2 }
 0x1fd   : > { %p86_p8 = scmp.ne.s32.totalorder %s12317_s6, %s12318_s20  ;;  %p62_p9 = scmp.ge.s32.totalorder %s12522_s23, 2 }
 0x1fe   : > { %s97_s0 = ssub.s32 %s9583_s22, %s12520_s19  ;;  %p10193_p1 = por %p12220_p5, %p80_p6 }
 0x1ff   : > { %p12321_p3 = scmp.eq.s32.totalorder %s12319_s27, 0  ;;  %s12524_s23 = smov (%p62_p9, %s12522_s23), 0 }
 0x200   : > { %s12526_s17 = smov (!%p62_p9, %s64_s17), %s12315_s1  ;;  %s69_s26 = ssub.s32 %s12314_s2, %s12524_s23 }
 0x201   : > { %p10202_p10 = por %p12321_p3, %p86_p8  ;;  %p476_p11 = scmp.eq.s32.totalorder %s12319_s27, 7 }
 0x202   : > { %p66_p12 = scmp.ge.s32.totalorder %s12526_s17, 2  ;;  %p482_p13 = scmp.eq.s32.totalorder %s6917_s21, 7 }
 0x203   : > { %p10215_p0 = por %p476_p11, %p80_p6  ;;  %p12219_p2 = scmp.lt.s32.totalorder %s9595_s24, 8 }
 0x204   : > { %s12528_s17 = smov (%p66_p12, %s12526_s17), 0  ;;  %p10225_p4 = por %p482_p13, %p86_p8 }
 0x205   : > { %s12323_s29 = scalar_select %p10215_p0, 1, 0 }
 0x206   : > { %12324 = sst [smem:[#allocation61_spill]] %s12528_s17  ;;  %s696_s28 = sand.u32 1, %s12316_s5  }
 0x207   : > { %s12325_s18 = scalar_select %p10225_p4, 1, 0 }
 0x208   : > { %s68_s3 = ssub.s32 %s12315_s1, %s12528_s17  ;;  %s6936_s8 = sshll.u32 %s696_s28, 6 }
 0x209   : > { %s70_s21 = sor.u32 %s69_s26, %s68_s3  ;;  %s10232_s7 = sor.u32 %s97_s0, %s68_s3 }
 0x20a   : > { %p71_p7 = scmp.eq.s32.totalorder %s70_s21, 0  ;;  %s6937_s9 = sshll.u32 %s12314_s2, 3 }
 0x20b   : > { %s6938_s6 = sshll.u32 %s12315_s1, 4  ;;  %s700_s10 = scalar_lea.vmem [#allocation6], %s6936_s8 }
 0x20c   : > { %s12530_s5 = smov (!%p71_p7, %s12316_s5), %s73_s4  ;;  %s706_s20 = sadd.s32 %s6938_s6, %s6937_s9 }
 0x20d   : > { %s709_s11 = sshll.u32 %s700_s10, 4  ;;  %s6939_s12 = sshll.u32 %s706_s20, 7  ;;  %s10242_s11 = int_to_ptr.vmem [resolvable:$true] %s709_s11 }
 0x20e   : > { %s12326_s26 = sld [smem:[#allocation112_spill]]  ;;  %p10253_p8 = pnand %p12219_p2, %p10193_p1 }
 0x20f   : > { %s6941_s8 = sshll.u32 %s9583_s22, 3  ;;  %s10258_s9 = scalar_lea.sflag [#allocation7], %s696_s28 }
 0x210   : > { %p9359_p3 = pneg %p10253_p8 }
 0x214   : > { %s10247_s3 = scalar_lea.hbm %s12326_s26, %s6939_s12  ;;  %s9362_s14 = scalar_lea.hbm %s12326_s26, 4096 }
 0x215   : > { %s9357_s10 = scalar_lea.hbm %s10247_s3, 1024  ;;  %p9363_p1 = scmp.lt.u32.totalorder %s10247_s3, %s12326_s26 }
 0x216   : > { %p9358_p9 = scmp.ne.s32.totalorder %s10247_s3, %s9357_s10  ;;  %p9364_p13 = scmp.lt.u32.totalorder %s9362_s14, %s9357_s10 }
 0x217   : > { %p9366_p2 = scmp.lt.u32.totalorder %s9357_s10, %s10247_s3 }
 0x218   : > { %p9360_p11 = pnand %p9359_p3, %p9358_p9  ;;  %p9365_p7 = por %p9364_p13, %p9363_p1 }
 0x21a   : > { %p9361_p12 = pneg %p9360_p11  ;;  %p9367_p5 = por %p9366_p2, %p9365_p7 }
 0x21c   : > { %p9368_p6 = pnand %p9367_p5, %p9361_p12 }
 0x21e   : > { %9371 = shalt.err (!%p9368_p6)
}
 0x21f   : > { %s9372_s30 = scalar_lea.vmem %s10242_s11, 1024  ;;  %s9618_s28 = smov [#allocation6]  }
 0x220   : > { %p9373_p9 = scmp.ne.s32.totalorder %s10242_s11, %s9372_s30  ;;  %s9377_s21 = sshll.u32 %s9618_s28, 4  ;;  %s9378_s21 = int_to_ptr.vmem [resolvable:$false] %s9377_s21 }
 0x221   : > { %s9379_s20 = scalar_lea.vmem %s9378_s21, 2048  ;;  %p9380_p0 = scmp.lt.s32.totalorder %s10242_s11, %s9378_s21 }
 0x222   : > { %p9375_p11 = pnand %p9373_p9, %p9359_p3  ;;  %p9381_p1 = scmp.lt.s32.totalorder %s9379_s20, %s9372_s30 }
 0x224   : > { %p9376_p4 = pneg %p9375_p11  ;;  %p9382_p13 = por %p9381_p1, %p9380_p0 }
 0x226   : > { %p9383_p2 = pnand %p9382_p13, %p9376_p4 }
 0x228   : > { %9386 = shalt.err (!%p9383_p2)
}
 0x229   : > { %s9619_s10 = smov 128   ;;  %s12328_s12 = sld [smem:[#allocation50_spill]] }
 0x22a   : > { %s12329_s13 = sld [smem:[#allocation49_spill]]  ;;  %s12330_s14 = sld [smem:[#allocation48_spill]] }
 0x22b   : > { %s9620_s4 = smov 8   ;;  %s729_s0 = sadd.s32 %s6941_s8, %s6938_s6 }
 0x22c   : > { %8178 = dma.hbm_to_vmem [thread:$0]  (!%p10253_p8), %s10247_s3, 1024, %s10242_s11, %s10258_s9, %s9619_s10, %s9619_s10, %s9620_s4  }
 0x22d   : > { %s6943_s30 = sshll.u32 %s729_s0, 7  ;;  %s12331_s20 = sld [smem:[#allocation113_spill]] }
 0x22e   : > { %p12333_p5 = scmp.eq.s32.totalorder %s10232_s7, 0  ;;  %s719_s2 = sand.u32 1, %s9595_s24  }
 0x22f   : > { %s101_s26 = sadd.s32 1, %s12328_s12  ;;  %s721_s11 = sand.u32 1, %s12328_s12  }
 0x230   : > { %s10302_s17 = scalar_select %p12333_p5, %s12328_s12, %s101_s26  }
 0x231   : > { %p108_p0 = scmp.ne.s32.totalorder %s12328_s12, %s12329_s13  ;;  %p114_p4 = scmp.ne.s32.totalorder %s12329_s13, %s12330_s14 }
 0x232   : > { %p12334_p6 = scmp.eq.s32.totalorder %s9595_s24, 0  ;;  %p12335_p3 = scmp.eq.s32.totalorder %s12319_s27, 0 }
 0x233   : > { %s12332_s15 = smov %s12331_s20  ;;  %s10296_s16 = scalar_lea.hbm %s12331_s20, %s6943_s30 }
 0x234   : > { %p110_p8 = por %p108_p0, %p12334_p6  ;;  %p10314_p12 = por %p114_p4, %p12335_p3 }
 0x235   : > { %s6940_s6 = sshll.u32 %s721_s11, 6  ;;  %p12337_p7 = scmp.lt.s32.totalorder %s9595_s24, 8 }
 0x236   : > { %s12336_s1 = scalar_select %p10314_p12, 1, 0 }
 0x237   : > { %p10320_p9 = pnand %p12337_p7, %p110_p8  ;;  %s723_s7 = scalar_lea.vmem [#allocation9], %s6940_s6 }
 0x238   : > { %s732_s26 = sshll.u32 %s723_s7, 4  ;;  %s10326_s8 = scalar_lea.sflag [#allocation10], %s719_s2  ;;  %s10324_s26 = int_to_ptr.vmem [resolvable:$true] %s732_s26 }
 0x239   : > { %s9387_s27 = scalar_lea.hbm %s10296_s16, 1024  ;;  %p9389_p1 = pneg %p10320_p9 }
 0x23a   : > { %p9388_p11 = scmp.ne.s32.totalorder %s10296_s16, %s9387_s27  ;;  %s9392_s13 = scalar_lea.hbm %s12332_s15, 4096 }
 0x23b   : > { %p9393_p5 = scmp.lt.u32.totalorder %s10296_s16, %s12332_s15  ;;  %p9394_p0 = scmp.lt.u32.totalorder %s9392_s13, %s9387_s27 }
 0x23c   : > { %p9390_p13 = pnand %p9389_p1, %p9388_p11  ;;  %p9396_p6 = scmp.lt.u32.totalorder %s9387_s27, %s10296_s16 }
 0x23d   : > { %p9395_p4 = por %p9394_p0, %p9393_p5 }
 0x23e   : > { %p9391_p2 = pneg %p9390_p13 }
 0x23f   : > { %p9397_p8 = por %p9396_p6, %p9395_p4 }
 0x241   : > { %p9398_p3 = pnand %p9397_p8, %p9391_p2 }
 0x243   : > { %9401 = shalt.err (!%p9398_p3)
}
 0x244   : > { %s9402_s30 = scalar_lea.vmem %s10324_s26, 1024  ;;  %s9621_s28 = smov [#allocation9]  }
 0x245   : > { %p9403_p7 = scmp.ne.s32.totalorder %s10324_s26, %s9402_s30  ;;  %s9407_s21 = sshll.u32 %s9621_s28, 4  ;;  %s9408_s21 = int_to_ptr.vmem [resolvable:$false] %s9407_s21 }
 0x246   : > { %s9409_s20 = scalar_lea.vmem %s9408_s21, 2048  ;;  %p9410_p12 = scmp.lt.s32.totalorder %s10324_s26, %s9408_s21 }
 0x247   : > { %p9405_p11 = pnand %p9403_p7, %p9389_p1  ;;  %p9411_p5 = scmp.lt.s32.totalorder %s9409_s20, %s9402_s30 }
 0x249   : > { %p9406_p13 = pneg %p9405_p11  ;;  %p9412_p0 = por %p9411_p5, %p9410_p12 }
 0x24b   : > { %p9413_p4 = pnand %p9412_p0, %p9406_p13 }
 0x24d   : > { %9416 = shalt.err (!%p9413_p4)
}
 0x24e   : > { %8181 = dma.hbm_to_vmem [thread:$0]  (!%p10320_p9), %s10296_s16, 1024, %s10324_s26, %s10326_s8, %s9619_s10, %s9619_s10, %s9620_s4  }
 0x24f   : > { %s12339_s2 = sld [smem:[#allocation60_spill]] }
 0x255   : > { %p12340_p1 = scmp.ne.s32.totalorder %s12339_s2, 0 }
 0x257   : > { %744 = sbr.rel (%p12340_p1) target bundleno = 6182 (0x1826), region = 92 }
 0x25e   : > { %s12341_s11 = sld [smem:[#allocation52_spill]] }
 0x264   : > { %s10360_s6 = sand.u32 1, %s12341_s11  }
 0x265   : > { %s6945_s7 = sshll.u32 %s10360_s6, 6  ;;  %s747_s27 = scalar_lea.sflag [#allocation7], %s10360_s6 }
 0x266   : > { %s10364_s9 = scalar_lea.vmem [#allocation6], %s6945_s7 }
 0x267   : > { %9498 = dma.done.wait (%p10202_p10), %s747_s27, 1024  }
 0x268   : > { %9500 = vsyncadd (%p10202_p10), %s747_s27, 4294966272  ;;  %s12342_s3 = sld [smem:[#allocation59_spill]]  ;;  %s12343_s16 = sld [smem:[#allocation49_spill]] }
 0x269   : > { %p12344_p12 = scmp.ne.s32.totalorder %s12336_s1, 0 }
 0x26e   : > { %s755_s10 = sand.u32 1, %s12342_s3   ;;  %s757_s4 = sand.u32 1, %s12343_s16  }
 0x26f   : > { %s6946_s26 = sshll.u32 %s757_s4, 6  ;;  %s756_s8 = scalar_lea.sflag [#allocation10], %s755_s10 }
 0x270   : > { %s10372_s12 = scalar_lea.vmem [#allocation9], %s6946_s26 }
 0x271   : > { %9502 = dma.done.wait (%p12344_p12), %s756_s8, 1024  }
 0x272   : > { %9504 = vsyncadd (%p12344_p12), %s756_s8, 4294966272  ;;  %p12345_p9 = scmp.eq.s32.totalorder %s12342_s3, 0 }
 0x274   : > { %9506 = dma.done.wait (%p12345_p9), [#allocation10], 16   ;;  %p12346_p2 = pmov %p12345_p9 }
 0x276   : > { %9508 = vsyncadd (%p12346_p2), [#allocation10], 4294967280  ;;  %p12347_p10 = pmov %p12346_p2 }
 0x277   : > { %p12348_p6 = pmov %p12346_p2 }
 0x278   : > { %9510 = dma.done.wait (%p12347_p10), [#allocation13], 4112  }
 0x279   : > { %9512 = vsyncadd (%p12348_p6), [#allocation13], 4294963184  ;;  %p12349_p8 = pmov %p12346_p2 }
 0x27a   : > { %p12350_p3 = pmov %p12346_p2 }
 0x27b   : > { %9514 = dma.done.wait (%p12349_p8), [#allocation16], 8192  }
 0x27c   : > { %9516 = vsyncadd (%p12350_p3), [#allocation16], 4294959104  ;;  %p12351_p7 = pmov %p12346_p2 }
 0x27d   : > { %p12352_p11 = pmov %p12346_p2 }
 0x27e   : > { %9518 = dma.done.wait (%p12351_p7), [#allocation19], 128  }
 0x27f   : > { %9520 = vsyncadd (%p12352_p11), [#allocation19], 4294967168  ;;  %p12353_p13 = pmov %p12346_p2 }
 0x280   : > { %p12354_p5 = pmov %p12346_p2 }
 0x281   : > { %9522 = dma.done.wait (%p12353_p13), [#allocation22], 1088  }
 0x282   : > { %9524 = vsyncadd (%p12354_p5), [#allocation22], 4294966208  ;;  %p12355_p0 = pmov %p12346_p2 }
 0x284   : > { %9526 = dma.done.wait (%p12355_p0), [#allocation25], 32   ;;  %p12356_p4 = pmov %p12355_p0 }
 0x285   : > { %p12357_p1 = pmov %p12355_p0 }
 0x286   : > { %9528 = vsyncadd (%p12356_p4), [#allocation25], 4294967264 }
 0x287   : > { %9530 = dma.done.wait (%p12357_p1), [#allocation28], 4112   ;;  %p12358_p12 = pmov %p12355_p0 }
 0x288   : > { %p12359_p9 = pmov %p12355_p0 }
 0x289   : > { %9532 = vsyncadd (%p12358_p12), [#allocation28], 4294963184 }
 0x28a   : > { %9534 = dma.done.wait (%p12359_p9), [#allocation31], 4160   ;;  %p12360_p2 = pmov %p12355_p0 }
 0x28b   : > { %p12361_p10 = pmov %p12355_p0 }
 0x28c   : > { %9536 = vsyncadd (%p12360_p2), [#allocation31], 4294963136 }
 0x28d   : > { %9538 = dma.done.wait (%p12361_p10), [#allocation34], 16   ;;  %p12362_p6 = pmov %p12355_p0 }
 0x28e   : > { %s10414_s25 = scalar_lea.vmem [#allocation35], %s6945_s7  ;;  %s12363_s1 = sld [smem:[#allocation54_spill]] }
 0x28f   : > { %9540 = vsyncadd (%p12362_p6), [#allocation34], 4294967280 }
 0x294   : > { %p6964_p8 = scmp.ne.s32.totalorder %s12363_s1, 0 }
 0x295   : > { %v889_v0 = vld [vmem:[%s10364_s9] sm:$0xff] (!%p6964_p8)  ;;  %v891_v1 = vld [vmem:[%s10364_s9 + $0x10] sm:$0xff] (!%p6964_p8)  ;;  %v890_v2 = vld [vmem:[%s10364_s9 + $0x8] sm:$0xff] (!%p6964_p8)  ;;  %vm1160_vm0 = vcmask (!%p6964_p8), 261120   ;;  %vm1606_vm1 = vcmask (!%p6964_p8), 7168  }
 0x296   : > { %888 = sbr.rel (%p6964_p8) target bundleno = 1243 (0x4db), region = 168  ;;  %899 = vadd.xlane.f32.xlu0 (!%p6964_p8), %v889_v0  ;;  %903 = vadd.xlane.f32.xlu1 (!%p6964_p8), %v891_v1  ;;  %v892_v3 = vld [vmem:[%s10364_s9 + $0x18] sm:$0xff] (!%p6964_p8)  ;;  %v893_v4 = vld [vmem:[%s10364_s9 + $0x20] sm:$0xff] (!%p6964_p8)  ;;  %v894_v5 = vld [vmem:[%s10364_s9 + $0x28] sm:$0xff] (!%p6964_p8) }
 0x297   : > { %v895_v6 = vld [vmem:[%s10364_s9 + $0x30] sm:$0xff] (!%p6964_p8)  ;;  %v896_v7 = vld [vmem:[%s10364_s9 + $0x38] sm:$0xff] (!%p6964_p8)  ;;  %v8353_v8 = vld [vmem:[#allocation14] sm:$0xff] (!%p6964_p8)  }
 0x298   : > { %v8354_v9 = vld [vmem:[#allocation14 + $0x40] sm:$0xff] (!%p6964_p8)   ;;  %7552 = vmatprep.subr.bf16.mxu0 (!%p6964_p8), %v8353_v8  ;;  %v8355_v42 = vld [vmem:[#allocation14 + $0x8] sm:$0xff] (!%p6964_p8)   ;;  %v8357_v44 = vld [vmem:[#allocation14 + $0x10] sm:$0xff] (!%p6964_p8)  }
 0x299   : > { %7576 = vmatprep.subr.bf16.mxu1 (!%p6964_p8), %v8354_v9  ;;  %7553 = vmatpush3.bf16.msra.mxu0 (!%p6964_p8), %v8353_v8  ;;  %v8356_v43 = vld [vmem:[#allocation14 + $0x48] sm:$0xff] (!%p6964_p8)   ;;  %v8358_v45 = vld [vmem:[#allocation14 + $0x50] sm:$0xff] (!%p6964_p8)   ;;  %v8359_v46 = vld [vmem:[#allocation14 + $0x18] sm:$0xff] (!%p6964_p8)  }
 0x29a   : > { %901 = vadd.xlane.f32.xlu0 (!%p6964_p8), %v890_v2  ;;  %905 = vadd.xlane.f32.xlu1 (!%p6964_p8), %v892_v3  ;;  %v8360_v47 = vld [vmem:[#allocation14 + $0x58] sm:$0xff] (!%p6964_p8)   ;;  %v8361_v48 = vld [vmem:[#allocation14 + $0x20] sm:$0xff] (!%p6964_p8)   ;;  %v8363_v50 = vld [vmem:[#allocation14 + $0x28] sm:$0xff] (!%p6964_p8)  }
 0x29b   : > { %7577 = vmatpush3.bf16.msra.mxu1 (!%p6964_p8), %v8354_v9  ;;  %7554 = vmatprep.subr.bf16.mxu0 (!%p6964_p8), %v8355_v42  ;;  %v8362_v49 = vld [vmem:[#allocation14 + $0x60] sm:$0xff] (!%p6964_p8)   ;;  %v8364_v51 = vld [vmem:[#allocation14 + $0x68] sm:$0xff] (!%p6964_p8)   ;;  %v8365_v52 = vld [vmem:[#allocation14 + $0x30] sm:$0xff] (!%p6964_p8)  }
 0x29c   : > { %7578 = vmatprep.subr.bf16.mxu1 (!%p6964_p8), %v8356_v43  ;;  %v8366_v53 = vld [vmem:[#allocation14 + $0x70] sm:$0xff] (!%p6964_p8)   ;;  %v8367_v54 = vld [vmem:[#allocation14 + $0x38] sm:$0xff] (!%p6964_p8)   ;;  %v10457_v56 = vld [vmem:[#allocation14 + $0x80] sm:$0xff] (!%p6964_p8)  }
 0x29d   : > { %7555 = vmatpush3.bf16.msra.mxu0 %v8355_v42  ;;  %v8368_v55 = vld [vmem:[#allocation14 + $0x78] sm:$0xff]   ;;  %v10459_v57 = vld [vmem:[#allocation14 + $0xc0] sm:$0xff]  }
 0x29e   : > { %907 = vadd.xlane.f32.xlu0 %v893_v4  ;;  %909 = vadd.xlane.f32.xlu1 %v894_v5 }
 0x29f   : > { %7579 = vmatpush3.bf16.msra.mxu1 %v8356_v43  ;;  %7556 = vmatprep.subr.bf16.mxu0 %v8357_v44 }
 0x2a0   : > { %7580 = vmatprep.subr.bf16.mxu1 %v8358_v45 }
 0x2a1   : > { %7557 = vmatpush3.bf16.msra.mxu0 %v8357_v44 }
 0x2a2   : > { %911 = vadd.xlane.f32.xlu0 %v895_v6  ;;  %913 = vadd.xlane.f32.xlu1 %v896_v7 }
 0x2a3   : > { %7581 = vmatpush3.bf16.msra.mxu1 %v8358_v45  ;;  %7558 = vmatprep.subr.bf16.mxu0 %v8359_v46 }
 0x2a4   : > { %7582 = vmatprep.subr.bf16.mxu1 %v8360_v47 }
 0x2a5   : > { %7559 = vmatpush3.bf16.msra.mxu0 %v8359_v46 }
 0x2a6   : > { %7560 = vmatprep.subr.bf16.mxu0 %v8361_v48 }
 0x2a7   : > { %7583 = vmatpush3.bf16.msra.mxu1 %v8360_v47 }
 0x2a8   : > { %7584 = vmatprep.subr.bf16.mxu1 %v8362_v49 }
 0x2a9   : > { %7561 = vmatpush3.bf16.msra.mxu0 %v8361_v48 }
 0x2aa   : > { %7562 = vmatprep.subr.bf16.mxu0 %v8363_v50 }
 0x2ab   : > { %7585 = vmatpush3.bf16.msra.mxu1 %v8362_v49 }
 0x2ac   : > { %7586 = vmatprep.subr.bf16.mxu1 %v8364_v51 }
 0x2ad   : > { %7563 = vmatpush3.bf16.msra.mxu0 %v8363_v50  ;;  %v8372_v50 = vld [vmem:[#allocation14 + $0xc8] sm:$0xff]  }
 0x2ae   : > { %7564 = vmatprep.subr.bf16.mxu0 %v8365_v52 }
 0x2af   : > { %7587 = vmatpush3.bf16.msra.mxu1 %v8364_v51 }
 0x2b0   : > { %7588 = vmatprep.subr.bf16.mxu1 %v8366_v53 }
 0x2b1   : > { %7565 = vmatpush3.bf16.msra.mxu0 %v8365_v52 }
 0x2b2   : > { %7566 = vmatprep.subr.bf16.mxu0 %v8367_v54 }
 0x2b3   : > { %7589 = vmatpush3.bf16.msra.mxu1 %v8366_v53 }
 0x2b4   : > { %7590 = vmatprep.subr.bf16.mxu1 %v8368_v55 }
 0x2b5   : > { %7567 = vmatpush3.bf16.msra.mxu0 %v8367_v54 }
 0x2b6   : > { %7600 = vmatprep.subr.bf16.mxu0 %v10457_v56 }
 0x2b7   : > { %7591 = vmatpush3.bf16.msra.mxu1 %v8368_v55  ;;  %v8373_v55 = vld [vmem:[#allocation14 + $0x90] sm:$0xff]  }
 0x2b8   : > { %7624 = vmatprep.subr.bf16.mxu1 %v10459_v57 }
 0x323   : > { %v900_v10 = vpop.xlane.xlu0 %899  ;;  %v904_v11 = vpop.xlane.xlu1 %903 }
 0x324   : > { %v916_v12 = vmul.f32 0.0078125, %v900_v10  ;;  %v918_v13 = vmul.f32 0.0078125, %v904_v11 }
 0x326   : > { %v10425_v14 = vsub.f32 %v889_v0, %v916_v12  ;;  %v10427_v15 = vsub.f32 %v891_v1, %v918_v13 }
 0x327   : > { %v902_v16 = vpop.xlane.xlu0 %901  ;;  %v906_v17 = vpop.xlane.xlu1 %905 }
 0x328   : > { %v917_v18 = vmul.f32 0.0078125, %v902_v16  ;;  %v932_v19 = vmul.f32 %v10425_v14, %v10425_v14  ;;  %v919_v20 = vmul.f32 0.0078125, %v906_v17  ;;  %v934_v23 = vmul.f32 %v10427_v15, %v10427_v15 }
 0x32a   : > { %v10431_v21 = vsub.f32 %v890_v2, %v917_v18  ;;  %940 = vadd.xlane.f32.xlu0 %v932_v19  ;;  %v10433_v22 = vsub.f32 %v892_v3, %v919_v20 }
 0x32b   : > { %v908_v24 = vpop.xlane.xlu0 %907  ;;  %v910_v25 = vpop.xlane.xlu1 %909 }
 0x32c   : > { %v920_v26 = vmul.f32 0.0078125, %v908_v24  ;;  %v933_v27 = vmul.f32 %v10431_v21, %v10431_v21  ;;  %v921_v28 = vmul.f32 0.0078125, %v910_v25  ;;  %v935_v31 = vmul.f32 %v10433_v22, %v10433_v22 }
 0x32e   : > { %v10439_v29 = vsub.f32 %v893_v4, %v920_v26  ;;  %944 = vadd.xlane.f32.xlu0 %v934_v23  ;;  %942 = vadd.xlane.f32.xlu1 %v933_v27  ;;  %v10441_v30 = vsub.f32 %v894_v5, %v921_v28  ;;  %v6965_v23 = vld [vmem:[#allocation11] ss:$0 sm:$0xff] }
 0x32f   : > { %v912_v32 = vpop.xlane.xlu0 %911  ;;  %v914_v33 = vpop.xlane.xlu1 %913 }
 0x330   : > { %v922_v34 = vmul.f32 0.0078125, %v912_v32  ;;  %v936_v35 = vmul.f32 %v10439_v29, %v10439_v29  ;;  %v923_v36 = vmul.f32 0.0078125, %v914_v33  ;;  %v937_v39 = vmul.f32 %v10441_v30, %v10441_v30  ;;  %v6966_v32 = vld [vmem:[#allocation12] ss:$0 sm:$0xff] }
 0x332   : > { %v10447_v37 = vsub.f32 %v895_v6, %v922_v34  ;;  %946 = vadd.xlane.f32.xlu1 %v935_v31  ;;  %948 = vadd.xlane.f32.xlu0 %v936_v35  ;;  %v10449_v38 = vsub.f32 %v896_v7, %v923_v36 }
 0x334   : > { %v938_v40 = vmul.f32 %v10447_v37, %v10447_v37  ;;  %v939_v41 = vmul.f32 %v10449_v38, %v10449_v38 }
 0x336   : > { %950 = vadd.xlane.f32.xlu1 %v937_v39  ;;  %952 = vadd.xlane.f32.xlu0 %v938_v40 }
 0x33a   : > { %954 = vadd.xlane.f32.xlu1 %v939_v41 }
 0x3b7   : > { %v941_v58 = vpop.xlane.xlu0 %940 }
 0x3b8   : > { %v956_v59 = vmul.f32 0.0078125, %v941_v58  ;;  %v8374_v58 = vld [vmem:[#allocation14 + $0xd0] sm:$0xff]  }
 0x3ba   : > { %v964_v60 = vadd.f32 1e-05, %v956_v59 }
 0x3bb   : > { %v943_v61 = vpop.xlane.xlu1 %942  ;;  %v945_v62 = vpop.xlane.xlu0 %944 }
 0x3bc   : > { %8385 = vrsqrt.f32 %v964_v60  ;;  %v957_v63 = vmul.f32 0.0078125, %v943_v61  ;;  %v958_v0 = vmul.f32 0.0078125, %v945_v62  ;;  %v8375_v62 = vld [vmem:[#allocation14 + $0x98] sm:$0xff]  }
 0x3be   : > { %v965_v1 = vadd.f32 1e-05, %v957_v63  ;;  %v966_v2 = vadd.f32 1e-05, %v958_v0  ;;  %v8376_v63 = vld [vmem:[#allocation14 + $0xd8] sm:$0xff]   ;;  %v8379_v0 = vld [vmem:[#allocation14 + $0xa8] sm:$0xff]  }
 0x3bf   : > { %v947_v3 = vpop.xlane.xlu1 %946  ;;  %v949_v4 = vpop.xlane.xlu0 %948 }
 0x3c0   : > { %8387 = vrsqrt.f32 %v965_v1  ;;  %v959_v5 = vmul.f32 0.0078125, %v947_v3  ;;  %v960_v6 = vmul.f32 0.0078125, %v949_v4  ;;  %v8380_v1 = vld [vmem:[#allocation14 + $0xe8] sm:$0xff]   ;;  %v8382_v3 = vld [vmem:[#allocation14 + $0xf0] sm:$0xff]   ;;  %v8383_v4 = vld [vmem:[#allocation14 + $0xb8] sm:$0xff]  }
 0x3c1   : > { %8389 = vrsqrt.f32 %v966_v2  ;;  %v8381_v2 = vld [vmem:[#allocation14 + $0xb0] sm:$0xff]  }
 0x3c2   : > { %v967_v7 = vadd.f32 1e-05, %v959_v5  ;;  %v968_v8 = vadd.f32 1e-05, %v960_v6  ;;  %v8384_v5 = vld [vmem:[#allocation14 + $0xf8] sm:$0xff]   ;;  %v9622_v6 = vmov 0.0  }
 0x3c3   : > { %v951_v9 = vpop.xlane.xlu1 %950  ;;  %v953_v10 = vpop.xlane.xlu0 %952  ;;  %1671 = vst.msk [vmem:[#allocation5] sm:$0xff] %vm1160_vm0, %v9622_v6  ;;  %1672 = vst.msk [vmem:[#allocation5 + $0x8] sm:$0xff] %vm1160_vm0, %v9622_v6 }
 0x3c4   : > { %8391 = vrsqrt.f32 %v967_v7  ;;  %v961_v11 = vmul.f32 0.0078125, %v951_v9  ;;  %v962_v12 = vmul.f32 0.0078125, %v953_v10  ;;  %1673 = vst.msk [vmem:[#allocation5 + $0x10] sm:$0xff] %vm1160_vm0, %v9622_v6  ;;  %1674 = vst.msk [vmem:[#allocation5 + $0x18] sm:$0xff] %vm1160_vm0, %v9622_v6  ;;  %v9623_v7 = vmov -inf  }
 0x3c5   : > { %8393 = vrsqrt.f32 %v968_v8  ;;  %1675 = vst.msk [vmem:[#allocation5 + $0x20] sm:$0xff] %vm1160_vm0, %v9622_v6  ;;  %1676 = vst.msk [vmem:[#allocation5 + $0x28] sm:$0xff] %vm1160_vm0, %v9622_v6  ;;  %v6967_v9 = vld [vmem:[#allocation18] ss:$0 sm:$0xff] }
 0x3c6   : > { %v8386_v13 = vpop.eup %8385  ;;  %v969_v16 = vadd.f32 1e-05, %v961_v11  ;;  %v970_v17 = vadd.f32 1e-05, %v962_v12  ;;  %1677 = vst.msk [vmem:[#allocation5 + $0x30] sm:$0xff] %vm1160_vm0, %v9622_v6  ;;  %1678 = vst.msk [vmem:[#allocation5 + $0x38] sm:$0xff] %vm1160_vm0, %v9622_v6 }
 0x3c7   : > { %v980_v18 = vmul.f32 %v8386_v13, %v10425_v14  ;;  %v955_v19 = vpop.xlane.xlu1 %954  ;;  %1679 = vst.msk [vmem:[#allocation5 + $0x40] sm:$0xff] %vm1160_vm0, %v9622_v6  ;;  %1680 = vst.msk [vmem:[#allocation5 + $0x48] sm:$0xff] %vm1160_vm0, %v9622_v6  ;;  %v6976_v11 = vld [vmem:[#allocation18 + $0x1] ss:$0 sm:$0xff] }
 0x3c8   : > { %8395 = vrsqrt.f32 %v969_v16  ;;  %v963_v20 = vmul.f32 0.0078125, %v955_v19  ;;  %1681 = vst.msk [vmem:[#allocation5 + $0x50] sm:$0xff] %vm1160_vm0, %v9622_v6  ;;  %1682 = vst.msk [vmem:[#allocation5 + $0x58] sm:$0xff] %vm1160_vm0, %v9622_v6 }
 0x3c9   : > { %8397 = vrsqrt.f32 %v970_v17  ;;  %v994_v28 = vmul.f32 %v6965_v23, %v980_v18  ;;  %1683 = vst.msk [vmem:[#allocation5 + $0x60] sm:$0xff] %vm1160_vm0, %v9622_v6  ;;  %1684 = vst.msk [vmem:[#allocation5 + $0x68] sm:$0xff] %vm1160_vm0, %v9622_v6 }
 0x3ca   : > { %v8388_v24 = vpop.eup %8387  ;;  %v971_v25 = vadd.f32 1e-05, %v963_v20  ;;  %1685 = vst.msk [vmem:[#allocation5 + $0x70] sm:$0xff] %vm1160_vm0, %v9622_v6  ;;  %1686 = vst.msk [vmem:[#allocation5 + $0x78] sm:$0xff] %vm1160_vm0, %v9622_v6 }
 0x3cb   : > { %v8390_v26 = vpop.eup %8389  ;;  %v981_v27 = vmul.f32 %v8388_v24, %v10431_v21  ;;  %v1008_v36 = vadd.f32 %v6966_v32, %v994_v28  ;;  %1687 = vst.msk [vmem:[#allocation5 + $0x80] sm:$0xff] %vm1160_vm0, %v9622_v6  ;;  %1688 = vst.msk [vmem:[#allocation5 + $0x88] sm:$0xff] %vm1160_vm0, %v9622_v6 }
 0x3cc   : > { %v982_v31 = vmul.f32 %v8390_v26, %v10427_v15  ;;  %8399 = vrsqrt.f32 %v971_v25  ;;  %1689 = vst.msk [vmem:[#allocation5 + $0x90] sm:$0xff] %vm1160_vm0, %v9622_v6  ;;  %1690 = vst.msk [vmem:[#allocation5 + $0x98] sm:$0xff] %vm1160_vm0, %v9622_v6 }
 0x3cd   : > { %v995_v33 = vmul.f32 %v6965_v23, %v981_v27  ;;  %1691 = vst.msk [vmem:[#allocation5 + $0xa0] sm:$0xff] %vm1160_vm0, %v9622_v6  ;;  %1692 = vst.msk [vmem:[#allocation5 + $0xa8] sm:$0xff] %vm1160_vm0, %v9622_v6 }
 0x3ce   : > { %v8392_v34 = vpop.eup %8391  ;;  %v996_v40 = vmul.f32 %v6965_v23, %v982_v31  ;;  %1693 = vst.msk [vmem:[#allocation5 + $0xb0] sm:$0xff] %vm1160_vm0, %v9622_v6  ;;  %1694 = vst.msk [vmem:[#allocation5 + $0xb8] sm:$0xff] %vm1160_vm0, %v9622_v6 }
 0x3cf   : > { %v8394_v35 = vpop.eup %8393  ;;  %v983_v14 = vmul.f32 %v8392_v34, %v10433_v22  ;;  %v1009_v39 = vadd.f32 %v6966_v32, %v995_v33  ;;  %v8371_v22 = vld [vmem:[#allocation14 + $0x88] sm:$0xff]   ;;  %1695 = vst.msk [vmem:[#allocation5 + $0xc0] sm:$0xff] %vm1160_vm0, %v9622_v6  ;;  %1696 = vst.msk [vmem:[#allocation5 + $0xc8] sm:$0xff] %vm1160_vm0, %v9622_v6 }
 0x3d0   : > { %v984_v41 = vmul.f32 %v8394_v35, %v10439_v29  ;;  %v1010_v15 = vadd.f32 %v6966_v32, %v996_v40  ;;  %1697 = vst.msk [vmem:[#allocation5 + $0xd0] sm:$0xff] %vm1160_vm0, %v9622_v6  ;;  %1698 = vst.msk [vmem:[#allocation5 + $0xd8] sm:$0xff] %vm1160_vm0, %v9622_v6 }
 0x3d1   : > { %v1016_v42 = vpack.c.bf16 %v1009_v39, %v1008_v36  ;;  %v997_v43 = vmul.f32 %v6965_v23, %v983_v14  ;;  %1699 = vst.msk [vmem:[#allocation5 + $0xe0] sm:$0xff] %vm1160_vm0, %v9622_v6  ;;  %1700 = vst.msk [vmem:[#allocation5 + $0xe8] sm:$0xff] %vm1160_vm0, %v9622_v6 }
 0x3d2   : > { %v8396_v44 = vpop.eup %8395  ;;  %v998_v45 = vmul.f32 %v6965_v23, %v984_v41  ;;  %1701 = vst.msk [vmem:[#allocation5 + $0xf0] sm:$0xff] %vm1160_vm0, %v9622_v6  ;;  %1702 = vst.msk [vmem:[#allocation5 + $0xf8] sm:$0xff] %vm1160_vm0, %v9622_v6 }
 0x3d3   : > { %v8398_v21 = vpop.eup %8397  ;;  %v985_v46 = vmul.f32 %v8396_v44, %v10441_v30  ;;  %7568 = vmatprep.mubr.bf16.mxu0 %v1016_v42  ;;  %7592 = vmatprep.mubr.bf16.mxu1 %v1016_v42  ;;  %v1011_v47 = vadd.f32 %v6966_v32, %v997_v43  ;;  %1607 = vst.msk [vmem:[#allocation3] sm:$0xff] %vm1606_vm1, %v9623_v7  ;;  %1608 = vst.msk [vmem:[#allocation3 + $0x8] sm:$0xff] %vm1606_vm1, %v9623_v7 }
 0x3d4   : > { %v986_v48 = vmul.f32 %v8398_v21, %v10447_v37  ;;  %v1012_v29 = vadd.f32 %v6966_v32, %v998_v45  ;;  %1609 = vst.msk [vmem:[#allocation3 + $0x10] sm:$0xff] %vm1606_vm1, %v9623_v7  ;;  %1610 = vst.msk [vmem:[#allocation3 + $0x18] sm:$0xff] %vm1606_vm1, %v9623_v7 }
 0x3d5   : > { %v10470_v49 = vpack.c.bf16 %v1011_v47, %v1010_v15  ;;  %v999_v51 = vmul.f32 %v6965_v23, %v985_v46  ;;  %1611 = vst.msk [vmem:[#allocation3 + $0x20] sm:$0xff] %vm1606_vm1, %v9623_v7  ;;  %1612 = vst.msk [vmem:[#allocation3 + $0x28] sm:$0xff] %vm1606_vm1, %v9623_v7 }
 0x3d6   : > { %v8400_v52 = vpop.eup %8399  ;;  %v1000_v54 = vmul.f32 %v6965_v23, %v986_v48  ;;  %1613 = vst.msk [vmem:[#allocation3 + $0x30] sm:$0xff] %vm1606_vm1, %v9623_v7  ;;  %1614 = vst.msk [vmem:[#allocation3 + $0x38] sm:$0xff] %vm1606_vm1, %v9623_v7 }
 0x3d7   : > { %v987_v53 = vmul.f32 %v8400_v52, %v10449_v38  ;;  %7569 = vmatmul.mubr.bf16.vlgmr.msra.gmra.mrb[0].mxu0 %v10470_v49  ;;  %7593 = vmatmul.mubr.bf16.vlgmr.msra.gmra.mrb[0].mxu1 %v10470_v49  ;;  %v1013_v30 = vadd.f32 %v6966_v32, %v999_v51  ;;  %1615 = vst.msk [vmem:[#allocation3 + $0x40] sm:$0xff] %vm1606_vm1, %v9623_v7  ;;  %1616 = vst.msk [vmem:[#allocation3 + $0x48] sm:$0xff] %vm1606_vm1, %v9623_v7 }
 0x3d8   : > { %7601 = vmatpush3.bf16.msra.mxu0 %v10457_v56  ;;  %7625 = vmatpush3.bf16.msra.mxu1 %v10459_v57  ;;  %v1014_v60 = vadd.f32 %v6966_v32, %v1000_v54  ;;  %v8377_v56 = vld [vmem:[#allocation14 + $0xa0] sm:$0xff]   ;;  %1617 = vst.msk [vmem:[#allocation3 + $0x50] sm:$0xff] %vm1606_vm1, %v9623_v7  ;;  %1618 = vst.msk [vmem:[#allocation3 + $0x58] sm:$0xff] %vm1606_vm1, %v9623_v7 }
 0x3d9   : > { %7602 = vmatprep.subr.bf16.mxu0 %v8371_v22  ;;  %7626 = vmatprep.subr.bf16.mxu1 %v8372_v50  ;;  %v1018_v37 = vpack.c.bf16 %v1013_v30, %v1012_v29  ;;  %v1001_v59 = vmul.f32 %v6965_v23, %v987_v53  ;;  %v8378_v57 = vld [vmem:[#allocation14 + $0xe0] sm:$0xff]   ;;  %1619 = vst.msk [vmem:[#allocation3 + $0x60] sm:$0xff] %vm1606_vm1, %v9623_v7  ;;  %1620 = vst.msk [vmem:[#allocation3 + $0x68] sm:$0xff] %vm1606_vm1, %v9623_v7 }
 0x3da   : > { %1621 = vst.msk [vmem:[#allocation3 + $0x70] sm:$0xff] %vm1606_vm1, %v9623_v7  ;;  %1622 = vst.msk [vmem:[#allocation3 + $0x78] sm:$0xff] %vm1606_vm1, %v9623_v7  ;;  %v6985_v30 = vld [vmem:[#allocation18 + $0x2] ss:$0 sm:$0xff] }
 0x3db   : > { %7572 = vmatprep.mubr.bf16.mxu0 %v1018_v37  ;;  %7596 = vmatprep.mubr.bf16.mxu1 %v1018_v37  ;;  %v1015_v38 = vadd.f32 %v6966_v32, %v1001_v59  ;;  %1623 = vst.msk [vmem:[#allocation3 + $0x80] sm:$0xff] %vm1606_vm1, %v9623_v7  ;;  %1624 = vst.msk [vmem:[#allocation3 + $0x88] sm:$0xff] %vm1606_vm1, %v9623_v7 }
 0x3dc   : > { %7603 = vmatpush3.bf16.msra.mxu0 %v8371_v22  ;;  %7627 = vmatpush3.bf16.msra.mxu1 %v8372_v50  ;;  %1625 = vst.msk [vmem:[#allocation3 + $0x90] sm:$0xff] %vm1606_vm1, %v9623_v7  ;;  %1626 = vst.msk [vmem:[#allocation3 + $0x98] sm:$0xff] %vm1606_vm1, %v9623_v7 }
 0x3dd   : > { %7604 = vmatprep.subr.bf16.mxu0 %v8373_v55  ;;  %7628 = vmatprep.subr.bf16.mxu1 %v8374_v58  ;;  %v1019_v61 = vpack.c.bf16 %v1015_v38, %v1014_v60  ;;  %1627 = vst.msk [vmem:[#allocation3 + $0xa0] sm:$0xff] %vm1606_vm1, %v9623_v7  ;;  %1628 = vst.msk [vmem:[#allocation3 + $0xa8] sm:$0xff] %vm1606_vm1, %v9623_v7 }
 0x3de   : > { %1629 = vst.msk [vmem:[#allocation3 + $0xb0] sm:$0xff] %vm1606_vm1, %v9623_v7  ;;  %1630 = vst.msk [vmem:[#allocation3 + $0xb8] sm:$0xff] %vm1606_vm1, %v9623_v7 }
 0x3df   : > { %7573 = vmatmul.mubr.bf16.gmra.mrb[4].mxu0 %v1019_v61  ;;  %7597 = vmatmul.mubr.bf16.gmra.mrb[4].mxu1 %v1019_v61  ;;  %1631 = vst.msk [vmem:[#allocation3 + $0xc0] sm:$0xff] %vm1606_vm1, %v9623_v7  ;;  %1632 = vst.msk [vmem:[#allocation3 + $0xc8] sm:$0xff] %vm1606_vm1, %v9623_v7 }
 0x3e0   : > { %7605 = vmatpush3.bf16.msra.mxu0 %v8373_v55  ;;  %7629 = vmatpush3.bf16.msra.mxu1 %v8374_v58  ;;  %1633 = vst.msk [vmem:[#allocation3 + $0xd0] sm:$0xff] %vm1606_vm1, %v9623_v7  ;;  %1634 = vst.msk [vmem:[#allocation3 + $0xd8] sm:$0xff] %vm1606_vm1, %v9623_v7 }
 0x3e1   : > { %7616 = vmatprep.mubr.bf16.mxu0 %v1016_v42  ;;  %7640 = vmatprep.mubr.bf16.mxu1 %v1016_v42  ;;  %1635 = vst.msk [vmem:[#allocation3 + $0xe0] sm:$0xff] %vm1606_vm1, %v9623_v7  ;;  %1636 = vst.msk [vmem:[#allocation3 + $0xe8] sm:$0xff] %vm1606_vm1, %v9623_v7 }
 0x3e2   : > { %7606 = vmatprep.subr.bf16.mxu0 %v8375_v62  ;;  %7630 = vmatprep.subr.bf16.mxu1 %v8376_v63  ;;  %1637 = vst.msk [vmem:[#allocation3 + $0xf0] sm:$0xff] %vm1606_vm1, %v9623_v7  ;;  %1638 = vst.msk [vmem:[#allocation3 + $0xf8] sm:$0xff] %vm1606_vm1, %v9623_v7 }
 0x3e3   : > { %1639 = vst.msk [vmem:[#allocation4] sm:$0xff] %vm1606_vm1, %v9622_v6  ;;  %1640 = vst.msk [vmem:[#allocation4 + $0x8] sm:$0xff] %vm1606_vm1, %v9622_v6 }
 0x3e4   : > { %7607 = vmatpush3.bf16.msra.mxu0 %v8375_v62  ;;  %7631 = vmatpush3.bf16.msra.mxu1 %v8376_v63  ;;  %1641 = vst.msk [vmem:[#allocation4 + $0x10] sm:$0xff] %vm1606_vm1, %v9622_v6  ;;  %1642 = vst.msk [vmem:[#allocation4 + $0x18] sm:$0xff] %vm1606_vm1, %v9622_v6 }
 0x3e5   : > { %7608 = vmatprep.subr.bf16.mxu0 %v8377_v56  ;;  %7632 = vmatprep.subr.bf16.mxu1 %v8378_v57  ;;  %1643 = vst.msk [vmem:[#allocation4 + $0x20] sm:$0xff] %vm1606_vm1, %v9622_v6  ;;  %1644 = vst.msk [vmem:[#allocation4 + $0x28] sm:$0xff] %vm1606_vm1, %v9622_v6 }
 0x3e6   : > { %1645 = vst.msk [vmem:[#allocation4 + $0x30] sm:$0xff] %vm1606_vm1, %v9622_v6  ;;  %1646 = vst.msk [vmem:[#allocation4 + $0x38] sm:$0xff] %vm1606_vm1, %v9622_v6 }
 0x3e7   : > { %1647 = vst.msk [vmem:[#allocation4 + $0x40] sm:$0xff] %vm1606_vm1, %v9622_v6  ;;  %1648 = vst.msk [vmem:[#allocation4 + $0x48] sm:$0xff] %vm1606_vm1, %v9622_v6 }
 0x3e8   : > { %7609 = vmatpush3.bf16.msra.mxu0 %v8377_v56  ;;  %7633 = vmatpush3.bf16.msra.mxu1 %v8378_v57  ;;  %1649 = vst.msk [vmem:[#allocation4 + $0x50] sm:$0xff] %vm1606_vm1, %v9622_v6  ;;  %1650 = vst.msk [vmem:[#allocation4 + $0x58] sm:$0xff] %vm1606_vm1, %v9622_v6 }
 0x3e9   : > { %7610 = vmatprep.subr.bf16.mxu0 %v8379_v0  ;;  %7634 = vmatprep.subr.bf16.mxu1 %v8380_v1  ;;  %1651 = vst.msk [vmem:[#allocation4 + $0x60] sm:$0xff] %vm1606_vm1, %v9622_v6  ;;  %1652 = vst.msk [vmem:[#allocation4 + $0x68] sm:$0xff] %vm1606_vm1, %v9622_v6 }
 0x3ea   : > { %1653 = vst.msk [vmem:[#allocation4 + $0x70] sm:$0xff] %vm1606_vm1, %v9622_v6  ;;  %1654 = vst.msk [vmem:[#allocation4 + $0x78] sm:$0xff] %vm1606_vm1, %v9622_v6 }
 0x3eb   : > { %1655 = vst.msk [vmem:[#allocation4 + $0x80] sm:$0xff] %vm1606_vm1, %v9622_v6  ;;  %1656 = vst.msk [vmem:[#allocation4 + $0x88] sm:$0xff] %vm1606_vm1, %v9622_v6 }
 0x3ec   : > { %7611 = vmatpush3.bf16.msra.mxu0 %v8379_v0  ;;  %7635 = vmatpush3.bf16.msra.mxu1 %v8380_v1  ;;  %1657 = vst.msk [vmem:[#allocation4 + $0x90] sm:$0xff] %vm1606_vm1, %v9622_v6  ;;  %1658 = vst.msk [vmem:[#allocation4 + $0x98] sm:$0xff] %vm1606_vm1, %v9622_v6 }
 0x3ed   : > { %7612 = vmatprep.subr.bf16.mxu0 %v8381_v2  ;;  %7636 = vmatprep.subr.bf16.mxu1 %v8382_v3  ;;  %1659 = vst.msk [vmem:[#allocation4 + $0xa0] sm:$0xff] %vm1606_vm1, %v9622_v6  ;;  %1660 = vst.msk [vmem:[#allocation4 + $0xa8] sm:$0xff] %vm1606_vm1, %v9622_v6 }
 0x3ee   : > { %1661 = vst.msk [vmem:[#allocation4 + $0xb0] sm:$0xff] %vm1606_vm1, %v9622_v6  ;;  %1662 = vst.msk [vmem:[#allocation4 + $0xb8] sm:$0xff] %vm1606_vm1, %v9622_v6 }
 0x3ef   : > { %1663 = vst.msk [vmem:[#allocation4 + $0xc0] sm:$0xff] %vm1606_vm1, %v9622_v6  ;;  %1664 = vst.msk [vmem:[#allocation4 + $0xc8] sm:$0xff] %vm1606_vm1, %v9622_v6 }
 0x3f0   : > { %7613 = vmatpush3.bf16.msra.mxu0 %v8381_v2  ;;  %7637 = vmatpush3.bf16.msra.mxu1 %v8382_v3  ;;  %1665 = vst.msk [vmem:[#allocation4 + $0xd0] sm:$0xff] %vm1606_vm1, %v9622_v6  ;;  %1666 = vst.msk [vmem:[#allocation4 + $0xd8] sm:$0xff] %vm1606_vm1, %v9622_v6 }
 0x3f1   : > { %7614 = vmatprep.subr.bf16.mxu0 %v8383_v4  ;;  %7638 = vmatprep.subr.bf16.mxu1 %v8384_v5  ;;  %1667 = vst.msk [vmem:[#allocation4 + $0xe0] sm:$0xff] %vm1606_vm1, %v9622_v6  ;;  %1668 = vst.msk [vmem:[#allocation4 + $0xe8] sm:$0xff] %vm1606_vm1, %v9622_v6 }
 0x3f2   : > { %1669 = vst.msk [vmem:[#allocation4 + $0xf0] sm:$0xff] %vm1606_vm1, %v9622_v6  ;;  %1670 = vst.msk [vmem:[#allocation4 + $0xf8] sm:$0xff] %vm1606_vm1, %v9622_v6 }
 0x3f4   : > { %7615 = vmatpush3.bf16.msra.mxu0 %v8383_v4  ;;  %7639 = vmatpush3.bf16.msra.mxu1 %v8384_v5 }
 0x3f7   : > { %7617 = vmatmul.mubr.bf16.vlgmr.msra.gmra.mrb[8].mxu0 %v10470_v49  ;;  %7641 = vmatmul.mubr.bf16.vlgmr.msra.gmra.mrb[8].mxu1 %v10470_v49 }
 0x3f8   : > { %7620 = vmatprep.mubr.bf16.mxu0 %v1018_v37  ;;  %7644 = vmatprep.mubr.bf16.mxu1 %v1018_v37  ;;  %v6994_v37 = vld [vmem:[#allocation18 + $0x3] ss:$0 sm:$0xff] }
 0x3ff   : > { %7621 = vmatmul.mubr.bf16.gmra.mrb[12].mxu0 %v1019_v61  ;;  %7645 = vmatmul.mubr.bf16.gmra.mrb[12].mxu1 %v1019_v61 }
 0x4aa   : > { %v7570_v8 = vpop.f32.mrb[0].mxu0  ;;  %v7594_v10 = vpop.f32.mrb[0].mxu1 }
 0x4ab   : > { %v1125_v12 = vpop.f32.mrb[1].mxu0  ;;  %v1272_v13 = vpop.f32.mrb[1].mxu1  ;;  %v1134_v18 = vadd.f32 %v7570_v8, %v6967_v9  ;;  %v1281_v19 = vadd.f32 %v7594_v10, %v6976_v11 }
 0x4ac   : > { %v7571_v16 = vpop.f32.mrb[2].mxu0  ;;  %v7595_v17 = vpop.f32.mrb[2].mxu1  ;;  %v1126_v26 = vadd.f32 %v6967_v9, %v1125_v12  ;;  %v1273_v27 = vadd.f32 %v6976_v11, %v1272_v13 }
 0x4ad   : > { %v1137_v20 = vadd.f32 %v7571_v16, %v6967_v9  ;;  %v1284_v23 = vadd.f32 %v7595_v17, %v6976_v11  ;;  %v1128_v24 = vpop.f32.mrb[3].mxu0  ;;  %v1275_v25 = vpop.f32.mrb[3].mxu1 }
 0x4ae   : > { %v1129_v28 = vadd.f32 %v6967_v9, %v1128_v24  ;;  %v1276_v31 = vadd.f32 %v6976_v11, %v1275_v25 }
 0x4af   : > { %v1157_v32 = vpack.c.bf16 %v1137_v20, %v1134_v18  ;;  %v1304_v33 = vpack.c.bf16 %v1284_v23, %v1281_v19 }
 0x4b0   : > { %v1156_v34 = vpack.c.bf16 %v1129_v28, %v1126_v26  ;;  %v1303_v35 = vpack.c.bf16 %v1276_v31, %v1273_v27 }
 0x4b1   : > { %1162 = vst.msk [vmem:[#allocation2 + $0x8] sm:$0xff] %vm1160_vm0, %v1157_v32  ;;  %1309 = vst.msk [vmem:[#allocation2 + $0x28] sm:$0xff] %vm1160_vm0, %v1304_v33 }
 0x4b2   : > { %1161 = vst.msk [vmem:[#allocation2] sm:$0xff] %vm1160_vm0, %v1156_v34  ;;  %1308 = vst.msk [vmem:[#allocation2 + $0x20] sm:$0xff] %vm1160_vm0, %v1303_v35  ;;  %v7574_v14 = vpop.f32.mrb[4].mxu0  ;;  %v7598_v36 = vpop.f32.mrb[4].mxu1 }
 0x4b3   : > { %v1141_v39 = vpop.f32.mrb[5].mxu0  ;;  %v1288_v40 = vpop.f32.mrb[5].mxu1  ;;  %v1150_v43 = vadd.f32 %v7574_v14, %v6967_v9  ;;  %v1297_v44 = vadd.f32 %v7598_v36, %v6976_v11 }
 0x4b4   : > { %v7575_v41 = vpop.f32.mrb[6].mxu0  ;;  %v7599_v42 = vpop.f32.mrb[6].mxu1  ;;  %v1142_v47 = vadd.f32 %v6967_v9, %v1141_v39  ;;  %v1289_v48 = vadd.f32 %v6976_v11, %v1288_v40 }
 0x4b5   : > { %v1153_v45 = vadd.f32 %v7575_v41, %v6967_v9  ;;  %v1300_v21 = vadd.f32 %v7599_v42, %v6976_v11  ;;  %v1144_v46 = vpop.f32.mrb[7].mxu0  ;;  %v1291_v15 = vpop.f32.mrb[7].mxu1 }
 0x4b6   : > { %v1145_v49 = vadd.f32 %v6967_v9, %v1144_v46  ;;  %v1292_v22 = vadd.f32 %v6976_v11, %v1291_v15 }
 0x4b7   : > { %v1159_v50 = vpack.c.bf16 %v1153_v45, %v1150_v43  ;;  %v1306_v51 = vpack.c.bf16 %v1300_v21, %v1297_v44 }
 0x4b8   : > { %v1158_v52 = vpack.c.bf16 %v1145_v49, %v1142_v47  ;;  %v1305_v29 = vpack.c.bf16 %v1292_v22, %v1289_v48 }
 0x4b9   : > { %1164 = vst.msk [vmem:[#allocation2 + $0x18] sm:$0xff] %vm1160_vm0, %v1159_v50  ;;  %1311 = vst.msk [vmem:[#allocation2 + $0x38] sm:$0xff] %vm1160_vm0, %v1306_v51 }
 0x4ba   : > { %1163 = vst.msk [vmem:[#allocation2 + $0x10] sm:$0xff] %vm1160_vm0, %v1158_v52  ;;  %1310 = vst.msk [vmem:[#allocation2 + $0x30] sm:$0xff] %vm1160_vm0, %v1305_v29 }
 0x4ca   : > { %v7618_v53 = vpop.f32.mrb[8].mxu0  ;;  %v7642_v54 = vpop.f32.mrb[8].mxu1 }
 0x4cb   : > { %v1419_v55 = vpop.f32.mrb[9].mxu0  ;;  %v1566_v58 = vpop.f32.mrb[9].mxu1  ;;  %v1428_v38 = vadd.f32 %v7618_v53, %v6985_v30  ;;  %v1575_v61 = vadd.f32 %v7642_v54, %v6994_v37 }
 0x4cc   : > { %v7619_v59 = vpop.f32.mrb[10].mxu0  ;;  %v7643_v60 = vpop.f32.mrb[10].mxu1  ;;  %v1420_v0 = vadd.f32 %v6985_v30, %v1419_v55  ;;  %v1567_v1 = vadd.f32 %v6994_v37, %v1566_v58 }
 0x4cd   : > { %v1431_v62 = vadd.f32 %v7619_v59, %v6985_v30  ;;  %v1578_v63 = vadd.f32 %v7643_v60, %v6994_v37  ;;  %v1422_v56 = vpop.f32.mrb[11].mxu0  ;;  %v1569_v57 = vpop.f32.mrb[11].mxu1 }
 0x4ce   : > { %v1423_v2 = vadd.f32 %v6985_v30, %v1422_v56  ;;  %v1570_v3 = vadd.f32 %v6994_v37, %v1569_v57 }
 0x4cf   : > { %v1451_v4 = vpack.c.bf16 %v1431_v62, %v1428_v38  ;;  %v1598_v5 = vpack.c.bf16 %v1578_v63, %v1575_v61 }
 0x4d0   : > { %v1450_v6 = vpack.c.bf16 %v1423_v2, %v1420_v0  ;;  %v1597_v7 = vpack.c.bf16 %v1570_v3, %v1567_v1 }
 0x4d1   : > { %1456 = vst.msk [vmem:[#allocation2 + $0x48] sm:$0xff] %vm1160_vm0, %v1451_v4  ;;  %1603 = vst.msk [vmem:[#allocation2 + $0x68] sm:$0xff] %vm1160_vm0, %v1598_v5 }
 0x4d2   : > { %1455 = vst.msk [vmem:[#allocation2 + $0x40] sm:$0xff] %vm1160_vm0, %v1450_v6  ;;  %1602 = vst.msk [vmem:[#allocation2 + $0x60] sm:$0xff] %vm1160_vm0, %v1597_v7  ;;  %v7622_v8 = vpop.f32.mrb[12].mxu0  ;;  %v7646_v9 = vpop.f32.mrb[12].mxu1 }
 0x4d3   : > { %v1435_v10 = vpop.f32.mrb[13].mxu0  ;;  %v1582_v11 = vpop.f32.mrb[13].mxu1  ;;  %v1444_v16 = vadd.f32 %v7622_v8, %v6985_v30  ;;  %v1591_v17 = vadd.f32 %v7646_v9, %v6994_v37 }
 0x4d4   : > { %v7623_v12 = vpop.f32.mrb[14].mxu0  ;;  %v7647_v13 = vpop.f32.mrb[14].mxu1  ;;  %v1436_v24 = vadd.f32 %v6985_v30, %v1435_v10  ;;  %v1583_v25 = vadd.f32 %v6994_v37, %v1582_v11 }
 0x4d5   : > { %v1447_v18 = vadd.f32 %v7623_v12, %v6985_v30  ;;  %v1594_v19 = vadd.f32 %v7647_v13, %v6994_v37  ;;  %v1438_v20 = vpop.f32.mrb[15].mxu0  ;;  %v1585_v23 = vpop.f32.mrb[15].mxu1 }
 0x4d6   : > { %v1439_v26 = vadd.f32 %v6985_v30, %v1438_v20  ;;  %v1586_v27 = vadd.f32 %v6994_v37, %v1585_v23 }
 0x4d7   : > { %v1453_v28 = vpack.c.bf16 %v1447_v18, %v1444_v16  ;;  %v1600_v31 = vpack.c.bf16 %v1594_v19, %v1591_v17 }
 0x4d8   : > { %v1452_v32 = vpack.c.bf16 %v1439_v26, %v1436_v24  ;;  %v1599_v33 = vpack.c.bf16 %v1586_v27, %v1583_v25 }
 0x4d9   : > { %1458 = vst.msk [vmem:[#allocation2 + $0x58] sm:$0xff] %vm1160_vm0, %v1453_v28  ;;  %1605 = vst.msk [vmem:[#allocation2 + $0x78] sm:$0xff] %vm1160_vm0, %v1600_v31 }
 0x4da   : > { %1457 = vst.msk [vmem:[#allocation2 + $0x50] sm:$0xff] %vm1160_vm0, %v1452_v32  ;;  %1604 = vst.msk [vmem:[#allocation2 + $0x70] sm:$0xff] %vm1160_vm0, %v1599_v33 }
 0x4db PF: > { %v1703_v34 = vld [vmem:[%s10372_s12] sm:$0xff]  ;;  %v1705_v35 = vld [vmem:[%s10372_s12 + $0x10] sm:$0xff]  ;;  %v1704_v14 = vld [vmem:[%s10372_s12 + $0x8] sm:$0xff]  ;;  %vm2118_vm2 = vcmask 261120   ;;  %vm2216_vm3 = vcmask 523264   ;;  %vm2385_vm4 = vcmask 7168  }
 0x4dc   : > { %1713 = vadd.xlane.f32.xlu0 %v1703_v34  ;;  %1717 = vadd.xlane.f32.xlu1 %v1705_v35  ;;  %v1706_v36 = vld [vmem:[%s10372_s12 + $0x18] sm:$0xff]  ;;  %v1707_v39 = vld [vmem:[%s10372_s12 + $0x20] sm:$0xff]  ;;  %v1708_v40 = vld [vmem:[%s10372_s12 + $0x28] sm:$0xff]  ;;  %s12496_s13 = sld [smem:[#allocation54_spill]] }
 0x4dd   : > { %v1709_v41 = vld [vmem:[%s10372_s12 + $0x30] sm:$0xff]  ;;  %v1710_v42 = vld [vmem:[%s10372_s12 + $0x38] sm:$0xff]  ;;  %v8403_v43 = vld [vmem:[#allocation15] sm:$0xff]  }
 0x4de   : > { %v8404_v44 = vld [vmem:[#allocation17] sm:$0xff]   ;;  %7648 = vmatprep.subr.bf16.mxu0 %v8403_v43  ;;  %v8405_v6 = vld [vmem:[#allocation15 + $0x8] sm:$0xff]   ;;  %v8407_v8 = vld [vmem:[#allocation15 + $0x10] sm:$0xff]  }
 0x4df   : > { %7672 = vmatprep.subr.bf16.mxu1 %v8404_v44  ;;  %7649 = vmatpush3.bf16.msra.mxu0 %v8403_v43  ;;  %v8406_v7 = vld [vmem:[#allocation17 + $0x8] sm:$0xff]   ;;  %v8408_v9 = vld [vmem:[#allocation17 + $0x10] sm:$0xff]   ;;  %v8409_v10 = vld [vmem:[#allocation15 + $0x18] sm:$0xff]  }
 0x4e0   : > { %1715 = vadd.xlane.f32.xlu0 %v1704_v14  ;;  %1719 = vadd.xlane.f32.xlu1 %v1706_v36  ;;  %v8410_v11 = vld [vmem:[#allocation17 + $0x18] sm:$0xff]   ;;  %v8411_v12 = vld [vmem:[#allocation15 + $0x20] sm:$0xff]   ;;  %v8413_v16 = vld [vmem:[#allocation15 + $0x28] sm:$0xff]  }
 0x4e1   : > { %7673 = vmatpush3.bf16.msra.mxu1 %v8404_v44  ;;  %7650 = vmatprep.subr.bf16.mxu0 %v8405_v6  ;;  %v8412_v13 = vld [vmem:[#allocation17 + $0x20] sm:$0xff]   ;;  %v8414_v17 = vld [vmem:[#allocation17 + $0x28] sm:$0xff]   ;;  %v8415_v18 = vld [vmem:[#allocation15 + $0x30] sm:$0xff]  }
 0x4e2   : > { %7674 = vmatprep.subr.bf16.mxu1 %v8406_v7  ;;  %v8416_v19 = vld [vmem:[#allocation17 + $0x30] sm:$0xff]   ;;  %v8417_v20 = vld [vmem:[#allocation15 + $0x38] sm:$0xff]   ;;  %p7109_p3 = scmp.ne.s32.totalorder %s12496_s13, 1 }
 0x4e3   : > { %7651 = vmatpush3.bf16.msra.mxu0 %v8405_v6  ;;  %v8418_v23 = vld [vmem:[#allocation17 + $0x38] sm:$0xff]  }
 0x4e4   : > { %1721 = vadd.xlane.f32.xlu0 %v1707_v39  ;;  %1723 = vadd.xlane.f32.xlu1 %v1708_v40 }
 0x4e5   : > { %7675 = vmatpush3.bf16.msra.mxu1 %v8406_v7  ;;  %7652 = vmatprep.subr.bf16.mxu0 %v8407_v8 }
 0x4e6   : > { %7676 = vmatprep.subr.bf16.mxu1 %v8408_v9 }
 0x4e7   : > { %7653 = vmatpush3.bf16.msra.mxu0 %v8407_v8 }
 0x4e8   : > { %1725 = vadd.xlane.f32.xlu0 %v1709_v41  ;;  %1727 = vadd.xlane.f32.xlu1 %v1710_v42 }
 0x4e9   : > { %7677 = vmatpush3.bf16.msra.mxu1 %v8408_v9  ;;  %7654 = vmatprep.subr.bf16.mxu0 %v8409_v10 }
 0x4ea   : > { %7678 = vmatprep.subr.bf16.mxu1 %v8410_v11 }
 0x4eb   : > { %7655 = vmatpush3.bf16.msra.mxu0 %v8409_v10 }
 0x4ec   : > { %7656 = vmatprep.subr.bf16.mxu0 %v8411_v12 }
 0x4ed   : > { %7679 = vmatpush3.bf16.msra.mxu1 %v8410_v11 }
 0x4ee   : > { %7680 = vmatprep.subr.bf16.mxu1 %v8412_v13 }
 0x4ef   : > { %7657 = vmatpush3.bf16.msra.mxu0 %v8411_v12 }
 0x4f0   : > { %7658 = vmatprep.subr.bf16.mxu0 %v8413_v16 }
 0x4f1   : > { %7681 = vmatpush3.bf16.msra.mxu1 %v8412_v13 }
 0x4f2   : > { %7682 = vmatprep.subr.bf16.mxu1 %v8414_v17 }
 0x4f3   : > { %7659 = vmatpush3.bf16.msra.mxu0 %v8413_v16 }
 0x4f4   : > { %7660 = vmatprep.subr.bf16.mxu0 %v8415_v18 }
 0x4f5   : > { %7683 = vmatpush3.bf16.msra.mxu1 %v8414_v17 }
 0x4f6   : > { %7684 = vmatprep.subr.bf16.mxu1 %v8416_v19 }
 0x4f7   : > { %7661 = vmatpush3.bf16.msra.mxu0 %v8415_v18 }
 0x4f8   : > { %7662 = vmatprep.subr.bf16.mxu0 %v8417_v20 }
 0x4f9   : > { %7685 = vmatpush3.bf16.msra.mxu1 %v8416_v19 }
 0x4fa   : > { %7686 = vmatprep.subr.bf16.mxu1 %v8418_v23 }
 0x4fb   : > { %7663 = vmatpush3.bf16.msra.mxu0 %v8417_v20 }
 0x4fd   : > { %7687 = vmatpush3.bf16.msra.mxu1 %v8418_v23 }
 0x569   : > { %v1714_v45 = vpop.xlane.xlu0 %1713  ;;  %v1718_v21 = vpop.xlane.xlu1 %1717 }
 0x56a   : > { %v1730_v46 = vmul.f32 0.0078125, %v1714_v45  ;;  %v1732_v15 = vmul.f32 0.0078125, %v1718_v21 }
 0x56c   : > { %v10663_v47 = vsub.f32 %v1703_v34, %v1730_v46  ;;  %v10665_v48 = vsub.f32 %v1705_v35, %v1732_v15 }
 0x56d   : > { %v1716_v49 = vpop.xlane.xlu0 %1715  ;;  %v1720_v22 = vpop.xlane.xlu1 %1719 }
 0x56e   : > { %v1731_v50 = vmul.f32 0.0078125, %v1716_v49  ;;  %v1746_v51 = vmul.f32 %v10663_v47, %v10663_v47  ;;  %v1733_v52 = vmul.f32 0.0078125, %v1720_v22  ;;  %v1748_v29 = vmul.f32 %v10665_v48, %v10665_v48 }
 0x570   : > { %1754 = vadd.xlane.f32.xlu0 %v1746_v51  ;;  %v10671_v53 = vsub.f32 %v1704_v14, %v1731_v50  ;;  %v10673_v30 = vsub.f32 %v1706_v36, %v1733_v52  ;;  %v7003_v50 = vld [vmem:[#allocation11] ss:$0 sm:$0xff] }
 0x571   : > { %v1722_v54 = vpop.xlane.xlu0 %1721  ;;  %v1724_v37 = vpop.xlane.xlu1 %1723 }
 0x572   : > { %v1734_v55 = vmul.f32 0.0078125, %v1722_v54  ;;  %v1747_v58 = vmul.f32 %v10671_v53, %v10671_v53  ;;  %v1735_v59 = vmul.f32 0.0078125, %v1724_v37  ;;  %v1749_v60 = vmul.f32 %v10673_v30, %v10673_v30 }
 0x574   : > { %1758 = vadd.xlane.f32.xlu0 %v1748_v29  ;;  %1756 = vadd.xlane.f32.xlu1 %v1747_v58  ;;  %v10679_v38 = vsub.f32 %v1707_v39, %v1734_v55  ;;  %v10681_v61 = vsub.f32 %v1708_v40, %v1735_v59  ;;  %v7004_v58 = vld [vmem:[#allocation12] ss:$0 sm:$0xff] }
 0x575   : > { %v1726_v62 = vpop.xlane.xlu0 %1725  ;;  %v1728_v63 = vpop.xlane.xlu1 %1727 }
 0x576   : > { %v1736_v56 = vmul.f32 0.0078125, %v1726_v62  ;;  %v1750_v57 = vmul.f32 %v10679_v38, %v10679_v38  ;;  %v1737_v0 = vmul.f32 0.0078125, %v1728_v63  ;;  %v1751_v1 = vmul.f32 %v10681_v61, %v10681_v61 }
 0x578   : > { %1760 = vadd.xlane.f32.xlu1 %v1749_v60  ;;  %1762 = vadd.xlane.f32.xlu0 %v1750_v57  ;;  %v10687_v2 = vsub.f32 %v1709_v41, %v1736_v56  ;;  %v10689_v3 = vsub.f32 %v1710_v42, %v1737_v0 }
 0x57a   : > { %v1752_v4 = vmul.f32 %v10687_v2, %v10687_v2  ;;  %v1753_v5 = vmul.f32 %v10689_v3, %v10689_v3 }
 0x57c   : > { %1764 = vadd.xlane.f32.xlu1 %v1751_v1  ;;  %1766 = vadd.xlane.f32.xlu0 %v1752_v4 }
 0x580   : > { %1768 = vadd.xlane.f32.xlu1 %v1753_v5 }
 0x5fd   : > { %v1755_v24 = vpop.xlane.xlu0 %1754 }
 0x5fe   : > { %v1770_v25 = vmul.f32 0.0078125, %v1755_v24  ;;  %v7005_v24 = vld [vmem:[#allocation20] ss:$0 sm:$0xff] }
 0x600   : > { %v1778_v26 = vadd.f32 1e-05, %v1770_v25 }
 0x601   : > { %v1757_v27 = vpop.xlane.xlu1 %1756  ;;  %v1759_v28 = vpop.xlane.xlu0 %1758 }
 0x602   : > { %8467 = vrsqrt.f32 %v1778_v26  ;;  %v1771_v31 = vmul.f32 0.0078125, %v1757_v27  ;;  %v1772_v32 = vmul.f32 0.0078125, %v1759_v28  ;;  %v7014_v26 = vld [vmem:[#allocation21] ss:$0 sm:$0xff] }
 0x604   : > { %v1779_v33 = vadd.f32 1e-05, %v1771_v31  ;;  %v1780_v34 = vadd.f32 1e-05, %v1772_v32 }
 0x605   : > { %v1761_v35 = vpop.xlane.xlu1 %1760  ;;  %v1763_v14 = vpop.xlane.xlu0 %1762 }
 0x606   : > { %8469 = vrsqrt.f32 %v1779_v33  ;;  %v1773_v36 = vmul.f32 0.0078125, %v1761_v35  ;;  %v1774_v39 = vmul.f32 0.0078125, %v1763_v14 }
 0x607   : > { %8471 = vrsqrt.f32 %v1780_v34 }
 0x608   : > { %v1781_v40 = vadd.f32 1e-05, %v1773_v36  ;;  %v1782_v41 = vadd.f32 1e-05, %v1774_v39 }
 0x609   : > { %v1765_v42 = vpop.xlane.xlu1 %1764  ;;  %v1767_v43 = vpop.xlane.xlu0 %1766 }
 0x60a   : > { %8473 = vrsqrt.f32 %v1781_v40  ;;  %v1775_v44 = vmul.f32 0.0078125, %v1765_v42  ;;  %v1776_v45 = vmul.f32 0.0078125, %v1767_v43 }
 0x60b   : > { %8475 = vrsqrt.f32 %v1782_v41 }
 0x60c   : > { %v8468_v21 = vpop.eup %8467  ;;  %v1783_v46 = vadd.f32 1e-05, %v1775_v44  ;;  %v1784_v15 = vadd.f32 1e-05, %v1776_v45 }
 0x60d   : > { %v1794_v49 = vmul.f32 %v8468_v21, %v10663_v47  ;;  %v1769_v22 = vpop.xlane.xlu1 %1768 }
 0x60e   : > { %8477 = vrsqrt.f32 %v1783_v46  ;;  %v1777_v51 = vmul.f32 0.0078125, %v1769_v22 }
 0x60f   : > { %8479 = vrsqrt.f32 %v1784_v15  ;;  %v1808_v37 = vmul.f32 %v7003_v50, %v1794_v49 }
 0x610   : > { %v8470_v52 = vpop.eup %8469  ;;  %v1785_v29 = vadd.f32 1e-05, %v1777_v51 }
 0x611   : > { %v8472_v54 = vpop.eup %8471  ;;  %v1795_v55 = vmul.f32 %v8470_v52, %v10671_v53  ;;  %v1822_v56 = vadd.f32 %v7004_v58, %v1808_v37 }
 0x612   : > { %v1796_v59 = vmul.f32 %v8472_v54, %v10665_v48  ;;  %8481 = vrsqrt.f32 %v1785_v29 }
 0x613   : > { %v1809_v60 = vmul.f32 %v7003_v50, %v1795_v55 }
 0x614   : > { %v8474_v62 = vpop.eup %8473  ;;  %v1810_v57 = vmul.f32 %v7003_v50, %v1796_v59 }
 0x615   : > { %v8476_v63 = vpop.eup %8475  ;;  %v1823_v47 = vadd.f32 %v7004_v58, %v1809_v60  ;;  %v1797_v0 = vmul.f32 %v8474_v62, %v10673_v30 }
 0x616   : > { %v1798_v1 = vmul.f32 %v8476_v63, %v10679_v38  ;;  %v1824_v8 = vadd.f32 %v7004_v58, %v1810_v57 }
 0x617   : > { %v10700_v4 = vpack.c.bf16 %v1823_v47, %v1822_v56  ;;  %v1811_v5 = vmul.f32 %v7003_v50, %v1797_v0 }
 0x618   : > { %v8478_v6 = vpop.eup %8477  ;;  %v1812_v7 = vmul.f32 %v7003_v50, %v1798_v1 }
 0x619   : > { %v8480_v53 = vpop.eup %8479  ;;  %v1825_v9 = vadd.f32 %v7004_v58, %v1811_v5  ;;  %v1799_v48 = vmul.f32 %v8478_v6, %v10681_v61  ;;  %7664 = vmatprep.mubr.bf16.mxu0 %v10700_v4  ;;  %7688 = vmatprep.mubr.bf16.mxu1 %v10700_v4 }
 0x61a   : > { %v1800_v10 = vmul.f32 %v8480_v53, %v10687_v2  ;;  %v1826_v12 = vadd.f32 %v7004_v58, %v1812_v7  ;;  %v8419_v53 = vld [vmem:[#allocation17 + $0x40] sm:$0xff]  }
 0x61b   : > { %v10706_v11 = vpack.c.bf16 %v1825_v9, %v1824_v8  ;;  %v1813_v30 = vmul.f32 %v7003_v50, %v1799_v48  ;;  %v2115_v9 = vld [vmem:[#allocation2 + $0x8] sm:$0xff] }
 0x61c   : > { %v8482_v38 = vpop.eup %8481  ;;  %v1814_v16 = vmul.f32 %v7003_v50, %v1800_v10  ;;  %v8420_v48 = vld [vmem:[#allocation17 + $0x48] sm:$0xff]  }
 0x61d   : > { %v1827_v13 = vadd.f32 %v7004_v58, %v1813_v30  ;;  %v1801_v17 = vmul.f32 %v8482_v38, %v10689_v3  ;;  %7665 = vmatmul.mubr.bf16.vlgmr.msra.gmra.mrb[0].mxu0 %v10706_v11  ;;  %7689 = vmatmul.mubr.bf16.vlgmr.msra.gmra.mrb[0].mxu1 %v10706_v11  ;;  %v2114_v3 = vld [vmem:[#allocation2] sm:$0xff]  ;;  %v2116_v10 = vld [vmem:[#allocation2 + $0x10] sm:$0xff]  ;;  %v2117_v38 = vld [vmem:[#allocation2 + $0x18] sm:$0xff] }
 0x61e   : > { %v1828_v19 = vadd.f32 %v7004_v58, %v1814_v16  ;;  %v8421_v30 = vld [vmem:[#allocation17 + $0x50] sm:$0xff]   ;;  %v8424_v16 = vld [vmem:[#allocation17 + $0x68] sm:$0xff]  }
 0x61f   : > { %v10711_v61 = vpack.c.bf16 %v1827_v13, %v1826_v12  ;;  %v1815_v18 = vmul.f32 %v7003_v50, %v1801_v17  ;;  %v8422_v12 = vld [vmem:[#allocation17 + $0x58] sm:$0xff]   ;;  %v8423_v13 = vld [vmem:[#allocation17 + $0x60] sm:$0xff]   ;;  %v8425_v17 = vld [vmem:[#allocation17 + $0x70] sm:$0xff]  }
 0x621   : > { %v1829_v20 = vadd.f32 %v7004_v58, %v1815_v18  ;;  %7668 = vmatprep.mubr.bf16.mxu0 %v10711_v61  ;;  %7692 = vmatprep.mubr.bf16.mxu1 %v10711_v61  ;;  %v8426_v18 = vld [vmem:[#allocation17 + $0x78] sm:$0xff]  }
 0x623   : > { %v10715_v2 = vpack.c.bf16 %v1829_v20, %v1828_v19 }
 0x625   : > { %7669 = vmatmul.mubr.bf16.gmra.mrb[4].mxu0 %v10715_v2  ;;  %7693 = vmatmul.mubr.bf16.gmra.mrb[4].mxu1 %v10715_v2 }
 0x626   : > { %7704 = vmatprep.mubr.msk.bf16.mxu0 %vm2118_vm2, %v2114_v3 }
 0x6f0   : > { %v7666_v23 = vpop.f32.mrb[0].mxu0  ;;  %v7690_v25 = vpop.f32.mrb[0].mxu1 }
 0x6f1   : > { %v1939_v27 = vpop.f32.mrb[1].mxu0  ;;  %v2079_v28 = vpop.f32.mrb[1].mxu1  ;;  %v1948_v33 = vadd.f32 %v7666_v23, %v7005_v24  ;;  %v2088_v34 = vadd.f32 %v7690_v25, %v7014_v26 }
 0x6f2   : > { %v7667_v31 = vpop.f32.mrb[2].mxu0  ;;  %v7691_v32 = vpop.f32.mrb[2].mxu1  ;;  %v1940_v40 = vadd.f32 %v7005_v24, %v1939_v27  ;;  %v2080_v41 = vadd.f32 %v7014_v26, %v2079_v28 }
 0x6f3   : > { %v1951_v35 = vadd.f32 %v7667_v31, %v7005_v24  ;;  %v2091_v14 = vadd.f32 %v7691_v32, %v7014_v26  ;;  %v1942_v36 = vpop.f32.mrb[3].mxu0  ;;  %v2082_v39 = vpop.f32.mrb[3].mxu1 }
 0x6f4   : > { %v1943_v42 = vadd.f32 %v7005_v24, %v1942_v36  ;;  %v2083_v43 = vadd.f32 %v7014_v26, %v2082_v39  ;;  %v9624_v39 = vmov 0  }
 0x6f5   : > { %v1971_v44 = vpack.c.bf16 %v1951_v35, %v1948_v33  ;;  %v2111_v45 = vpack.c.bf16 %v2091_v14, %v2088_v34  ;;  %8401 = vset.pattern.permute.xlu0 %v9624_v39  ;;  %8402 = vset.pattern.permute.xlu1 %v9624_v39 }
 0x6f6   : > { %v1970_v21 = vpack.c.bf16 %v1943_v42, %v1940_v40  ;;  %v2110_v46 = vpack.c.bf16 %v2083_v43, %v2080_v41  ;;  %v7040_v41 = vld [vmem:[#allocation21 + $0x1] ss:$0 sm:$0xff] }
 0x6f7   : > { %v2135_v6 = vsel %vm2118_vm2, %v1971_v44, 0 }
 0x6f8   : > { %v7670_v15 = vpop.f32.mrb[4].mxu0  ;;  %v7694_v49 = vpop.f32.mrb[4].mxu1  ;;  %8040 = vmatprep.subr.msk.bf16.mxu0 %vm2118_vm2, %v1970_v21  ;;  %7712 = vmatprep.subr.bf16.mxu1 %v2110_v46  ;;  %v2132_v22 = vsel %vm2118_vm2, %v1970_v21, 0 }
 0x6f9   : > { %v1955_v50 = vpop.f32.mrb[5].mxu0  ;;  %v2095_v51 = vpop.f32.mrb[5].mxu1  ;;  %7697 = vmatpush3.bf16.xpose.msra.mxu0 %v2132_v22  ;;  %7713 = vmatpush3.bf16.msra.mxu1 %v2110_v46  ;;  %v1964_v54 = vadd.f32 %v7670_v15, %v7005_v24  ;;  %v2104_v37 = vadd.f32 %v7694_v49, %v7014_v26 }
 0x6fa   : > { %v7671_v52 = vpop.f32.mrb[6].mxu0  ;;  %v7695_v29 = vpop.f32.mrb[6].mxu1  ;;  %8041 = vmatprep.subr.msk.bf16.mxu0 %vm2118_vm2, %v1971_v44  ;;  %7714 = vmatprep.subr.bf16.mxu1 %v2111_v45  ;;  %v1956_v62 = vadd.f32 %v7005_v24, %v1955_v50  ;;  %v2096_v63 = vadd.f32 %v7014_v26, %v2095_v51 }
 0x6fb   : > { %v1967_v55 = vadd.f32 %v7671_v52, %v7005_v24  ;;  %v2107_v58 = vadd.f32 %v7695_v29, %v7014_v26  ;;  %v1958_v59 = vpop.f32.mrb[7].mxu0  ;;  %v2098_v60 = vpop.f32.mrb[7].mxu1 }
 0x6fc   : > { %v1959_v56 = vadd.f32 %v7005_v24, %v1958_v59  ;;  %v2099_v47 = vadd.f32 %v7014_v26, %v2098_v60 }
 0x6fd   : > { %v1973_v57 = vpack.c.bf16 %v1967_v55, %v1964_v54  ;;  %v2113_v0 = vpack.c.bf16 %v2107_v58, %v2104_v37  ;;  %7715 = vmatpush3.bf16.msra.mxu1 %v2111_v45 }
 0x6fe   : > { %v1972_v1 = vpack.c.bf16 %v1959_v56, %v1956_v62  ;;  %v2112_v5 = vpack.c.bf16 %v2099_v47, %v2096_v63  ;;  %v10767_v62 = vld [vmem:[#allocation3] sm:$0xff]  ;;  %v10769_v56 = vld [vmem:[#allocation3 + $0x8] sm:$0xff] }
 0x6ff   : > { %v2141_v8 = vsel %vm2118_vm2, %v1973_v57, 0 }
 0x700   : > { %7716 = vmatprep.subr.bf16.mxu1 %v2112_v5  ;;  %v2138_v7 = vsel %vm2118_vm2, %v1972_v1, 0 }
 0x701   : > { %7699 = vmatpush3.bf16.xpose.msra.mxu0 %v2135_v6  ;;  %7717 = vmatpush3.bf16.msra.mxu1 %v2112_v5 }
 0x702   : > { %8042 = vmatprep.subr.msk.bf16.mxu0 %vm2118_vm2, %v1972_v1  ;;  %7718 = vmatprep.subr.bf16.mxu1 %v2113_v0 }
 0x705   : > { %7719 = vmatpush3.bf16.msra.mxu1 %v2113_v0  ;;  %v10774_v0 = vld [vmem:[#allocation3 + $0x10] sm:$0xff] }
 0x709   : > { %7701 = vmatpush3.bf16.xpose.msra.mxu0 %v2138_v7  ;;  %v10784_v7 = vld [vmem:[#allocation3 + $0x18] sm:$0xff] }
 0x70a   : > { %8043 = vmatprep.subr.msk.bf16.mxu0 %vm2118_vm2, %v1973_v57 }
 0x711   : > { %7703 = vmatpush3.bf16.xpose.msra.mxu0 %v2141_v8 }
 0x712   : > { %7752 = vmatprep.subr.bf16.mxu0 %v8419_v53 }
 0x718   : > { %7705 = vmatmul.mubr.msk.bf16.vlgmr.msra.gmra.mrb[8].mxu0 %vm2118_vm2, %v2115_v9 }
 0x719   : > { %7753 = vmatpush3.bf16.msra.mxu0 %v8419_v53  ;;  %7708 = vmatprep.mubr.msk.bf16.mxu0 %vm2118_vm2, %v2116_v10 }
 0x71a   : > { %7754 = vmatprep.subr.bf16.mxu0 %v8420_v48 }
 0x71d   : > { %7755 = vmatpush3.bf16.msra.mxu0 %v8420_v48  ;;  %v10793_v48 = vld [vmem:[#allocation3 + $0x20] sm:$0xff] }
 0x71e   : > { %7756 = vmatprep.subr.bf16.mxu0 %v8421_v30 }
 0x720   : > { %7709 = vmatmul.mubr.msk.bf16.gmra.mrb[12].mxu0 %vm2118_vm2, %v2117_v38 }
 0x721   : > { %7757 = vmatpush3.bf16.msra.mxu0 %v8421_v30  ;;  %7768 = vmatprep.mubr.bf16.mxu0 %v10700_v4 }
 0x722   : > { %7758 = vmatprep.subr.bf16.mxu0 %v8422_v12 }
 0x725   : > { %7759 = vmatpush3.bf16.msra.mxu0 %v8422_v12  ;;  %v10803_v12 = vld [vmem:[#allocation3 + $0x28] sm:$0xff] }
 0x726   : > { %7760 = vmatprep.subr.bf16.mxu0 %v8423_v13 }
 0x729   : > { %7761 = vmatpush3.bf16.msra.mxu0 %v8423_v13 }
 0x72a   : > { %7762 = vmatprep.subr.bf16.mxu0 %v8424_v16 }
 0x72d   : > { %7763 = vmatpush3.bf16.msra.mxu0 %v8424_v16 }
 0x72e   : > { %7764 = vmatprep.subr.bf16.mxu0 %v8425_v17 }
 0x731   : > { %7765 = vmatpush3.bf16.msra.mxu0 %v8425_v17 }
 0x732   : > { %7766 = vmatprep.subr.bf16.mxu0 %v8426_v18 }
 0x735   : > { %7767 = vmatpush3.bf16.msra.mxu0 %v8426_v18  ;;  %v10812_v18 = vld [vmem:[#allocation3 + $0x30] sm:$0xff] }
 0x738   : > { %7769 = vmatmul.mubr.bf16.vlgmr.msra.gmra.mrb[16].mxu0 %v10706_v11 }
 0x739   : > { %7772 = vmatprep.mubr.bf16.mxu0 %v10711_v61 }
 0x740   : > { %7773 = vmatmul.mubr.bf16.gmra.mrb[20].mxu0 %v10715_v2 }
 0x7eb   : > { %v10735_v19 = vpop.f32.mrb[8].mxu0 }
 0x7ec   : > { %v10737_v20 = vpop.f32.mrb[9].mxu0  ;;  %v2223_v26 = vsel %vm2216_vm3, %v10735_v19, -inf }
 0x7ed   : > { %v10739_v3 = vpop.f32.mrb[10].mxu0  ;;  %v2217_v23 = vsel %vm2216_vm3, %v10737_v20, -inf }
 0x7ee   : > { %2218 = vmax.xlane.f32.xlu0 %v2217_v23  ;;  %v10743_v24 = vpop.f32.mrb[11].mxu0  ;;  %v2226_v27 = vsel %vm2216_vm3, %v10739_v3, -inf }
 0x7ef   : > { %v2220_v25 = vsel %vm2216_vm3, %v10743_v24, -inf }
 0x7f0   : > { %2221 = vmax.xlane.f32.xlu1 %v2220_v25 }
 0x7f2   : > { %2224 = vmax.xlane.f32.xlu0 %v2223_v26 }
 0x7f3   : > { %v10751_v28 = vpop.f32.mrb[12].mxu0 }
 0x7f4   : > { %2227 = vmax.xlane.f32.xlu1 %v2226_v27  ;;  %v10753_v31 = vpop.f32.mrb[13].mxu0  ;;  %v2235_v14 = vsel %vm2216_vm3, %v10751_v28, -inf  ;;  %v10822_v27 = vld [vmem:[#allocation3 + $0x38] sm:$0xff] }
 0x7f5   : > { %v10755_v32 = vpop.f32.mrb[14].mxu0  ;;  %v2229_v33 = vsel %vm2216_vm3, %v10753_v31, -inf }
 0x7f6   : > { %2230 = vmax.xlane.f32.xlu0 %v2229_v33  ;;  %v10759_v34 = vpop.f32.mrb[15].mxu0  ;;  %v2238_v36 = vsel %vm2216_vm3, %v10755_v32, -inf }
 0x7f7   : > { %v2232_v35 = vsel %vm2216_vm3, %v10759_v34, -inf }
 0x7f8   : > { %2233 = vmax.xlane.f32.xlu1 %v2232_v35 }
 0x7fa   : > { %2236 = vmax.xlane.f32.xlu0 %v2235_v14 }
 0x7fc   : > { %2239 = vmax.xlane.f32.xlu1 %v2238_v36 }
 0x80b   : > { %v7770_v40 = vpop.f32.mrb[16].mxu0 }
 0x80c   : > { %v2804_v42 = vpop.f32.mrb[17].mxu0  ;;  %v2813_v44 = vadd.f32 %v7770_v40, %v7040_v41 }
 0x80d   : > { %v7771_v43 = vpop.f32.mrb[18].mxu0  ;;  %v2805_v46 = vadd.f32 %v7040_v41, %v2804_v42 }
 0x80e   : > { %v2816_v45 = vadd.f32 %v7771_v43, %v7040_v41  ;;  %v2807_v21 = vpop.f32.mrb[19].mxu0 }
 0x80f   : > { %v2808_v15 = vadd.f32 %v7040_v41, %v2807_v21 }
 0x810   : > { %v2836_v49 = vpack.c.bf16 %v2816_v45, %v2813_v44 }
 0x811   : > { %v2835_v22 = vpack.c.bf16 %v2808_v15, %v2805_v46 }
 0x813   : > { %v7774_v50 = vpop.f32.mrb[20].mxu0  ;;  %7792 = vmatprep.subr.bf16.mxu0 %v2835_v22 }
 0x814   : > { %v2820_v51 = vpop.f32.mrb[21].mxu0  ;;  %7793 = vmatpush3.bf16.msra.mxu0 %v2835_v22  ;;  %v2829_v29 = vadd.f32 %v7774_v50, %v7040_v41 }
 0x815   : > { %v7775_v52 = vpop.f32.mrb[22].mxu0  ;;  %7794 = vmatprep.subr.bf16.mxu0 %v2836_v49  ;;  %v2821_v55 = vadd.f32 %v7040_v41, %v2820_v51 }
 0x816   : > { %v2832_v54 = vadd.f32 %v7775_v52, %v7040_v41  ;;  %v2823_v37 = vpop.f32.mrb[23].mxu0 }
 0x817   : > { %v2824_v58 = vadd.f32 %v7040_v41, %v2823_v37  ;;  %v8427_v41 = vld [vmem:[#allocation15 + $0x40] sm:$0xff]  }
 0x818   : > { %v2838_v59 = vpack.c.bf16 %v2832_v54, %v2829_v29  ;;  %7795 = vmatpush3.bf16.msra.mxu0 %v2836_v49  ;;  %7728 = vmatprep.subr.bf16.mxu1 %v8427_v41 }
 0x819   : > { %v2837_v60 = vpack.c.bf16 %v2824_v58, %v2821_v55 }
 0x81b   : > { %7796 = vmatprep.subr.bf16.mxu0 %v2837_v60 }
 0x81c   : > { %7797 = vmatpush3.bf16.msra.mxu0 %v2837_v60 }
 0x81d   : > { %7798 = vmatprep.subr.bf16.mxu0 %v2838_v59 }
 0x820   : > { %7799 = vmatpush3.bf16.msra.mxu0 %v2838_v59 }
 0x87b   : > { %v2219_v63 = vpop.xlane.xlu0 %2218 }
 0x87c   : > { %v10772_v47 = vmax.f32 %v10767_v62, %v2219_v63 }
 0x87d   : > { %v2222_v57 = vpop.xlane.xlu1 %2221 }
 0x87e   : > { %2547 = vst.msk [vmem:[#allocation3] sm:$0xff] %vm2385_vm4, %v10772_v47  ;;  %v10781_v5 = vmax.f32 %v10769_v56, %v2222_v57  ;;  %2275 = vperm.xlu0 %8401, %v10772_v47  }
 0x87f   : > { %v2225_v6 = vpop.xlane.xlu0 %2224 }
 0x880   : > { %2548 = vst.msk [vmem:[#allocation3 + $0x8] sm:$0xff] %vm2385_vm4, %v10781_v5  ;;  %v10791_v8 = vmax.f32 %v10774_v0, %v2225_v6 }
 0x881   : > { %v2228_v9 = vpop.xlane.xlu1 %2227 }
 0x882   : > { %2549 = vst.msk [vmem:[#allocation3 + $0x10] sm:$0xff] %vm2385_vm4, %v10791_v8  ;;  %v10800_v30 = vmax.f32 %v10784_v7, %v2228_v9  ;;  %2285 = vperm.xlu1 %8402, %v10791_v8   ;;  %v8428_v9 = vld [vmem:[#allocation15 + $0x48] sm:$0xff]  }
 0x883   : > { %v2231_v38 = vpop.xlane.xlu0 %2230 }
 0x884   : > { %2550 = vst.msk [vmem:[#allocation3 + $0x18] sm:$0xff] %vm2385_vm4, %v10800_v30  ;;  %v10810_v16 = vmax.f32 %v10793_v48, %v2231_v38 }
 0x885   : > { %v2234_v17 = vpop.xlane.xlu1 %2233 }
 0x886   : > { %2280 = vperm.xlu1 %8402, %v10781_v5   ;;  %2551 = vst.msk [vmem:[#allocation3 + $0x20] sm:$0xff] %vm2385_vm4, %v10810_v16  ;;  %v10820_v25 = vmax.f32 %v10803_v12, %v2234_v17  ;;  %v8429_v17 = vld [vmem:[#allocation15 + $0x50] sm:$0xff]  }
 0x887   : > { %v2237_v26 = vpop.xlane.xlu0 %2236 }
 0x888   : > { %2552 = vst.msk [vmem:[#allocation3 + $0x28] sm:$0xff] %vm2385_vm4, %v10820_v25  ;;  %v10829_v35 = vmax.f32 %v10812_v18, %v2237_v26  ;;  %v8430_v26 = vld [vmem:[#allocation15 + $0x58] sm:$0xff]  }
 0x889   : > { %v2240_v14 = vpop.xlane.xlu1 %2239 }
 0x88a   : > { %2290 = vperm.xlu1 %8402, %v10800_v30   ;;  %2553 = vst.msk [vmem:[#allocation3 + $0x30] sm:$0xff] %vm2385_vm4, %v10829_v35  ;;  %v10837_v39 = vmax.f32 %v10822_v27, %v2240_v14 }
 0x88c   : > { %2554 = vst.msk [vmem:[#allocation3 + $0x38] sm:$0xff] %vm2385_vm4, %v10837_v39 }
 0x88e   : > { %2305 = vperm.xlu1 %8402, %v10829_v35  }
 0x892   : > { %2295 = vperm.xlu1 %8402, %v10810_v16  }
 0x896   : > { %2300 = vperm.xlu1 %8402, %v10820_v25  }
 0x89a   : > { %2310 = vperm.xlu1 %8402, %v10837_v39  }
 0x8fd   : > { %v2276_v42 = vpop.permute.xlu0 %2275 }
 0x8fe   : > { %v2313_v43 = vsub.f32 %v10737_v20, %v2276_v42 }
 0x900   : > { %v2321_v45 = vmul.f32 1.442695, %v2313_v43  ;;  %v8431_v43 = vld [vmem:[#allocation15 + $0x60] sm:$0xff]  }
 0x901   : > { %v2286_v44 = vpop.permute.xlu1 %2285 }
 0x902   : > { %v2315_v21 = vsub.f32 %v10735_v19, %v2286_v44  ;;  %8483 = vpow2.f32 %v2321_v45 }
 0x904   : > { %v2325_v22 = vmul.f32 1.442695, %v2315_v21  ;;  %v8432_v21 = vld [vmem:[#allocation15 + $0x68] sm:$0xff]  }
 0x905   : > { %v2281_v46 = vpop.permute.xlu1 %2280 }
 0x906   : > { %v2314_v15 = vsub.f32 %v10743_v24, %v2281_v46  ;;  %v8433_v46 = vld [vmem:[#allocation15 + $0x70] sm:$0xff]  }
 0x908   : > { %v2323_v49 = vmul.f32 1.442695, %v2314_v15  ;;  %v8434_v15 = vld [vmem:[#allocation15 + $0x78] sm:$0xff]  }
 0x909   : > { %v2291_v50 = vpop.permute.xlu1 %2290 }
 0x90a   : > { %8485 = vpow2.f32 %v2323_v49  ;;  %v2316_v51 = vsub.f32 %v10739_v3, %v2291_v50  ;;  %v2840_v49 = vld [vmem:[#allocation2 + $0x20] sm:$0xff] }
 0x90b   : > { %8487 = vpow2.f32 %v2325_v22 }
 0x90c   : > { %v2327_v52 = vmul.f32 1.442695, %v2316_v51  ;;  %v10852_v37 = vpop.eup %8483 }
 0x90d   : > { %v2306_v29 = vpop.permute.xlu1 %2305 }
 0x90e   : > { %8489 = vpow2.f32 %v2327_v52  ;;  %v2319_v24 = vsub.f32 %v10751_v28, %v2306_v29 }
 0x910   : > { %v2333_v6 = vmul.f32 1.442695, %v2319_v24 }
 0x911   : > { %v2296_v54 = vpop.permute.xlu1 %2295 }
 0x912   : > { %v2317_v20 = vsub.f32 %v10753_v31, %v2296_v54 }
 0x914   : > { %v10854_v19 = vpop.eup %8485  ;;  %v2329_v55 = vmul.f32 1.442695, %v2317_v20 }
 0x915   : > { %v2301_v58 = vpop.permute.xlu1 %2300  ;;  %v2450_v59 = vpack.c.bf16 %v10854_v19, %v10852_v37  ;;  %v10860_v60 = vpop.eup %8487 }
 0x916   : > { %v2318_v3 = vsub.f32 %v10759_v34, %v2301_v58  ;;  %8491 = vpow2.f32 %v2329_v55  ;;  %v7031_v58 = vld [vmem:[#allocation20 + $0x1] ss:$0 sm:$0xff] }
 0x917   : > { %7720 = vmatprep.mubr.msk.bf16.mxu1 %vm2216_vm3, %v2450_v59 }
 0x918   : > { %v10863_v63 = vpop.eup %8489  ;;  %v2331_v31 = vmul.f32 1.442695, %v2318_v3 }
 0x919   : > { %v2451_v57 = vpack.c.bf16 %v10863_v63, %v10860_v60  ;;  %v2311_v28 = vpop.permute.xlu1 %2310 }
 0x91a   : > { %8493 = vpow2.f32 %v2331_v31  ;;  %v2320_v38 = vsub.f32 %v10755_v32, %v2311_v28 }
 0x91b   : > { %7721 = vmatmul.mubr.msk.bf16.vlgmr.msra.gmra.mrb[8].mxu1 %vm2216_vm3, %v2451_v57  ;;  %8495 = vpow2.f32 %v2333_v6 }
 0x91c   : > { %v2335_v34 = vmul.f32 1.442695, %v2320_v38  ;;  %7729 = vmatpush3.bf16.msra.mxu1 %v8427_v41 }
 0x91d   : > { %7730 = vmatprep.subr.bf16.mxu1 %v8428_v9 }
 0x91e   : > { %8497 = vpow2.f32 %v2335_v34 }
 0x920   : > { %7731 = vmatpush3.bf16.msra.mxu1 %v8428_v9  ;;  %v10869_v14 = vpop.eup %8491 }
 0x921   : > { %7732 = vmatprep.subr.bf16.mxu1 %v8429_v17 }
 0x924   : > { %v10871_v42 = vpop.eup %8493  ;;  %7733 = vmatpush3.bf16.msra.mxu1 %v8429_v17 }
 0x925   : > { %7734 = vmatprep.subr.bf16.mxu1 %v8430_v26  ;;  %v2452_v32 = vpack.c.bf16 %v10871_v42, %v10869_v14  ;;  %v10875_v44 = vpop.eup %8495 }
 0x927   : > { %7724 = vmatprep.mubr.msk.bf16.mxu1 %vm2216_vm3, %v2452_v32 }
 0x928   : > { %v10878_v41 = vpop.eup %8497  ;;  %7735 = vmatpush3.bf16.msra.mxu1 %v8430_v26 }
 0x929   : > { %7736 = vmatprep.subr.bf16.mxu1 %v8431_v43  ;;  %v2453_v45 = vpack.c.bf16 %v10878_v41, %v10875_v44 }
 0x92b   : > { %7725 = vmatmul.mubr.msk.bf16.gmra.mrb[12].mxu1 %vm2216_vm3, %v2453_v45 }
 0x92c   : > { %7737 = vmatpush3.bf16.msra.mxu1 %v8431_v43  ;;  %7744 = vmatprep.mubr.bf16.mxu1 %v10700_v4 }
 0x92d   : > { %7738 = vmatprep.subr.bf16.mxu1 %v8432_v21 }
 0x930   : > { %7739 = vmatpush3.bf16.msra.mxu1 %v8432_v21 }
 0x931   : > { %7740 = vmatprep.subr.bf16.mxu1 %v8433_v46 }
 0x934   : > { %7741 = vmatpush3.bf16.msra.mxu1 %v8433_v46 }
 0x935   : > { %7742 = vmatprep.subr.bf16.mxu1 %v8434_v15 }
 0x938   : > { %7743 = vmatpush3.bf16.msra.mxu1 %v8434_v15 }
 0x93b   : > { %7745 = vmatmul.mubr.bf16.vlgmr.msra.gmra.mrb[16].mxu1 %v10706_v11 }
 0x93c   : > { %7748 = vmatprep.mubr.bf16.mxu1 %v10711_v61 }
 0x943   : > { %7749 = vmatmul.mubr.bf16.gmra.mrb[20].mxu1 %v10715_v2 }
 0x944   : > { %7784 = vmatprep.mubr.msk.bf16.mxu1 %vm2118_vm2, %v2840_v49 }
 0x9ee   : > { %v10888_v22 = vpop.f32.mrb[8].mxu1 }
 0x9ef   : > { %v10890_v50 = vpop.f32.mrb[9].mxu1 }
 0x9f0   : > { %v10892_v51 = vpop.f32.mrb[10].mxu1 }
 0x9f1   : > { %v10894_v52 = vpop.f32.mrb[11].mxu1 }
 0x9fe   : > { %v10896_v29 = vpop.f32.mrb[12].mxu1 }
 0x9ff   : > { %v10898_v54 = vpop.f32.mrb[13].mxu1 }
 0xa00   : > { %v10900_v20 = vpop.f32.mrb[14].mxu1 }
 0xa01   : > { %12364 = vst [vmem:[#allocation62_spill] sm:$0xff] %v10900_v20  ;;  %v10902_v24 = vpop.f32.mrb[15].mxu1 }
 0xa0e   : > { %v7746_v55 = vpop.f32.mrb[16].mxu1 }
 0xa0f   : > { %v2662_v59 = vpop.f32.mrb[17].mxu1  ;;  %v2671_v31 = vadd.f32 %v7746_v55, %v7031_v58 }
 0xa10   : > { %v7747_v3 = vpop.f32.mrb[18].mxu1  ;;  %v2663_v28 = vadd.f32 %v7031_v58, %v2662_v59 }
 0xa11   : > { %v2674_v57 = vadd.f32 %v7747_v3, %v7031_v58  ;;  %v2665_v6 = vpop.f32.mrb[19].mxu1 }
 0xa12   : > { %v2666_v9 = vadd.f32 %v7031_v58, %v2665_v6 }
 0xa13   : > { %v2694_v38 = vpack.c.bf16 %v2674_v57, %v2671_v31  ;;  %v8435_v57 = vld [vmem:[#allocation17 + $0x80] sm:$0xff]  }
 0xa14   : > { %v2693_v34 = vpack.c.bf16 %v2666_v9, %v2663_v28  ;;  %v2841_v28 = vld [vmem:[#allocation2 + $0x28] sm:$0xff] }
 0xa15   : > { %v2860_v3 = vsel %vm2118_vm2, %v2694_v38, 0  ;;  %v8436_v9 = vld [vmem:[#allocation17 + $0x88] sm:$0xff]  }
 0xa16   : > { %v7750_v17 = vpop.f32.mrb[20].mxu1  ;;  %8044 = vmatprep.subr.msk.bf16.mxu1 %vm2118_vm2, %v2693_v34  ;;  %v2857_v26 = vsel %vm2118_vm2, %v2693_v34, 0  ;;  %v2843_v34 = vld [vmem:[#allocation2 + $0x38] sm:$0xff] }
 0xa17   : > { %v2678_v32 = vpop.f32.mrb[21].mxu1  ;;  %7777 = vmatpush3.bf16.xpose.msra.mxu1 %v2857_v26  ;;  %v2687_v45 = vadd.f32 %v7750_v17, %v7031_v58  ;;  %v8438_v17 = vld [vmem:[#allocation17 + $0x98] sm:$0xff]   ;;  %v8439_v26 = vld [vmem:[#allocation17 + $0xa0] sm:$0xff]  }
 0xa18   : > { %v7751_v43 = vpop.f32.mrb[22].mxu1  ;;  %8045 = vmatprep.subr.msk.bf16.mxu1 %vm2118_vm2, %v2694_v38  ;;  %v2679_v15 = vadd.f32 %v7031_v58, %v2678_v32  ;;  %v8437_v38 = vld [vmem:[#allocation17 + $0x90] sm:$0xff]   ;;  %v8440_v32 = vld [vmem:[#allocation17 + $0xa8] sm:$0xff]  }
 0xa19   : > { %v2690_v21 = vadd.f32 %v7751_v43, %v7031_v58  ;;  %v2681_v46 = vpop.f32.mrb[23].mxu1  ;;  %v8441_v43 = vld [vmem:[#allocation17 + $0xb0] sm:$0xff]  }
 0xa1a   : > { %v2682_v49 = vadd.f32 %v7031_v58, %v2681_v46  ;;  %v2842_v58 = vld [vmem:[#allocation2 + $0x30] sm:$0xff] }
 0xa1b   : > { %v2696_v55 = vpack.c.bf16 %v2690_v21, %v2687_v45  ;;  %v8442_v45 = vld [vmem:[#allocation17 + $0xb8] sm:$0xff]  }
 0xa1c   : > { %v2695_v59 = vpack.c.bf16 %v2682_v49, %v2679_v15 }
 0xa1d   : > { %v2866_v6 = vsel %vm2118_vm2, %v2696_v55, 0 }
 0xa1e   : > { %v2863_v31 = vsel %vm2118_vm2, %v2695_v59, 0 }
 0xa1f   : > { %7779 = vmatpush3.bf16.xpose.msra.mxu1 %v2860_v3 }
 0xa20   : > { %8046 = vmatprep.subr.msk.bf16.mxu1 %vm2118_vm2, %v2695_v59 }
 0xa27   : > { %7781 = vmatpush3.bf16.xpose.msra.mxu1 %v2863_v31 }
 0xa28   : > { %8047 = vmatprep.subr.msk.bf16.mxu1 %vm2118_vm2, %v2696_v55 }
 0xa2f   : > { %7783 = vmatpush3.bf16.xpose.msra.mxu1 %v2866_v6 }
 0xa30   : > { %7832 = vmatprep.subr.bf16.mxu1 %v8435_v57 }
 0xa36   : > { %7785 = vmatmul.mubr.msk.bf16.vlgmr.msra.gmra.mrb[24].mxu1 %vm2118_vm2, %v2841_v28 }
 0xa37   : > { %7833 = vmatpush3.bf16.msra.mxu1 %v8435_v57  ;;  %7788 = vmatprep.mubr.msk.bf16.mxu1 %vm2118_vm2, %v2842_v58 }
 0xa38   : > { %7834 = vmatprep.subr.bf16.mxu1 %v8436_v9 }
 0xa3b   : > { %7835 = vmatpush3.bf16.msra.mxu1 %v8436_v9 }
 0xa3c   : > { %7836 = vmatprep.subr.bf16.mxu1 %v8437_v38 }
 0xa3e   : > { %7789 = vmatmul.mubr.msk.bf16.gmra.mrb[28].mxu1 %vm2118_vm2, %v2843_v34 }
 0xa3f   : > { %7837 = vmatpush3.bf16.msra.mxu1 %v8437_v38  ;;  %7848 = vmatprep.mubr.bf16.mxu1 %v10700_v4 }
 0xa40   : > { %7838 = vmatprep.subr.bf16.mxu1 %v8438_v17 }
 0xa43   : > { %7839 = vmatpush3.bf16.msra.mxu1 %v8438_v17 }
 0xa44   : > { %7840 = vmatprep.subr.bf16.mxu1 %v8439_v26 }
 0xa47   : > { %7841 = vmatpush3.bf16.msra.mxu1 %v8439_v26 }
 0xa48   : > { %7842 = vmatprep.subr.bf16.mxu1 %v8440_v32 }
 0xa4b   : > { %7843 = vmatpush3.bf16.msra.mxu1 %v8440_v32  ;;  %v7066_v32 = vld [vmem:[#allocation21 + $0x2] ss:$0 sm:$0xff] }
 0xa4c   : > { %7844 = vmatprep.subr.bf16.mxu1 %v8441_v43 }
 0xa4f   : > { %7845 = vmatpush3.bf16.msra.mxu1 %v8441_v43 }
 0xa50   : > { %7846 = vmatprep.subr.bf16.mxu1 %v8442_v45 }
 0xa53   : > { %7847 = vmatpush3.bf16.msra.mxu1 %v8442_v45 }
 0xa56   : > { %7849 = vmatmul.mubr.bf16.vlgmr.msra.gmra.mrb[32].mxu1 %v10706_v11 }
 0xa57   : > { %7852 = vmatprep.mubr.bf16.mxu1 %v10711_v61 }
 0xa5e   : > { %7853 = vmatmul.mubr.bf16.gmra.mrb[36].mxu1 %v10715_v2 }
 0xb09   : > { %v10919_v21 = vpop.f32.mrb[24].mxu1 }
 0xb0a   : > { %v10921_v46 = vpop.f32.mrb[25].mxu1  ;;  %v2948_v57 = vsel %vm2216_vm3, %v10919_v21, -inf }
 0xb0b   : > { %v10923_v15 = vpop.f32.mrb[26].mxu1  ;;  %v2942_v49 = vsel %vm2216_vm3, %v10921_v46, -inf }
 0xb0c   : > { %2943 = vmax.xlane.f32.xlu1 %v2942_v49  ;;  %v10927_v55 = vpop.f32.mrb[27].mxu1  ;;  %v2951_v3 = vsel %vm2216_vm3, %v10923_v15, -inf }
 0xb0d   : > { %v2945_v59 = vsel %vm2216_vm3, %v10927_v55, -inf }
 0xb0e   : > { %2946 = vmax.xlane.f32.xlu0 %v2945_v59 }
 0xb10   : > { %2952 = vmax.xlane.f32.xlu1 %v2951_v3 }
 0xb11   : > { %v10933_v31 = vpop.f32.mrb[28].mxu1 }
 0xb12   : > { %2949 = vmax.xlane.f32.xlu0 %v2948_v57  ;;  %v10937_v6 = vpop.f32.mrb[29].mxu1  ;;  %v2960_v34 = vsel %vm2216_vm3, %v10933_v31, -inf }
 0xb13   : > { %v10939_v28 = vpop.f32.mrb[30].mxu1  ;;  %v2954_v9 = vsel %vm2216_vm3, %v10937_v6, -inf }
 0xb14   : > { %v10943_v58 = vpop.f32.mrb[31].mxu1  ;;  %v2963_v17 = vsel %vm2216_vm3, %v10939_v28, -inf }
 0xb15   : > { %v2957_v38 = vsel %vm2216_vm3, %v10943_v58, -inf }
 0xb16   : > { %2955 = vmax.xlane.f32.xlu0 %v2954_v9  ;;  %2958 = vmax.xlane.f32.xlu1 %v2957_v38 }
 0xb1a   : > { %2961 = vmax.xlane.f32.xlu0 %v2960_v34  ;;  %2964 = vmax.xlane.f32.xlu1 %v2963_v17 }
 0xb29   : > { %v7850_v26 = vpop.f32.mrb[32].mxu1 }
 0xb2a   : > { %v3530_v43 = vpop.f32.mrb[33].mxu1  ;;  %v3539_v49 = vadd.f32 %v7850_v26, %v7066_v32 }
 0xb2b   : > { %v7851_v45 = vpop.f32.mrb[34].mxu1  ;;  %v3531_v57 = vadd.f32 %v7066_v32, %v3530_v43  ;;  %v10951_v43 = vld [vmem:[#allocation3 + $0x40] sm:$0xff] }
 0xb2c   : > { %v3542_v59 = vadd.f32 %v7851_v45, %v7066_v32  ;;  %v3533_v3 = vpop.f32.mrb[35].mxu1  ;;  %12365 = vst [vmem:[#allocation63_spill] sm:$0xff] %v10951_v43  ;;  %v10953_v45 = vld [vmem:[#allocation3 + $0x48] sm:$0xff] }
 0xb2d   : > { %v3534_v40 = vadd.f32 %v7066_v32, %v3533_v3  ;;  %12366 = vst [vmem:[#allocation64_spill] sm:$0xff] %v10953_v45 }
 0xb2e   : > { %v3562_v36 = vpack.c.bf16 %v3542_v59, %v3539_v49 }
 0xb2f   : > { %v3561_v9 = vpack.c.bf16 %v3534_v40, %v3531_v57 }
 0xb31   : > { %v7854_v38 = vpop.f32.mrb[36].mxu1  ;;  %7872 = vmatprep.subr.bf16.mxu1 %v3561_v9 }
 0xb32   : > { %v3546_v33 = vpop.f32.mrb[37].mxu1  ;;  %7873 = vmatpush3.bf16.msra.mxu1 %v3561_v9  ;;  %v3555_v13 = vadd.f32 %v7854_v38, %v7066_v32  ;;  %v10986_v9 = vld [vmem:[#allocation3 + $0x60] sm:$0xff]  ;;  %v10988_v38 = vld [vmem:[#allocation3 + $0x68] sm:$0xff] }
 0xb33   : > { %v7855_v23 = vpop.f32.mrb[38].mxu1  ;;  %7874 = vmatprep.subr.bf16.mxu1 %v3562_v36  ;;  %v3547_v10 = vadd.f32 %v7066_v32, %v3546_v33  ;;  %12373 = vst [vmem:[#allocation71_spill] sm:$0xff] %v10986_v9  ;;  %12374 = vst [vmem:[#allocation72_spill] sm:$0xff] %v10988_v38 }
 0xb34   : > { %v3558_v34 = vadd.f32 %v7855_v23, %v7066_v32  ;;  %v3549_v17 = vpop.f32.mrb[39].mxu1  ;;  %v10958_v23 = vld [vmem:[#allocation3 + $0x58] sm:$0xff] }
 0xb35   : > { %v3550_v1 = vadd.f32 %v7066_v32, %v3549_v17  ;;  %12368 = vst [vmem:[#allocation66_spill] sm:$0xff] %v10958_v23 }
 0xb36   : > { %v3564_v53 = vpack.c.bf16 %v3558_v34, %v3555_v13  ;;  %7875 = vmatpush3.bf16.msra.mxu1 %v3562_v36 }
 0xb37   : > { %v3563_v26 = vpack.c.bf16 %v3550_v1, %v3547_v10  ;;  %v10968_v10 = vld [vmem:[#allocation3 + $0x50] sm:$0xff] }
 0xb38   : > { %12370 = vst [vmem:[#allocation68_spill] sm:$0xff] %v10968_v10 }
 0xb39   : > { %7876 = vmatprep.subr.bf16.mxu1 %v3563_v26 }
 0xb3a   : > { %7877 = vmatpush3.bf16.msra.mxu1 %v3563_v26 }
 0xb3b   : > { %7878 = vmatprep.subr.bf16.mxu1 %v3564_v53 }
 0xb3e   : > { %7879 = vmatpush3.bf16.msra.mxu1 %v3564_v53 }
 0xb99   : > { %v2944_v40 = vpop.xlane.xlu1 %2943 }
 0xb9a   : > { %v10956_v49 = vmax.f32 %v10951_v43, %v2944_v40 }
 0xb9b   : > { %v2947_v59 = vpop.xlane.xlu0 %2946 }
 0xb9c   : > { %12367 = vst [vmem:[#allocation65_spill] sm:$0xff] %v10956_v49  ;;  %3273 = vst.msk [vmem:[#allocation3 + $0x40] sm:$0xff] %vm2385_vm4, %v10956_v49  ;;  %v10965_v1 = vmax.f32 %v10953_v45, %v2947_v59  ;;  %3000 = vperm.xlu0 %8401, %v10956_v49  }
 0xb9d   : > { %v2953_v53 = vpop.xlane.xlu1 %2952 }
 0xb9e   : > { %12369 = vst [vmem:[#allocation67_spill] sm:$0xff] %v10965_v1  ;;  %3274 = vst.msk [vmem:[#allocation3 + $0x48] sm:$0xff] %vm2385_vm4, %v10965_v1  ;;  %v10975_v36 = vmax.f32 %v10958_v23, %v2953_v53  ;;  %3005 = vperm.xlu1 %8402, %v10965_v1   ;;  %v11001_v53 = vld [vmem:[#allocation3 + $0x70] sm:$0xff] }
 0xb9f   : > { %v2950_v32 = vpop.xlane.xlu0 %2949  ;;  %12377 = vst [vmem:[#allocation75_spill] sm:$0xff] %v11001_v53 }
 0xba0   : > { %12371 = vst [vmem:[#allocation69_spill] sm:$0xff] %v10975_v36  ;;  %3276 = vst.msk [vmem:[#allocation3 + $0x58] sm:$0xff] %vm2385_vm4, %v10975_v36  ;;  %v10983_v57 = vmax.f32 %v10968_v10, %v2950_v32  ;;  %3015 = vperm.xlu0 %8401, %v10975_v36   ;;  %v11003_v32 = vld [vmem:[#allocation3 + $0x78] sm:$0xff] }
 0xba1   : > { %12378 = vst [vmem:[#allocation76_spill] sm:$0xff] %v11003_v32 }
 0xba2   : > { %12372 = vst [vmem:[#allocation70_spill] sm:$0xff] %v10983_v57  ;;  %3275 = vst.msk [vmem:[#allocation3 + $0x50] sm:$0xff] %vm2385_vm4, %v10983_v57  ;;  %3010 = vperm.xlu1 %8402, %v10983_v57  }
 0xba3   : > { %v2956_v17 = vpop.xlane.xlu0 %2955  ;;  %v2959_v26 = vpop.xlane.xlu1 %2958 }
 0xba4   : > { %v10996_v40 = vmax.f32 %v10986_v9, %v2956_v17  ;;  %v10999_v59 = vmax.f32 %v10988_v38, %v2959_v26 }
 0xba6   : > { %12375 = vst [vmem:[#allocation73_spill] sm:$0xff] %v10996_v40  ;;  %12376 = vst [vmem:[#allocation74_spill] sm:$0xff] %v10999_v59  ;;  %3020 = vperm.xlu1 %8402, %v10996_v40   ;;  %3025 = vperm.xlu0 %8401, %v10999_v59  }
 0xba7   : > { %3277 = vst.msk [vmem:[#allocation3 + $0x60] sm:$0xff] %vm2385_vm4, %v10996_v40  ;;  %3278 = vst.msk [vmem:[#allocation3 + $0x68] sm:$0xff] %vm2385_vm4, %v10999_v59  ;;  %v2962_v17 = vpop.xlane.xlu0 %2961  ;;  %v2965_v26 = vpop.xlane.xlu1 %2964 }
 0xba8   : > { %v11016_v33 = vmax.f32 %v11001_v53, %v2962_v17  ;;  %v11019_v34 = vmax.f32 %v11003_v32, %v2965_v26  ;;  %v8443_v17 = vld [vmem:[#allocation15 + $0x80] sm:$0xff]  }
 0xba9   : > { %7808 = vmatprep.subr.bf16.mxu0 %v8443_v17 }
 0xbaa   : > { %12379 = vst [vmem:[#allocation77_spill] sm:$0xff] %v11016_v33  ;;  %12380 = vst [vmem:[#allocation78_spill] sm:$0xff] %v11019_v34  ;;  %3030 = vperm.xlu1 %8402, %v11016_v33   ;;  %3035 = vperm.xlu0 %8401, %v11019_v34  }
 0xbab   : > { %3279 = vst.msk [vmem:[#allocation3 + $0x70] sm:$0xff] %vm2385_vm4, %v11016_v33  ;;  %3280 = vst.msk [vmem:[#allocation3 + $0x78] sm:$0xff] %vm2385_vm4, %v11019_v34 }
 0xc1b   : > { %v3001_v26 = vpop.permute.xlu0 %3000 }
 0xc1c   : > { %v3038_v20 = vsub.f32 %v10921_v46, %v3001_v26 }
 0xc1d   : > { %v3006_v40 = vpop.permute.xlu1 %3005 }
 0xc1e   : > { %v3046_v13 = vmul.f32 1.442695, %v3038_v20  ;;  %v3039_v53 = vsub.f32 %v10927_v55, %v3006_v40 }
 0xc1f   : > { %v3016_v9 = vpop.permute.xlu0 %3015 }
 0xc20   : > { %v3048_v59 = vmul.f32 1.442695, %v3039_v53  ;;  %v3041_v3 = vsub.f32 %v10923_v15, %v3016_v9  ;;  %8499 = vpow2.f32 %v3046_v13 }
 0xc21   : > { %v3011_v32 = vpop.permute.xlu1 %3010 }
 0xc22   : > { %8501 = vpow2.f32 %v3048_v59  ;;  %v3052_v38 = vmul.f32 1.442695, %v3041_v3  ;;  %v3040_v33 = vsub.f32 %v10919_v21, %v3011_v32 }
 0xc24   : > { %v3050_v34 = vmul.f32 1.442695, %v3040_v33  ;;  %8503 = vpow2.f32 %v3052_v38 }
 0xc25   : > { %v3026_v57 = vpop.permute.xlu0 %3025  ;;  %v3021_v10 = vpop.permute.xlu1 %3020 }
 0xc26   : > { %8505 = vpow2.f32 %v3050_v34  ;;  %v3043_v46 = vsub.f32 %v10943_v58, %v3026_v57  ;;  %v3042_v20 = vsub.f32 %v10937_v6, %v3021_v10  ;;  %v8445_v34 = vld [vmem:[#allocation15 + $0x90] sm:$0xff]  }
 0xc28   : > { %v3056_v55 = vmul.f32 1.442695, %v3043_v46  ;;  %v3054_v40 = vmul.f32 1.442695, %v3042_v20 }
 0xc29   : > { %v3036_v53 = vpop.permute.xlu0 %3035  ;;  %v3031_v26 = vpop.permute.xlu1 %3030 }
 0xc2a   : > { %8507 = vpow2.f32 %v3056_v55  ;;  %v3045_v15 = vsub.f32 %v10939_v28, %v3036_v53  ;;  %v3044_v13 = vsub.f32 %v10933_v31, %v3031_v26  ;;  %v11039_v3 = vpop.eup %8499  ;;  %v8444_v28 = vld [vmem:[#allocation15 + $0x88] sm:$0xff]   ;;  %v8446_v55 = vld [vmem:[#allocation15 + $0x98] sm:$0xff]   ;;  %v8449_v53 = vld [vmem:[#allocation15 + $0xb0] sm:$0xff]  }
 0xc2b   : > { %12381 = vst [vmem:[#allocation79_spill] sm:$0xff] %v11039_v3  ;;  %8509 = vpow2.f32 %v3054_v40  ;;  %v8448_v40 = vld [vmem:[#allocation15 + $0xa8] sm:$0xff]   ;;  %v8450_v26 = vld [vmem:[#allocation15 + $0xb8] sm:$0xff]  }
 0xc2c   : > { %v11041_v21 = vpop.eup %8501  ;;  %v3060_v33 = vmul.f32 1.442695, %v3045_v15  ;;  %v3058_v9 = vmul.f32 1.442695, %v3044_v13  ;;  %v3566_v15 = vld [vmem:[#allocation2 + $0x40] sm:$0xff] }
 0xc2d   : > { %v3176_v58 = vpack.c.bf16 %v11041_v21, %v11039_v3 }
 0xc2e   : > { %8511 = vpow2.f32 %v3060_v33  ;;  %v11045_v6 = vpop.eup %8503 }
 0xc2f   : > { %12382 = vst [vmem:[#allocation80_spill] sm:$0xff] %v11045_v6  ;;  %8513 = vpow2.f32 %v3058_v9  ;;  %7800 = vmatprep.mubr.msk.bf16.mxu0 %vm2216_vm3, %v3176_v58 }
 0xc30   : > { %v11048_v10 = vpop.eup %8505 }
 0xc31   : > { %12383 = vst [vmem:[#allocation81_spill] sm:$0xff] %v11048_v10  ;;  %v3177_v31 = vpack.c.bf16 %v11045_v6, %v11048_v10 }
 0xc33   : > { %7801 = vmatmul.mubr.msk.bf16.vlgmr.msra.gmra.mrb[24].mxu0 %vm2216_vm3, %v3177_v31 }
 0xc34   : > { %v11053_v57 = vpop.eup %8507  ;;  %7809 = vmatpush3.bf16.msra.mxu0 %v8443_v17  ;;  %v8447_v17 = vld [vmem:[#allocation15 + $0xa0] sm:$0xff]  }
 0xc35   : > { %12384 = vst [vmem:[#allocation82_spill] sm:$0xff] %v11053_v57  ;;  %v11055_v38 = vpop.eup %8509  ;;  %7810 = vmatprep.subr.bf16.mxu0 %v8444_v28 }
 0xc36   : > { %12385 = vst [vmem:[#allocation83_spill] sm:$0xff] %v11055_v38  ;;  %v3178_v59 = vpack.c.bf16 %v11053_v57, %v11055_v38 }
 0xc38   : > { %v11059_v32 = vpop.eup %8511  ;;  %7804 = vmatprep.mubr.msk.bf16.mxu0 %vm2216_vm3, %v3178_v59  ;;  %7811 = vmatpush3.bf16.msra.mxu0 %v8444_v28 }
 0xc39   : > { %12386 = vst [vmem:[#allocation84_spill] sm:$0xff] %v11059_v32  ;;  %v11062_v46 = vpop.eup %8513  ;;  %7812 = vmatprep.subr.bf16.mxu0 %v8445_v34 }
 0xc3a   : > { %12387 = vst [vmem:[#allocation85_spill] sm:$0xff] %v11062_v46  ;;  %v3179_v20 = vpack.c.bf16 %v11059_v32, %v11062_v46 }
 0xc3c   : > { %7805 = vmatmul.mubr.msk.bf16.gmra.mrb[28].mxu0 %vm2216_vm3, %v3179_v20 }
 0xc3d   : > { %7813 = vmatpush3.bf16.msra.mxu0 %v8445_v34  ;;  %7824 = vmatprep.mubr.bf16.mxu0 %v10700_v4 }
 0xc3e   : > { %7814 = vmatprep.subr.bf16.mxu0 %v8446_v55 }
 0xc41   : > { %7815 = vmatpush3.bf16.msra.mxu0 %v8446_v55  ;;  %v7057_v55 = vld [vmem:[#allocation20 + $0x2] ss:$0 sm:$0xff] }
 0xc42   : > { %7816 = vmatprep.subr.bf16.mxu0 %v8447_v17 }
 0xc45   : > { %7817 = vmatpush3.bf16.msra.mxu0 %v8447_v17 }
 0xc46   : > { %7818 = vmatprep.subr.bf16.mxu0 %v8448_v40 }
 0xc49   : > { %7819 = vmatpush3.bf16.msra.mxu0 %v8448_v40 }
 0xc4a   : > { %7820 = vmatprep.subr.bf16.mxu0 %v8449_v53 }
 0xc4d   : > { %7821 = vmatpush3.bf16.msra.mxu0 %v8449_v53 }
 0xc4e   : > { %7822 = vmatprep.subr.bf16.mxu0 %v8450_v26 }
 0xc51   : > { %7823 = vmatpush3.bf16.msra.mxu0 %v8450_v26 }
 0xc54   : > { %7825 = vmatmul.mubr.bf16.vlgmr.msra.gmra.mrb[32].mxu0 %v10706_v11 }
 0xc55   : > { %7828 = vmatprep.mubr.bf16.mxu0 %v10711_v61 }
 0xc5c   : > { %7829 = vmatmul.mubr.bf16.gmra.mrb[36].mxu0 %v10715_v2 }
 0xc5d   : > { %7864 = vmatprep.mubr.msk.bf16.mxu0 %vm2118_vm2, %v3566_v15 }
 0xd06   : > { %v11072_v13 = vpop.f32.mrb[24].mxu0 }
 0xd07   : > { %12388 = vst [vmem:[#allocation86_spill] sm:$0xff] %v11072_v13  ;;  %v11074_v33 = vpop.f32.mrb[25].mxu0 }
 0xd08   : > { %12389 = vst [vmem:[#allocation87_spill] sm:$0xff] %v11074_v33  ;;  %v11076_v9 = vpop.f32.mrb[26].mxu0 }
 0xd09   : > { %12390 = vst [vmem:[#allocation88_spill] sm:$0xff] %v11076_v9  ;;  %v11078_v58 = vpop.f32.mrb[27].mxu0 }
 0xd0a   : > { %12391 = vst [vmem:[#allocation89_spill] sm:$0xff] %v11078_v58 }
 0xd0f   : > { %v11080_v31 = vpop.f32.mrb[28].mxu0 }
 0xd10   : > { %12392 = vst [vmem:[#allocation90_spill] sm:$0xff] %v11080_v31  ;;  %v11082_v28 = vpop.f32.mrb[29].mxu0 }
 0xd11   : > { %12393 = vst [vmem:[#allocation91_spill] sm:$0xff] %v11082_v28  ;;  %v11084_v34 = vpop.f32.mrb[30].mxu0 }
 0xd12   : > { %12394 = vst [vmem:[#allocation92_spill] sm:$0xff] %v11084_v34  ;;  %v11086_v59 = vpop.f32.mrb[31].mxu0 }
 0xd13   : > { %12395 = vst [vmem:[#allocation93_spill] sm:$0xff] %v11086_v59 }
 0xd27   : > { %v7826_v20 = vpop.f32.mrb[32].mxu0 }
 0xd28   : > { %v3388_v17 = vpop.f32.mrb[33].mxu0  ;;  %v3397_v53 = vadd.f32 %v7826_v20, %v7057_v55 }
 0xd29   : > { %v7827_v40 = vpop.f32.mrb[34].mxu0  ;;  %v3389_v13 = vadd.f32 %v7057_v55, %v3388_v17 }
 0xd2a   : > { %v3400_v26 = vadd.f32 %v7827_v40, %v7057_v55  ;;  %v3391_v15 = vpop.f32.mrb[35].mxu0 }
 0xd2b   : > { %v3392_v33 = vadd.f32 %v7057_v55, %v3391_v15 }
 0xd2c   : > { %v3420_v9 = vpack.c.bf16 %v3400_v26, %v3397_v53 }
 0xd2d   : > { %v3419_v36 = vpack.c.bf16 %v3392_v33, %v3389_v13 }
 0xd2e   : > { %v3586_v53 = vsel %vm2118_vm2, %v3420_v9, 0 }
 0xd2f   : > { %v7830_v58 = vpop.f32.mrb[36].mxu0  ;;  %8048 = vmatprep.subr.msk.bf16.mxu0 %vm2118_vm2, %v3419_v36  ;;  %v3583_v31 = vsel %vm2118_vm2, %v3419_v36, 0  ;;  %v8451_v36 = vld [vmem:[#allocation17 + $0xc0] sm:$0xff]  }
 0xd30   : > { %v3404_v28 = vpop.f32.mrb[37].mxu0  ;;  %7857 = vmatpush3.bf16.xpose.msra.mxu0 %v3583_v31  ;;  %v3413_v59 = vadd.f32 %v7830_v58, %v7057_v55  ;;  %v3567_v58 = vld [vmem:[#allocation2 + $0x48] sm:$0xff] }
 0xd31   : > { %v7831_v34 = vpop.f32.mrb[38].mxu0  ;;  %8049 = vmatprep.subr.msk.bf16.mxu0 %vm2118_vm2, %v3420_v9  ;;  %v3405_v20 = vadd.f32 %v7057_v55, %v3404_v28  ;;  %v8452_v31 = vld [vmem:[#allocation17 + $0xc8] sm:$0xff]   ;;  %v3569_v9 = vld [vmem:[#allocation2 + $0x58] sm:$0xff] }
 0xd32   : > { %v3416_v23 = vadd.f32 %v7831_v34, %v7057_v55  ;;  %v3407_v1 = vpop.f32.mrb[39].mxu0  ;;  %v8454_v28 = vld [vmem:[#allocation17 + $0xd8] sm:$0xff]   ;;  %v8456_v34 = vld [vmem:[#allocation17 + $0xe8] sm:$0xff]  }
 0xd33   : > { %v3408_v40 = vadd.f32 %v7057_v55, %v3407_v1  ;;  %v3568_v1 = vld [vmem:[#allocation2 + $0x50] sm:$0xff]  ;;  %v8458_v55 = vld [vmem:[#allocation17 + $0xf8] sm:$0xff]  }
 0xd34   : > { %v3422_v45 = vpack.c.bf16 %v3416_v23, %v3413_v59  ;;  %v8453_v23 = vld [vmem:[#allocation17 + $0xd0] sm:$0xff]  }
 0xd35   : > { %v3421_v17 = vpack.c.bf16 %v3408_v40, %v3405_v20  ;;  %v8457_v59 = vld [vmem:[#allocation17 + $0xf0] sm:$0xff]  }
 0xd36   : > { %v3592_v33 = vsel %vm2118_vm2, %v3422_v45, 0 }
 0xd37   : > { %v3589_v13 = vsel %vm2118_vm2, %v3421_v17, 0 }
 0xd38   : > { %7859 = vmatpush3.bf16.xpose.msra.mxu0 %v3586_v53 }
 0xd39   : > { %8050 = vmatprep.subr.msk.bf16.mxu0 %vm2118_vm2, %v3421_v17 }
 0xd40   : > { %7861 = vmatpush3.bf16.xpose.msra.mxu0 %v3589_v13 }
 0xd41   : > { %8051 = vmatprep.subr.msk.bf16.mxu0 %vm2118_vm2, %v3422_v45  ;;  %v8455_v45 = vld [vmem:[#allocation17 + $0xe0] sm:$0xff]  }
 0xd48   : > { %7863 = vmatpush3.bf16.xpose.msra.mxu0 %v3592_v33 }
 0xd49   : > { %7912 = vmatprep.subr.bf16.mxu0 %v8451_v36 }
 0xd4f   : > { %7865 = vmatmul.mubr.msk.bf16.vlgmr.msra.gmra.mrb[40].mxu0 %vm2118_vm2, %v3567_v58 }
 0xd50   : > { %7913 = vmatpush3.bf16.msra.mxu0 %v8451_v36  ;;  %7868 = vmatprep.mubr.msk.bf16.mxu0 %vm2118_vm2, %v3568_v1 }
 0xd51   : > { %7914 = vmatprep.subr.bf16.mxu0 %v8452_v31 }
 0xd54   : > { %7915 = vmatpush3.bf16.msra.mxu0 %v8452_v31 }
 0xd55   : > { %7916 = vmatprep.subr.bf16.mxu0 %v8453_v23 }
 0xd57   : > { %7869 = vmatmul.mubr.msk.bf16.gmra.mrb[44].mxu0 %vm2118_vm2, %v3569_v9 }
 0xd58   : > { %7917 = vmatpush3.bf16.msra.mxu0 %v8453_v23  ;;  %7928 = vmatprep.mubr.bf16.mxu0 %v10700_v4 }
 0xd59   : > { %7918 = vmatprep.subr.bf16.mxu0 %v8454_v28 }
 0xd5c   : > { %7919 = vmatpush3.bf16.msra.mxu0 %v8454_v28 }
 0xd5d   : > { %7920 = vmatprep.subr.bf16.mxu0 %v8455_v45 }
 0xd60   : > { %7921 = vmatpush3.bf16.msra.mxu0 %v8455_v45 }
 0xd61   : > { %7922 = vmatprep.subr.bf16.mxu0 %v8456_v34 }
 0xd64   : > { %7923 = vmatpush3.bf16.msra.mxu0 %v8456_v34 }
 0xd65   : > { %7924 = vmatprep.subr.bf16.mxu0 %v8457_v59 }
 0xd68   : > { %7925 = vmatpush3.bf16.msra.mxu0 %v8457_v59  ;;  %v7092_v59 = vld [vmem:[#allocation21 + $0x3] ss:$0 sm:$0xff] }
 0xd69   : > { %7926 = vmatprep.subr.bf16.mxu0 %v8458_v55 }
 0xd6c   : > { %7927 = vmatpush3.bf16.msra.mxu0 %v8458_v55 }
 0xd6f   : > { %7929 = vmatmul.mubr.bf16.vlgmr.msra.gmra.mrb[48].mxu0 %v10706_v11 }
 0xd70   : > { %7932 = vmatprep.mubr.bf16.mxu0 %v10711_v61 }
 0xd77   : > { %7933 = vmatmul.mubr.bf16.gmra.mrb[52].mxu0 %v10715_v2 }
 0xe22   : > { %v11103_v26 = vpop.f32.mrb[40].mxu0 }
 0xe23   : > { %v11105_v15 = vpop.f32.mrb[41].mxu0  ;;  %v3674_v33 = vsel %vm2216_vm3, %v11103_v26, -inf }
 0xe24   : > { %v11107_v20 = vpop.f32.mrb[42].mxu0  ;;  %v3668_v40 = vsel %vm2216_vm3, %v11105_v15, -inf }
 0xe25   : > { %3669 = vmax.xlane.f32.xlu1 %v3668_v40  ;;  %v11111_v17 = vpop.f32.mrb[43].mxu0  ;;  %v3677_v13 = vsel %vm2216_vm3, %v11107_v20, -inf }
 0xe26   : > { %v3671_v53 = vsel %vm2216_vm3, %v11111_v17, -inf }
 0xe27   : > { %3672 = vmax.xlane.f32.xlu0 %v3671_v53 }
 0xe29   : > { %3678 = vmax.xlane.f32.xlu1 %v3677_v13 }
 0xe2a   : > { %v11117_v36 = vpop.f32.mrb[44].mxu0 }
 0xe2b   : > { %3675 = vmax.xlane.f32.xlu0 %v3674_v33  ;;  %v11121_v58 = vpop.f32.mrb[45].mxu0  ;;  %v3686_v28 = vsel %vm2216_vm3, %v11117_v36, -inf }
 0xe2c   : > { %v11123_v31 = vpop.f32.mrb[46].mxu0  ;;  %v3680_v1 = vsel %vm2216_vm3, %v11121_v58, -inf }
 0xe2d   : > { %v11127_v23 = vpop.f32.mrb[47].mxu0  ;;  %v3689_v45 = vsel %vm2216_vm3, %v11123_v31, -inf }
 0xe2e   : > { %v3683_v9 = vsel %vm2216_vm3, %v11127_v23, -inf }
 0xe2f   : > { %3681 = vmax.xlane.f32.xlu0 %v3680_v1  ;;  %3684 = vmax.xlane.f32.xlu1 %v3683_v9 }
 0xe33   : > { %3687 = vmax.xlane.f32.xlu0 %v3686_v28  ;;  %3690 = vmax.xlane.f32.xlu1 %v3689_v45 }
 0xe42   : > { %v7930_v34 = vpop.f32.mrb[48].mxu0 }
 0xe43   : > { %v4256_v55 = vpop.f32.mrb[49].mxu0  ;;  %v4265_v53 = vadd.f32 %v7930_v34, %v7092_v59 }
 0xe44   : > { %v7931_v40 = vpop.f32.mrb[50].mxu0  ;;  %v4257_v49 = vadd.f32 %v7092_v59, %v4256_v55  ;;  %v11135_v55 = vld [vmem:[#allocation3 + $0x80] sm:$0xff] }
 0xe45   : > { %v4268_v13 = vadd.f32 %v7931_v40, %v7092_v59  ;;  %v4259_v33 = vpop.f32.mrb[51].mxu0 }
 0xe46   : > { %v4260_v43 = vadd.f32 %v7092_v59, %v4259_v33 }
 0xe47   : > { %v4288_v32 = vpack.c.bf16 %v4268_v13, %v4265_v53 }
 0xe48   : > { %v4287_v1 = vpack.c.bf16 %v4260_v43, %v4257_v49  ;;  %v11137_v49 = vld [vmem:[#allocation3 + $0x88] sm:$0xff] }
 0xe4a   : > { %v7934_v9 = vpop.f32.mrb[52].mxu0  ;;  %7952 = vmatprep.subr.bf16.mxu0 %v4287_v1 }
 0xe4b   : > { %v4272_v57 = vpop.f32.mrb[53].mxu0  ;;  %7953 = vmatpush3.bf16.msra.mxu0 %v4287_v1  ;;  %v4281_v46 = vadd.f32 %v7934_v9, %v7092_v59  ;;  %v11170_v1 = vld [vmem:[#allocation3 + $0xa0] sm:$0xff]  ;;  %v11172_v9 = vld [vmem:[#allocation3 + $0xa8] sm:$0xff] }
 0xe4c   : > { %v7935_v6 = vpop.f32.mrb[54].mxu0  ;;  %7954 = vmatprep.subr.bf16.mxu0 %v4288_v32  ;;  %v4273_v3 = vadd.f32 %v7092_v59, %v4272_v57  ;;  %12397 = vst [vmem:[#allocation95_spill] sm:$0xff] %v11170_v1  ;;  %12398 = vst [vmem:[#allocation96_spill] sm:$0xff] %v11172_v9  ;;  %v2353_v57 = vsel %vm2216_vm3, %v10852_v37, 0.0 }
 0xe4d   : > { %v4284_v28 = vadd.f32 %v7935_v6, %v7092_v59  ;;  %v4275_v45 = vpop.f32.mrb[55].mxu0  ;;  %v11142_v6 = vld [vmem:[#allocation3 + $0x98] sm:$0xff] }
 0xe4e   : > { %v4276_v38 = vadd.f32 %v7092_v59, %v4275_v45 }
 0xe4f   : > { %v4290_v10 = vpack.c.bf16 %v4284_v28, %v4281_v46  ;;  %7955 = vmatpush3.bf16.msra.mxu0 %v4288_v32 }
 0xe50   : > { %v4289_v34 = vpack.c.bf16 %v4276_v38, %v4273_v3  ;;  %v11152_v38 = vld [vmem:[#allocation3 + $0x90] sm:$0xff] }
 0xe52   : > { %7956 = vmatprep.subr.bf16.mxu0 %v4289_v34 }
 0xe53   : > { %7957 = vmatpush3.bf16.msra.mxu0 %v4289_v34 }
 0xe54   : > { %7958 = vmatprep.subr.bf16.mxu0 %v4290_v10 }
 0xe57   : > { %7959 = vmatpush3.bf16.msra.mxu0 %v4290_v10 }
 0xeb2   : > { %v3670_v43 = vpop.xlane.xlu1 %3669 }
 0xeb3   : > { %v11140_v40 = vmax.f32 %v11135_v55, %v3670_v43 }
 0xeb4   : > { %v3673_v53 = vpop.xlane.xlu0 %3672 }
 0xeb5   : > { %3999 = vst.msk [vmem:[#allocation3 + $0x80] sm:$0xff] %vm2385_vm4, %v11140_v40  ;;  %v11149_v3 = vmax.f32 %v11137_v49, %v3673_v53  ;;  %3726 = vperm.xlu0 %8401, %v11140_v40  }
 0xeb6   : > { %v3679_v10 = vpop.xlane.xlu1 %3678 }
 0xeb7   : > { %4000 = vst.msk [vmem:[#allocation3 + $0x88] sm:$0xff] %vm2385_vm4, %v11149_v3  ;;  %v11159_v46 = vmax.f32 %v11142_v6, %v3679_v10  ;;  %3731 = vperm.xlu1 %8402, %v11149_v3   ;;  %v11185_v10 = vld [vmem:[#allocation3 + $0xb0] sm:$0xff] }
 0xeb8   : > { %v3676_v59 = vpop.xlane.xlu0 %3675  ;;  %12401 = vst [vmem:[#allocation99_spill] sm:$0xff] %v11185_v10 }
 0xeb9   : > { %4002 = vst.msk [vmem:[#allocation3 + $0x98] sm:$0xff] %vm2385_vm4, %v11159_v46  ;;  %v11167_v33 = vmax.f32 %v11152_v38, %v3676_v59  ;;  %3741 = vperm.xlu0 %8401, %v11159_v46   ;;  %v11187_v59 = vld [vmem:[#allocation3 + $0xb8] sm:$0xff] }
 0xeba   : > { %12402 = vst [vmem:[#allocation100_spill] sm:$0xff] %v11187_v59 }
 0xebb   : > { %12396 = vst [vmem:[#allocation94_spill] sm:$0xff] %v11167_v33  ;;  %4001 = vst.msk [vmem:[#allocation3 + $0x90] sm:$0xff] %vm2385_vm4, %v11167_v33  ;;  %3736 = vperm.xlu1 %8402, %v11167_v33  }
 0xebc   : > { %v3682_v45 = vpop.xlane.xlu0 %3681  ;;  %v3685_v34 = vpop.xlane.xlu1 %3684 }
 0xebd   : > { %v11180_v43 = vmax.f32 %v11170_v1, %v3682_v45  ;;  %v11183_v53 = vmax.f32 %v11172_v9, %v3685_v34 }
 0xebf   : > { %12399 = vst [vmem:[#allocation97_spill] sm:$0xff] %v11180_v43  ;;  %12400 = vst [vmem:[#allocation98_spill] sm:$0xff] %v11183_v53  ;;  %3746 = vperm.xlu1 %8402, %v11180_v43   ;;  %3751 = vperm.xlu0 %8401, %v11183_v53  }
 0xec0   : > { %4003 = vst.msk [vmem:[#allocation3 + $0xa0] sm:$0xff] %vm2385_vm4, %v11180_v43  ;;  %4004 = vst.msk [vmem:[#allocation3 + $0xa8] sm:$0xff] %vm2385_vm4, %v11183_v53  ;;  %v3688_v45 = vpop.xlane.xlu0 %3687  ;;  %v3691_v34 = vpop.xlane.xlu1 %3690 }
 0xec1   : > { %v11200_v32 = vmax.f32 %v11185_v10, %v3688_v45  ;;  %v11203_v28 = vmax.f32 %v11187_v59, %v3691_v34  ;;  %v8459_v45 = vld [vmem:[#allocation15 + $0xc0] sm:$0xff]   ;;  %v2356_v34 = vsel %vm2216_vm3, %v10854_v19, 0.0 }
 0xec2   : > { %7888 = vmatprep.subr.bf16.mxu1 %v8459_v45 }
 0xec3   : > { %12403 = vst [vmem:[#allocation101_spill] sm:$0xff] %v11200_v32  ;;  %12404 = vst [vmem:[#allocation102_spill] sm:$0xff] %v11203_v28  ;;  %3756 = vperm.xlu1 %8402, %v11200_v32   ;;  %3761 = vperm.xlu0 %8401, %v11203_v28  }
 0xec4   : > { %4005 = vst.msk [vmem:[#allocation3 + $0xb0] sm:$0xff] %vm2385_vm4, %v11200_v32  ;;  %4006 = vst.msk [vmem:[#allocation3 + $0xb8] sm:$0xff] %vm2385_vm4, %v11203_v28 }
 0xee2   : > { %2357 = vadd.xlane.f32.xlu0 %v2356_v34 }
 0xee7   : > { %2354 = vadd.xlane.f32.xlu1 %v2353_v57 }
 0xf34   : > { %v3727_v10 = vpop.permute.xlu0 %3726 }
 0xf35   : > { %v3764_v13 = vsub.f32 %v11105_v15, %v3727_v10 }
 0xf36   : > { %v3732_v59 = vpop.permute.xlu1 %3731 }
 0xf37   : > { %v3772_v43 = vmul.f32 1.442695, %v3764_v13  ;;  %v3765_v1 = vsub.f32 %v11111_v17, %v3732_v59 }
 0xf38   : > { %v3742_v32 = vpop.permute.xlu0 %3741 }
 0xf39   : > { %v3774_v53 = vmul.f32 1.442695, %v3765_v1  ;;  %v3767_v28 = vsub.f32 %v11107_v20, %v3742_v32  ;;  %8515 = vpow2.f32 %v3772_v43 }
 0xf3a   : > { %v3737_v9 = vpop.permute.xlu1 %3736 }
 0xf3b   : > { %8517 = vpow2.f32 %v3774_v53  ;;  %v3778_v19 = vmul.f32 1.442695, %v3767_v28  ;;  %v3766_v34 = vsub.f32 %v11103_v26, %v3737_v9 }
 0xf3d   : > { %v3776_v33 = vmul.f32 1.442695, %v3766_v34  ;;  %8519 = vpow2.f32 %v3778_v19  ;;  %v8461_v34 = vld [vmem:[#allocation15 + $0xd0] sm:$0xff]  }
 0xf3e   : > { %v3752_v37 = vpop.permute.xlu0 %3751  ;;  %v3747_v57 = vpop.permute.xlu1 %3746 }
 0xf3f   : > { %8521 = vpow2.f32 %v3776_v33  ;;  %v3769_v15 = vsub.f32 %v11127_v23, %v3752_v37  ;;  %v3768_v13 = vsub.f32 %v11121_v58, %v3747_v57 }
 0xf41   : > { %v3782_v17 = vmul.f32 1.442695, %v3769_v15  ;;  %v3780_v10 = vmul.f32 1.442695, %v3768_v13 }
 0xf42   : > { %v3762_v1 = vpop.permute.xlu0 %3761  ;;  %v3757_v59 = vpop.permute.xlu1 %3756 }
 0xf43   : > { %8523 = vpow2.f32 %v3782_v17  ;;  %v3771_v20 = vsub.f32 %v11123_v31, %v3762_v1  ;;  %v3770_v32 = vsub.f32 %v11117_v36, %v3757_v59  ;;  %v11227_v28 = vpop.eup %8515  ;;  %v8460_v31 = vld [vmem:[#allocation15 + $0xc8] sm:$0xff]   ;;  %v8462_v17 = vld [vmem:[#allocation15 + $0xd8] sm:$0xff]   ;;  %v12405_v1 = vsub.f32 %v10769_v56, %v10781_v5 }
 0xf44   : > { %8525 = vpow2.f32 %v3780_v10  ;;  %v8464_v10 = vld [vmem:[#allocation15 + $0xe8] sm:$0xff]  }
 0xf45   : > { %v11229_v26 = vpop.eup %8517  ;;  %v3786_v9 = vmul.f32 1.442695, %v3771_v20  ;;  %v3784_v33 = vmul.f32 1.442695, %v3770_v32  ;;  %v2259_v59 = vmul.f32 1.442695, %v12405_v1  ;;  %v12406_v32 = vsub.f32 %v10767_v62, %v10772_v47 }
 0xf46   : > { %v3902_v23 = vpack.c.bf16 %v11229_v26, %v11227_v28  ;;  %v8465_v20 = vld [vmem:[#allocation15 + $0xf0] sm:$0xff]   ;;  %v2337_v47 = vld [vmem:[#allocation4] sm:$0xff] }
 0xf47   : > { %8527 = vpow2.f32 %v3786_v9  ;;  %v11233_v58 = vpop.eup %8519  ;;  %v2257_v9 = vmul.f32 1.442695, %v12406_v32  ;;  %v7083_v32 = vld [vmem:[#allocation20 + $0x3] ss:$0 sm:$0xff] }
 0xf48   : > { %8529 = vpow2.f32 %v3784_v33  ;;  %7880 = vmatprep.mubr.msk.bf16.mxu1 %vm2216_vm3, %v3902_v23  ;;  %v2338_v23 = vld [vmem:[#allocation4 + $0x8] sm:$0xff] }
 0xf49   : > { %v11236_v43 = vpop.eup %8521  ;;  %8531 = vpow2.f32 %v2259_v59 }
 0xf4a   : > { %v3903_v36 = vpack.c.bf16 %v11233_v58, %v11236_v43  ;;  %8533 = vpow2.f32 %v2257_v9 }
 0xf4c   : > { %7881 = vmatmul.mubr.msk.bf16.vlgmr.msra.gmra.mrb[40].mxu1 %vm2216_vm3, %v3903_v36 }
 0xf4d   : > { %v11241_v53 = vpop.eup %8523  ;;  %7889 = vmatpush3.bf16.msra.mxu1 %v8459_v45  ;;  %v8463_v45 = vld [vmem:[#allocation15 + $0xe0] sm:$0xff]  }
 0xf4e   : > { %v11243_v19 = vpop.eup %8525  ;;  %7890 = vmatprep.subr.bf16.mxu1 %v8460_v31 }
 0xf4f   : > { %v3904_v37 = vpack.c.bf16 %v11241_v53, %v11243_v19 }
 0xf51   : > { %v11247_v57 = vpop.eup %8527  ;;  %7884 = vmatprep.mubr.msk.bf16.mxu1 %vm2216_vm3, %v3904_v37  ;;  %7891 = vmatpush3.bf16.msra.mxu1 %v8460_v31 }
 0xf52   : > { %v11250_v15 = vpop.eup %8529  ;;  %7892 = vmatprep.subr.bf16.mxu1 %v8461_v34 }
 0xf53   : > { %v3905_v13 = vpack.c.bf16 %v11247_v57, %v11250_v15  ;;  %v11262_v33 = vpop.eup %8531 }
 0xf54   : > { %v2346_v56 = vmul.f32 %v11262_v33, %v2338_v23  ;;  %v11267_v36 = vpop.eup %8533 }
 0xf55   : > { %7885 = vmatmul.mubr.msk.bf16.gmra.mrb[44].mxu1 %vm2216_vm3, %v3905_v13  ;;  %v2345_v31 = vmul.f32 %v11267_v36, %v2337_v47 }
 0xf56   : > { %7893 = vmatpush3.bf16.msra.mxu1 %v8461_v34  ;;  %7904 = vmatprep.mubr.bf16.mxu1 %v10700_v4  ;;  %v8466_v4 = vld [vmem:[#allocation15 + $0xf8] sm:$0xff]  }
 0xf57   : > { %7894 = vmatprep.subr.bf16.mxu1 %v8462_v17 }
 0xf5a   : > { %7895 = vmatpush3.bf16.msra.mxu1 %v8462_v17 }
 0xf5b   : > { %7896 = vmatprep.subr.bf16.mxu1 %v8463_v45 }
 0xf5e   : > { %7897 = vmatpush3.bf16.msra.mxu1 %v8463_v45 }
 0xf5f   : > { %7898 = vmatprep.subr.bf16.mxu1 %v8464_v10 }
 0xf62   : > { %7899 = vmatpush3.bf16.msra.mxu1 %v8464_v10 }
 0xf63   : > { %7900 = vmatprep.subr.bf16.mxu1 %v8465_v20 }
 0xf66   : > { %7901 = vmatpush3.bf16.msra.mxu1 %v8465_v20 }
 0xf67   : > { %7902 = vmatprep.subr.bf16.mxu1 %v8466_v4 }
 0xf6a   : > { %7903 = vmatpush3.bf16.msra.mxu1 %v8466_v4 }
 0xf6d   : > { %7905 = vmatmul.mubr.bf16.vlgmr.msra.gmra.mrb[48].mxu1 %v10706_v11  ;;  %v4292_v11 = vld [vmem:[#allocation2 + $0x60] sm:$0xff] }
 0xf6e   : > { %7908 = vmatprep.mubr.bf16.mxu1 %v10711_v61 }
 0xf6f   : > { %v2358_v5 = vpop.xlane.xlu0 %2357 }
 0xf70   : > { %v2378_v62 = vadd.f32 %v2358_v5, %v2346_v56 }
 0xf72   : > { %2387 = vst.msk [vmem:[#allocation4 + $0x8] sm:$0xff] %vm2385_vm4, %v2378_v62 }
 0xf74   : > { %v2355_v34 = vpop.xlane.xlu1 %2354 }
 0xf75   : > { %7909 = vmatmul.mubr.bf16.gmra.mrb[52].mxu1 %v10715_v2  ;;  %v2377_v37 = vadd.f32 %v2355_v34, %v2345_v31 }
 0xf76   : > { %7944 = vmatprep.mubr.msk.bf16.mxu1 %vm2118_vm2, %v4292_v11 }
 0xf77   : > { %2386 = vst.msk [vmem:[#allocation4] sm:$0xff] %vm2385_vm4, %v2377_v37 }
0x101f   : > { %v11274_v61 = vpop.f32.mrb[40].mxu1 }
0x1020   : > { %12407 = vst [vmem:[#allocation103_spill] sm:$0xff] %v11274_v61  ;;  %v11276_v13 = vpop.f32.mrb[41].mxu1 }
0x1021   : > { %12408 = vst [vmem:[#allocation104_spill] sm:$0xff] %v11276_v13  ;;  %v11278_v17 = vpop.f32.mrb[42].mxu1 }
0x1022   : > { %12409 = vst [vmem:[#allocation105_spill] sm:$0xff] %v11278_v17  ;;  %v11280_v45 = vpop.f32.mrb[43].mxu1 }
0x1023   : > { %12410 = vst [vmem:[#allocation106_spill] sm:$0xff] %v11280_v45 }
0x1028   : > { %v11282_v10 = vpop.f32.mrb[44].mxu1 }
0x1029   : > { %12411 = vst [vmem:[#allocation107_spill] sm:$0xff] %v11282_v10  ;;  %v11284_v1 = vpop.f32.mrb[45].mxu1 }
0x102a   : > { %12412 = vst [vmem:[#allocation108_spill] sm:$0xff] %v11284_v1  ;;  %v11286_v59 = vpop.f32.mrb[46].mxu1 }
0x102b   : > { %12413 = vst [vmem:[#allocation109_spill] sm:$0xff] %v11286_v59  ;;  %v11288_v2 = vpop.f32.mrb[47].mxu1 }
0x102c   : > { %12414 = vst [vmem:[#allocation110_spill] sm:$0xff] %v11288_v2 }
0x1040   : > { %v7906_v20 = vpop.f32.mrb[48].mxu1 }
0x1041   : > { %v4114_v9 = vpop.f32.mrb[49].mxu1  ;;  %v4123_v23 = vadd.f32 %v7906_v20, %v7083_v32 }
0x1042   : > { %v7907_v4 = vpop.f32.mrb[50].mxu1  ;;  %v4115_v62 = vadd.f32 %v7083_v32, %v4114_v9 }
0x1043   : > { %v4126_v56 = vadd.f32 %v7907_v4, %v7083_v32  ;;  %v4117_v5 = vpop.f32.mrb[51].mxu1 }
0x1044   : > { %v4118_v47 = vadd.f32 %v7083_v32, %v4117_v5 }
0x1045   : > { %v4146_v31 = vpack.c.bf16 %v4126_v56, %v4123_v23 }
0x1046   : > { %v4145_v34 = vpack.c.bf16 %v4118_v47, %v4115_v62  ;;  %v4293_v62 = vld [vmem:[#allocation2 + $0x68] sm:$0xff] }
0x1047   : > { %v4312_v23 = vsel %vm2118_vm2, %v4146_v31, 0 }
0x1048   : > { %v7910_v37 = vpop.f32.mrb[52].mxu1  ;;  %8052 = vmatprep.subr.msk.bf16.mxu1 %vm2118_vm2, %v4145_v34  ;;  %v4309_v11 = vsel %vm2118_vm2, %v4145_v34, 0 }
0x1049   : > { %v4130_v10 = vpop.f32.mrb[53].mxu1  ;;  %7937 = vmatpush3.bf16.xpose.msra.mxu1 %v4309_v11  ;;  %v4139_v1 = vadd.f32 %v7910_v37, %v7083_v32 }
0x104a   : > { %v7911_v59 = vpop.f32.mrb[54].mxu1  ;;  %8053 = vmatprep.subr.msk.bf16.mxu1 %vm2118_vm2, %v4146_v31  ;;  %v4131_v20 = vadd.f32 %v7083_v32, %v4130_v10 }
0x104b   : > { %v4142_v2 = vadd.f32 %v7911_v59, %v7083_v32  ;;  %v4133_v61 = vpop.f32.mrb[55].mxu1  ;;  %v4294_v59 = vld [vmem:[#allocation2 + $0x70] sm:$0xff] }
0x104c   : > { %v4134_v4 = vadd.f32 %v7083_v32, %v4133_v61  ;;  %v4295_v61 = vld [vmem:[#allocation2 + $0x78] sm:$0xff] }
0x104d   : > { %v4148_v17 = vpack.c.bf16 %v4142_v2, %v4139_v1 }
0x104e   : > { %v4147_v9 = vpack.c.bf16 %v4134_v4, %v4131_v20 }
0x104f   : > { %v4318_v5 = vsel %vm2118_vm2, %v4148_v17, 0 }
0x1050   : > { %v4315_v56 = vsel %vm2118_vm2, %v4147_v9, 0 }
0x1051   : > { %7939 = vmatpush3.bf16.xpose.msra.mxu1 %v4312_v23 }
0x1052   : > { %8054 = vmatprep.subr.msk.bf16.mxu1 %vm2118_vm2, %v4147_v9 }
0x1059   : > { %7941 = vmatpush3.bf16.xpose.msra.mxu1 %v4315_v56 }
0x105a   : > { %8055 = vmatprep.subr.msk.bf16.mxu1 %vm2118_vm2, %v4148_v17 }
0x1061   : > { %7943 = vmatpush3.bf16.xpose.msra.mxu1 %v4318_v5 }
0x1068   : > { %7945 = vmatmul.mubr.msk.bf16.vlgmr.msra.gmra.mrb[56].mxu1 %vm2118_vm2, %v4293_v62  ;;  %v2359_v62 = vsel %vm2216_vm3, %v10860_v60, 0.0  ;;  %v2374_v60 = vsel %vm2216_vm3, %v10878_v41, 0.0  ;;  %v12419_v41 = vsub.f32 %v10812_v18, %v10829_v35  ;;  %v11373_v18 = vld [vmem:[#allocation3 + $0xd8] sm:$0xff] }
0x1069   : > { %7948 = vmatprep.mubr.msk.bf16.mxu1 %vm2118_vm2, %v4294_v59  ;;  %v2362_v59 = vsel %vm2216_vm3, %v10863_v63, 0.0  ;;  %v12415_v63 = vsub.f32 %v10774_v0, %v10791_v8 }
0x106a   : > { %v2269_v0 = vmul.f32 1.442695, %v12419_v41  ;;  %v11423_v41 = vld [vmem:[#allocation3 + $0xf0] sm:$0xff] }
0x1070   : > { %7949 = vmatmul.mubr.msk.bf16.gmra.mrb[60].mxu1 %vm2118_vm2, %v4295_v61  ;;  %v2365_v61 = vsel %vm2216_vm3, %v10869_v14, 0.0  ;;  %v12416_v14 = vsub.f32 %v10784_v7, %v10800_v30 }
0x113b   : > { %v11301_v10 = vpop.f32.mrb[56].mxu1 }
0x113c   : > { %v11303_v1 = vpop.f32.mrb[57].mxu1  ;;  %v4400_v31 = vsel %vm2216_vm3, %v11301_v10, -inf }
0x113d   : > { %v11305_v2 = vpop.f32.mrb[58].mxu1  ;;  %v4394_v32 = vsel %vm2216_vm3, %v11303_v1, -inf }
0x113e   : > { %4395 = vmax.xlane.f32.xlu0 %v4394_v32  ;;  %v11309_v17 = vpop.f32.mrb[59].mxu1  ;;  %v4403_v47 = vsel %vm2216_vm3, %v11305_v2, -inf  ;;  %v2368_v32 = vsel %vm2216_vm3, %v10871_v42, 0.0  ;;  %v12417_v42 = vsub.f32 %v10793_v48, %v10810_v16  ;;  %v11371_v16 = vld [vmem:[#allocation3 + $0xc0] sm:$0xff] }
0x113f   : > { %4404 = vmax.xlane.f32.xlu1 %v4403_v47  ;;  %v4397_v34 = vsel %vm2216_vm3, %v11309_v17, -inf  ;;  %v2371_v47 = vsel %vm2216_vm3, %v10875_v44, 0.0  ;;  %v12418_v44 = vsub.f32 %v10803_v12, %v10820_v25 }
0x1142   : > { %4401 = vmax.xlane.f32.xlu0 %v4400_v31  ;;  %v2261_v31 = vmul.f32 1.442695, %v12415_v63  ;;  %v11400_v63 = vld [vmem:[#allocation3 + $0xe0] sm:$0xff] }
0x1143   : > { %4398 = vmax.xlane.f32.xlu1 %v4397_v34  ;;  %v11317_v37 = vpop.f32.mrb[60].mxu1  ;;  %v2263_v34 = vmul.f32 1.442695, %v12416_v14 }
0x1144   : > { %v11319_v11 = vpop.f32.mrb[61].mxu1  ;;  %v4412_v56 = vsel %vm2216_vm3, %v11317_v37, -inf  ;;  %8535 = vpow2.f32 %v2261_v31  ;;  %v12420_v31 = vsub.f32 %v10822_v27, %v10837_v39 }
0x1145   : > { %v11321_v20 = vpop.f32.mrb[62].mxu1  ;;  %v4406_v4 = vsel %vm2216_vm3, %v11319_v11, -inf  ;;  %8537 = vpow2.f32 %v2263_v34 }
0x1146   : > { %4407 = vmax.xlane.f32.xlu0 %v4406_v4  ;;  %v11325_v9 = vpop.f32.mrb[63].mxu1  ;;  %v4415_v23 = vsel %vm2216_vm3, %v11321_v20, -inf  ;;  %v2265_v4 = vmul.f32 1.442695, %v12417_v42  ;;  %v2271_v14 = vmul.f32 1.442695, %v12420_v31 }
0x1147   : > { %4416 = vmax.xlane.f32.xlu1 %v4415_v23  ;;  %v4409_v5 = vsel %vm2216_vm3, %v11325_v9, -inf  ;;  %v2267_v23 = vmul.f32 1.442695, %v12418_v44  ;;  %v11410_v42 = vld [vmem:[#allocation3 + $0xf8] sm:$0xff] }
0x1148   : > { %8539 = vpow2.f32 %v2265_v4  ;;  %v2343_v4 = vld [vmem:[#allocation4 + $0x30] sm:$0xff] }
0x1149   : > { %8541 = vpow2.f32 %v2267_v23 }
0x114a   : > { %4413 = vmax.xlane.f32.xlu0 %v4412_v56  ;;  %8543 = vpow2.f32 %v2269_v0  ;;  %v11381_v56 = vld [vmem:[#allocation3 + $0xd0] sm:$0xff]  ;;  %v2342_v0 = vld [vmem:[#allocation4 + $0x28] sm:$0xff] }
0x114b   : > { %4410 = vmax.xlane.f32.xlu1 %v4409_v5  ;;  %8545 = vpow2.f32 %v2271_v14 }
0x114e   : > { %2360 = vadd.xlane.f32.xlu0 %v2359_v62  ;;  %v8536_v7 = vpop.eup %8535  ;;  %v11388_v62 = vld [vmem:[#allocation3 + $0xc8] sm:$0xff] }
0x114f   : > { %2363 = vadd.xlane.f32.xlu1 %v2362_v59  ;;  %v8538_v8 = vpop.eup %8537  ;;  %v2341_v59 = vld [vmem:[#allocation4 + $0x20] sm:$0xff] }
0x1152   : > { %2366 = vadd.xlane.f32.xlu0 %v2365_v61  ;;  %v11362_v48 = vpop.eup %8539 }
0x1153   : > { %2369 = vadd.xlane.f32.xlu1 %v2368_v32  ;;  %v11365_v30 = vpop.eup %8541  ;;  %v2349_v13 = vmul.f32 %v11362_v48, %v2341_v59 }
0x1154   : > { %v11367_v12 = vpop.eup %8543 }
0x1156   : > { %2372 = vadd.xlane.f32.xlu0 %v2371_v47 }
0x1157   : > { %2375 = vadd.xlane.f32.xlu1 %v2374_v60 }
0x1168   : > { %2409 = vperm.xlu1 %8402, %v11262_v33  }
0x116c   : > { %2404 = vperm.xlu0 %8401, %v11267_v36   ;;  %2414 = vperm.xlu1 %8402, %v8536_v7  }
0x1170   : > { %2419 = vperm.xlu0 %8401, %v8538_v8   ;;  %2424 = vperm.xlu1 %8402, %v11362_v48  }
0x1174   : > { %2429 = vperm.xlu0 %8401, %v11365_v30   ;;  %2434 = vperm.xlu1 %8402, %v11367_v12  }
0x11cb   : > { %v4396_v25 = vpop.xlane.xlu0 %4395 }
0x11cc   : > { %v11376_v35 = vmax.f32 %v11371_v16, %v4396_v25  ;;  %v4405_v33 = vpop.xlane.xlu1 %4404  ;;  %v11430_v25 = vld [vmem:[#allocation3 + $0xe8] sm:$0xff] }
0x11cd   : > { %v11379_v36 = vmax.f32 %v11373_v18, %v4405_v33 }
0x11ce   : > { %4725 = vst.msk [vmem:[#allocation3 + $0xc0] sm:$0xff] %vm2385_vm4, %v11376_v35  ;;  %4452 = vperm.xlu0 %8401, %v11376_v35  }
0x11cf   : > { %4728 = vst.msk [vmem:[#allocation3 + $0xd8] sm:$0xff] %vm2385_vm4, %v11379_v36  ;;  %v4402_v61 = vpop.xlane.xlu0 %4401 }
0x11d0   : > { %v11395_v32 = vmax.f32 %v11381_v56, %v4402_v61  ;;  %v4399_v47 = vpop.xlane.xlu1 %4398 }
0x11d1   : > { %v11398_v60 = vmax.f32 %v11388_v62, %v4399_v47  ;;  %v2339_v47 = vld [vmem:[#allocation4 + $0x10] sm:$0xff] }
0x11d2   : > { %4727 = vst.msk [vmem:[#allocation3 + $0xd0] sm:$0xff] %vm2385_vm4, %v11395_v32  ;;  %4462 = vperm.xlu0 %8401, %v11395_v32   ;;  %v2347_v33 = vmul.f32 %v8536_v7, %v2339_v47  ;;  %v2350_v47 = vmul.f32 %v11365_v30, %v2342_v0  ;;  %v2395_v30 = vld [vmem:[#allocation5 + $0x8] sm:$0xff] }
0x11d3   : > { %4726 = vst.msk [vmem:[#allocation3 + $0xc8] sm:$0xff] %vm2385_vm4, %v11398_v60  ;;  %v4408_v44 = vpop.xlane.xlu0 %4407  ;;  %4457 = vperm.xlu1 %8402, %v11398_v60  }
0x11d4   : > { %v11418_v27 = vmax.f32 %v11400_v63, %v4408_v44  ;;  %v4417_v39 = vpop.xlane.xlu1 %4416  ;;  %v2340_v44 = vld [vmem:[#allocation4 + $0x18] sm:$0xff] }
0x11d5   : > { %v11421_v23 = vmax.f32 %v11410_v42, %v4417_v39 }
0x11d6   : > { %4729 = vst.msk [vmem:[#allocation3 + $0xe0] sm:$0xff] %vm2385_vm4, %v11418_v27  ;;  %4472 = vperm.xlu0 %8401, %v11418_v27  }
0x11d7   : > { %4732 = vst.msk [vmem:[#allocation3 + $0xf8] sm:$0xff] %vm2385_vm4, %v11421_v23  ;;  %v4414_v61 = vpop.xlane.xlu0 %4413  ;;  %4467 = vperm.xlu1 %8402, %v11379_v36  }
0x11d8   : > { %v11438_v31 = vmax.f32 %v11423_v41, %v4414_v61  ;;  %v4411_v14 = vpop.xlane.xlu1 %4410 }
0x11d9   : > { %v11441_v39 = vmax.f32 %v11430_v25, %v4411_v14  ;;  %v2348_v14 = vmul.f32 %v8538_v8, %v2340_v44 }
0x11da   : > { %12421 = vst [vmem:[#allocation111_spill] sm:$0xff] %v11438_v31  ;;  %4731 = vst.msk [vmem:[#allocation3 + $0xf0] sm:$0xff] %vm2385_vm4, %v11438_v31  ;;  %4482 = vperm.xlu0 %8401, %v11438_v31   ;;  %v11458_v31 = vpop.eup %8545 }
0x11db   : > { %4730 = vst.msk [vmem:[#allocation3 + $0xe8] sm:$0xff] %vm2385_vm4, %v11441_v39  ;;  %v2361_v61 = vpop.xlane.xlu0 %2360  ;;  %4477 = vperm.xlu1 %8402, %v11441_v39  }
0x11dc   : > { %v2379_v34 = vadd.f32 %v2361_v61, %v2347_v33  ;;  %v2364_v5 = vpop.xlane.xlu1 %2363  ;;  %v2344_v33 = vld [vmem:[#allocation4 + $0x38] sm:$0xff] }
0x11dd   : > { %v2380_v45 = vadd.f32 %v2364_v5, %v2348_v14  ;;  %v2351_v5 = vmul.f32 %v11367_v12, %v2343_v4 }
0x11de   : > { %2388 = vst.msk [vmem:[#allocation4 + $0x10] sm:$0xff] %vm2385_vm4, %v2379_v34 }
0x11df   : > { %2389 = vst.msk [vmem:[#allocation4 + $0x18] sm:$0xff] %vm2385_vm4, %v2380_v45  ;;  %v2367_v7 = vpop.xlane.xlu0 %2366  ;;  %4487 = vperm.xlu1 %8402, %v11421_v23   ;;  %v2352_v45 = vmul.f32 %v11458_v31, %v2344_v33 }
0x11e0   : > { %v2381_v8 = vadd.f32 %v2367_v7, %v2349_v13  ;;  %v2370_v44 = vpop.xlane.xlu1 %2369  ;;  %v2394_v7 = vld [vmem:[#allocation5] sm:$0xff] }
0x11e1   : > { %v2382_v61 = vadd.f32 %v2370_v44, %v2350_v47  ;;  %v2396_v47 = vld [vmem:[#allocation5 + $0x10] sm:$0xff] }
0x11e2   : > { %2390 = vst.msk [vmem:[#allocation4 + $0x20] sm:$0xff] %vm2385_vm4, %v2381_v8 }
0x11e3   : > { %2391 = vst.msk [vmem:[#allocation4 + $0x28] sm:$0xff] %vm2385_vm4, %v2382_v61  ;;  %v2373_v48 = vpop.xlane.xlu0 %2372  ;;  %v2397_v61 = vld [vmem:[#allocation5 + $0x18] sm:$0xff] }
0x11e4   : > { %v2383_v59 = vadd.f32 %v2373_v48, %v2351_v5  ;;  %v2376_v34 = vpop.xlane.xlu1 %2375  ;;  %v2398_v48 = vld [vmem:[#allocation5 + $0x20] sm:$0xff] }
0x11e5   : > { %v2384_v14 = vadd.f32 %v2376_v34, %v2352_v45 }
0x11e6   : > { %2392 = vst.msk [vmem:[#allocation4 + $0x30] sm:$0xff] %vm2385_vm4, %v2383_v59 }
0x11e7   : > { %2393 = vst.msk [vmem:[#allocation4 + $0x38] sm:$0xff] %vm2385_vm4, %v2384_v14 }
0x11e8   : > { %v2410_v13 = vpop.permute.xlu1 %2409 }
0x11e9   : > { %v2443_v0 = vmul.f32 %v2410_v13, %v2395_v30  ;;  %v2399_v30 = vld [vmem:[#allocation5 + $0x28] sm:$0xff] }
0x11eb   : > { %v2532_v8 = vadd.f32 %v10894_v52, %v2443_v0  ;;  %v2405_v12 = vpop.permute.xlu0 %2404  ;;  %v2400_v0 = vld [vmem:[#allocation5 + $0x30] sm:$0xff] }
0x11ec   : > { %v2442_v4 = vmul.f32 %v2405_v12, %v2394_v7  ;;  %v2415_v44 = vpop.permute.xlu1 %2414 }
0x11ed   : > { %2540 = vst.msk [vmem:[#allocation5 + $0x8] sm:$0xff] %vm2118_vm2, %v2532_v8  ;;  %v2444_v33 = vmul.f32 %v2415_v44, %v2396_v47 }
0x11ee   : > { %v2531_v5 = vadd.f32 %v10890_v50, %v2442_v4 }
0x11ef   : > { %v2533_v45 = vadd.f32 %v10888_v22, %v2444_v33  ;;  %v2420_v59 = vpop.permute.xlu0 %2419  ;;  %v12423_v33 = vld [vmem:[#allocation83_spill] sm:$0xff] }
0x11f0   : > { %2539 = vst.msk [vmem:[#allocation5] sm:$0xff] %vm2118_vm2, %v2531_v5  ;;  %v2445_v34 = vmul.f32 %v2420_v59, %v2397_v61  ;;  %v2425_v14 = vpop.permute.xlu1 %2424  ;;  %v3091_v61 = vsel %vm2216_vm3, %v12423_v33, 0.0  ;;  %v12424_v5 = vld [vmem:[#allocation79_spill] sm:$0xff]  ;;  %v3808_v59 = vsel %vm2216_vm3, %v11229_v26, 0.0  ;;  %v3805_v26 = vsel %vm2216_vm3, %v11227_v28, 0.0 }
0x11f1   : > { %2541 = vst.msk [vmem:[#allocation5 + $0x10] sm:$0xff] %vm2118_vm2, %v2533_v45  ;;  %v2446_v52 = vmul.f32 %v2425_v14, %v2398_v48 }
0x11f2   : > { %v2534_v13 = vadd.f32 %v10892_v51, %v2445_v34  ;;  %v3082_v51 = vsel %vm2216_vm3, %v11041_v21, 0.0  ;;  %v12426_v21 = vld [vmem:[#allocation80_spill] sm:$0xff]  ;;  %v12427_v34 = vld [vmem:[#allocation82_spill] sm:$0xff] }
0x11f3   : > { %v2535_v7 = vadd.f32 %v10898_v54, %v2446_v52  ;;  %v2430_v47 = vpop.permute.xlu0 %2429  ;;  %v12422_v54 = vld [vmem:[#allocation81_spill] sm:$0xff]  ;;  %v3088_v45 = vsel %vm2216_vm3, %v12426_v21, 0.0  ;;  %v3094_v14 = vsel %vm2216_vm3, %v12427_v34, 0.0  ;;  %v3811_v52 = vsel %vm2216_vm3, %v11236_v43, 0.0 }
0x11f4   : > { %2542 = vst.msk [vmem:[#allocation5 + $0x18] sm:$0xff] %vm2118_vm2, %v2534_v13  ;;  %v2447_v50 = vmul.f32 %v2430_v47, %v2399_v30  ;;  %v2435_v8 = vpop.permute.xlu1 %2434  ;;  %v3085_v44 = vsel %vm2216_vm3, %v12422_v54, 0.0  ;;  %v12428_v30 = vld [vmem:[#allocation84_spill] sm:$0xff]  ;;  %v3814_v43 = vsel %vm2216_vm3, %v11233_v58, 0.0  ;;  %v3820_v47 = vsel %vm2216_vm3, %v11241_v53, 0.0  ;;  %v12435_v54 = vld [vmem:[#allocation66_spill] sm:$0xff] }
0x11f5   : > { %2543 = vst.msk [vmem:[#allocation5 + $0x20] sm:$0xff] %vm2118_vm2, %v2535_v7  ;;  %v2448_v22 = vmul.f32 %v2435_v8, %v2400_v0  ;;  %v3100_v13 = vsel %vm2216_vm3, %v12428_v30, 0.0  ;;  %v3817_v0 = vsel %vm2216_vm3, %v11243_v19, 0.0  ;;  %v3823_v7 = vsel %vm2216_vm3, %v11250_v15, 0.0  ;;  %v12430_v8 = vld [vmem:[#allocation65_spill] sm:$0xff]  ;;  %v12438_v53 = vld [vmem:[#allocation68_spill] sm:$0xff] }
0x11f6   : > { %v2536_v12 = vadd.f32 %v10902_v24, %v2447_v50  ;;  %v3079_v24 = vsel %vm2216_vm3, %v12424_v5, 0.0  ;;  %v3826_v19 = vsel %vm2216_vm3, %v11247_v57, 0.0  ;;  %v12429_v50 = vld [vmem:[#allocation63_spill] sm:$0xff]  ;;  %v12436_v58 = vld [vmem:[#allocation69_spill] sm:$0xff]  ;;  %v12441_v57 = vld [vmem:[#allocation72_spill] sm:$0xff] }
0x11f7   : > { %v2537_v4 = vadd.f32 %v10896_v29, %v2448_v22  ;;  %v12425_v29 = vld [vmem:[#allocation85_spill] sm:$0xff]  ;;  %v12431_v28 = vsub.f32 %v12429_v50, %v12430_v8  ;;  %v12448_v30 = vld [vmem:[#allocation78_spill] sm:$0xff] }
0x11f8   : > { %2544 = vst.msk [vmem:[#allocation5 + $0x28] sm:$0xff] %vm2118_vm2, %v2536_v12  ;;  %v3097_v48 = vsel %vm2216_vm3, %v12425_v29, 0.0  ;;  %v12432_v12 = vld [vmem:[#allocation64_spill] sm:$0xff]  ;;  %v12442_v29 = vld [vmem:[#allocation74_spill] sm:$0xff] }
0x11f9   : > { %2545 = vst.msk [vmem:[#allocation5 + $0x30] sm:$0xff] %vm2118_vm2, %v2537_v4  ;;  %3083 = vadd.xlane.f32.xlu0 %v3082_v51  ;;  %v2982_v22 = vmul.f32 1.442695, %v12431_v28  ;;  %v12433_v4 = vld [vmem:[#allocation67_spill] sm:$0xff]  ;;  %v12454_v28 = vsub.f32 %v11137_v49, %v11149_v3 }
0x11fa   : > { %v12434_v15 = vsub.f32 %v12432_v12, %v12433_v4 }
0x11fb   : > { %8547 = vpow2.f32 %v2982_v22  ;;  %v3710_v22 = vmul.f32 1.442695, %v12454_v28  ;;  %v12474_v28 = vsub.f32 %v11430_v25, %v11441_v39 }
0x11fc   : > { %v2984_v51 = vmul.f32 1.442695, %v12434_v15  ;;  %v12455_v15 = vsub.f32 %v11142_v6, %v11159_v46  ;;  %v12461_v6 = vld [vmem:[#allocation95_spill] sm:$0xff]  ;;  %v12462_v46 = vld [vmem:[#allocation97_spill] sm:$0xff] }
0x11fd   : > { %3086 = vadd.xlane.f32.xlu0 %v3085_v44  ;;  %v12437_v44 = vsub.f32 %v12435_v54, %v12436_v58  ;;  %v12458_v58 = vld [vmem:[#allocation96_spill] sm:$0xff] }
0x11fe   : > { %8549 = vpow2.f32 %v2984_v51  ;;  %v3714_v51 = vmul.f32 1.442695, %v12455_v15 }
0x11ff   : > { %v2988_v33 = vmul.f32 1.442695, %v12437_v44  ;;  %v12459_v44 = vld [vmem:[#allocation98_spill] sm:$0xff] }
0x1201   : > { %3092 = vadd.xlane.f32.xlu0 %v3091_v61  ;;  %v12439_v61 = vld [vmem:[#allocation70_spill] sm:$0xff]  ;;  %8551 = vpow2.f32 %v2988_v33  ;;  %v12460_v33 = vsub.f32 %v12458_v58, %v12459_v44 }
0x1202   : > { %v12440_v5 = vsub.f32 %v12438_v53, %v12439_v61  ;;  %v12463_v61 = vsub.f32 %v12461_v6, %v12462_v46 }
0x1203   : > { %3080 = vadd.xlane.f32.xlu1 %v3079_v24  ;;  %v3718_v53 = vmul.f32 1.442695, %v12460_v33 }
0x1204   : > { %v2986_v24 = vmul.f32 1.442695, %v12440_v5  ;;  %v3716_v5 = vmul.f32 1.442695, %v12463_v61 }
0x1205   : > { %3098 = vadd.xlane.f32.xlu0 %v3097_v48  ;;  %v12443_v48 = vsub.f32 %v12441_v57, %v12442_v29  ;;  %v12464_v57 = vld [vmem:[#allocation100_spill] sm:$0xff]  ;;  %v12465_v29 = vld [vmem:[#allocation102_spill] sm:$0xff] }
0x1206   : > { %8553 = vpow2.f32 %v2986_v24 }
0x1207   : > { %3089 = vadd.xlane.f32.xlu1 %v3088_v45  ;;  %v2992_v21 = vmul.f32 1.442695, %v12443_v48  ;;  %v12444_v45 = vld [vmem:[#allocation71_spill] sm:$0xff]  ;;  %v12466_v48 = vsub.f32 %v12464_v57, %v12465_v29 }
0x1209   : > { %3809 = vadd.xlane.f32.xlu0 %v3808_v59  ;;  %v12445_v59 = vld [vmem:[#allocation73_spill] sm:$0xff]  ;;  %8555 = vpow2.f32 %v2992_v21  ;;  %v3722_v21 = vmul.f32 1.442695, %v12466_v48 }
0x120a   : > { %v12446_v34 = vsub.f32 %v12444_v45, %v12445_v59  ;;  %v12467_v45 = vld [vmem:[#allocation99_spill] sm:$0xff]  ;;  %v12468_v59 = vld [vmem:[#allocation101_spill] sm:$0xff] }
0x120b   : > { %3095 = vadd.xlane.f32.xlu1 %v3094_v14 }
0x120c   : > { %v2990_v14 = vmul.f32 1.442695, %v12446_v34  ;;  %v12469_v34 = vsub.f32 %v12467_v45, %v12468_v59 }
0x120d   : > { %3812 = vadd.xlane.f32.xlu0 %v3811_v52  ;;  %v12447_v52 = vld [vmem:[#allocation76_spill] sm:$0xff] }
0x120e   : > { %8557 = vpow2.f32 %v2990_v14  ;;  %v3720_v14 = vmul.f32 1.442695, %v12469_v34 }
0x120f   : > { %3101 = vadd.xlane.f32.xlu1 %v3100_v13  ;;  %v12449_v13 = vsub.f32 %v12447_v52, %v12448_v30 }
0x1211   : > { %3818 = vadd.xlane.f32.xlu0 %v3817_v0  ;;  %v2996_v0 = vmul.f32 1.442695, %v12449_v13  ;;  %v12470_v13 = vsub.f32 %v11371_v16, %v11376_v35  ;;  %v12473_v16 = vsub.f32 %v11388_v62, %v11398_v60 }
0x1213   : > { %3806 = vadd.xlane.f32.xlu1 %v3805_v26  ;;  %v12450_v26 = vld [vmem:[#allocation75_spill] sm:$0xff]  ;;  %8559 = vpow2.f32 %v2996_v0  ;;  %v4434_v0 = vmul.f32 1.442695, %v12470_v13  ;;  %v4436_v35 = vmul.f32 1.442695, %v12473_v16 }
0x1215   : > { %3824 = vadd.xlane.f32.xlu0 %v3823_v7  ;;  %v12451_v7 = vld [vmem:[#allocation77_spill] sm:$0xff] }
0x1217   : > { %3815 = vadd.xlane.f32.xlu1 %v3814_v43  ;;  %v12452_v43 = vsub.f32 %v12450_v26, %v12451_v7  ;;  %v12471_v26 = vsub.f32 %v11381_v56, %v11395_v32 }
0x1219   : > { %v4438_v7 = vmul.f32 1.442695, %v12471_v26 }
0x121b   : > { %3821 = vadd.xlane.f32.xlu1 %v3820_v47  ;;  %v2994_v47 = vmul.f32 1.442695, %v12452_v43 }
0x121d   : > { %8561 = vpow2.f32 %v2994_v47 }
0x121f   : > { %3827 = vadd.xlane.f32.xlu1 %v3826_v19  ;;  %v11537_v19 = vpop.eup %8547 }
0x1220   : > { %v11539_v50 = vpop.eup %8549 }
0x1221   : > { %v11549_v12 = vpop.eup %8551 }
0x1222   : > { %v11551_v4 = vpop.eup %8553 }
0x1223   : > { %v11561_v49 = vpop.eup %8555 }
0x1224   : > { %v11563_v3 = vpop.eup %8557 }
0x122b   : > { %2439 = vperm.xlu0 %8401, %v11458_v31   ;;  %v12453_v31 = vsub.f32 %v11135_v55, %v11140_v40  ;;  %v12456_v55 = vld [vmem:[#allocation94_spill] sm:$0xff] }
0x122c   : > { %v12457_v40 = vsub.f32 %v11152_v38, %v12456_v55  ;;  %v11573_v38 = vpop.eup %8559 }
0x122d   : > { %v3708_v8 = vmul.f32 1.442695, %v12453_v31  ;;  %v11575_v24 = vpop.eup %8561  ;;  %v12472_v31 = vsub.f32 %v11373_v18, %v11379_v36  ;;  %v12475_v18 = vsub.f32 %v11400_v63, %v11418_v27 }
0x122e   : > { %v3712_v54 = vmul.f32 1.442695, %v12457_v40 }
0x122f   : > { %3130 = vperm.xlu0 %8401, %v11537_v19   ;;  %8563 = vpow2.f32 %v3708_v8  ;;  %v4440_v8 = vmul.f32 1.442695, %v12472_v31  ;;  %v4442_v36 = vmul.f32 1.442695, %v12475_v18 }
0x1230   : > { %3135 = vperm.xlu1 %8402, %v11539_v50   ;;  %8565 = vpow2.f32 %v3710_v22  ;;  %v4444_v22 = vmul.f32 1.442695, %v12474_v28 }
0x1231   : > { %8567 = vpow2.f32 %v3714_v51 }
0x1232   : > { %8569 = vpow2.f32 %v3712_v54 }
0x1233   : > { %3145 = vperm.xlu0 %8401, %v11549_v12   ;;  %8571 = vpow2.f32 %v3718_v53 }
0x1234   : > { %3140 = vperm.xlu1 %8402, %v11551_v4   ;;  %8573 = vpow2.f32 %v3716_v5 }
0x1235   : > { %8575 = vpow2.f32 %v3722_v21 }
0x1236   : > { %8577 = vpow2.f32 %v3720_v14 }
0x1237   : > { %3155 = vperm.xlu0 %8401, %v11561_v49   ;;  %8579 = vpow2.f32 %v4434_v0 }
0x1238   : > { %3150 = vperm.xlu1 %8402, %v11563_v3   ;;  %8581 = vpow2.f32 %v4438_v7 }
0x1239   : > { %v11585_v52 = vpop.eup %8563  ;;  %8583 = vpow2.f32 %v4440_v8 }
0x123a   : > { %v11587_v30 = vpop.eup %8565  ;;  %8585 = vpow2.f32 %v4436_v35 }
0x123b   : > { %3165 = vperm.xlu0 %8401, %v11573_v38   ;;  %v11597_v43 = vpop.eup %8567  ;;  %8587 = vpow2.f32 %v4444_v22 }
0x123c   : > { %3160 = vperm.xlu1 %8402, %v11575_v24   ;;  %v11599_v47 = vpop.eup %8569  ;;  %8589 = vpow2.f32 %v4442_v36 }
0x123d   : > { %v11609_v56 = vpop.eup %8571 }
0x123e   : > { %v11611_v32 = vpop.eup %8573 }
0x123f   : > { %3856 = vperm.xlu0 %8401, %v11585_v52   ;;  %v11621_v62 = vpop.eup %8575 }
0x1240   : > { %3861 = vperm.xlu1 %8402, %v11587_v30   ;;  %v11623_v60 = vpop.eup %8577 }
0x1241   : > { %v11627_v25 = vpop.eup %8579 }
0x1242   : > { %v11630_v51 = vpop.eup %8581 }
0x1243   : > { %3871 = vperm.xlu0 %8401, %v11597_v43   ;;  %v11634_v27 = vpop.eup %8583 }
0x1244   : > { %3866 = vperm.xlu1 %8402, %v11599_v47   ;;  %v11637_v58 = vpop.eup %8585 }
0x1245   : > { %v11642_v53 = vpop.eup %8587 }
0x1246   : > { %v11645_v5 = vpop.eup %8589 }
0x1247   : > { %3881 = vperm.xlu0 %8401, %v11609_v56  }
0x1248   : > { %3876 = vperm.xlu1 %8402, %v11611_v32  }
0x124b   : > { %3891 = vperm.xlu0 %8401, %v11621_v62  }
0x124c   : > { %3886 = vperm.xlu1 %8402, %v11623_v60  }
0x124d   : > { %v4453_v15 = vpop.permute.xlu0 %4452 }
0x124e   : > { %v4490_v39 = vsub.f32 %v11303_v1, %v4453_v15 }
0x124f   : > { %4582 = vperm.xlu0 %8401, %v11627_v25  }
0x1250   : > { %4592 = vperm.xlu1 %8402, %v11630_v51   ;;  %v4498_v55 = vmul.f32 1.442695, %v4490_v39 }
0x1251   : > { %v4463_v63 = vpop.permute.xlu0 %4462 }
0x1252   : > { %v4492_v40 = vsub.f32 %v11301_v10, %v4463_v63  ;;  %v4458_v54 = vpop.permute.xlu1 %4457  ;;  %8591 = vpow2.f32 %v4498_v55  ;;  %v3064_v55 = vld [vmem:[#allocation4 + $0x48] sm:$0xff] }
0x1253   : > { %v4491_v44 = vsub.f32 %v11309_v17, %v4458_v54  ;;  %4597 = vperm.xlu0 %8401, %v11634_v27   ;;  %v3072_v54 = vmul.f32 %v11539_v50, %v3064_v55  ;;  %v3067_v50 = vld [vmem:[#allocation4 + $0x60] sm:$0xff] }
0x1254   : > { %4587 = vperm.xlu1 %8402, %v11637_v58   ;;  %v4502_v6 = vmul.f32 1.442695, %v4492_v40 }
0x1255   : > { %v4500_v1 = vmul.f32 1.442695, %v4491_v44  ;;  %v4473_v33 = vpop.permute.xlu0 %4472 }
0x1256   : > { %v4494_v46 = vsub.f32 %v11319_v11, %v4473_v33  ;;  %v4468_v61 = vpop.permute.xlu1 %4467 }
0x1257   : > { %8593 = vpow2.f32 %v4500_v1  ;;  %v4493_v10 = vsub.f32 %v11305_v2, %v4468_v61  ;;  %4607 = vperm.xlu0 %8401, %v11642_v53   ;;  %v3065_v1 = vld [vmem:[#allocation4 + $0x50] sm:$0xff] }
0x1258   : > { %4602 = vperm.xlu1 %8402, %v11645_v5   ;;  %8595 = vpow2.f32 %v4502_v6  ;;  %v4506_v29 = vmul.f32 1.442695, %v4494_v46  ;;  %v12476_v46 = vsub.f32 %v11410_v42, %v11421_v23  ;;  %v3069_v23 = vld [vmem:[#allocation4 + $0x70] sm:$0xff] }
0x1259   : > { %v4504_v17 = vmul.f32 1.442695, %v4493_v10  ;;  %v4483_v57 = vpop.permute.xlu0 %4482  ;;  %v3073_v10 = vmul.f32 %v11551_v4, %v3065_v1 }
0x125a   : > { %v4496_v48 = vsub.f32 %v11317_v37, %v4483_v57  ;;  %v4478_v21 = vpop.permute.xlu1 %4477  ;;  %v4448_v61 = vmul.f32 1.442695, %v12476_v46 }
0x125b   : > { %8597 = vpow2.f32 %v4504_v17  ;;  %v4495_v11 = vsub.f32 %v11325_v9, %v4478_v21  ;;  %v12477_v17 = vld [vmem:[#allocation111_spill] sm:$0xff] }
0x125c   : > { %8599 = vpow2.f32 %v4506_v29  ;;  %v4510_v59 = vmul.f32 1.442695, %v4496_v48  ;;  %v8592_v14 = vpop.eup %8591  ;;  %v12478_v57 = vsub.f32 %v11423_v41, %v12477_v17 }
0x125d   : > { %v4508_v45 = vmul.f32 1.442695, %v4495_v11  ;;  %v4531_v36 = vsel %vm2216_vm3, %v8592_v14, 0.0  ;;  %v3063_v11 = vld [vmem:[#allocation4 + $0x40] sm:$0xff] }
0x125e   : > { %v4488_v34 = vpop.permute.xlu1 %4487  ;;  %v4446_v29 = vmul.f32 1.442695, %v12478_v57  ;;  %v3794_v57 = vld [vmem:[#allocation4 + $0xa8] sm:$0xff] }
0x125f   : > { %8601 = vpow2.f32 %v4508_v45  ;;  %v4497_v2 = vsub.f32 %v11321_v20, %v4488_v34  ;;  %v3075_v45 = vmul.f32 %v11563_v3, %v3067_v50  ;;  %v3071_v34 = vmul.f32 %v11537_v19, %v3063_v11  ;;  %v2401_v50 = vld [vmem:[#allocation5 + $0x38] sm:$0xff] }
0x1260   : > { %8603 = vpow2.f32 %v4510_v59 }
0x1261   : > { %v8594_v13 = vpop.eup %8593  ;;  %v4512_v0 = vmul.f32 1.442695, %v4497_v2  ;;  %v3066_v2 = vld [vmem:[#allocation4 + $0x58] sm:$0xff] }
0x1262   : > { %v4628_v26 = vpack.c.bf16 %v8594_v13, %v8592_v14  ;;  %v8596_v7 = vpop.eup %8595  ;;  %v4534_v18 = vsel %vm2216_vm3, %v8594_v13, 0.0  ;;  %v3077_v14 = vmul.f32 %v11575_v24, %v3069_v23  ;;  %v3074_v3 = vmul.f32 %v11549_v12, %v3066_v2  ;;  %v3120_v23 = vld [vmem:[#allocation5 + $0x40] sm:$0xff] }
0x1263   : > { %8605 = vpow2.f32 %v4512_v0  ;;  %v4537_v22 = vsel %vm2216_vm3, %v8596_v7, 0.0  ;;  %v3790_v0 = vld [vmem:[#allocation4 + $0x88] sm:$0xff] }
0x1264   : > { %7960 = vmatprep.mubr.msk.bf16.mxu0 %vm2216_vm3, %v4628_v26  ;;  %8607 = vpow2.f32 %v4448_v61  ;;  %v3798_v19 = vmul.f32 %v11587_v30, %v3790_v0  ;;  %v12480_v0 = vld [vmem:[#allocation87_spill] sm:$0xff] }
0x1265   : > { %v8598_v37 = vpop.eup %8597  ;;  %8609 = vpow2.f32 %v4446_v29 }
0x1266   : > { %v4629_v31 = vpack.c.bf16 %v8598_v37, %v8596_v7  ;;  %v8600_v8 = vpop.eup %8599  ;;  %v4540_v39 = vsel %vm2216_vm3, %v8598_v37, 0.0  ;;  %v3068_v37 = vld [vmem:[#allocation4 + $0x68] sm:$0xff] }
0x1267   : > { %v4543_v63 = vsel %vm2216_vm3, %v8600_v8, 0.0 }
0x1268   : > { %7961 = vmatmul.mubr.msk.bf16.vlgmr.msra.gmra.mrb[56].mxu0 %vm2216_vm3, %v4629_v31 }
0x1269   : > { %v8602_v9 = vpop.eup %8601 }
0x126a   : > { %v4630_v16 = vpack.c.bf16 %v8602_v9, %v8600_v8  ;;  %v8604_v35 = vpop.eup %8603  ;;  %v4546_v6 = vsel %vm2216_vm3, %v8602_v9, 0.0  ;;  %v3791_v9 = vld [vmem:[#allocation4 + $0x90] sm:$0xff] }
0x126b   : > { %v4549_v15 = vsel %vm2216_vm3, %v8604_v35, 0.0  ;;  %v3799_v30 = vmul.f32 %v11599_v47, %v3791_v9  ;;  %v3125_v9 = vld [vmem:[#allocation5 + $0x68] sm:$0xff] }
0x126c   : > { %7964 = vmatprep.mubr.msk.bf16.mxu0 %vm2216_vm3, %v4630_v16 }
0x126d   : > { %v8606_v20 = vpop.eup %8605 }
0x126e   : > { %v4631_v28 = vpack.c.bf16 %v8606_v20, %v8604_v35  ;;  %v4552_v40 = vsel %vm2216_vm3, %v8606_v20, 0.0  ;;  %v11683_v16 = vpop.eup %8607  ;;  %v3076_v35 = vmul.f32 %v11561_v49, %v3068_v37  ;;  %v3122_v37 = vld [vmem:[#allocation5 + $0x50] sm:$0xff] }
0x126f   : > { %v11687_v20 = vpop.eup %8609 }
0x1270   : > { %7965 = vmatmul.mubr.msk.bf16.gmra.mrb[60].mxu0 %vm2216_vm3, %v4631_v28  ;;  %v3070_v28 = vld [vmem:[#allocation4 + $0x78] sm:$0xff] }
0x1271   : > { %v3078_v49 = vmul.f32 %v11573_v38, %v3070_v28 }
0x1276   : > { %4538 = vadd.xlane.f32.xlu0 %v4537_v22 }
0x127a   : > { %4535 = vadd.xlane.f32.xlu0 %v4534_v18 }
0x127c   : > { %4532 = vadd.xlane.f32.xlu1 %v4531_v36  ;;  %v3793_v36 = vld [vmem:[#allocation4 + $0xa0] sm:$0xff] }
0x127e   : > { %4550 = vadd.xlane.f32.xlu0 %v4549_v15 }
0x1280   : > { %4541 = vadd.xlane.f32.xlu1 %v4540_v39 }
0x1282   : > { %4544 = vadd.xlane.f32.xlu0 %v4543_v63  ;;  %v3789_v63 = vld [vmem:[#allocation4 + $0x80] sm:$0xff] }
0x1283   : > { %v3797_v47 = vmul.f32 %v11585_v52, %v3789_v63  ;;  %v3802_v52 = vmul.f32 %v11609_v56, %v3794_v57 }
0x1284   : > { %4553 = vadd.xlane.f32.xlu1 %v4552_v40  ;;  %v3801_v40 = vmul.f32 %v11611_v32, %v3793_v36 }
0x1286   : > { %v3084_v44 = vpop.xlane.xlu0 %3083 }
0x1287   : > { %v3104_v33 = vadd.f32 %v3084_v44, %v3072_v54  ;;  %v3795_v44 = vld [vmem:[#allocation4 + $0xb0] sm:$0xff] }
0x1288   : > { %4547 = vadd.xlane.f32.xlu1 %v4546_v6  ;;  %v3792_v6 = vld [vmem:[#allocation4 + $0x98] sm:$0xff]  ;;  %v3803_v38 = vmul.f32 %v11623_v60, %v3795_v44  ;;  %v12485_v44 = vld [vmem:[#allocation91_spill] sm:$0xff] }
0x1289   : > { %3112 = vst.msk [vmem:[#allocation4 + $0x48] sm:$0xff] %vm2385_vm4, %v3104_v33  ;;  %v3800_v32 = vmul.f32 %v11597_v43, %v3792_v6  ;;  %v3846_v6 = vld [vmem:[#allocation5 + $0x80] sm:$0xff] }
0x128a   : > { %v3087_v48 = vpop.xlane.xlu0 %3086 }
0x128b   : > { %v3105_v21 = vadd.f32 %v3087_v48, %v3073_v10 }
0x128d   : > { %3113 = vst.msk [vmem:[#allocation4 + $0x50] sm:$0xff] %vm2385_vm4, %v3105_v21  ;;  %v3796_v21 = vld [vmem:[#allocation4 + $0xb8] sm:$0xff] }
0x128e   : > { %v3093_v42 = vpop.xlane.xlu0 %3092 }
0x128f   : > { %v3107_v59 = vadd.f32 %v3093_v42, %v3075_v45  ;;  %v3804_v42 = vmul.f32 %v11621_v62, %v3796_v21  ;;  %v12481_v62 = vld [vmem:[#allocation89_spill] sm:$0xff] }
0x1290   : > { %v3081_v4 = vpop.xlane.xlu1 %3080 }
0x1291   : > { %3115 = vst.msk [vmem:[#allocation4 + $0x60] sm:$0xff] %vm2385_vm4, %v3107_v59  ;;  %v3103_v41 = vadd.f32 %v3081_v4, %v3071_v34  ;;  %v12479_v59 = vld [vmem:[#allocation62_spill] sm:$0xff] }
0x1292   : > { %v3099_v13 = vpop.xlane.xlu0 %3098 }
0x1293   : > { %3111 = vst.msk [vmem:[#allocation4 + $0x40] sm:$0xff] %vm2385_vm4, %v3103_v41  ;;  %v3109_v26 = vadd.f32 %v3099_v13, %v3077_v14  ;;  %v3121_v41 = vld [vmem:[#allocation5 + $0x48] sm:$0xff]  ;;  %v3123_v13 = vld [vmem:[#allocation5 + $0x58] sm:$0xff] }
0x1294   : > { %v3090_v7 = vpop.xlane.xlu1 %3089 }
0x1295   : > { %3117 = vst.msk [vmem:[#allocation4 + $0x70] sm:$0xff] %vm2385_vm4, %v3109_v26  ;;  %v3106_v31 = vadd.f32 %v3090_v7, %v3074_v3 }
0x1296   : > { %v3810_v8 = vpop.xlane.xlu0 %3809 }
0x1297   : > { %3114 = vst.msk [vmem:[#allocation4 + $0x58] sm:$0xff] %vm2385_vm4, %v3106_v31  ;;  %v3830_v24 = vadd.f32 %v3810_v8, %v3798_v19 }
0x1298   : > { %4617 = vperm.xlu0 %8401, %v11683_v16   ;;  %v3096_v12 = vpop.xlane.xlu1 %3095 }
0x1299   : > { %3838 = vst.msk [vmem:[#allocation4 + $0x88] sm:$0xff] %vm2385_vm4, %v3830_v24  ;;  %v3108_v22 = vadd.f32 %v3096_v12, %v3076_v35  ;;  %4612 = vperm.xlu1 %8402, %v11687_v20   ;;  %v12482_v24 = vld [vmem:[#allocation88_spill] sm:$0xff] }
0x129a   : > { %v3813_v18 = vpop.xlane.xlu0 %3812 }
0x129b   : > { %3116 = vst.msk [vmem:[#allocation4 + $0x68] sm:$0xff] %vm2385_vm4, %v3108_v22  ;;  %v3831_v15 = vadd.f32 %v3813_v18, %v3799_v30  ;;  %v3124_v22 = vld [vmem:[#allocation5 + $0x60] sm:$0xff] }
0x129c   : > { %v3102_v39 = vpop.xlane.xlu1 %3101  ;;  %v12483_v30 = vld [vmem:[#allocation86_spill] sm:$0xff] }
0x129d   : > { %3839 = vst.msk [vmem:[#allocation4 + $0x90] sm:$0xff] %vm2385_vm4, %v3831_v15  ;;  %v3110_v55 = vadd.f32 %v3102_v39, %v3078_v49  ;;  %v3127_v49 = vld [vmem:[#allocation5 + $0x78] sm:$0xff] }
0x129e   : > { %v3819_v54 = vpop.xlane.xlu0 %3818  ;;  %v12484_v39 = vld [vmem:[#allocation93_spill] sm:$0xff] }
0x129f   : > { %3118 = vst.msk [vmem:[#allocation4 + $0x78] sm:$0xff] %vm2385_vm4, %v3110_v55  ;;  %v3833_v1 = vadd.f32 %v3819_v54, %v3801_v40  ;;  %v3126_v54 = vld [vmem:[#allocation5 + $0x70] sm:$0xff] }
0x12a0   : > { %v3807_v33 = vpop.xlane.xlu1 %3806 }
0x12a1   : > { %3841 = vst.msk [vmem:[#allocation4 + $0xa0] sm:$0xff] %vm2385_vm4, %v3833_v1  ;;  %v3829_v46 = vadd.f32 %v3807_v33, %v3797_v47 }
0x12a2   : > { %v3825_v61 = vpop.xlane.xlu0 %3824 }
0x12a3   : > { %3837 = vst.msk [vmem:[#allocation4 + $0x80] sm:$0xff] %vm2385_vm4, %v3829_v46  ;;  %v3835_v10 = vadd.f32 %v3825_v61, %v3803_v38  ;;  %v12486_v46 = vld [vmem:[#allocation92_spill] sm:$0xff] }
0x12a4   : > { %v3816_v17 = vpop.xlane.xlu1 %3815 }
0x12a5   : > { %3843 = vst.msk [vmem:[#allocation4 + $0xb0] sm:$0xff] %vm2385_vm4, %v3835_v10  ;;  %v3832_v29 = vadd.f32 %v3816_v17, %v3800_v32  ;;  %v3847_v32 = vld [vmem:[#allocation5 + $0x88] sm:$0xff]  ;;  %v12487_v17 = vld [vmem:[#allocation90_spill] sm:$0xff] }
0x12a7   : > { %3840 = vst.msk [vmem:[#allocation4 + $0x98] sm:$0xff] %vm2385_vm4, %v3832_v29 }
0x12a8   : > { %v3822_v48 = vpop.xlane.xlu1 %3821 }
0x12a9   : > { %v3834_v11 = vadd.f32 %v3822_v48, %v3802_v52  ;;  %v3849_v48 = vld [vmem:[#allocation5 + $0x98] sm:$0xff] }
0x12aa   : > { %v2440_v60 = vpop.permute.xlu0 %2439 }
0x12ab   : > { %3842 = vst.msk [vmem:[#allocation4 + $0xa8] sm:$0xff] %vm2385_vm4, %v3834_v11  ;;  %v2449_v45 = vmul.f32 %v2440_v60, %v2401_v50  ;;  %v12488_v50 = vld [vmem:[#allocation104_spill] sm:$0xff] }
0x12ac   : > { %v3828_v43 = vpop.xlane.xlu1 %3827 }
0x12ad   : > { %v2538_v34 = vadd.f32 %v12479_v59, %v2449_v45  ;;  %v3836_v4 = vadd.f32 %v3828_v43, %v3804_v42  ;;  %v3848_v45 = vld [vmem:[#allocation5 + $0x90] sm:$0xff]  ;;  %v12489_v42 = vld [vmem:[#allocation106_spill] sm:$0xff] }
0x12ae   : > { %v3131_v2 = vpop.permute.xlu0 %3130 }
0x12af   : > { %2546 = vst.msk [vmem:[#allocation5 + $0x38] sm:$0xff] %vm2118_vm2, %v2538_v34  ;;  %v3168_v56 = vmul.f32 %v3131_v2, %v3120_v23  ;;  %v3851_v34 = vld [vmem:[#allocation5 + $0xa8] sm:$0xff] }
0x12b0   : > { %3844 = vst.msk [vmem:[#allocation4 + $0xb8] sm:$0xff] %vm2385_vm4, %v3836_v4  ;;  %v3136_v14 = vpop.permute.xlu1 %3135  ;;  %v12490_v4 = vld [vmem:[#allocation105_spill] sm:$0xff] }
0x12b1   : > { %v3257_v26 = vadd.f32 %v12480_v0, %v3168_v56  ;;  %v3169_v3 = vmul.f32 %v3136_v14, %v3121_v41  ;;  %v3850_v14 = vld [vmem:[#allocation5 + $0xa0] sm:$0xff] }
0x12b2   : > { %v3146_v7 = vpop.permute.xlu0 %3145 }
0x12b3   : > { %3265 = vst.msk [vmem:[#allocation5 + $0x40] sm:$0xff] %vm2118_vm2, %v3257_v26  ;;  %v3258_v31 = vadd.f32 %v12481_v62, %v3169_v3  ;;  %v3171_v19 = vmul.f32 %v3146_v7, %v3123_v13  ;;  %v12491_v13 = vld [vmem:[#allocation103_spill] sm:$0xff]  ;;  %v3853_v7 = vld [vmem:[#allocation5 + $0xb8] sm:$0xff] }
0x12b4   : > { %v3141_v8 = vpop.permute.xlu1 %3140 }
0x12b5   : > { %3266 = vst.msk [vmem:[#allocation5 + $0x48] sm:$0xff] %vm2118_vm2, %v3258_v31  ;;  %v3260_v35 = vadd.f32 %v12482_v24, %v3171_v19  ;;  %v3170_v12 = vmul.f32 %v3141_v8, %v3122_v37  ;;  %v12492_v37 = vld [vmem:[#allocation110_spill] sm:$0xff]  ;;  %v3852_v8 = vld [vmem:[#allocation5 + $0xb0] sm:$0xff] }
0x12b6   : > { %v3156_v28 = vpop.permute.xlu0 %3155 }
0x12b7   : > { %3268 = vst.msk [vmem:[#allocation5 + $0x58] sm:$0xff] %vm2118_vm2, %v3260_v35  ;;  %v3259_v18 = vadd.f32 %v12483_v30, %v3170_v12  ;;  %v3173_v36 = vmul.f32 %v3156_v28, %v3125_v9  ;;  %v12493_v9 = vld [vmem:[#allocation108_spill] sm:$0xff]  ;;  %v12494_v28 = vld [vmem:[#allocation109_spill] sm:$0xff] }
0x12b8   : > { %v3151_v15 = vpop.permute.xlu1 %3150 }
0x12b9   : > { %3267 = vst.msk [vmem:[#allocation5 + $0x50] sm:$0xff] %vm2118_vm2, %v3259_v18  ;;  %v3262_v63 = vadd.f32 %v12484_v39, %v3173_v36  ;;  %v3172_v55 = vmul.f32 %v3151_v15, %v3124_v22  ;;  %v12495_v18 = vld [vmem:[#allocation107_spill] sm:$0xff] }
0x12ba   : > { %v3166_v40 = vpop.permute.xlu0 %3165 }
0x12bb   : > { %3270 = vst.msk [vmem:[#allocation5 + $0x68] sm:$0xff] %vm2118_vm2, %v3262_v63  ;;  %v3261_v1 = vadd.f32 %v12485_v44, %v3172_v55  ;;  %v3175_v47 = vmul.f32 %v3166_v40, %v3127_v49  ;;  %v4517_v40 = vld [vmem:[#allocation4 + $0xd0] sm:$0xff] }
0x12bc   : > { %v3161_v33 = vpop.permute.xlu1 %3160 }
0x12bd   : > { %3269 = vst.msk [vmem:[#allocation5 + $0x60] sm:$0xff] %vm2118_vm2, %v3261_v1  ;;  %v3264_v38 = vadd.f32 %v12486_v46, %v3175_v47  ;;  %v3174_v61 = vmul.f32 %v3161_v33, %v3126_v54  ;;  %v4525_v54 = vmul.f32 %v11630_v51, %v4517_v40  ;;  %v4516_v1 = vld [vmem:[#allocation4 + $0xc8] sm:$0xff] }
0x12be   : > { %v3857_v10 = vpop.permute.xlu0 %3856  ;;  %v4524_v46 = vmul.f32 %v11637_v58, %v4516_v1 }
0x12bf   : > { %3272 = vst.msk [vmem:[#allocation5 + $0x78] sm:$0xff] %vm2118_vm2, %v3264_v38  ;;  %v3263_v57 = vadd.f32 %v12487_v17, %v3174_v61  ;;  %v3894_v29 = vmul.f32 %v3857_v10, %v3846_v6  ;;  %v4515_v6 = vld [vmem:[#allocation4 + $0xc0] sm:$0xff]  ;;  %v4521_v61 = vld [vmem:[#allocation4 + $0xf0] sm:$0xff] }
0x12c0   : > { %v3862_v52 = vpop.permute.xlu1 %3861 }
0x12c1   : > { %3271 = vst.msk [vmem:[#allocation5 + $0x70] sm:$0xff] %vm2118_vm2, %v3263_v57  ;;  %v3983_v21 = vadd.f32 %v12488_v50, %v3894_v29  ;;  %v3895_v11 = vmul.f32 %v3862_v52, %v3847_v32  ;;  %v4523_v32 = vmul.f32 %v11627_v25, %v4515_v6  ;;  %v4518_v57 = vld [vmem:[#allocation4 + $0xd8] sm:$0xff]  ;;  %v4529_v29 = vmul.f32 %v11687_v20, %v4521_v61  ;;  %v4837_v61 = vld [vmem:[#allocation4 + $0x60] sm:$0xff] (!%p7109_p3) }
0x12c2   : > { %v3872_v60 = vpop.permute.xlu0 %3871  ;;  %v4836_v6 = vld [vmem:[#allocation4 + $0x58] sm:$0xff] (!%p7109_p3) }
0x12c3   : > { %3991 = vst.msk [vmem:[#allocation5 + $0x80] sm:$0xff] %vm2118_vm2, %v3983_v21  ;;  %v3984_v43 = vadd.f32 %v12489_v42, %v3895_v11  ;;  %v3897_v23 = vmul.f32 %v3872_v60, %v3849_v48  ;;  %v4519_v48 = vld [vmem:[#allocation4 + $0xe0] sm:$0xff]  ;;  %v4526_v21 = vmul.f32 %v11634_v27, %v4518_v57  ;;  %v4522_v11 = vld [vmem:[#allocation4 + $0xf8] sm:$0xff] }
0x12c4   : > { %v3867_v59 = vpop.permute.xlu1 %3866  ;;  %v4527_v25 = vmul.f32 %v11645_v5, %v4519_v48  ;;  %v4530_v20 = vmul.f32 %v11683_v16, %v4522_v11  ;;  %v4574_v5 = vld [vmem:[#allocation5 + $0xd0] sm:$0xff]  ;;  %v4753_v48 = vld [vmem:[#allocation4] sm:$0xff] (!%p7109_p3)  ;;  %v8614_v11 = vld [vmem:[#allocation23 + $0x18] sm:$0xff] (!%p7109_p3)  }
0x12c5   : > { %3992 = vst.msk [vmem:[#allocation5 + $0x88] sm:$0xff] %vm2118_vm2, %v3984_v43  ;;  %v3986_v2 = vadd.f32 %v12490_v4, %v3897_v23  ;;  %v3896_v41 = vmul.f32 %v3867_v59, %v3848_v45  ;;  %v4520_v23 = vld [vmem:[#allocation4 + $0xe8] sm:$0xff] }
0x12c6   : > { %v3882_v56 = vpop.permute.xlu0 %3881  ;;  %v4528_v27 = vmul.f32 %v11642_v53, %v4520_v23  ;;  %v4760_v23 = vld [vmem:[#allocation4 + $0x38] sm:$0xff] (!%p7109_p3) }
0x12c7   : > { %3994 = vst.msk [vmem:[#allocation5 + $0x98] sm:$0xff] %vm2118_vm2, %v3986_v2  ;;  %v3985_v0 = vadd.f32 %v12491_v13, %v3896_v41  ;;  %v3899_v26 = vmul.f32 %v3882_v56, %v3851_v34  ;;  %v4572_v2 = vld [vmem:[#allocation5 + $0xc0] sm:$0xff]  ;;  %v4575_v41 = vld [vmem:[#allocation5 + $0xd8] sm:$0xff] }
0x12c8   : > { %v3877_v3 = vpop.permute.xlu1 %3876 }
0x12c9   : > { %3993 = vst.msk [vmem:[#allocation5 + $0x90] sm:$0xff] %vm2118_vm2, %v3985_v0  ;;  %v3988_v62 = vadd.f32 %v12492_v37, %v3899_v26  ;;  %v3898_v31 = vmul.f32 %v3877_v3, %v3850_v14  ;;  %v4573_v14 = vld [vmem:[#allocation5 + $0xc8] sm:$0xff] }
0x12ca   : > { %v3892_v19 = vpop.permute.xlu0 %3891 }
0x12cb   : > { %3996 = vst.msk [vmem:[#allocation5 + $0xa8] sm:$0xff] %vm2118_vm2, %v3988_v62  ;;  %v3987_v24 = vadd.f32 %v12493_v9, %v3898_v31  ;;  %v3901_v35 = vmul.f32 %v3892_v19, %v3853_v7  ;;  %v4578_v19 = vld [vmem:[#allocation5 + $0xf0] sm:$0xff] }
0x12cc   : > { %v3887_v12 = vpop.permute.xlu1 %3886 }
0x12cd   : > { %3995 = vst.msk [vmem:[#allocation5 + $0xa0] sm:$0xff] %vm2118_vm2, %v3987_v24  ;;  %v3990_v22 = vadd.f32 %v12494_v28, %v3901_v35  ;;  %v3900_v30 = vmul.f32 %v3887_v12, %v3852_v8  ;;  %v4576_v24 = vld [vmem:[#allocation5 + $0xe0] sm:$0xff]  ;;  %v4579_v35 = vld [vmem:[#allocation5 + $0xf8] sm:$0xff]  ;;  %v4577_v28 = vld [vmem:[#allocation5 + $0xe8] sm:$0xff] }
0x12ce   : > { %v4583_v15 = vpop.permute.xlu0 %4582 }
0x12cf   : > { %3998 = vst.msk [vmem:[#allocation5 + $0xb8] sm:$0xff] %vm2118_vm2, %v3990_v22  ;;  %v3989_v36 = vadd.f32 %v12495_v18, %v3900_v30  ;;  %v4620_v13 = vmul.f32 %v4583_v15, %v4572_v2  ;;  %v5092_v2 = vld [vmem:[#allocation4 + $0x80] sm:$0xff] (!%p7109_p3) }
0x12d0   : > { %v4593_v49 = vpop.permute.xlu1 %4592 }
0x12d1   : > { %3997 = vst.msk [vmem:[#allocation5 + $0xb0] sm:$0xff] %vm2118_vm2, %v3989_v36  ;;  %v4622_v56 = vmul.f32 %v4593_v49, %v4574_v5  ;;  %v5093_v5 = vld [vmem:[#allocation4 + $0x88] sm:$0xff] (!%p7109_p3) }
0x12d2   : > { %v4598_v39 = vpop.permute.xlu0 %4597 }
0x12d3   : > { %v4623_v0 = vmul.f32 %v4598_v39, %v4575_v41 }
0x12d4   : > { %v4588_v63 = vpop.permute.xlu1 %4587 }
0x12d5   : > { %v4621_v7 = vmul.f32 %v4588_v63, %v4573_v14  ;;  %v5095_v14 = vld [vmem:[#allocation4 + $0x98] sm:$0xff] (!%p7109_p3) }
0x12d6   : > { %v11743_v55 = vpop.permute.xlu0 %4607 }
0x12d7   : > { %v4625_v39 = vmul.f32 %v11743_v55, %v4577_v28  ;;  %v9625_v55 = vmov (!%p7109_p3), 0  }
0x12d8   : > { %v11746_v33 = vpop.permute.xlu1 %4602  ;;  %8612 = vset.pattern.permute.xlu1 (!%p7109_p3), %v9625_v55  ;;  %8611 = vset.pattern.permute.xlu0 (!%p7109_p3), %v9625_v55 }
0x12d9   : > { %v4624_v30 = vmul.f32 %v11746_v33, %v4576_v24  ;;  %v4833_v33 = vld [vmem:[#allocation4 + $0x40] sm:$0xff] (!%p7109_p3)  ;;  %5831 = vmatprep.mubr.bf16.mxu1 (!%p7109_p3), %v9625_v55 }
0x1303   : > { %v4539_v44 = vpop.xlane.xlu0 %4538 }
0x1304   : > { %v4557_v47 = vadd.f32 %v4539_v44, %v4525_v54 }
0x1306   : > { %4565 = vst.msk [vmem:[#allocation4 + $0xd0] sm:$0xff] %vm2385_vm4, %v4557_v47  ;;  %v4835_v47 = vld [vmem:[#allocation4 + $0x50] sm:$0xff] (!%p7109_p3) }
0x1307   : > { %v4536_v38 = vpop.xlane.xlu0 %4535  ;;  %8701 = vrcp.f32 (!%p7109_p3), %v4835_v47 }
0x1308   : > { %v4556_v10 = vadd.f32 %v4536_v38, %v4524_v46  ;;  %v4834_v46 = vld [vmem:[#allocation4 + $0x48] sm:$0xff] (!%p7109_p3)  ;;  %8703 = vrcp.f32 (!%p7109_p3), %v4833_v33 }
0x1309   : > { %v4533_v17 = vpop.xlane.xlu1 %4532  ;;  %8705 = vrcp.f32 (!%p7109_p3), %v4836_v6  ;;  %v4838_v38 = vld [vmem:[#allocation4 + $0x68] sm:$0xff] (!%p7109_p3) }
0x130a   : > { %4564 = vst.msk [vmem:[#allocation4 + $0xc8] sm:$0xff] %vm2385_vm4, %v4556_v10  ;;  %v4555_v51 = vadd.f32 %v4533_v17, %v4523_v32  ;;  %8707 = vrcp.f32 (!%p7109_p3), %v4834_v46  ;;  %v4840_v10 = vld [vmem:[#allocation4 + $0x78] sm:$0xff] (!%p7109_p3)  ;;  %v4839_v32 = vld [vmem:[#allocation4 + $0x70] sm:$0xff] (!%p7109_p3) }
0x130b   : > { %v4551_v52 = vpop.xlane.xlu0 %4550  ;;  %8709 = vrcp.f32 (!%p7109_p3), %v4838_v38 }
0x130c   : > { %4563 = vst.msk [vmem:[#allocation4 + $0xc0] sm:$0xff] %vm2385_vm4, %v4555_v51  ;;  %v4561_v50 = vadd.f32 %v4551_v52, %v4529_v29  ;;  %8711 = vrcp.f32 (!%p7109_p3), %v4837_v61  ;;  %v4754_v51 = vld [vmem:[#allocation4 + $0x8] sm:$0xff] (!%p7109_p3)  ;;  %v8613_v29 = vld [vmem:[#allocation23 + $0x10] sm:$0xff] (!%p7109_p3)  }
0x130d   : > { %v4542_v58 = vpop.xlane.xlu1 %4541  ;;  %8713 = vrcp.f32 (!%p7109_p3), %v4840_v10  ;;  %7968 = vmatprep.subr.bf16.mxu0 (!%p7109_p3), %v8613_v29  ;;  %v5272_v28 = vld [vmem:[#allocation4 + $0xd0] sm:$0xff] (!%p7109_p3) }
0x130e   : > { %4569 = vst.msk [vmem:[#allocation4 + $0xf0] sm:$0xff] %vm2385_vm4, %v4561_v50  ;;  %v4558_v60 = vadd.f32 %v4542_v58, %v4526_v21  ;;  %8715 = vrcp.f32 (!%p7109_p3), %v4839_v32  ;;  %v4756_v21 = vld [vmem:[#allocation4 + $0x18] sm:$0xff] (!%p7109_p3)  ;;  %7969 = vmatpush3.bf16.msra.mxu0 (!%p7109_p3), %v8613_v29  ;;  %v4755_v58 = vld [vmem:[#allocation4 + $0x10] sm:$0xff] (!%p7109_p3) }
0x130f   : > { %v4545_v45 = vpop.xlane.xlu0 %4544  ;;  %8717 = vrcp.f32 (!%p7109_p3), %v4754_v51  ;;  %7970 = vmatprep.subr.bf16.mxu0 (!%p7109_p3), %v8614_v11  ;;  %v4827_v10 = vld [vmem:[#allocation5 + $0x50] sm:$0xff] (!%p7109_p3)  ;;  %v4828_v32 = vld [vmem:[#allocation5 + $0x58] sm:$0xff] (!%p7109_p3) }
0x1310   : > { %4566 = vst.msk [vmem:[#allocation4 + $0xd8] sm:$0xff] %vm2385_vm4, %v4558_v60  ;;  %v4559_v42 = vadd.f32 %v4545_v45, %v4527_v25  ;;  %8719 = vrcp.f32 (!%p7109_p3), %v4753_v48  ;;  %v4758_v45 = vld [vmem:[#allocation4 + $0x28] sm:$0xff] (!%p7109_p3) }
0x1311   : > { %v4554_v43 = vpop.xlane.xlu1 %4553  ;;  %v8702_v17 = vpop.eup (!%p7109_p3), %8701  ;;  %8721 = vrcp.f32 (!%p7109_p3), %v4756_v21 }
0x1312   : > { %4567 = vst.msk [vmem:[#allocation4 + $0xe0] sm:$0xff] %vm2385_vm4, %v4559_v42  ;;  %v4562_v59 = vadd.f32 %v4554_v43, %v4530_v20  ;;  %v8704_v57 = vpop.eup (!%p7109_p3), %8703  ;;  %4861 = vperm.xlu1 (!%p7109_p3), %8612, %v8702_v17   ;;  %7971 = vmatpush3.bf16.msra.mxu0 (!%p7109_p3), %v8614_v11  ;;  %8723 = vrcp.f32 (!%p7109_p3), %v4755_v58  ;;  %v4757_v42 = vld [vmem:[#allocation4 + $0x20] sm:$0xff] (!%p7109_p3)  ;;  %v4830_v58 = vld [vmem:[#allocation5 + $0x68] sm:$0xff] (!%p7109_p3) }
0x1313   : > { %v8706_v52 = vpop.eup (!%p7109_p3), %8705  ;;  %4851 = vperm.xlu0 (!%p7109_p3), %8611, %v8704_v57   ;;  %8725 = vrcp.f32 (!%p7109_p3), %v4758_v45  ;;  %v4825_v17 = vld [vmem:[#allocation5 + $0x40] sm:$0xff] (!%p7109_p3)  ;;  %v4826_v57 = vld [vmem:[#allocation5 + $0x48] sm:$0xff] (!%p7109_p3) }
0x1314   : > { %4570 = vst.msk [vmem:[#allocation4 + $0xf8] sm:$0xff] %vm2385_vm4, %v4562_v59  ;;  %v8708_v50 = vpop.eup (!%p7109_p3), %8707  ;;  %v11777_v59 = vld [vmem:[#allocation23] sm:$0xff] (!%p7109_p3)   ;;  %8727 = vrcp.f32 (!%p7109_p3), %v4757_v42 }
0x1315   : > { %v4548_v34 = vpop.xlane.xlu1 %4547  ;;  %v8710_v60 = vpop.eup (!%p7109_p3), %8709  ;;  %7980 = vmatprep.subr.bf16.mxu0 (!%p7109_p3), %v11777_v59  ;;  %8729 = vrcp.f32 (!%p7109_p3), %v4760_v23 }
0x1316   : > { %v4560_v4 = vadd.f32 %v4548_v34, %v4528_v27  ;;  %4866 = vperm.xlu1 (!%p7109_p3), %8612, %v8706_v52   ;;  %v8712_v25 = vpop.eup (!%p7109_p3), %8711  ;;  %v4759_v27 = vld [vmem:[#allocation4 + $0x30] sm:$0xff] (!%p7109_p3) }
0x1317   : > { %v4618_v12 = vpop.permute.xlu0 %4617  ;;  %4856 = vperm.xlu0 (!%p7109_p3), %8611, %v8708_v50   ;;  %v8714_v20 = vpop.eup (!%p7109_p3), %8713  ;;  %8731 = vrcp.f32 (!%p7109_p3), %v4759_v27  ;;  %v4832_v27 = vld [vmem:[#allocation5 + $0x78] sm:$0xff] (!%p7109_p3) }
0x1318   : > { %4568 = vst.msk [vmem:[#allocation4 + $0xe8] sm:$0xff] %vm2385_vm4, %v4560_v4  ;;  %v4627_v36 = vmul.f32 %v4618_v12, %v4579_v35  ;;  %v8716_v43 = vpop.eup (!%p7109_p3), %8715  ;;  %8733 = vrcp.f32 (!%p7109_p3), %v5093_v5  ;;  %v5273_v12 = vld [vmem:[#allocation4 + $0xd8] sm:$0xff] (!%p7109_p3) }
0x1319   : > { %v4613_v8 = vpop.permute.xlu1 %4612  ;;  %v8718_v34 = vpop.eup (!%p7109_p3), %8717  ;;  %8735 = vrcp.f32 (!%p7109_p3), %v5092_v2 }
0x131a   : > { %v4626_v22 = vmul.f32 %v4613_v8, %v4578_v19  ;;  %4876 = vperm.xlu1 (!%p7109_p3), %8612, %v8710_v60   ;;  %v8720_v4 = vpop.eup (!%p7109_p3), %8719  ;;  %8737 = vrcp.f32 (!%p7109_p3), %v5095_v14  ;;  %v5271_v8 = vld [vmem:[#allocation4 + $0xc8] sm:$0xff] (!%p7109_p3)  ;;  %v4829_v60 = vld [vmem:[#allocation5 + $0x60] sm:$0xff] (!%p7109_p3) }
0x131b   : > { %4871 = vperm.xlu0 (!%p7109_p3), %8611, %v8712_v25   ;;  %v8722_v41 = vpop.eup (!%p7109_p3), %8721 }
0x131e   : > { %4886 = vperm.xlu1 (!%p7109_p3), %8612, %v8714_v20  }
0x131f   : > { %4881 = vperm.xlu0 (!%p7109_p3), %8611, %v8716_v43   ;;  %v8616_v43 = vld [vmem:[#allocation23 + $0x8] sm:$0xff] (!%p7109_p3)  }
0x1322   : > { %4776 = vperm.xlu1 (!%p7109_p3), %8612, %v8718_v34   ;;  %v4831_v34 = vld [vmem:[#allocation5 + $0x70] sm:$0xff] (!%p7109_p3) }
0x1323   : > { %4771 = vperm.xlu0 (!%p7109_p3), %8611, %v8720_v4  }
0x1326   : > { %4786 = vperm.xlu1 (!%p7109_p3), %8612, %v8722_v41  }
0x133b   : > { %v7962_v16 = vpop.f32.mrb[56].mxu0 }
0x133c   : > { %v4711_v26 = vadd.f32 %v7962_v16, %v4622_v56  ;;  %v4678_v3 = vpop.f32.mrb[57].mxu0  ;;  %v8724_v56 = vpop.eup (!%p7109_p3), %8723 }
0x133d   : > { %v4709_v37 = vadd.f32 %v4678_v3, %v4620_v13  ;;  %v7963_v62 = vpop.f32.mrb[58].mxu0  ;;  %v5094_v13 = vld [vmem:[#allocation4 + $0x90] sm:$0xff] (!%p7109_p3)  ;;  %v8726_v16 = vpop.eup (!%p7109_p3), %8725  ;;  %4781 = vperm.xlu0 (!%p7109_p3), %8611, %v8724_v56   ;;  %v5096_v3 = vld [vmem:[#allocation4 + $0xa0] sm:$0xff] (!%p7109_p3) }
0x133e   : > { %4719 = vst.msk [vmem:[#allocation5 + $0xd0] sm:$0xff] %vm2118_vm2, %v4711_v26  ;;  %v4712_v53 = vadd.f32 %v7963_v62, %v4623_v0  ;;  %v4681_v31 = vpop.f32.mrb[59].mxu0  ;;  %v8728_v0 = vpop.eup (!%p7109_p3), %8727  ;;  %v5097_v26 = vld [vmem:[#allocation4 + $0xa8] sm:$0xff] (!%p7109_p3)  ;;  %4796 = vperm.xlu1 (!%p7109_p3), %8612, %v8726_v16   ;;  %8739 = vrcp.f32 (!%p7109_p3), %v5094_v13  ;;  %v5099_v62 = vld [vmem:[#allocation4 + $0xb8] sm:$0xff] (!%p7109_p3)  ;;  %v8617_v56 = vld [vmem:[#allocation23 + $0x20] sm:$0xff] (!%p7109_p3)  }
0x133f   : > { %4717 = vst.msk [vmem:[#allocation5 + $0xc0] sm:$0xff] %vm2118_vm2, %v4709_v37  ;;  %v4710_v9 = vadd.f32 %v4681_v31, %v4621_v7  ;;  %v8730_v7 = vpop.eup (!%p7109_p3), %8729  ;;  %8741 = vrcp.f32 (!%p7109_p3), %v5097_v26  ;;  %v4746_v13 = vld [vmem:[#allocation5 + $0x8] sm:$0xff] (!%p7109_p3)  ;;  %v4745_v16 = vld [vmem:[#allocation5] sm:$0xff] (!%p7109_p3) }
0x1340   : > { %4720 = vst.msk [vmem:[#allocation5 + $0xd8] sm:$0xff] %vm2118_vm2, %v4712_v53  ;;  %v8732_v37 = vpop.eup (!%p7109_p3), %8731  ;;  %8743 = vrcp.f32 (!%p7109_p3), %v5096_v3  ;;  %v5098_v53 = vld [vmem:[#allocation4 + $0xb0] sm:$0xff] (!%p7109_p3) }
0x1341   : > { %4718 = vst.msk [vmem:[#allocation5 + $0xc8] sm:$0xff] %vm2118_vm2, %v4710_v9  ;;  %4791 = vperm.xlu0 (!%p7109_p3), %8611, %v8728_v0   ;;  %v8734_v31 = vpop.eup (!%p7109_p3), %8733  ;;  %8745 = vrcp.f32 (!%p7109_p3), %v5099_v62  ;;  %v5270_v9 = vld [vmem:[#allocation4 + $0xc0] sm:$0xff] (!%p7109_p3)  ;;  %v4748_v62 = vld [vmem:[#allocation5 + $0x18] sm:$0xff] (!%p7109_p3) }
0x1342   : > { %4806 = vperm.xlu1 (!%p7109_p3), %8612, %v8730_v7   ;;  %v8736_v19 = vpop.eup (!%p7109_p3), %8735  ;;  %8747 = vrcp.f32 (!%p7109_p3), %v5098_v53 }
0x1343   : > { %v7966_v18 = vpop.f32.mrb[60].mxu0  ;;  %4736 = sbr.rel (%p7109_p3) target bundleno = 6152 (0x1808), region = 172  ;;  %v8738_v24 = vpop.eup (!%p7109_p3), %8737  ;;  %8749 = vrcp.f32 (!%p7109_p3), %v5271_v8 }
0x1344   : > { %v4715_v15 = vadd.f32 %v7966_v18, %v4626_v22  ;;  %v4694_v49 = vpop.f32.mrb[61].mxu0  ;;  %8751 = vrcp.f32 (!%p7109_p3), %v5270_v9  ;;  %v5275_v18 = vld [vmem:[#allocation4 + $0xe8] sm:$0xff] (!%p7109_p3) }
0x1345   : > { %v4713_v63 = vadd.f32 %v4694_v49, %v4624_v30  ;;  %v7967_v40 = vpop.f32.mrb[62].mxu0  ;;  %4801 = vperm.xlu0 (!%p7109_p3), %8611, %v8732_v37   ;;  %8753 = vrcp.f32 (!%p7109_p3), %v5273_v12 }
0x1346   : > { %4723 = vst.msk [vmem:[#allocation5 + $0xf0] sm:$0xff] %vm2118_vm2, %v4715_v15  ;;  %v4716_v54 = vadd.f32 %v7967_v40, %v4627_v36  ;;  %v4697_v44 = vpop.f32.mrb[63].mxu0  ;;  %5115 = vperm.xlu1 (!%p7109_p3), %8612, %v8734_v31   ;;  %8755 = vrcp.f32 (!%p7109_p3), %v5272_v28  ;;  %v5274_v36 = vld [vmem:[#allocation4 + $0xe0] sm:$0xff] (!%p7109_p3) }
0x1347   : > { %4721 = vst.msk [vmem:[#allocation5 + $0xe0] sm:$0xff] %vm2118_vm2, %v4713_v63  ;;  %v4714_v1 = vadd.f32 %v4697_v44, %v4625_v39  ;;  %8757 = vrcp.f32 (!%p7109_p3), %v5275_v18  ;;  %v5277_v39 = vld [vmem:[#allocation4 + $0xf8] sm:$0xff] (!%p7109_p3)  ;;  %v5276_v63 = vld [vmem:[#allocation4 + $0xf0] sm:$0xff] (!%p7109_p3) }
0x1348   : > { %4724 = vst.msk [vmem:[#allocation5 + $0xf8] sm:$0xff] %vm2118_vm2, %v4716_v54  ;;  %v8740_v35 = vpop.eup (!%p7109_p3), %8739  ;;  %8759 = vrcp.f32 (!%p7109_p3), %v5274_v36  ;;  %v8618_v18 = vld [vmem:[#allocation23 + $0x28] sm:$0xff] (!%p7109_p3)  }
0x1349   : > { %4722 = vst.msk [vmem:[#allocation5 + $0xe8] sm:$0xff] %vm2118_vm2, %v4714_v1  ;;  %5110 = vperm.xlu0 (!%p7109_p3), %8611, %v8736_v19   ;;  %v8742_v22 = vpop.eup (!%p7109_p3), %8741  ;;  %8761 = vrcp.f32 (!%p7109_p3), %v5277_v39 }
0x134a   : > { %5125 = vperm.xlu1 %8612, %v8738_v24   ;;  %v8744_v30 = vpop.eup %8743  ;;  %8763 = vrcp.f32 %v5276_v63  ;;  %v4750_v24 = vld [vmem:[#allocation5 + $0x28] sm:$0xff] }
0x134b   : > { %v8746_v15 = vpop.eup %8745 }
0x134c   : > { %v8748_v49 = vpop.eup %8747 }
0x134d   : > { %5120 = vperm.xlu0 %8611, %v8740_v35   ;;  %v8750_v40 = vpop.eup %8749  ;;  %v4749_v35 = vld [vmem:[#allocation5 + $0x20] sm:$0xff] }
0x134e   : > { %5135 = vperm.xlu1 %8612, %v8742_v22   ;;  %v8752_v54 = vpop.eup %8751 }
0x134f   : > { %v8754_v44 = vpop.eup %8753 }
0x1350   : > { %v8756_v1 = vpop.eup %8755 }
0x1351   : > { %5130 = vperm.xlu0 %8611, %v8744_v30   ;;  %v8758_v47 = vpop.eup %8757 }
0x1352   : > { %5145 = vperm.xlu1 %8612, %v8746_v15   ;;  %v8760_v33 = vpop.eup %8759  ;;  %v4752_v15 = vld [vmem:[#allocation5 + $0x38] sm:$0xff] }
0x1353   : > { %v8762_v6 = vpop.eup %8761 }
0x1354   : > { %v8764_v46 = vpop.eup %8763 }
0x1355   : > { %5140 = vperm.xlu0 %8611, %v8748_v49   ;;  %v4751_v49 = vld [vmem:[#allocation5 + $0x30] sm:$0xff] }
0x1356   : > { %5293 = vperm.xlu1 %8612, %v8750_v40  }
0x1359   : > { %5288 = vperm.xlu0 %8611, %v8752_v54  }
0x135a   : > { %5303 = vperm.xlu1 %8612, %v8754_v44   ;;  %v8619_v44 = vld [vmem:[#allocation23 + $0x30] sm:$0xff]  }
0x135d   : > { %5298 = vperm.xlu0 %8611, %v8756_v1  }
0x135e   : > { %5313 = vperm.xlu1 %8612, %v8758_v47   ;;  %v5085_v47 = vld [vmem:[#allocation5 + $0x88] sm:$0xff] }
0x1361   : > { %5308 = vperm.xlu0 %8611, %v8760_v33   ;;  %v5084_v33 = vld [vmem:[#allocation5 + $0x80] sm:$0xff] }
0x1362   : > { %5323 = vperm.xlu1 %8612, %v8762_v6  }
0x1365   : > { %5318 = vperm.xlu0 %8611, %v8764_v46  }
0x1391   : > { %v4862_v38 = vpop.permute.xlu1 %4861 }
0x1392   : > { %v4852_v61 = vpop.permute.xlu0 %4851  ;;  %v4891_v29 = vmul.f32 %v4862_v38, %v4827_v10 }
0x1393   : > { %v4889_v50 = vmul.f32 %v4852_v61, %v4825_v17  ;;  %v5086_v17 = vld [vmem:[#allocation5 + $0x90] sm:$0xff] }
0x1395   : > { %v4867_v51 = vpop.permute.xlu1 %4866 }
0x1396   : > { %v4892_v52 = vmul.f32 %v4867_v51, %v4828_v32  ;;  %v4857_v48 = vpop.permute.xlu0 %4856  ;;  %v5087_v32 = vld [vmem:[#allocation5 + $0x98] sm:$0xff] }
0x1397   : > { %v4890_v21 = vmul.f32 %v4857_v48, %v4826_v57 }
0x1398   : > { %v4898_v11 = vpack.c.bf16 %v4892_v52, %v4891_v29 }
0x1399   : > { %v4877_v25 = vpop.permute.xlu1 %4876  ;;  %v4897_v45 = vpack.c.bf16 %v4890_v21, %v4889_v50  ;;  %v5089_v50 = vld [vmem:[#allocation5 + $0xa8] sm:$0xff]  ;;  %v5088_v21 = vld [vmem:[#allocation5 + $0xa0] sm:$0xff] }
0x139a   : > { %v4894_v42 = vmul.f32 %v4877_v25, %v4830_v58  ;;  %v4872_v20 = vpop.permute.xlu0 %4871 }
0x139b   : > { %v4893_v23 = vmul.f32 %v4872_v20, %v4829_v60  ;;  %7972 = vmatprep.mubr.msk.bf16.mxu0 %vm2118_vm2, %v4897_v45  ;;  %v8620_v45 = vld [vmem:[#allocation23 + $0x38] sm:$0xff]   ;;  %v5091_v20 = vld [vmem:[#allocation5 + $0xb8] sm:$0xff] }
0x139c   : > { %7973 = vmatmul.mubr.msk.bf16.vlgmr.msra.gmra.mrb[0].mxu0 %vm2118_vm2, %v4898_v11 }
0x139d   : > { %v4899_v4 = vpack.c.bf16 %v4894_v42, %v4893_v23  ;;  %7981 = vmatpush3.bf16.msra.mxu0 %v11777_v59  ;;  %v4887_v5 = vpop.permute.xlu1 %4886  ;;  %v4747_v59 = vld [vmem:[#allocation5 + $0x10] sm:$0xff] }
0x139e   : > { %v4896_v2 = vmul.f32 %v4887_v5, %v4832_v27  ;;  %v4882_v41 = vpop.permute.xlu0 %4881  ;;  %7982 = vmatprep.subr.bf16.mxu0 %v8616_v43 }
0x139f   : > { %v4895_v14 = vmul.f32 %v4882_v41, %v4831_v34  ;;  %7976 = vmatprep.mubr.msk.bf16.mxu0 %vm2118_vm2, %v4899_v4  ;;  %v5262_v41 = vld [vmem:[#allocation5 + $0xc0] sm:$0xff] }
0x13a1   : > { %v4900_v0 = vpack.c.bf16 %v4896_v2, %v4895_v14  ;;  %v4777_v26 = vpop.permute.xlu1 %4776  ;;  %7983 = vmatpush3.bf16.msra.mxu0 %v8616_v43  ;;  %v5090_v43 = vld [vmem:[#allocation5 + $0xb0] sm:$0xff]  ;;  %v5263_v2 = vld [vmem:[#allocation5 + $0xc8] sm:$0xff] }
0x13a2   : > { %v4810_v3 = vmul.f32 %v4777_v26, %v4746_v13  ;;  %v4772_v7 = vpop.permute.xlu0 %4771  ;;  %7992 = vmatprep.subr.bf16.mxu0 %v8617_v56  ;;  %v5265_v26 = vld [vmem:[#allocation5 + $0xd8] sm:$0xff] }
0x13a3   : > { %v4809_v37 = vmul.f32 %v4772_v7, %v4745_v16 }
0x13a4   : > { %7977 = vmatmul.mubr.msk.bf16.gmra.mrb[4].mxu0 %vm2118_vm2, %v4900_v0 }
0x13a5   : > { %v4817_v53 = vpack.c.bf16 %v4810_v3, %v4809_v37  ;;  %v4787_v31 = vpop.permute.xlu1 %4786  ;;  %v5264_v3 = vld [vmem:[#allocation5 + $0xd0] sm:$0xff] }
0x13a6   : > { %v4812_v19 = vmul.f32 %v4787_v31, %v4748_v62  ;;  %v5267_v31 = vld [vmem:[#allocation5 + $0xe8] sm:$0xff] }
0x13a7   : > { %7984 = vmatprep.mubr.msk.bf16.mxu0 %vm2118_vm2, %v4817_v53 }
0x13bc   : > { %v4782_v8 = vpop.permute.xlu0 %4781 }
0x13bd   : > { %v4811_v9 = vmul.f32 %v4782_v8, %v4747_v59  ;;  %v4797_v28 = vpop.permute.xlu1 %4796 }
0x13be   : > { %v4814_v22 = vmul.f32 %v4797_v28, %v4750_v24  ;;  %v5269_v28 = vld [vmem:[#allocation5 + $0xf8] sm:$0xff] }
0x13bf   : > { %v4818_v12 = vpack.c.bf16 %v4812_v19, %v4811_v9  ;;  %v5266_v19 = vld [vmem:[#allocation5 + $0xe0] sm:$0xff] }
0x13c0   : > { %v4792_v30 = vpop.permute.xlu0 %4791 }
0x13c1   : > { %v4813_v36 = vmul.f32 %v4792_v30, %v4749_v35  ;;  %7985 = vmatmul.mubr.msk.bf16.vlgmr.msra.gmra.mrb[0].mxu0 %vm2118_vm2, %v4818_v12  ;;  %v4807_v63 = vpop.permute.xlu1 %4806 }
0x13c2   : > { %7993 = vmatpush3.bf16.msra.mxu0 %v8617_v56  ;;  %v4816_v40 = vmul.f32 %v4807_v63, %v4752_v15  ;;  %v4737_v63 = vld [vmem:[%s10364_s9] sm:$0xff] }
0x13c3   : > { %v4819_v39 = vpack.c.bf16 %v4814_v22, %v4813_v36  ;;  %7994 = vmatprep.subr.bf16.mxu0 %v8618_v18  ;;  %v5268_v22 = vld [vmem:[#allocation5 + $0xf0] sm:$0xff] }
0x13c4   : > { %v4802_v54 = vpop.permute.xlu0 %4801 }
0x13c5   : > { %v4815_v1 = vmul.f32 %v4802_v54, %v4751_v49  ;;  %7988 = vmatprep.mubr.msk.bf16.mxu0 %vm2118_vm2, %v4819_v39  ;;  %v5116_v46 = vpop.permute.xlu1 %5115  ;;  %v4739_v54 = vld [vmem:[%s10364_s9 + $0x10] sm:$0xff] }
0x13c6   : > { %7995 = vmatpush3.bf16.msra.mxu0 %v8618_v18  ;;  %v5149_v38 = vmul.f32 %v5116_v46, %v5085_v47  ;;  %v4738_v47 = vld [vmem:[%s10364_s9 + $0x8] sm:$0xff] }
0x13c7   : > { %v4820_v6 = vpack.c.bf16 %v4816_v40, %v4815_v1  ;;  %8004 = vmatprep.subr.bf16.mxu0 %v8619_v44 }
0x13c8   : > { %v5111_v61 = vpop.permute.xlu0 %5110 }
0x13c9   : > { %v5148_v10 = vmul.f32 %v5111_v61, %v5084_v33  ;;  %7989 = vmatmul.mubr.msk.bf16.gmra.mrb[4].mxu0 %vm2118_vm2, %v4820_v6  ;;  %v5126_v51 = vpop.permute.xlu1 %5125 }
0x13ca   : > { %v5151_v29 = vmul.f32 %v5126_v51, %v5087_v32  ;;  %v4740_v32 = vld [vmem:[%s10364_s9 + $0x18] sm:$0xff] }
0x13cb   : > { %v5156_v57 = vpack.c.bf16 %v5149_v38, %v5148_v10 }
0x13cc   : > { %v5121_v52 = vpop.permute.xlu0 %5120 }
0x13cd   : > { %v5150_v48 = vmul.f32 %v5121_v52, %v5086_v17  ;;  %7996 = vmatprep.mubr.msk.bf16.mxu0 %vm2118_vm2, %v5156_v57  ;;  %v5136_v11 = vpop.permute.xlu1 %5135  ;;  %v4741_v57 = vld [vmem:[%s10364_s9 + $0x20] sm:$0xff] }
0x13ce   : > { %v5153_v60 = vmul.f32 %v5136_v11, %v5089_v50 }
0x13cf   : > { %v5157_v58 = vpack.c.bf16 %v5151_v29, %v5150_v48  ;;  %v4743_v48 = vld [vmem:[%s10364_s9 + $0x30] sm:$0xff] }
0x13d0   : > { %v5131_v25 = vpop.permute.xlu0 %5130 }
0x13d1   : > { %v5152_v42 = vmul.f32 %v5131_v25, %v5088_v21  ;;  %7997 = vmatmul.mubr.msk.bf16.vlgmr.msra.gmra.mrb[0].mxu0 %vm2118_vm2, %v5157_v58  ;;  %v5146_v27 = vpop.permute.xlu1 %5145  ;;  %v4742_v21 = vld [vmem:[%s10364_s9 + $0x28] sm:$0xff] }
0x13d2   : > { %8005 = vmatpush3.bf16.msra.mxu0 %v8619_v44  ;;  %v5155_v34 = vmul.f32 %v5146_v27, %v5091_v20  ;;  %v7134_v44 = vld [vmem:[#allocation24] ss:$0 sm:$0xff] }
0x13d3   : > { %v5158_v23 = vpack.c.bf16 %v5153_v60, %v5152_v42  ;;  %8006 = vmatprep.subr.bf16.mxu0 %v8620_v45 }
0x13d4   : > { %v5141_v4 = vpop.permute.xlu0 %5140 }
0x13d5   : > { %v5154_v5 = vmul.f32 %v5141_v4, %v5090_v43  ;;  %8000 = vmatprep.mubr.msk.bf16.mxu0 %vm2118_vm2, %v5158_v23  ;;  %v5294_v14 = vpop.permute.xlu1 %5293  ;;  %v4744_v43 = vld [vmem:[%s10364_s9 + $0x38] sm:$0xff] }
0x13d6   : > { %8007 = vmatpush3.bf16.msra.mxu0 %v8620_v45  ;;  %v5327_v13 = vmul.f32 %v5294_v14, %v5263_v2  ;;  %v8623_v2 = vld [vmem:[#allocation29] ss:$16 sps:$4 sm:$0xff]  }
0x13d7   : > { %v5159_v56 = vpack.c.bf16 %v5155_v34, %v5154_v5  ;;  %v8621_v5 = vld [vmem:[#allocation29 + $0x4] ss:$16 sps:$4 sm:$0xff]  }
0x13d8   : > { %v5289_v16 = vpop.permute.xlu0 %5288  ;;  %5799 = vmatprep.subr.bf16.mxu1 %v8621_v5 }
0x13d9   : > { %v5326_v0 = vmul.f32 %v5289_v16, %v5262_v41  ;;  %8001 = vmatmul.mubr.msk.bf16.gmra.mrb[4].mxu0 %vm2118_vm2, %v5159_v56  ;;  %v5304_v37 = vpop.permute.xlu1 %5303  ;;  %v8624_v41 = vld [vmem:[#allocation29 + $0x24] ss:$16 sps:$4 sm:$0xff]   ;;  %5800 = vmatpush1.bf16.msra.mxu1 %v8623_v2  ;;  %v8626_v56 = vld [vmem:[#allocation29 + $0x20] ss:$16 sps:$4 sm:$0xff]  }
0x13da   : > { %v5329_v62 = vmul.f32 %v5304_v37, %v5265_v26  ;;  %5801 = vmatprep.subr.bf16.mxu1 %v8624_v41 }
0x13db   : > { %v5334_v7 = vpack.c.bf16 %v5327_v13, %v5326_v0 }
0x13dc   : > { %v5299_v59 = vpop.permute.xlu0 %5298 }
0x13dd   : > { %v5328_v53 = vmul.f32 %v5299_v59, %v5264_v3  ;;  %8008 = vmatprep.mubr.msk.bf16.mxu0 %vm2118_vm2, %v5334_v7  ;;  %v5314_v9 = vpop.permute.xlu1 %5313  ;;  %5802 = vmatpush1.bf16.msra.mxu1 %v8626_v56 }
0x13de   : > { %v5331_v24 = vmul.f32 %v5314_v9, %v5267_v31 }
0x13df   : > { %v5335_v8 = vpack.c.bf16 %v5329_v62, %v5328_v53 }
0x13e0   : > { %v5309_v35 = vpop.permute.xlu0 %5308 }
0x13e1   : > { %v5330_v12 = vmul.f32 %v5309_v35, %v5266_v19  ;;  %8009 = vmatmul.mubr.msk.bf16.vlgmr.msra.gmra.mrb[0].mxu0 %vm2118_vm2, %v5335_v8  ;;  %v5324_v18 = vpop.permute.xlu1 %5323 }
0x13e2   : > { %v5333_v36 = vmul.f32 %v5324_v18, %v5269_v28 }
0x13e3   : > { %v5336_v30 = vpack.c.bf16 %v5331_v24, %v5330_v12 }
0x13e4   : > { %v5319_v15 = vpop.permute.xlu0 %5318 }
0x13e5   : > { %v5332_v49 = vmul.f32 %v5319_v15, %v5268_v22  ;;  %8012 = vmatprep.mubr.msk.bf16.mxu0 %vm2118_vm2, %v5336_v30 }
0x13e7   : > { %v5337_v39 = vpack.c.bf16 %v5333_v36, %v5332_v49 }
0x13e9   : > { %8013 = vmatmul.mubr.msk.bf16.gmra.mrb[4].mxu0 %vm2118_vm2, %v5337_v39 }
0x14b4   : > { %v8010_v40 = vpop.f32.mrb[0].mxu0 }
0x14b5   : > { %v5401_v1 = vpop.f32.mrb[1].mxu0  ;;  %v5442_v38 = vadd.f32 %v8010_v40, %v4739_v54 }
0x14b6   : > { %v5440_v33 = vadd.f32 %v5401_v1, %v4737_v63  ;;  %v8011_v6 = vpop.f32.mrb[2].mxu0 }
0x14b7   : > { %v5404_v46 = vpop.f32.mrb[3].mxu0  ;;  %v11807_v51 = vadd.f32 %v7134_v44, %v5442_v38  ;;  %v5443_v29 = vadd.f32 %v8011_v6, %v4740_v32  ;;  %v8629_v6 = vld [vmem:[#allocation29 + $0x40] ss:$16 sps:$4 sm:$0xff]  }
0x14b8   : > { %v11800_v61 = vadd.f32 %v7134_v44, %v5440_v33  ;;  %v5441_v10 = vadd.f32 %v5404_v46, %v4738_v47  ;;  %v8627_v47 = vld [vmem:[#allocation29 + $0x44] ss:$16 sps:$4 sm:$0xff]   ;;  %v8632_v38 = vld [vmem:[#allocation29 + $0x60] ss:$16 sps:$4 sm:$0xff]  }
0x14b9   : > { %v11813_v25 = vadd.f32 %v7134_v44, %v5443_v29  ;;  %5803 = vmatprep.subr.bf16.mxu1 %v8627_v47  ;;  %v8630_v46 = vld [vmem:[#allocation29 + $0x64] ss:$16 sps:$4 sm:$0xff]   ;;  %v8635_v32 = vld [vmem:[#allocation29 + $0x80] ss:$16 sps:$4 sm:$0xff]  }
0x14ba   : > { %v11803_v17 = vadd.f32 %v7134_v44, %v5441_v10  ;;  %5465 = vadd.xlane.f32.xlu0 %v11800_v61  ;;  %5804 = vmatpush1.bf16.msra.mxu1 %v8629_v6  ;;  %v8633_v10 = vld [vmem:[#allocation29 + $0x84] ss:$16 sps:$4 sm:$0xff]   ;;  %v8638_v29 = vld [vmem:[#allocation29 + $0xa0] ss:$16 sps:$4 sm:$0xff]  }
0x14bb   : > { %5805 = vmatprep.subr.bf16.mxu1 %v8630_v46 }
0x14bc   : > { %v8014_v52 = vpop.f32.mrb[4].mxu0  ;;  %5467 = vadd.xlane.f32.xlu1 %v11803_v17 }
0x14bd   : > { %v5417_v50 = vpop.f32.mrb[5].mxu0  ;;  %v5446_v45 = vadd.f32 %v8014_v52, %v4743_v48  ;;  %v8639_v52 = vld [vmem:[#allocation29 + $0xc4] ss:$16 sps:$4 sm:$0xff]   ;;  %v8641_v48 = vld [vmem:[#allocation29 + $0xc0] ss:$16 sps:$4 sm:$0xff]  }
0x14be   : > { %v5444_v58 = vadd.f32 %v5417_v50, %v4741_v57  ;;  %v8015_v11 = vpop.f32.mrb[6].mxu0  ;;  %5469 = vadd.xlane.f32.xlu0 %v11807_v51  ;;  %5806 = vmatpush1.bf16.msra.mxu1 %v8632_v38  ;;  %v8636_v57 = vld [vmem:[#allocation29 + $0xa4] ss:$16 sps:$4 sm:$0xff]  }
0x14bf   : > { %v5420_v60 = vpop.f32.mrb[7].mxu0  ;;  %v11820_v23 = vadd.f32 %v7134_v44, %v5446_v45  ;;  %v5447_v27 = vadd.f32 %v8015_v11, %v4744_v43  ;;  %5807 = vmatprep.subr.bf16.mxu1 %v8633_v10  ;;  %v8642_v50 = vld [vmem:[#allocation29 + $0xe4] ss:$16 sps:$4 sm:$0xff]   ;;  %v8650_v10 = vld [vmem:[#allocation29 + $0x2c] ss:$16 sps:$4 sm:$0xff]  }
0x14c0   : > { %v11815_v42 = vadd.f32 %v7134_v44, %v5444_v58  ;;  %v5445_v20 = vadd.f32 %v5420_v60, %v4742_v21  ;;  %v8644_v21 = vld [vmem:[#allocation29 + $0xe0] ss:$16 sps:$4 sm:$0xff]   ;;  %v8647_v58 = vld [vmem:[#allocation29 + $0xc] ss:$16 sps:$4 sm:$0xff]  }
0x14c1   : > { %v11826_v4 = vadd.f32 %v7134_v44, %v5447_v27 }
0x14c2   : > { %5473 = vadd.xlane.f32.xlu1 %v11815_v42  ;;  %5471 = vadd.xlane.f32.xlu0 %v11813_v25  ;;  %v11822_v34 = vadd.f32 %v7134_v44, %v5445_v20 }
0x14c3   : > { %5808 = vmatpush1.bf16.msra.mxu1 %v8635_v32 }
0x14c4   : > { %5809 = vmatprep.subr.bf16.mxu1 %v8636_v57 }
0x14c6   : > { %5477 = vadd.xlane.f32.xlu1 %v11820_v23  ;;  %5475 = vadd.xlane.f32.xlu0 %v11822_v34 }
0x14c7   : > { %5810 = vmatpush1.bf16.msra.mxu1 %v8638_v29  ;;  %v8648_v29 = vld [vmem:[#allocation29 + $0x28] ss:$16 sps:$4 sm:$0xff]  }
0x14c8   : > { %5811 = vmatprep.subr.bf16.mxu1 %v8639_v52 }
0x14ca   : > { %5479 = vadd.xlane.f32.xlu0 %v11826_v4 }
0x14cb   : > { %5812 = vmatpush1.bf16.msra.mxu1 %v8641_v48 }
0x14cc   : > { %5813 = vmatprep.subr.bf16.mxu1 %v8642_v50 }
0x14cf   : > { %5814 = vmatpush1.bf16.msra.mxu1 %v8644_v21 }
0x14d0   : > { %5872 = vmatprep.subr.bf16.mxu1 %v8647_v58 }
0x1547   : > { %v5466_v14 = vpop.xlane.xlu0 %5465 }
0x1548   : > { %v5481_v13 = vmul.f32 0.0078125, %v5466_v14 }
0x1549   : > { %v5468_v16 = vpop.xlane.xlu1 %5467 }
0x154a   : > { %v11830_v0 = vsub.f32 %v11800_v61, %v5481_v13  ;;  %v5482_v26 = vmul.f32 0.0078125, %v5468_v16 }
0x154b   : > { %v5470_v3 = vpop.xlane.xlu0 %5469 }
0x154c   : > { %v11833_v7 = vsub.f32 %v11803_v17, %v5482_v26  ;;  %v5483_v37 = vmul.f32 0.0078125, %v5470_v3  ;;  %v5497_v62 = vmul.f32 %v11830_v0, %v11830_v0 }
0x154e   : > { %v11838_v59 = vsub.f32 %v11807_v51, %v5483_v37  ;;  %5505 = vadd.xlane.f32.xlu1 %v5497_v62  ;;  %v5498_v53 = vmul.f32 %v11833_v7, %v11833_v7 }
0x154f   : > { %v5474_v31 = vpop.xlane.xlu1 %5473  ;;  %v5472_v19 = vpop.xlane.xlu0 %5471 }
0x1550   : > { %v5485_v8 = vmul.f32 0.0078125, %v5474_v31  ;;  %v5484_v9 = vmul.f32 0.0078125, %v5472_v19  ;;  %5507 = vadd.xlane.f32.xlu0 %v5498_v53  ;;  %v5499_v24 = vmul.f32 %v11838_v59, %v11838_v59 }
0x1552   : > { %v11845_v35 = vsub.f32 %v11815_v42, %v5485_v8  ;;  %v11848_v12 = vsub.f32 %v11813_v25, %v5484_v9  ;;  %5509 = vadd.xlane.f32.xlu1 %v5499_v24  ;;  %v11869_v8 = vld [vmem:[#allocation26] ss:$0 sm:$0xff] }
0x1553   : > { %v5478_v28 = vpop.xlane.xlu1 %5477  ;;  %v5476_v22 = vpop.xlane.xlu0 %5475 }
0x1554   : > { %v5487_v30 = vmul.f32 0.0078125, %v5478_v28  ;;  %v5486_v18 = vmul.f32 0.0078125, %v5476_v22  ;;  %v5501_v36 = vmul.f32 %v11845_v35, %v11845_v35  ;;  %v5500_v15 = vmul.f32 %v11848_v12, %v11848_v12 }
0x1556   : > { %v11855_v49 = vsub.f32 %v11820_v23, %v5487_v30  ;;  %v11858_v39 = vsub.f32 %v11822_v34, %v5486_v18  ;;  %5513 = vadd.xlane.f32.xlu1 %v5501_v36  ;;  %5511 = vadd.xlane.f32.xlu0 %v5500_v15 }
0x1557   : > { %v5480_v63 = vpop.xlane.xlu0 %5479 }
0x1558   : > { %v5488_v40 = vmul.f32 0.0078125, %v5480_v63  ;;  %v5503_v54 = vmul.f32 %v11855_v49, %v11855_v49  ;;  %v5502_v44 = vmul.f32 %v11858_v39, %v11858_v39 }
0x155a   : > { %v11865_v1 = vsub.f32 %v11826_v4, %v5488_v40  ;;  %5517 = vadd.xlane.f32.xlu1 %v5503_v54  ;;  %5515 = vadd.xlane.f32.xlu0 %v5502_v44  ;;  %v7136_v40 = vld [vmem:[#allocation27] ss:$0 sm:$0xff] }
0x155c   : > { %v5504_v33 = vmul.f32 %v11865_v1, %v11865_v1 }
0x155e   : > { %5519 = vadd.xlane.f32.xlu0 %v5504_v33 }
0x15db   : > { %v5506_v11 = vpop.xlane.xlu1 %5505 }
0x15dc   : > { %v5521_v60 = vmul.f32 0.0078125, %v5506_v11 }
0x15dd   : > { %v5508_v45 = vpop.xlane.xlu0 %5507 }
0x15de   : > { %v5529_v20 = vadd.f32 1e-05, %v5521_v60  ;;  %v5522_v43 = vmul.f32 0.0078125, %v5508_v45  ;;  %v8656_v45 = vld [vmem:[#allocation29 + $0x6c] ss:$16 sps:$4 sm:$0xff]  }
0x15df   : > { %v5510_v27 = vpop.xlane.xlu1 %5509 }
0x15e0   : > { %8765 = vrsqrt.f32 %v5529_v20  ;;  %v5530_v5 = vadd.f32 1e-05, %v5522_v43  ;;  %v5523_v2 = vmul.f32 0.0078125, %v5510_v27 }
0x15e2   : > { %8767 = vrsqrt.f32 %v5530_v5  ;;  %v5531_v41 = vadd.f32 1e-05, %v5523_v2  ;;  %v8654_v2 = vld [vmem:[#allocation29 + $0x68] ss:$16 sps:$4 sm:$0xff]  }
0x15e3   : > { %v5514_v56 = vpop.xlane.xlu1 %5513  ;;  %v5512_v14 = vpop.xlane.xlu0 %5511 }
0x15e4   : > { %8769 = vrsqrt.f32 %v5531_v41  ;;  %v5525_v13 = vmul.f32 0.0078125, %v5514_v56  ;;  %v5524_v16 = vmul.f32 0.0078125, %v5512_v14 }
0x15e6   : > { %v5532_v26 = vadd.f32 1e-05, %v5524_v16  ;;  %v5533_v37 = vadd.f32 1e-05, %v5525_v13  ;;  %v8657_v13 = vld [vmem:[#allocation29 + $0x88] ss:$16 sps:$4 sm:$0xff]  }
0x15e7   : > { %v5516_v3 = vpop.xlane.xlu0 %5515  ;;  %v5518_v53 = vpop.xlane.xlu1 %5517 }
0x15e8   : > { %v5526_v62 = vmul.f32 0.0078125, %v5516_v3  ;;  %8771 = vrsqrt.f32 %v5532_v26  ;;  %v5527_v22 = vmul.f32 0.0078125, %v5518_v53  ;;  %v8662_v26 = vld [vmem:[#allocation29 + $0xac] ss:$16 sps:$4 sm:$0xff]  }
0x15e9   : > { %8773 = vrsqrt.f32 %v5533_v37  ;;  %v8665_v53 = vld [vmem:[#allocation29 + $0xcc] ss:$16 sps:$4 sm:$0xff]  }
0x15ea   : > { %v8766_v31 = vpop.eup %8765  ;;  %v5534_v19 = vadd.f32 1e-05, %v5526_v62  ;;  %v5535_v44 = vadd.f32 1e-05, %v5527_v22  ;;  %v8660_v62 = vld [vmem:[#allocation29 + $0xa8] ss:$16 sps:$4 sm:$0xff]  }
0x15eb   : > { %v5520_v9 = vpop.xlane.xlu0 %5519  ;;  %v5545_v24 = vmul.f32 %v8766_v31, %v11830_v0  ;;  %v8645_v0 = vld [vmem:[#allocation29 + $0x8] ss:$16 sps:$4 sm:$0xff]   ;;  %v8671_v22 = vld [vmem:[#allocation32 + $0x48] sm:$0xff]  }
0x15ec   : > { %v8768_v28 = vpop.eup %8767  ;;  %v5528_v30 = vmul.f32 0.0078125, %v5520_v9  ;;  %8775 = vrsqrt.f32 %v5534_v19  ;;  %v8668_v9 = vld [vmem:[#allocation29 + $0xec] ss:$16 sps:$4 sm:$0xff]  }
0x15ed   : > { %v5546_v18 = vmul.f32 %v8768_v28, %v11833_v7  ;;  %v5559_v36 = vmul.f32 %v11869_v8, %v5545_v24  ;;  %v8666_v24 = vld [vmem:[#allocation29 + $0xe8] ss:$16 sps:$4 sm:$0xff]  }
0x15ee   : > { %v8770_v15 = vpop.eup %8769  ;;  %v5536_v63 = vadd.f32 1e-05, %v5528_v30  ;;  %v8670_v28 = vld [vmem:[#allocation32] sm:$0xff]   ;;  %v8672_v30 = vld [vmem:[#allocation32 + $0x8] sm:$0xff]  }
0x15ef   : > { %v5560_v54 = vmul.f32 %v11869_v8, %v5546_v18  ;;  %v5573_v47 = vadd.f32 %v7136_v40, %v5559_v36  ;;  %v5547_v6 = vmul.f32 %v8770_v15, %v11838_v59  ;;  %v8653_v59 = vld [vmem:[#allocation29 + $0x4c] ss:$16 sps:$4 sm:$0xff]   ;;  %v8673_v18 = vld [vmem:[#allocation32 + $0x50] sm:$0xff]  }
0x15f0   : > { %8777 = vrsqrt.f32 %v5536_v63  ;;  %v8674_v36 = vld [vmem:[#allocation32 + $0x10] sm:$0xff]   ;;  %v8675_v15 = vld [vmem:[#allocation32 + $0x58] sm:$0xff]  }
0x15f1   : > { %v5574_v33 = vadd.f32 %v7136_v40, %v5560_v54  ;;  %8779 = vrsqrt.f32 %v5535_v44  ;;  %v5561_v32 = vmul.f32 %v11869_v8, %v5547_v6  ;;  %v8676_v63 = vld [vmem:[#allocation32 + $0x18] sm:$0xff]   ;;  %v8678_v54 = vld [vmem:[#allocation32 + $0x20] sm:$0xff]   ;;  %v8680_v44 = vld [vmem:[#allocation32 + $0x28] sm:$0xff]  }
0x15f2   : > { %v8772_v46 = vpop.eup %8771  ;;  %v8683_v6 = vld [vmem:[#allocation32 + $0x78] sm:$0xff]  }
0x15f3   : > { %v5581_v38 = vpack.c.bf16 %v5574_v33, %v5573_v47  ;;  %v5548_v7 = vmul.f32 %v8772_v46, %v11848_v12  ;;  %v8774_v57 = vpop.eup %8773  ;;  %v5575_v58 = vadd.f32 %v7136_v40, %v5561_v32  ;;  %v8651_v12 = vld [vmem:[#allocation29 + $0x48] ss:$16 sps:$4 sm:$0xff]  }
0x15f4   : > { %v5549_v11 = vmul.f32 %v8774_v57, %v11845_v35  ;;  %v8681_v47 = vld [vmem:[#allocation32 + $0x70] sm:$0xff]   ;;  %v8685_v46 = vld [vmem:[#allocation32 + $0xc0] sm:$0xff]  }
0x15f5   : > { %5832 = vmatmul.mubr.bf16.vlgmr.msra.gmra.mrb[0].mxu1 %v5581_v38  ;;  %v5562_v52 = vmul.f32 %v11869_v8, %v5548_v7  ;;  %v8682_v33 = vld [vmem:[#allocation32 + $0x30] sm:$0xff]   ;;  %v8688_v7 = vld [vmem:[#allocation32 + $0x88] sm:$0xff]  }
0x15f6   : > { %5873 = vmatpush1.bf16.msra.mxu1 %v8645_v0  ;;  %5841 = vmatprep.mubr.bf16.mxu1 %v9625_v55  ;;  %v8776_v48 = vpop.eup %8775  ;;  %v5563_v27 = vmul.f32 %v11869_v8, %v5549_v11  ;;  %v8684_v0 = vld [vmem:[#allocation32 + $0x38] sm:$0xff]   ;;  %v8689_v32 = vld [vmem:[#allocation32 + $0xd0] sm:$0xff]  }
0x15f7   : > { %5874 = vmatprep.subr.bf16.mxu1 %v8650_v10  ;;  %v5576_v50 = vadd.f32 %v7136_v40, %v5562_v52  ;;  %v5550_v21 = vmul.f32 %v8776_v48, %v11858_v39  ;;  %v8659_v39 = vld [vmem:[#allocation29 + $0x8c] ss:$16 sps:$4 sm:$0xff]   ;;  %v8690_v57 = vld [vmem:[#allocation32 + $0x90] sm:$0xff]   ;;  %v8693_v48 = vld [vmem:[#allocation32 + $0xe0] sm:$0xff]  }
0x15f8   : > { %v5577_v56 = vadd.f32 %v7136_v40, %v5563_v27  ;;  %v8687_v10 = vld [vmem:[#allocation32 + $0xc8] sm:$0xff]   ;;  %v8692_v52 = vld [vmem:[#allocation32 + $0x98] sm:$0xff]   ;;  %v8698_v11 = vld [vmem:[#allocation32 + $0xb0] sm:$0xff]  }
0x15f9   : > { %v5582_v60 = vpack.c.bf16 %v5576_v50, %v5575_v58  ;;  %v5564_v20 = vmul.f32 %v11869_v8, %v5550_v21  ;;  %v8695_v50 = vld [vmem:[#allocation32 + $0xe8] sm:$0xff]   ;;  %v8697_v58 = vld [vmem:[#allocation32 + $0xf0] sm:$0xff]   ;;  %v11897_v27 = vld [vmem:[#allocation30] sm:$0xf] }
0x15fa   : > { %5875 = vmatpush1.bf16.msra.mxu1 %v8648_v29  ;;  %v8778_v43 = vpop.eup %8777  ;;  %v8691_v29 = vld [vmem:[#allocation32 + $0xd8] sm:$0xff]   ;;  %v8696_v21 = vld [vmem:[#allocation32 + $0xa8] sm:$0xff]  }
0x15fb   : > { %5876 = vmatprep.subr.bf16.mxu1 %v8653_v59  ;;  %v8780_v5 = vpop.eup %8779  ;;  %v5578_v41 = vadd.f32 %v7136_v40, %v5564_v20  ;;  %v5552_v35 = vmul.f32 %v8778_v43, %v11865_v1  ;;  %v8694_v59 = vld [vmem:[#allocation32 + $0xa0] sm:$0xff]  }
0x15fc   : > { %v5551_v14 = vmul.f32 %v8780_v5, %v11855_v49  ;;  %v8663_v49 = vld [vmem:[#allocation29 + $0xc8] ss:$16 sps:$4 sm:$0xff]  }
0x15fd   : > { %5842 = vmatmul.mubr.bf16.gmra.mrb[4].mxu1 %v5582_v60  ;;  %v5583_v16 = vpack.c.bf16 %v5578_v41, %v5577_v56  ;;  %v5566_v3 = vmul.f32 %v11869_v8, %v5552_v35 }
0x15fe   : > { %5877 = vmatpush1.bf16.msra.mxu1 %v8651_v12  ;;  %5851 = vmatprep.mubr.bf16.mxu1 %v9625_v55  ;;  %v5565_v37 = vmul.f32 %v11869_v8, %v5551_v14  ;;  %v8669_v8 = vld [vmem:[#allocation32 + $0x40] sm:$0xff]   ;;  %v8699_v12 = vld [vmem:[#allocation32 + $0xf8] sm:$0xff]  }
0x15ff   : > { %5878 = vmatprep.subr.bf16.mxu1 %v8656_v45  ;;  %v5580_v1 = vadd.f32 %v7136_v40, %v5566_v3  ;;  %7472 = vmatprep.subr.bf16.mxu0 %v8669_v8  ;;  %v5619_v45 = vlaneseq }
0x1600   : > { %v5579_v31 = vadd.f32 %v7136_v40, %v5565_v37  ;;  %7473 = vmatpush3.bf16.msra.mxu0 %v8670_v28  ;;  %v8677_v40 = vld [vmem:[#allocation32 + $0x60] sm:$0xff]  }
0x1601   : > { %7474 = vmatprep.subr.bf16.mxu0 %v8671_v22  ;;  %v11894_v20 = vshrl.u32 %v5619_v45, 7 }
0x1602   : > { %5879 = vmatpush1.bf16.msra.mxu1 %v8654_v2  ;;  %v5584_v19 = vpack.c.bf16 %v5580_v1, %v5579_v31 }
0x1603   : > { %5880 = vmatprep.subr.bf16.mxu1 %v8659_v39  ;;  %v5621_v43 = vsub.s32 0, %v11894_v20  ;;  %v5625_v5 = vsub.s32 1, %v11894_v20 }
0x1604   : > { %7475 = vmatpush3.bf16.msra.mxu0 %v8672_v30 }
0x1605   : > { %5852 = vmatmul.mubr.bf16.gmra.mrb[8].mxu1 %v5583_v16  ;;  %7476 = vmatprep.subr.bf16.mxu0 %v8673_v18  ;;  %v11901_v2 = vrot.slane %v11897_v27, %v5621_v43  ;;  %v11904_v39 = vrot.slane %v11897_v27, %v5625_v5 }
0x1606   : > { %5881 = vmatpush1.bf16.msra.mxu1 %v8657_v13  ;;  %5861 = vmatprep.mubr.bf16.mxu1 %v9625_v55 }
0x1607   : > { %5882 = vmatprep.subr.bf16.mxu1 %v8662_v26 }
0x1608   : > { %7477 = vmatpush3.bf16.msra.mxu0 %v8674_v36 }
0x1609   : > { %7478 = vmatprep.subr.bf16.mxu0 %v8675_v15 }
0x160a   : > { %5883 = vmatpush1.bf16.msra.mxu1 %v8660_v62 }
0x160b   : > { %5884 = vmatprep.subr.bf16.mxu1 %v8665_v53 }
0x160c   : > { %7479 = vmatpush3.bf16.msra.mxu0 %v8676_v63 }
0x160d   : > { %5862 = vmatmul.mubr.bf16.gmra.mrb[12].mxu1 %v5584_v19  ;;  %7480 = vmatprep.subr.bf16.mxu0 %v8677_v40 }
0x160e   : > { %5885 = vmatpush1.bf16.msra.mxu1 %v8663_v49  ;;  %5904 = vmatprep.mubr.bf16.mxu1 %v9625_v55 }
0x160f   : > { %5886 = vmatprep.subr.bf16.mxu1 %v8668_v9 }
0x1610   : > { %7481 = vmatpush3.bf16.msra.mxu0 %v8678_v54 }
0x1612   : > { %5887 = vmatpush1.bf16.msra.mxu1 %v8666_v24 }
0x1613   : > { %7512 = vmatprep.subr.bf16.mxu1 %v8685_v46 }
0x1615   : > { %5905 = vmatmul.mubr.bf16.vlgmr.msra.gmra.mrb[16].mxu1 %v5581_v38  ;;  %v8686_v38 = vld [vmem:[#allocation32 + $0x80] sm:$0xff]  }
0x1616   : > { %5914 = vmatprep.mubr.bf16.mxu1 %v9625_v55  ;;  %7513 = vmatpush3.bf16.msra.mxu1 %v8686_v38 }
0x1617   : > { %7514 = vmatprep.subr.bf16.mxu1 %v8687_v10 }
0x161a   : > { %7515 = vmatpush3.bf16.msra.mxu1 %v8688_v7 }
0x161b   : > { %7516 = vmatprep.subr.bf16.mxu1 %v8689_v32 }
0x161d   : > { %5915 = vmatmul.mubr.bf16.gmra.mrb[20].mxu1 %v5582_v60  ;;  %v8700_v60 = vld [vmem:[#allocation32 + $0xb8] sm:$0xff]  }
0x161e   : > { %5924 = vmatprep.mubr.bf16.mxu1 %v9625_v55  ;;  %7517 = vmatpush3.bf16.msra.mxu1 %v8690_v57 }
0x161f   : > { %7518 = vmatprep.subr.bf16.mxu1 %v8691_v29 }
0x1622   : > { %7519 = vmatpush3.bf16.msra.mxu1 %v8692_v52 }
0x1623   : > { %7520 = vmatprep.subr.bf16.mxu1 %v8693_v48 }
0x1625   : > { %5925 = vmatmul.mubr.bf16.gmra.mrb[24].mxu1 %v5583_v16 }
0x1626   : > { %5934 = vmatprep.mubr.bf16.mxu1 %v9625_v55  ;;  %v8679_v55 = vld [vmem:[#allocation32 + $0x68] sm:$0xff]   ;;  %7521 = vmatpush3.bf16.msra.mxu1 %v8694_v59 }
0x1627   : > { %7482 = vmatprep.subr.bf16.mxu0 %v8679_v55  ;;  %7522 = vmatprep.subr.bf16.mxu1 %v8695_v50 }
0x1628   : > { %7483 = vmatpush3.bf16.msra.mxu0 %v8680_v44 }
0x1629   : > { %7484 = vmatprep.subr.bf16.mxu0 %v8681_v47 }
0x162a   : > { %7523 = vmatpush3.bf16.msra.mxu1 %v8696_v21 }
0x162b   : > { %7524 = vmatprep.subr.bf16.mxu1 %v8697_v58  ;;  %v5629_v58 = vsub.s32 2, %v11894_v20 }
0x162c   : > { %7485 = vmatpush3.bf16.msra.mxu0 %v8682_v33 }
0x162d   : > { %5935 = vmatmul.mubr.bf16.gmra.mrb[28].mxu1 %v5584_v19  ;;  %7486 = vmatprep.subr.bf16.mxu0 %v8683_v6 }
0x162e   : > { %7525 = vmatpush3.bf16.msra.mxu1 %v8698_v11 }
0x162f   : > { %7526 = vmatprep.subr.bf16.mxu1 %v8699_v12 }
0x1630   : > { %7487 = vmatpush3.bf16.msra.mxu0 %v8684_v0 }
0x1632   : > { %7527 = vmatpush3.bf16.msra.mxu1 %v8700_v60 }
0x16c8   : > { %v5833_v41 = vpop.f32.mrb[0].mxu1 }
0x16c9   : > { %v11907_v35 = vadd.f32 %v5833_v41, %v11901_v2  ;;  %v5835_v56 = vpop.f32.mrb[1].mxu1 }
0x16ca   : > { %v11910_v14 = vadd.f32 %v5835_v56, %v11904_v39  ;;  %v5837_v13 = vpop.f32.mrb[2].mxu1 }
0x16cb   : > { %v7169_v16 = vmul.f32 -1.702, %v11907_v35  ;;  %v11914_v26 = vadd.f32 %v5837_v13, %v11901_v2  ;;  %v5839_v3 = vpop.f32.mrb[3].mxu1 }
0x16cc   : > { %v7170_v37 = vmul.f32 -1.702, %v11910_v14  ;;  %v11918_v62 = vadd.f32 %v5839_v3, %v11904_v39 }
0x16cd   : > { %v6009_v53 = vmul.f32 1.442695, %v7169_v16  ;;  %v7173_v1 = vmul.f32 -1.702, %v11914_v26 }
0x16ce   : > { %v6011_v31 = vmul.f32 1.442695, %v7170_v37  ;;  %v7174_v49 = vmul.f32 -1.702, %v11918_v62 }
0x16cf   : > { %8781 = vpow2.f32 %v6009_v53  ;;  %v6017_v19 = vmul.f32 1.442695, %v7173_v1 }
0x16d0   : > { %8783 = vpow2.f32 %v6011_v31  ;;  %v6019_v9 = vmul.f32 1.442695, %v7174_v49  ;;  %v5843_v24 = vpop.f32.mrb[4].mxu1  ;;  %v11959_v49 = vrot.slane %v11897_v27, %v5629_v58 }
0x16d1   : > { %8785 = vpow2.f32 %v6017_v19  ;;  %v11923_v8 = vadd.f32 %v5843_v24, %v11901_v2  ;;  %v5845_v28 = vpop.f32.mrb[5].mxu1 }
0x16d2   : > { %8787 = vpow2.f32 %v6019_v9  ;;  %v11926_v22 = vadd.f32 %v5845_v28, %v11904_v39  ;;  %v5847_v30 = vpop.f32.mrb[6].mxu1 }
0x16d3   : > { %v7177_v18 = vmul.f32 -1.702, %v11923_v8  ;;  %v11930_v36 = vadd.f32 %v5847_v30, %v11901_v2  ;;  %v5849_v15 = vpop.f32.mrb[7].mxu1  ;;  %v5633_v30 = vsub.s32 3, %v11894_v20 }
0x16d4   : > { %v7178_v63 = vmul.f32 -1.702, %v11926_v22  ;;  %v11934_v40 = vadd.f32 %v5849_v15, %v11904_v39 }
0x16d5   : > { %v6025_v54 = vmul.f32 1.442695, %v7177_v18  ;;  %v7181_v55 = vmul.f32 -1.702, %v11930_v36 }
0x16d6   : > { %v6027_v44 = vmul.f32 1.442695, %v7178_v63  ;;  %v7182_v47 = vmul.f32 -1.702, %v11934_v40 }
0x16d7   : > { %8789 = vpow2.f32 %v6025_v54  ;;  %v6033_v33 = vmul.f32 1.442695, %v7181_v55 }
0x16d8   : > { %8791 = vpow2.f32 %v6027_v44  ;;  %v6035_v6 = vmul.f32 1.442695, %v7182_v47  ;;  %v5853_v0 = vpop.f32.mrb[8].mxu1 }
0x16d9   : > { %v8782_v46 = vpop.eup %8781  ;;  %8793 = vpow2.f32 %v6033_v33  ;;  %v11939_v38 = vadd.f32 %v5853_v0, %v11901_v2  ;;  %v5855_v10 = vpop.f32.mrb[9].mxu1 }
0x16da   : > { %v8784_v7 = vpop.eup %8783  ;;  %v6073_v32 = vadd.f32 1.0, %v8782_v46  ;;  %8795 = vpow2.f32 %v6035_v6  ;;  %v11942_v57 = vadd.f32 %v5855_v10, %v11904_v39  ;;  %v5857_v29 = vpop.f32.mrb[10].mxu1 }
0x16db   : > { %v8786_v52 = vpop.eup %8785  ;;  %v6074_v48 = vadd.f32 1.0, %v8784_v7  ;;  %v7185_v59 = vmul.f32 -1.702, %v11939_v38  ;;  %v11946_v50 = vadd.f32 %v5857_v29, %v11901_v2  ;;  %v5859_v21 = vpop.f32.mrb[11].mxu1 }
0x16dc   : > { %v8788_v11 = vpop.eup %8787  ;;  %8797 = vrcp.f32 %v6073_v32  ;;  %v6077_v12 = vadd.f32 1.0, %v8786_v52  ;;  %v7186_v60 = vmul.f32 -1.702, %v11942_v57  ;;  %v11951_v45 = vadd.f32 %v5859_v21, %v11904_v39 }
0x16dd   : > { %8799 = vrcp.f32 %v6074_v48  ;;  %v6078_v43 = vadd.f32 1.0, %v8788_v11  ;;  %v6041_v5 = vmul.f32 1.442695, %v7185_v59  ;;  %v7189_v41 = vmul.f32 -1.702, %v11946_v50 }
0x16de   : > { %8801 = vrcp.f32 %v6077_v12  ;;  %v6043_v56 = vmul.f32 1.442695, %v7186_v60  ;;  %v7190_v13 = vmul.f32 -1.702, %v11951_v45  ;;  %v11976_v32 = vrot.slane %v11897_v27, %v5633_v30 }
0x16df   : > { %8803 = vrcp.f32 %v6078_v43  ;;  %v6049_v16 = vmul.f32 1.442695, %v7189_v41 }
0x16e0   : > { %8805 = vpow2.f32 %v6041_v5  ;;  %v6051_v3 = vmul.f32 1.442695, %v7190_v13  ;;  %v5863_v37 = vpop.f32.mrb[12].mxu1 }
0x16e1   : > { %v8790_v53 = vpop.eup %8789  ;;  %8807 = vpow2.f32 %v6043_v56  ;;  %v11956_v1 = vadd.f32 %v5863_v37, %v11901_v2  ;;  %v5865_v31 = vpop.f32.mrb[13].mxu1 }
0x16e2   : > { %v8792_v19 = vpop.eup %8791  ;;  %v6081_v9 = vadd.f32 1.0, %v8790_v53  ;;  %8809 = vpow2.f32 %v6049_v16  ;;  %v11962_v24 = vadd.f32 %v5865_v31, %v11904_v39  ;;  %v5867_v28 = vpop.f32.mrb[14].mxu1 }
0x16e3   : > { %v8794_v18 = vpop.eup %8793  ;;  %v6082_v15 = vadd.f32 1.0, %v8792_v19  ;;  %8811 = vpow2.f32 %v6051_v3  ;;  %v7193_v63 = vmul.f32 -1.702, %v11956_v1  ;;  %v11967_v54 = vadd.f32 %v5867_v28, %v11901_v2  ;;  %v5869_v55 = vpop.f32.mrb[15].mxu1 }
0x16e4   : > { %v8796_v44 = vpop.eup %8795  ;;  %8813 = vrcp.f32 %v6081_v9  ;;  %v6085_v47 = vadd.f32 1.0, %v8794_v18  ;;  %v7194_v33 = vmul.f32 -1.702, %v11962_v24  ;;  %v11971_v6 = vadd.f32 %v5869_v55, %v11904_v39 }
0x16e5   : > { %8815 = vrcp.f32 %v6082_v15  ;;  %v6086_v0 = vadd.f32 1.0, %v8796_v44  ;;  %v6057_v20 = vmul.f32 1.442695, %v7193_v63  ;;  %v7197_v46 = vmul.f32 -1.702, %v11967_v54 }
0x16e6   : > { %v8798_v10 = vpop.eup %8797  ;;  %8817 = vrcp.f32 %v6085_v47  ;;  %v6059_v7 = vmul.f32 1.442695, %v7194_v33  ;;  %v7198_v2 = vmul.f32 -1.702, %v11971_v6 }
0x16e7   : > { %v8800_v29 = vpop.eup %8799  ;;  %8819 = vrcp.f32 %v6086_v0  ;;  %v6065_v52 = vmul.f32 1.442695, %v7197_v46  ;;  %v6169_v58 = vmul.f32 %v8798_v10, %v11907_v35 }
0x16e8   : > { %v8802_v48 = vpop.eup %8801  ;;  %8821 = vpow2.f32 %v6057_v20  ;;  %v6067_v39 = vmul.f32 1.442695, %v7198_v2  ;;  %v5906_v59 = vpop.f32.mrb[16].mxu1  ;;  %v6170_v27 = vmul.f32 %v8800_v29, %v11910_v14 }
0x16e9   : > { %v8804_v21 = vpop.eup %8803  ;;  %v6173_v11 = vmul.f32 %v8802_v48, %v11914_v26  ;;  %8823 = vpow2.f32 %v6059_v7  ;;  %v11981_v12 = vadd.f32 %v5906_v59, %v11959_v49  ;;  %v5908_v60 = vpop.f32.mrb[17].mxu1 }
0x16ea   : > { %v8806_v43 = vpop.eup %8805  ;;  %v6174_v5 = vmul.f32 %v8804_v21, %v11918_v62  ;;  %8825 = vpow2.f32 %v6065_v52  ;;  %v11986_v41 = vadd.f32 %v5908_v60, %v11976_v32  ;;  %v5910_v56 = vpop.f32.mrb[18].mxu1 }
0x16eb   : > { %v8808_v13 = vpop.eup %8807  ;;  %v6201_v16 = vpack.c.bf16 %v6173_v11, %v6169_v58  ;;  %v6089_v35 = vadd.f32 1.0, %v8806_v43  ;;  %8827 = vpow2.f32 %v6067_v39  ;;  %v7171_v26 = vmul.f32 -1.702, %v11981_v12  ;;  %v5912_v3 = vpop.f32.mrb[19].mxu1 }
0x16ec   : > { %v8810_v37 = vpop.eup %8809  ;;  %v6090_v53 = vadd.f32 1.0, %v8808_v13  ;;  %v7172_v31 = vmul.f32 -1.702, %v11986_v41  ;;  %v11991_v14 = vadd.f32 %v5910_v56, %v11959_v49  ;;  %v11994_v62 = vadd.f32 %v5912_v3, %v11976_v32 }
0x16ed   : > { %v8812_v19 = vpop.eup %8811  ;;  %8829 = vrcp.f32 %v6089_v35  ;;  %v6093_v9 = vadd.f32 1.0, %v8810_v37  ;;  %v6013_v28 = vmul.f32 1.442695, %v7171_v26  ;;  %v6202_v30 = vpack.c.bf16 %v6174_v5, %v6170_v27 }
0x16ee   : > { %v8814_v18 = vpop.eup %8813  ;;  %8831 = vrcp.f32 %v6090_v53  ;;  %v6094_v15 = vadd.f32 1.0, %v8812_v19  ;;  %v6015_v63 = vmul.f32 1.442695, %v7172_v31  ;;  %v7175_v55 = vmul.f32 -1.702, %v11991_v14 }
0x16ef   : > { %v8816_v44 = vpop.eup %8815  ;;  %8833 = vrcp.f32 %v6093_v9  ;;  %v7176_v47 = vmul.f32 -1.702, %v11994_v62  ;;  %6512 = vmatprep.mubr.bf16.mxu0 %v6202_v30  ;;  %v6177_v0 = vmul.f32 %v8814_v18, %v11923_v8 }
0x16f0   : > { %v8818_v33 = vpop.eup %8817  ;;  %8835 = vrcp.f32 %v6094_v15  ;;  %v6021_v20 = vmul.f32 1.442695, %v7175_v55  ;;  %6513 = vmatmul.mubr.bf16.vlgmr.msra.gmra.mrb[8].mxu0 %v6201_v16  ;;  %v5916_v46 = vpop.f32.mrb[20].mxu1  ;;  %v6178_v7 = vmul.f32 %v8816_v44, %v11926_v22 }
0x16f1   : > { %v8820_v10 = vpop.eup %8819  ;;  %8837 = vpow2.f32 %v6013_v28  ;;  %v6023_v2 = vmul.f32 1.442695, %v7176_v47  ;;  %v12001_v29 = vadd.f32 %v5916_v46, %v11959_v49  ;;  %v5918_v52 = vpop.f32.mrb[21].mxu1  ;;  %v6181_v39 = vmul.f32 %v8818_v33, %v11930_v36 }
0x16f2   : > { %v8822_v48 = vpop.eup %8821  ;;  %v6182_v59 = vmul.f32 %v8820_v10, %v11934_v40  ;;  %8839 = vpow2.f32 %v6015_v63  ;;  %v12006_v8 = vadd.f32 %v5918_v52, %v11976_v32  ;;  %v5920_v21 = vpop.f32.mrb[22].mxu1 }
0x16f3   : > { %v8824_v58 = vpop.eup %8823  ;;  %v6097_v11 = vadd.f32 1.0, %v8822_v48  ;;  %8841 = vpow2.f32 %v6021_v20  ;;  %v7179_v22 = vmul.f32 -1.702, %v12001_v29  ;;  %v12010_v60 = vadd.f32 %v5920_v21, %v11959_v49  ;;  %v5922_v43 = vpop.f32.mrb[23].mxu1 }
0x16f4   : > { %v8826_v27 = vpop.eup %8825  ;;  %v6098_v5 = vadd.f32 1.0, %v8824_v58  ;;  %8843 = vpow2.f32 %v6023_v2  ;;  %v7180_v36 = vmul.f32 -1.702, %v12006_v8  ;;  %v12014_v40 = vadd.f32 %v5922_v43, %v11976_v32 }
0x16f5   : > { %v8828_v56 = vpop.eup %8827  ;;  %8845 = vrcp.f32 %v6097_v11  ;;  %v6101_v13 = vadd.f32 1.0, %v8826_v27  ;;  %v6029_v16 = vmul.f32 1.442695, %v7179_v22  ;;  %v7183_v35 = vmul.f32 -1.702, %v12010_v60 }
0x16f6   : > { %8847 = vrcp.f32 %v6098_v5  ;;  %v6102_v26 = vadd.f32 1.0, %v8828_v56  ;;  %v6031_v3 = vmul.f32 1.442695, %v7180_v36  ;;  %v7184_v37 = vmul.f32 -1.702, %v12014_v40 }
0x16f7   : > { %v8830_v53 = vpop.eup %8829  ;;  %8849 = vrcp.f32 %v6101_v13  ;;  %v6037_v31 = vmul.f32 1.442695, %v7183_v35  ;;  %v6206_v19 = vpack.c.bf16 %v6182_v59, %v6178_v7  ;;  %v6205_v9 = vpack.c.bf16 %v6181_v39, %v6177_v0 }
0x16f8   : > { %v8832_v28 = vpop.eup %8831  ;;  %8851 = vrcp.f32 %v6102_v26  ;;  %v6039_v30 = vmul.f32 1.442695, %v7184_v37  ;;  %v5926_v18 = vpop.f32.mrb[24].mxu1  ;;  %v6185_v21 = vmul.f32 %v8830_v53, %v11939_v38 }
0x16f9   : > { %v8834_v15 = vpop.eup %8833  ;;  %8853 = vpow2.f32 %v6029_v16  ;;  %6520 = vmatprep.mubr.bf16.mxu0 %v6206_v19  ;;  %v12019_v63 = vadd.f32 %v5926_v18, %v11959_v49  ;;  %v5928_v55 = vpop.f32.mrb[25].mxu1  ;;  %v6186_v47 = vmul.f32 %v8832_v28, %v11942_v57 }
0x16fa   : > { %v8836_v44 = vpop.eup %8835  ;;  %v6189_v33 = vmul.f32 %v8834_v15, %v11946_v50  ;;  %8855 = vpow2.f32 %v6031_v3  ;;  %6521 = vmatmul.mubr.bf16.gmra.mrb[12].mxu0 %v6205_v9  ;;  %v12024_v0 = vadd.f32 %v5928_v55, %v11976_v32  ;;  %v5930_v20 = vpop.f32.mrb[26].mxu1 }
0x16fb   : > { %v8838_v46 = vpop.eup %8837  ;;  %v6190_v10 = vmul.f32 %v8836_v44, %v11951_v45  ;;  %8857 = vpow2.f32 %v6037_v31  ;;  %v7187_v7 = vmul.f32 -1.702, %v12019_v63  ;;  %v12029_v2 = vadd.f32 %v5930_v20, %v11959_v49  ;;  %v5932_v52 = vpop.f32.mrb[27].mxu1 }
0x16fc   : > { %v8840_v48 = vpop.eup %8839  ;;  %v6075_v57 = vadd.f32 1.0, %v8838_v46  ;;  %8859 = vpow2.f32 %v6039_v30  ;;  %v7188_v50 = vmul.f32 -1.702, %v12024_v0  ;;  %v12033_v39 = vadd.f32 %v5932_v52, %v11976_v32 }
0x16fd   : > { %v8842_v59 = vpop.eup %8841  ;;  %v6076_v58 = vadd.f32 1.0, %v8840_v48  ;;  %v7191_v45 = vmul.f32 -1.702, %v12029_v2  ;;  %v6210_v11 = vpack.c.bf16 %v6190_v10, %v6186_v47  ;;  %v6045_v27 = vmul.f32 1.442695, %v7187_v7 }
0x16fe   : > { %v8844_v22 = vpop.eup %8843  ;;  %8861 = vrcp.f32 %v6075_v57  ;;  %v6079_v43 = vadd.f32 1.0, %v8842_v59  ;;  %v7192_v5 = vmul.f32 -1.702, %v12033_v39  ;;  %v6047_v13 = vmul.f32 1.442695, %v7188_v50 }
0x16ff   : > { %v8846_v36 = vpop.eup %8845  ;;  %8863 = vrcp.f32 %v6076_v58  ;;  %v6080_v56 = vadd.f32 1.0, %v8844_v22  ;;  %6528 = vmatprep.mubr.bf16.mxu0 %v6210_v11  ;;  %v6209_v16 = vpack.c.bf16 %v6189_v33, %v6185_v21  ;;  %v6053_v26 = vmul.f32 1.442695, %v7191_v45 }
0x1700   : > { %v8848_v35 = vpop.eup %8847  ;;  %8865 = vrcp.f32 %v6079_v43  ;;  %v5936_v38 = vpop.f32.mrb[28].mxu1  ;;  %v6055_v37 = vmul.f32 1.442695, %v7192_v5  ;;  %v6193_v9 = vmul.f32 %v8846_v36, %v11956_v1 }
0x1701   : > { %v8850_v3 = vpop.eup %8849  ;;  %8867 = vrcp.f32 %v6080_v56  ;;  %v12039_v53 = vadd.f32 %v5936_v38, %v11959_v49  ;;  %v5938_v31 = vpop.f32.mrb[29].mxu1  ;;  %v6194_v7 = vmul.f32 %v8848_v35, %v11962_v24 }
0x1702   : > { %v8852_v19 = vpop.eup %8851  ;;  %v6197_v28 = vmul.f32 %v8850_v3, %v11967_v54  ;;  %8869 = vpow2.f32 %v6045_v27  ;;  %6529 = vmatmul.mubr.bf16.gmra.mrb[16].mxu0 %v6209_v16  ;;  %v12044_v30 = vadd.f32 %v5938_v31, %v11976_v32  ;;  %v5940_v18 = vpop.f32.mrb[30].mxu1 }
0x1703   : > { %v8854_v15 = vpop.eup %8853  ;;  %v6198_v55 = vmul.f32 %v8852_v19, %v11971_v6  ;;  %8871 = vpow2.f32 %v6047_v13  ;;  %v7195_v44 = vmul.f32 -1.702, %v12039_v53  ;;  %v12049_v47 = vadd.f32 %v5940_v18, %v11959_v49  ;;  %v5942_v33 = vpop.f32.mrb[31].mxu1 }
0x1704   : > { %v8856_v20 = vpop.eup %8855  ;;  %v6083_v1 = vadd.f32 1.0, %v8854_v15  ;;  %8873 = vpow2.f32 %v6053_v26  ;;  %v7196_v54 = vmul.f32 -1.702, %v12044_v30  ;;  %v12053_v46 = vadd.f32 %v5942_v33, %v11976_v32 }
0x1705   : > { %v8858_v10 = vpop.eup %8857  ;;  %v6084_v52 = vadd.f32 1.0, %v8856_v20  ;;  %8875 = vpow2.f32 %v6055_v37  ;;  %v7199_v6 = vmul.f32 -1.702, %v12049_v47  ;;  %v6061_v57 = vmul.f32 1.442695, %v7195_v44 }
0x1706   : > { %v8860_v48 = vpop.eup %8859  ;;  %8877 = vrcp.f32 %v6083_v1  ;;  %v6087_v49 = vadd.f32 1.0, %v8858_v10  ;;  %v7200_v50 = vmul.f32 -1.702, %v12053_v46  ;;  %v6063_v21 = vmul.f32 1.442695, %v7196_v54 }
0x1707   : > { %8879 = vrcp.f32 %v6084_v52  ;;  %v6088_v59 = vadd.f32 1.0, %v8860_v48  ;;  %v6214_v58 = vpack.c.bf16 %v6198_v55, %v6194_v7  ;;  %v6069_v32 = vmul.f32 1.442695, %v7199_v6 }
0x1708   : > { %v8862_v45 = vpop.eup %8861  ;;  %8881 = vrcp.f32 %v6087_v49  ;;  %v6213_v11 = vpack.c.bf16 %v6197_v28, %v6193_v9  ;;  %v6071_v24 = vmul.f32 1.442695, %v7200_v50 }
0x1709   : > { %v8864_v22 = vpop.eup %8863  ;;  %8883 = vrcp.f32 %v6088_v59  ;;  %6536 = vmatprep.mubr.bf16.mxu0 %v6214_v58  ;;  %v6171_v5 = vmul.f32 %v8862_v45, %v11981_v12 }
0x170a   : > { %v8866_v43 = vpop.eup %8865  ;;  %8885 = vpow2.f32 %v6061_v57  ;;  %6537 = vmatmul.mubr.bf16.gmra.mrb[20].mxu0 %v6213_v11  ;;  %v6172_v13 = vmul.f32 %v8864_v22, %v11986_v41 }
0x170b   : > { %v8868_v27 = vpop.eup %8867  ;;  %v6175_v36 = vmul.f32 %v8866_v43, %v11991_v14  ;;  %8887 = vpow2.f32 %v6063_v21 }
0x170c   : > { %v8870_v56 = vpop.eup %8869  ;;  %v6176_v16 = vmul.f32 %v8868_v27, %v11994_v62  ;;  %8889 = vpow2.f32 %v6069_v32 }
0x170d   : > { %v8872_v35 = vpop.eup %8871  ;;  %v6203_v26 = vpack.c.bf16 %v6175_v36, %v6171_v5  ;;  %v6091_v38 = vadd.f32 1.0, %v8870_v56  ;;  %8891 = vpow2.f32 %v6071_v24 }
0x170e   : > { %v8874_v3 = vpop.eup %8873  ;;  %v6092_v37 = vadd.f32 1.0, %v8872_v35  ;;  %v6204_v31 = vpack.c.bf16 %v6176_v16, %v6172_v13 }
0x170f   : > { %v8876_v19 = vpop.eup %8875  ;;  %8893 = vrcp.f32 %v6091_v38  ;;  %v6095_v9 = vadd.f32 1.0, %v8874_v3 }
0x1710   : > { %v8878_v12 = vpop.eup %8877  ;;  %8895 = vrcp.f32 %v6092_v37  ;;  %v6096_v14 = vadd.f32 1.0, %v8876_v19  ;;  %6577 = vmatprep.mubr.bf16.mxu1 %v6204_v31 }
0x1711   : > { %v8880_v28 = vpop.eup %8879  ;;  %8897 = vrcp.f32 %v6095_v9  ;;  %6578 = vmatmul.mubr.bf16.vlgmr.msra.gmra.mrb[32].mxu1 %v6203_v26  ;;  %v6179_v18 = vmul.f32 %v8878_v12, %v12001_v29 }
0x1712   : > { %v8882_v41 = vpop.eup %8881  ;;  %8899 = vrcp.f32 %v6096_v14  ;;  %v6180_v44 = vmul.f32 %v8880_v28, %v12006_v8 }
0x1713   : > { %v8884_v62 = vpop.eup %8883  ;;  %v6183_v15 = vmul.f32 %v8882_v41, %v12010_v60 }
0x1714   : > { %v8886_v55 = vpop.eup %8885  ;;  %v6184_v33 = vmul.f32 %v8884_v62, %v12014_v40 }
0x1715   : > { %v8888_v20 = vpop.eup %8887  ;;  %v6099_v1 = vadd.f32 1.0, %v8886_v55  ;;  %v6207_v54 = vpack.c.bf16 %v6183_v15, %v6179_v18  ;;  %v7201_v55 = vld [vmem:[#allocation33] ss:$0 sm:$0xff] }
0x1716   : > { %v8890_v10 = vpop.eup %8889  ;;  %v6100_v7 = vadd.f32 1.0, %v8888_v20  ;;  %v6208_v52 = vpack.c.bf16 %v6184_v33, %v6180_v44 }
0x1717   : > { %v8892_v6 = vpop.eup %8891  ;;  %8901 = vrcp.f32 %v6099_v1  ;;  %v6103_v48 = vadd.f32 1.0, %v8890_v10 }
0x1718   : > { %8903 = vrcp.f32 %v6100_v7  ;;  %v6104_v49 = vadd.f32 1.0, %v8892_v6  ;;  %6585 = vmatprep.mubr.bf16.mxu1 %v6208_v52 }
0x1719   : > { %v8894_v29 = vpop.eup %8893  ;;  %8905 = vrcp.f32 %v6103_v48  ;;  %6586 = vmatmul.mubr.bf16.gmra.mrb[36].mxu1 %v6207_v54 }
0x171a   : > { %v8896_v60 = vpop.eup %8895  ;;  %8907 = vrcp.f32 %v6104_v49  ;;  %v6187_v40 = vmul.f32 %v8894_v29, %v12019_v63 }
0x171b   : > { %v8898_v8 = vpop.eup %8897  ;;  %v6188_v59 = vmul.f32 %v8896_v60, %v12024_v0 }
0x171c   : > { %v8900_v57 = vpop.eup %8899  ;;  %v6191_v50 = vmul.f32 %v8898_v8, %v12029_v2 }
0x171d   : > { %v6192_v21 = vmul.f32 %v8900_v57, %v12033_v39 }
0x171e   : > { %v6211_v58 = vpack.c.bf16 %v6191_v50, %v6187_v40 }
0x171f   : > { %v6212_v45 = vpack.c.bf16 %v6192_v21, %v6188_v59 }
0x1721   : > { %v8902_v32 = vpop.eup %8901  ;;  %6593 = vmatprep.mubr.bf16.mxu1 %v6212_v45 }
0x1722   : > { %v8904_v11 = vpop.eup %8903  ;;  %6594 = vmatmul.mubr.bf16.gmra.mrb[40].mxu1 %v6211_v58  ;;  %v6195_v43 = vmul.f32 %v8902_v32, %v12039_v53 }
0x1723   : > { %v8906_v22 = vpop.eup %8905  ;;  %v6196_v63 = vmul.f32 %v8904_v11, %v12044_v30 }
0x1724   : > { %v8908_v24 = vpop.eup %8907  ;;  %v6199_v27 = vmul.f32 %v8906_v22, %v12049_v47 }
0x1725   : > { %v6200_v2 = vmul.f32 %v8908_v24, %v12053_v46 }
0x1726   : > { %v6215_v5 = vpack.c.bf16 %v6199_v27, %v6195_v43 }
0x1727   : > { %v6216_v0 = vpack.c.bf16 %v6200_v2, %v6196_v63 }
0x1729   : > { %6601 = vmatprep.mubr.bf16.mxu1 %v6216_v0 }
0x172a   : > { %6602 = vmatmul.mubr.bf16.gmra.mrb[44].mxu1 %v6215_v5 }
0x17c3   : > { %v7488_v39 = vpop.f32.mrb[8].mxu0 }
0x17c4   : > { %v7489_v36 = vpop.f32.mrb[9].mxu0 }
0x17c5   : > { %v7490_v56 = vadd.f32 %v7489_v36, %v7488_v39  ;;  %v7491_v13 = vpop.f32.mrb[10].mxu0 }
0x17c6   : > { %v7492_v16 = vpop.f32.mrb[11].mxu0 }
0x17c7   : > { %v7493_v35 = vadd.f32 %v7492_v16, %v7491_v13  ;;  %v6515_v20 = vadd.f32 %v7490_v56, %v7201_v55 }
0x17c9   : > { %v6518_v7 = vadd.f32 %v7493_v35, %v7201_v55 }
0x17cd   : > { %v7494_v26 = vpop.f32.mrb[12].mxu0 }
0x17ce   : > { %v7495_v38 = vpop.f32.mrb[13].mxu0 }
0x17cf   : > { %v7496_v3 = vadd.f32 %v7495_v38, %v7494_v26  ;;  %v7497_v53 = vpop.f32.mrb[14].mxu0 }
0x17d0   : > { %v7498_v37 = vpop.f32.mrb[15].mxu0 }
0x17d1   : > { %v7499_v47 = vadd.f32 %v7498_v37, %v7497_v53  ;;  %v6523_v57 = vadd.f32 %v7496_v3, %v7201_v55 }
0x17d3   : > { %v6526_v21 = vadd.f32 %v7499_v47, %v7201_v55 }
0x17d5   : > { %v7500_v31 = vpop.f32.mrb[16].mxu0 }
0x17d6   : > { %v7501_v30 = vpop.f32.mrb[17].mxu0 }
0x17d7   : > { %v7502_v19 = vadd.f32 %v7501_v30, %v7500_v31  ;;  %v7503_v46 = vpop.f32.mrb[18].mxu0 }
0x17d8   : > { %v7504_v9 = vpop.f32.mrb[19].mxu0 }
0x17d9   : > { %v7505_v12 = vadd.f32 %v7504_v9, %v7503_v46  ;;  %v6531_v24 = vadd.f32 %v7502_v19, %v7201_v55 }
0x17db   : > { %v6534_v2 = vadd.f32 %v7505_v12, %v7201_v55 }
0x17dd   : > { %v7506_v14 = vpop.f32.mrb[20].mxu0 }
0x17de   : > { %v7507_v28 = vpop.f32.mrb[21].mxu0 }
0x17df   : > { %v7508_v41 = vadd.f32 %v7507_v28, %v7506_v14  ;;  %v7509_v62 = vpop.f32.mrb[22].mxu0 }
0x17e0   : > { %v7510_v18 = vpop.f32.mrb[23].mxu0 }
0x17e1   : > { %v7511_v15 = vadd.f32 %v7510_v18, %v7509_v62  ;;  %v6539_v13 = vadd.f32 %v7508_v41, %v7201_v55 }
0x17e3   : > { %v6542_v38 = vadd.f32 %v7511_v15, %v7201_v55 }
0x17e4   : > { %v7528_v44 = vpop.f32.mrb[32].mxu1 }
0x17e5   : > { %v7529_v33 = vpop.f32.mrb[33].mxu1 }
0x17e6   : > { %v7530_v1 = vadd.f32 %v7529_v33, %v7528_v44  ;;  %v7531_v54 = vpop.f32.mrb[34].mxu1 }
0x17e7   : > { %v7532_v10 = vpop.f32.mrb[35].mxu1 }
0x17e8   : > { %v6580_v52 = vadd.f32 %v7530_v1, %v6515_v20  ;;  %v7533_v6 = vadd.f32 %v7532_v10, %v7531_v54 }
0x17ea   : > { %v6610_v48 = vadd.f32 %v6580_v52, %v11800_v61  ;;  %v6583_v49 = vadd.f32 %v7533_v6, %v6518_v7 }
0x17ec   : > { %6618 = vst [vmem:[%s10414_s25] sm:$0xff] %v6610_v48  ;;  %v6611_v29 = vadd.f32 %v6583_v49, %v11803_v17  ;;  %v7534_v60 = vpop.f32.mrb[36].mxu1 }
0x17ed   : > { %v7535_v8 = vpop.f32.mrb[37].mxu1 }
0x17ee   : > { %6619 = vst [vmem:[%s10414_s25 + $0x8] sm:$0xff] %v6611_v29  ;;  %v7536_v40 = vadd.f32 %v7535_v8, %v7534_v60  ;;  %v7537_v50 = vpop.f32.mrb[38].mxu1 }
0x17ef   : > { %v7538_v59 = vpop.f32.mrb[39].mxu1 }
0x17f0   : > { %v6588_v58 = vadd.f32 %v7536_v40, %v6523_v57  ;;  %v7539_v45 = vadd.f32 %v7538_v59, %v7537_v50 }
0x17f2   : > { %v6612_v32 = vadd.f32 %v6588_v58, %v11807_v51  ;;  %v6591_v61 = vadd.f32 %v7539_v45, %v6526_v21 }
0x17f4   : > { %6620 = vst [vmem:[%s10414_s25 + $0x10] sm:$0xff] %v6612_v32  ;;  %v6613_v11 = vadd.f32 %v6591_v61, %v11813_v25 }
0x17f5   : > { %v7540_v22 = vpop.f32.mrb[40].mxu1 }
0x17f6   : > { %6621 = vst [vmem:[%s10414_s25 + $0x18] sm:$0xff] %v6613_v11  ;;  %v7541_v17 = vpop.f32.mrb[41].mxu1 }
0x17f7   : > { %v7542_v43 = vadd.f32 %v7541_v17, %v7540_v22  ;;  %v7543_v27 = vpop.f32.mrb[42].mxu1 }
0x17f8   : > { %v7544_v63 = vpop.f32.mrb[43].mxu1 }
0x17f9   : > { %v6596_v5 = vadd.f32 %v7542_v43, %v6531_v24  ;;  %v7545_v0 = vadd.f32 %v7544_v63, %v7543_v27 }
0x17fb   : > { %v6614_v39 = vadd.f32 %v6596_v5, %v11815_v42  ;;  %v6599_v51 = vadd.f32 %v7545_v0, %v6534_v2 }
0x17fd   : > { %6622 = vst [vmem:[%s10414_s25 + $0x20] sm:$0xff] %v6614_v39  ;;  %v6615_v36 = vadd.f32 %v6599_v51, %v11822_v34  ;;  %v7546_v25 = vpop.f32.mrb[44].mxu1 }
0x17fe   : > { %v7547_v56 = vpop.f32.mrb[45].mxu1 }
0x17ff   : > { %6623 = vst [vmem:[%s10414_s25 + $0x28] sm:$0xff] %v6615_v36  ;;  %v7548_v16 = vadd.f32 %v7547_v56, %v7546_v25  ;;  %v7549_v35 = vpop.f32.mrb[46].mxu1 }
0x1800   : > { %v7550_v26 = vpop.f32.mrb[47].mxu1 }
0x1801   : > { %v6604_v3 = vadd.f32 %v7548_v16, %v6539_v13  ;;  %v7551_v53 = vadd.f32 %v7550_v26, %v7549_v35 }
0x1803   : > { %v6616_v37 = vadd.f32 %v6604_v3, %v11820_v23  ;;  %v6607_v47 = vadd.f32 %v7551_v53, %v6542_v38 }
0x1805   : > { %6624 = vst [vmem:[%s10414_s25 + $0x30] sm:$0xff] %v6616_v37  ;;  %v6617_v42 = vadd.f32 %v6607_v47, %v11826_v4 }
0x1807   : > { %6625 = vst [vmem:[%s10414_s25 + $0x38] sm:$0xff] %v6617_v42 }
0x1808 PF: > { %s12497_s14 = sld [smem:[#allocation55_spill]]  ;;  %s12498_s0 = sld [smem:[#allocation56_spill]] }
0x1809   : > { %s6642_s21 = sshll.u32 %s10414_s25, 4  ;;  %s12499_s27 = sld [smem:[#allocation130_spill]]  ;;  %s12093_s21 = int_to_ptr.vmem [resolvable:$true] %s6642_s21 }
0x180a   : > { %s6627_s16 = scalar_lea.sflag [#allocation8], %s10360_s6  ;;  %s9417_s10 = scalar_lea.vmem %s12093_s21, 1024 }
0x180b   : > { %p9418_p7 = scmp.ne.s32.totalorder %s12093_s21, %s9417_s10  ;;  %p12501_p11 = scmp.ne.s32.totalorder %s12323_s29, 0 }
0x180c   : > { %s9626_s4 = smov [#allocation35]  }
0x180d   : > { %p9419_p13 = pnand %p9418_p7, %p12501_p11  ;;  %s9421_s26 = sshll.u32 %s9626_s4, 4  ;;  %s9422_s26 = int_to_ptr.vmem [resolvable:$false] %s9421_s26 }
0x180e   : > { %s7235_s30 = sshll.u32 %s12497_s14, 3  ;;  %s7236_s28 = sshll.u32 %s12498_s0, 4 }
0x180f   : > { %s6639_s20 = sadd.s32 %s7236_s28, %s7235_s30  ;;  %s12500_s9 = smov %s12499_s27 }
0x1810   : > { %s7237_s2 = sshll.u32 %s6639_s20, 7  ;;  %p9420_p5 = pneg %p9419_p13 }
0x1811   : > { %s12098_s3 = scalar_lea.hbm %s12499_s27, %s7237_s2  ;;  %s9423_s8 = scalar_lea.vmem %s9422_s26, 2048 }
0x1812   : > { %p9424_p0 = scmp.lt.s32.totalorder %s12093_s21, %s9422_s26  ;;  %p9425_p4 = scmp.lt.s32.totalorder %s9423_s8, %s9417_s10 }
0x1814   : > { %p9426_p1 = por %p9425_p4, %p9424_p0 }
0x1816   : > { %p9427_p12 = pnand %p9426_p1, %p9420_p5 }
0x1818   : > { %9430 = shalt.err (!%p9427_p12)
}
0x1819   : > { %s9431_s12 = scalar_lea.hbm %s12098_s3, 1024  ;;  %s9435_s13 = scalar_lea.hbm %s12500_s9, 4096 }
0x181a   : > { %p9432_p9 = scmp.ne.s32.totalorder %s12098_s3, %s9431_s12  ;;  %p9436_p6 = scmp.lt.u32.totalorder %s12098_s3, %s12500_s9 }
0x181b   : > { %p9437_p8 = scmp.lt.u32.totalorder %s9435_s13, %s9431_s12  ;;  %p9439_p7 = scmp.lt.u32.totalorder %s9431_s12, %s12098_s3 }
0x181c   : > { %p9433_p2 = pnand %p9432_p9, %p12501_p11 }
0x181d   : > { %p9438_p3 = por %p9437_p8, %p9436_p6 }
0x181e   : > { %p9434_p10 = pneg %p9433_p2 }
0x181f   : > { %p9440_p13 = por %p9439_p7, %p9438_p3 }
0x1821   : > { %p9441_p5 = pnand %p9440_p13, %p9434_p10 }
0x1823   : > { %9444 = shalt.err (!%p9441_p5)
}
0x1824   : > { %s9627_s30 = smov 128   ;;  %s9628_s28 = smov 8  }
0x1825   : > { %8124 = dma.vmem_to_hbm [thread:$0]  (%p12501_p11), %s12093_s21, 1024, %s12098_s3, %s6627_s16, %s9627_s30, %s9627_s30, %s9628_s28  }
0x1826 PF: > { %s12502_s20 = sld [smem:[#allocation51_spill]]  ;;  %p8219_p0 = scmp.ge.s32.totalorder %s9595_s24, 2 }
0x1827   : > { %p12503_p4 = scmp.ne.s32.totalorder %s12325_s18, 0 }
0x1829   : > { %p8183_p1 = pnand %p8219_p0, %p12503_p4 }
0x182c   : > { %s6657_s2 = sand.u32 1, %s12502_s20  }
0x182d   : > { %s6658_s11 = scalar_lea.sflag [#allocation8], %s6657_s2 }
0x182e   : > { %9542 = dma.done.wait (!%p8183_p1), %s6658_s11, 1024  }
0x182f   : > { %9544 = vsyncadd (!%p8183_p1), %s6658_s11, 4294966272  ;;  %s45_s24 = sadd.s32 1, %s9595_s24   ;;  %s12505_s27 = sld [smem:[#allocation49_spill]] }
0x1830   : > { %p12129_p12 = scmp.ge.s32.totalorder %s45_s24, 10   ;;  %s12506_s28 = sld [smem:[#allocation50_spill]] }
0x1831   : > { %s12507_s30 = sld [smem:[#allocation52_spill]]  ;;  %s12508_s0 = sld [smem:[#allocation53_spill]] }
0x1832   : > { %s12509_s20 = sld [smem:[#allocation57_spill]]  ;;  %s12510_s21 = sld [smem:[#allocation58_spill]] }
0x1833   : > { %s12511_s18 = smov %s12520_s19  ;;  %s12512_s6 = sld [smem:[#allocation61_spill]] }
0x1834   : > { %s12513_s29 = smov %s10302_s17  ;;  %s12514_s19 = smov %s12530_s5 }
0x1835   : > { %s12515_s1 = smov %s9583_s22  ;;  %s12516_s22 = smov %s12511_s18 }
0x1836   : > { %s12517_s2 = smov %s12524_s23  ;;  %44 = sbr.rel (!%p12129_p12) target bundleno = 40 (0x28), region = 258 }
0x1839   : > { %s12518_s23 = smov %s12512_s6 }
0x183d   :  { %6663 = vsyncpa [#allocation7], 1 }
0x183e   :  { %6665 = vsyncpa [#allocation7 + $0x1], 1 }
0x183f   :  { %6666 = vsyncpa [#allocation10], 1 }
0x1840   :  { %6668 = vsyncpa [#allocation10 + $0x1], 1 }
0x1841   :  { %6669 = vsyncpa [#allocation13], 1 }
0x1842   :  { %6670 = vsyncpa [#allocation16], 1 }
0x1843   :  { %6671 = vsyncpa [#allocation19], 1 }
0x1844   :  { %6672 = vsyncpa [#allocation22], 1 }
0x1845   :  { %6673 = vsyncpa [#allocation25], 1 }
0x1846   :  { %6674 = vsyncpa [#allocation28], 1 }
0x1847   :  { %6675 = vsyncpa [#allocation31], 1 }
0x1848   :  { %6676 = vsyncpa [#allocation34], 1 }
0x1849   :  { %6677 = vsyncpa [#allocation8], 1 }
0x184a   :  { %6679 = vsyncpa [#allocation8 + $0x1], 1 }

</bundles_post_ra>
